<compile_context>
chip_gen: v6e
topology: v6e:2x2x1
jax: 0.10.0
libtpu: 0.0.40
codegen_flags: <defaults>
</compile_context>

<pallas_src>
import functools

import jax
import jax.numpy as jnp
from jax.experimental import pallas as pl
from jax.experimental.pallas import tpu as pltpu


# ============================================================================
# Kernel A: [conv1 -> relu -> conv2 -> relu -> conv3 -> relu -> AvgPool(29)
#            -> dense1 -> relu]  (prologue, per N-tile under pl.when(k==0))
#           fused with  dense2 (int8 weights, streamed) -> relu, bf16 out.
# Grid: (N_tiles "parallel", K_tiles "arbitrary").
# ============================================================================
def _stage_a_kernel(x_ref, p_ref,
                    w1_ref, b1_ref, w2_ref, b2_ref, w3_ref, b3_ref,
                    wd1_ref, bd1_ref,
                    w2q_ref, s2_ref, bd2_ref,
                    o_ref,
                    x1_ref, acc_ref, *, tk):
    k = pl.program_id(1)

    @pl.when(k == 0)
    def _():
        # --- tiny conv/pool/dense1 prologue: hidden under dense2 weight DMA.
        h = jnp.dot(x_ref[...], w1_ref[...],
                    preferred_element_type=jnp.float32)
        h = jnp.maximum(h + b1_ref[...], 0.0)                   # (B*N, 512)
        h = jnp.dot(h.astype(jnp.bfloat16), w2_ref[...],
                    preferred_element_type=jnp.float32)
        h = jnp.maximum(h + b2_ref[...], 0.0)                   # (B*N, 256)
        h = jnp.dot(h.astype(jnp.bfloat16), w3_ref[...],
                    preferred_element_type=jnp.float32)
        h = jnp.maximum(h + b3_ref[...], 0.0)                   # (B*N, 128)
        # AvgPool1d(29) as a (B, B*N) @ (B*N, 128) matmul (no reshapes).
        pooled = jnp.dot(p_ref[...], h,
                         preferred_element_type=jnp.float32)    # (B, 128)
        h = jnp.dot(pooled.astype(jnp.bfloat16), wd1_ref[...],
                    preferred_element_type=jnp.float32)
        x1_ref[...] = jnp.maximum(h + bd1_ref[...], 0.0).astype(jnp.bfloat16)
        acc_ref[...] = jnp.zeros_like(acc_ref)

    # --- dense2 partial product for this K tile (int8 -> bf16 is exact). ----
    off = pl.multiple_of(k * tk, tk)
    xk = x1_ref[:, pl.ds(off, tk)]                               # (B, tk) bf16
    acc_ref[...] += jnp.dot(xk, w2q_ref[...].astype(jnp.bfloat16),
                            preferred_element_type=jnp.float32)

    @pl.when(k == pl.num_programs(1) - 1)
    def _():
        # Per-output-channel dequant scale + bias + relu, emit bf16 directly.
        y = acc_ref[...] * s2_ref[...] + bd2_ref[...]
        o_ref[...] = jnp.maximum(y, 0.0).astype(o_ref.dtype)


def stage_a(x_bf16, pool_mat, params, *, tk=512, tn=2048):
    B = pool_mat.shape[0]
    w1, b1 = params["conv1"]
    w2, b2 = params["conv2"]
    w3, b3 = params["conv3"]
    wd1, bd1 = params["dense1"]
    w2q, s2, bd2 = params["dense2"]
    K, N = w2q.shape
    assert K % tk == 0 and N % tn == 0

    cidx = lambda j, k: (0, 0)   # whole-array residents: DMA'd once

    return pl.pallas_call(
        functools.partial(_stage_a_kernel, tk=tk),
        out_shape=jax.ShapeDtypeStruct((B, N), jnp.bfloat16),
        grid_spec=pltpu.PrefetchScalarGridSpec(
            num_scalar_prefetch=0,
            grid=(N // tn, K // tk),
            in_specs=[
                pl.BlockSpec(x_bf16.shape, cidx),
                pl.BlockSpec(pool_mat.shape, cidx),
                pl.BlockSpec(w1.shape, cidx),
                pl.BlockSpec(b1.shape, cidx),
                pl.BlockSpec(w2.shape, cidx),
                pl.BlockSpec(b2.shape, cidx),
                pl.BlockSpec(w3.shape, cidx),
                pl.BlockSpec(b3.shape, cidx),
                pl.BlockSpec(wd1.shape, cidx),
                pl.BlockSpec(bd1.shape, cidx),
                pl.BlockSpec((tk, tn), lambda j, k: (k, j)),   # int8 weights
                pl.BlockSpec((1, tn), lambda j, k: (0, j)),    # dequant scale
                pl.BlockSpec((1, tn), lambda j, k: (0, j)),    # bias
            ],
            out_specs=pl.BlockSpec((B, tn), lambda j, k: (0, j)),
            scratch_shapes=[
                pltpu.VMEM((B, K), jnp.bfloat16),   # dense1 activation
                pltpu.VMEM((B, tn), jnp.float32),   # dense2 f32 accumulator
            ],
        ),
        compiler_params=pltpu.CompilerParams(
            dimension_semantics=("parallel", "arbitrary"),
        ),
    )(x_bf16, pool_mat, w1, b1, w2, b2, w3, b3, wd1, bd1, w2q, s2, bd2)


# ============================================================================
# Kernel B: dense3 (int8 weights, K-streamed) -> relu -> dense4 -> relu
#           -> dense5, head folded into the last-K epilogue.
# Grid: (K_tiles "arbitrary",).
# ============================================================================
def _stage_b_kernel(h2_ref, w3q_ref, s3_ref, b3_ref,
                    w4_ref, b4_ref, w5t_ref, b5_ref,
                    o_ref, acc_ref, *, tk):
    k = pl.program_id(0)

    @pl.when(k == 0)
    def _():
        acc_ref[...] = jnp.zeros_like(acc_ref)

    off = pl.multiple_of(k * tk, tk)
    xk = h2_ref[:, pl.ds(off, tk)]                               # (B, tk) bf16
    acc_ref[...] += jnp.dot(xk, w3q_ref[...].astype(jnp.bfloat16),
                            preferred_element_type=jnp.float32)

    @pl.when(k == pl.num_programs(0) - 1)
    def _():
        # dense3 epilogue (dequant + bias + relu) then the dense4/dense5 head.
        h3 = jnp.maximum(acc_ref[...] * s3_ref[...] + b3_ref[...], 0.0)
        h4 = jnp.dot(h3.astype(jnp.bfloat16), w4_ref[...],
                     preferred_element_type=jnp.float32)
        h4 = jnp.maximum(h4 + b4_ref[...], 0.0)                  # (B, 256) f32
        o_ref[...] = (jnp.sum(h4 * w5t_ref[...], axis=-1, keepdims=True)
                      + b5_ref[...])                             # (B, 1) f32


def stage_b(h2_bf16, params, *, tk=1024):
    B = h2_bf16.shape[0]
    w3q, s3, b3 = params["dense3"]
    w4, b4 = params["dense4"]
    w5t, b5 = params["dense5"]
    K, N = w3q.shape
    assert K % tk == 0

    cidx = lambda k: (0, 0)

    return pl.pallas_call(
        functools.partial(_stage_b_kernel, tk=tk),
        out_shape=jax.ShapeDtypeStruct((B, 1), jnp.float32),
        grid_spec=pltpu.PrefetchScalarGridSpec(
            num_scalar_prefetch=0,
            grid=(K // tk,),
            in_specs=[
                pl.BlockSpec(h2_bf16.shape, cidx),              # activation, resident
                pl.BlockSpec((tk, N), lambda k: (k, 0)),        # int8 weights, streamed
                pl.BlockSpec(s3.shape, cidx),
                pl.BlockSpec(b3.shape, cidx),
                pl.BlockSpec(w4.shape, cidx),                   # head weights, resident
                pl.BlockSpec(b4.shape, cidx),
                pl.BlockSpec(w5t.shape, cidx),
                pl.BlockSpec(b5.shape, cidx),
            ],
            out_specs=pl.BlockSpec((B, 1), cidx),
            scratch_shapes=[pltpu.VMEM((B, N), jnp.float32)],   # dense3 accumulator
        ),
        compiler_params=pltpu.CompilerParams(
            dimension_semantics=("arbitrary",),
        ),
    )(h2_bf16, w3q, s3, b3, w4, b4, w5t, b5)


# ============================================================================
# Parameter init (PyTorch-style uniform(+-1/sqrt(fan_in))).
#  * conv/dense1/dense4 weights: bf16 (fan_in, fan_out); biases (1, fo) f32.
#  * conv1 weight zero-padded 9 -> 16 on the input-channel axis.
#  * dense2/dense3: per-output-channel symmetric int8 + f32 scale + f32 bias.
#  * dense5: f32, stored transposed as (1, 256).
# ============================================================================
def _init_layer(key, fan_in, fan_out):
    kw, kb = jax.random.split(key)
    bound = 1.0 / (fan_in ** 0.5)
    w = jax.random.uniform(kw, (fan_in, fan_out), jnp.float32, -bound, bound)
    b = jax.random.uniform(kb, (fan_out,), jnp.float32, -bound, bound)
    return w, b


def _quantize_int8_per_col(w):
    amax = jnp.max(jnp.abs(w), axis=0, keepdims=True)            # (1, N)
    scale = jnp.maximum(amax, 1e-12) / 127.0
    q = jnp.clip(jnp.round(w / scale), -127.0, 127.0).astype(jnp.int8)
    return q, scale.astype(jnp.float32)


def init_params(key):
    names_dims = [
        ("conv1", 9, 512),
        ("conv2", 512, 256),
        ("conv3", 256, 128),
        ("dense1", 128, 1024),
        ("dense2", 1024, 4096),
        ("dense3", 4096, 2048),
        ("dense4", 2048, 256),
        ("dense5", 256, 1),
    ]
    keys = jax.random.split(key, len(names_dims))
    params = {}
    for k, (name, fi, fo) in zip(keys, names_dims):
        w, b = _init_layer(k, fi, fo)
        b = b.reshape(1, fo)
        if name == "conv1":
            w = jnp.pad(w, ((0, 16 - fi), (0, 0)))               # Cin 9 -> 16
            params[name] = (w.astype(jnp.bfloat16), b)
        elif name in ("dense2", "dense3"):
            q, s = _quantize_int8_per_col(w)
            params[name] = (q, s, b)
        elif name == "dense5":
            params[name] = (w.T, b)                               # (1, 256), (1, 1)
        else:
            params[name] = (w.astype(jnp.bfloat16), b)
    return params


# ============================================================================
# Forward pass (matches PointCNN.forward semantics).
# ============================================================================
def pointcnn_forward(x, params):
    B, N, Cin = x.shape            # (B, 29, 9): points x per-point features
    assert Cin == 9 and N == 29    # AvgPool1d(29) -> pooled length 1

    # 1x1 convs == per-point matmuls: flatten points, pad channels 9 -> 16.
    xf = x.reshape(B * N, Cin)
    xf = jnp.pad(xf, ((0, 0), (0, 16 - Cin))).astype(jnp.bfloat16)
    # Block-averaging matrix implementing AvgPool1d(29) over each cloud.
    pool_mat = jnp.repeat(jnp.eye(B, dtype=jnp.float32), N, axis=1) / N

    h2 = stage_a(xf, pool_mat, params)     # (B, 4096) bf16, post-ReLU dense2
    out = stage_b(h2, params)              # (B, 1) f32
    return out.reshape(B)                  # final view(B)


if __name__ == "__main__":
    key = jax.random.PRNGKey(0)
    k_params, k_x = jax.random.split(key)

    params = init_params(k_params)
    # Input: batch=2, 29 points per cloud, 9 features per point.
    x = jax.random.normal(k_x, (2, 29, 9), dtype=jnp.float32)

    fwd = jax.jit(pointcnn_forward)
    out = jax.block_until_ready(fwd(x, params))
    assert out.shape == (2,), out.shape
    assert bool(jnp.all(jnp.isfinite(out)))
    print("KERNEL_OK")
</pallas_src>

<mosaic_0001>
module attributes {stable_mosaic.version = 11 : i64} {
  func.func @_stage_a_kernel(%arg0: i32, %arg1: i32, %arg2: memref<58x16xbf16, #tpu.memory_space<vmem>>, %arg3: memref<2x58xf32, #tpu.memory_space<vmem>>, %arg4: memref<16x512xbf16, #tpu.memory_space<vmem>>, %arg5: memref<1x512xf32, #tpu.memory_space<vmem>>, %arg6: memref<512x256xbf16, #tpu.memory_space<vmem>>, %arg7: memref<1x256xf32, #tpu.memory_space<vmem>>, %arg8: memref<256x128xbf16, #tpu.memory_space<vmem>>, %arg9: memref<1x128xf32, #tpu.memory_space<vmem>>, %arg10: memref<128x1024xbf16, #tpu.memory_space<vmem>>, %arg11: memref<1x1024xf32, #tpu.memory_space<vmem>>, %arg12: memref<512x2048xi8, #tpu.memory_space<vmem>>, %arg13: memref<1x2048xf32, #tpu.memory_space<vmem>>, %arg14: memref<1x2048xf32, #tpu.memory_space<vmem>>, %arg15: memref<2x2048xbf16, #tpu.memory_space<vmem>>, %arg16: memref<2x1024xbf16, #tpu.memory_space<vmem>>, %arg17: memref<2x2048xf32, #tpu.memory_space<vmem>>) attributes {dimension_semantics = [#tpu.dimension_semantics<parallel>, #tpu.dimension_semantics<arbitrary>], iteration_bounds = array<i64: 2, 2>, scalar_prefetch = 0 : i64, scratch_operands = 2 : i64, tpu.core_type = #tpu.core_type<tc>, window_params = [{pipeline_mode = #tpu.pipeline_mode<synchronous>, transform_indices = @transform_0, window_bounds = array<i64: 58, 16>}, {pipeline_mode = #tpu.pipeline_mode<synchronous>, transform_indices = @transform_1, window_bounds = array<i64: 2, 58>}, {pipeline_mode = #tpu.pipeline_mode<synchronous>, transform_indices = @transform_2, window_bounds = array<i64: 16, 512>}, {pipeline_mode = #tpu.pipeline_mode<synchronous>, transform_indices = @transform_3, window_bounds = array<i64: 1, 512>}, {pipeline_mode = #tpu.pipeline_mode<synchronous>, transform_indices = @transform_4, window_bounds = array<i64: 512, 256>}, {pipeline_mode = #tpu.pipeline_mode<synchronous>, transform_indices = @transform_5, window_bounds = array<i64: 1, 256>}, {pipeline_mode = #tpu.pipeline_mode<synchronous>, transform_indices = @transform_6, window_bounds = array<i64: 256, 128>}, {pipeline_mode = #tpu.pipeline_mode<synchronous>, transform_indices = @transform_7, window_bounds = array<i64: 1, 128>}, {pipeline_mode = #tpu.pipeline_mode<synchronous>, transform_indices = @transform_8, window_bounds = array<i64: 128, 1024>}, {pipeline_mode = #tpu.pipeline_mode<synchronous>, transform_indices = @transform_9, window_bounds = array<i64: 1, 1024>}, {transform_indices = @transform_10, window_bounds = array<i64: 512, 2048>}, {transform_indices = @transform_11, window_bounds = array<i64: 1, 2048>}, {transform_indices = @transform_12, window_bounds = array<i64: 1, 2048>}, {transform_indices = @transform_13, window_bounds = array<i64: 2, 2048>}]} {
    %c0_i32 = arith.constant 0 : i32
    %0 = arith.cmpi eq, %arg1, %c0_i32 : i32
    %1 = arith.extui %0 : i1 to i32
    %c0_i32_0 = arith.constant 0 : i32
    %2 = arith.cmpi ne, %1, %c0_i32_0 : i32
    scf.if %2 {
      %c0_8 = arith.constant 0 : index
      %c0_9 = arith.constant 0 : index
      %16 = vector.load %arg2[%c0_8, %c0_9] : memref<58x16xbf16, #tpu.memory_space<vmem>>, vector<58x16xbf16>
      %c0_10 = arith.constant 0 : index
      %c0_11 = arith.constant 0 : index
      %17 = vector.load %arg4[%c0_10, %c0_11] : memref<16x512xbf16, #tpu.memory_space<vmem>>, vector<16x512xbf16>
      %cst_12 = arith.constant dense<0.000000e+00> : vector<58x512xf32>
      %18 = tpu.matmul %16, %17, %cst_12 {dimension_numbers = #tpu.dot_dimension_numbers<[1], [0], [0], [1], [0, 0, 1, 1], [], []>} : vector<58x16xbf16>, vector<16x512xbf16>, vector<58x512xf32> -> vector<58x512xf32>
      %c0_13 = arith.constant 0 : index
      %c0_14 = arith.constant 0 : index
      %19 = vector.load %arg5[%c0_13, %c0_14] : memref<1x512xf32, #tpu.memory_space<vmem>>, vector<1x512xf32>
      %20 = vector.broadcast %19 : vector<1x512xf32> to vector<58x512xf32>
      %21 = arith.addf %18, %20 : vector<58x512xf32>
      %cst_15 = arith.constant 0.000000e+00 : f32
      %22 = vector.broadcast %cst_15 : f32 to vector<58x512xf32>
      %23 = arith.maximumf %21, %22 : vector<58x512xf32>
      %24 = arith.truncf %23 : vector<58x512xf32> to vector<58x512xbf16>
      %c0_16 = arith.constant 0 : index
      %c0_17 = arith.constant 0 : index
      %25 = vector.load %arg6[%c0_16, %c0_17] : memref<512x256xbf16, #tpu.memory_space<vmem>>, vector<512x256xbf16>
      %cst_18 = arith.constant dense<0.000000e+00> : vector<58x256xf32>
      %26 = tpu.matmul %24, %25, %cst_18 {dimension_numbers = #tpu.dot_dimension_numbers<[1], [0], [0], [1], [0, 0, 1, 1], [], []>} : vector<58x512xbf16>, vector<512x256xbf16>, vector<58x256xf32> -> vector<58x256xf32>
      %c0_19 = arith.constant 0 : index
      %c0_20 = arith.constant 0 : index
      %27 = vector.load %arg7[%c0_19, %c0_20] : memref<1x256xf32, #tpu.memory_space<vmem>>, vector<1x256xf32>
      %28 = vector.broadcast %27 : vector<1x256xf32> to vector<58x256xf32>
      %29 = arith.addf %26, %28 : vector<58x256xf32>
      %cst_21 = arith.constant 0.000000e+00 : f32
      %30 = vector.broadcast %cst_21 : f32 to vector<58x256xf32>
      %31 = arith.maximumf %29, %30 : vector<58x256xf32>
      %32 = arith.truncf %31 : vector<58x256xf32> to vector<58x256xbf16>
      %c0_22 = arith.constant 0 : index
      %c0_23 = arith.constant 0 : index
      %33 = vector.load %arg8[%c0_22, %c0_23] : memref<256x128xbf16, #tpu.memory_space<vmem>>, vector<256x128xbf16>
      %cst_24 = arith.constant dense<0.000000e+00> : vector<58x128xf32>
      %34 = tpu.matmul %32, %33, %cst_24 {dimension_numbers = #tpu.dot_dimension_numbers<[1], [0], [0], [1], [0, 0, 1, 1], [], []>} : vector<58x256xbf16>, vector<256x128xbf16>, vector<58x128xf32> -> vector<58x128xf32>
      %c0_25 = arith.constant 0 : index
      %c0_26 = arith.constant 0 : index
      %35 = vector.load %arg9[%c0_25, %c0_26] : memref<1x128xf32, #tpu.memory_space<vmem>>, vector<1x128xf32>
      %36 = vector.broadcast %35 : vector<1x128xf32> to vector<58x128xf32>
      %37 = arith.addf %34, %36 : vector<58x128xf32>
      %cst_27 = arith.constant 0.000000e+00 : f32
      %38 = vector.broadcast %cst_27 : f32 to vector<58x128xf32>
      %39 = arith.maximumf %37, %38 : vector<58x128xf32>
      %c0_28 = arith.constant 0 : index
      %c0_29 = arith.constant 0 : index
      %40 = vector.load %arg3[%c0_28, %c0_29] : memref<2x58xf32, #tpu.memory_space<vmem>>, vector<2x58xf32>
      %cst_30 = arith.constant dense<0.000000e+00> : vector<2x128xf32>
      %41 = tpu.matmul %40, %39, %cst_30 {dimension_numbers = #tpu.dot_dimension_numbers<[1], [0], [0], [1], [0, 0, 1, 1], [], []>} : vector<2x58xf32>, vector<58x128xf32>, vector<2x128xf32> -> vector<2x128xf32>
      %42 = arith.truncf %41 : vector<2x128xf32> to vector<2x128xbf16>
      %c0_31 = arith.constant 0 : index
      %c0_32 = arith.constant 0 : index
      %43 = vector.load %arg10[%c0_31, %c0_32] : memref<128x1024xbf16, #tpu.memory_space<vmem>>, vector<128x1024xbf16>
      %cst_33 = arith.constant dense<0.000000e+00> : vector<2x1024xf32>
      %44 = tpu.matmul %42, %43, %cst_33 {dimension_numbers = #tpu.dot_dimension_numbers<[1], [0], [0], [1], [0, 0, 1, 1], [], []>} : vector<2x128xbf16>, vector<128x1024xbf16>, vector<2x1024xf32> -> vector<2x1024xf32>
      %c0_34 = arith.constant 0 : index
      %c0_35 = arith.constant 0 : index
      %45 = vector.load %arg11[%c0_34, %c0_35] : memref<1x1024xf32, #tpu.memory_space<vmem>>, vector<1x1024xf32>
      %46 = vector.broadcast %45 : vector<1x1024xf32> to vector<2x1024xf32>
      %47 = arith.addf %44, %46 : vector<2x1024xf32>
      %cst_36 = arith.constant 0.000000e+00 : f32
      %48 = vector.broadcast %cst_36 : f32 to vector<2x1024xf32>
      %49 = arith.maximumf %47, %48 : vector<2x1024xf32>
      %50 = arith.truncf %49 : vector<2x1024xf32> to vector<2x1024xbf16>
      %c0_37 = arith.constant 0 : index
      %c0_38 = arith.constant 0 : index
      %51 = vector.load %arg16[%c0_37, %c0_38] : memref<2x1024xbf16, #tpu.memory_space<vmem>>, vector<2x1024xbf16>
      tpu.vector_store %arg16[%c0_37, %c0_38], %50 {strides = array<i32>} : memref<2x1024xbf16, #tpu.memory_space<vmem>>, vector<2x1024xbf16>,
      %cst_39 = arith.constant 0.000000e+00 : f32
      %52 = vector.broadcast %cst_39 : f32 to vector<2x2048xf32>
      %c0_40 = arith.constant 0 : index
      %c0_41 = arith.constant 0 : index
      %53 = vector.load %arg17[%c0_40, %c0_41] : memref<2x2048xf32, #tpu.memory_space<vmem>>, vector<2x2048xf32>
      tpu.vector_store %arg17[%c0_40, %c0_41], %52 {strides = array<i32>} : memref<2x2048xf32, #tpu.memory_space<vmem>>, vector<2x2048xf32>,
    } else {
    }
    %c512_i32 = arith.constant 512 : i32
    %3 = arith.muli %arg1, %c512_i32 : i32
    %4 = tpu.assume_multiple %3, 512 : i32
    %c0 = arith.constant 0 : index
    %5 = arith.index_cast %4 : i32 to index
    %6 = vector.load %arg16[%c0, %5] : memref<2x1024xbf16, #tpu.memory_space<vmem>>, vector<2x512xbf16>
    %c0_1 = arith.constant 0 : index
    %c0_2 = arith.constant 0 : index
    %7 = vector.load %arg17[%c0_1, %c0_2] : memref<2x2048xf32, #tpu.memory_space<vmem>>, vector<2x2048xf32>
    %c0_3 = arith.constant 0 : index
    %c0_4 = arith.constant 0 : index
    %8 = vector.load %arg12[%c0_3, %c0_4] : memref<512x2048xi8, #tpu.memory_space<vmem>>, vector<512x2048xi8>
    %9 = arith.sitofp %8 : vector<512x2048xi8> to vector<512x2048xbf16>
    %cst = arith.constant dense<0.000000e+00> : vector<2x2048xf32>
    %10 = tpu.matmul %6, %9, %cst {dimension_numbers = #tpu.dot_dimension_numbers<[1], [0], [0], [1], [0, 0, 1, 1], [], []>} : vector<2x512xbf16>, vector<512x2048xbf16>, vector<2x2048xf32> -> vector<2x2048xf32>
    %11 = arith.addf %7, %10 : vector<2x2048xf32>
    %c0_5 = arith.constant 0 : index
    %c0_6 = arith.constant 0 : index
    %12 = vector.load %arg17[%c0_5, %c0_6] : memref<2x2048xf32, #tpu.memory_space<vmem>>, vector<2x2048xf32>
    tpu.vector_store %arg17[%c0_5, %c0_6], %11 {strides = array<i32>} : memref<2x2048xf32, #tpu.memory_space<vmem>>, vector<2x2048xf32>,
    %c1_i32 = arith.constant 1 : i32
    %13 = arith.cmpi eq, %arg1, %c1_i32 : i32
    %14 = arith.extui %13 : i1 to i32
    %c0_i32_7 = arith.constant 0 : i32
    %15 = arith.cmpi ne, %14, %c0_i32_7 : i32
    scf.if %15 {
      %c0_8 = arith.constant 0 : index
      %c0_9 = arith.constant 0 : index
      %16 = vector.load %arg17[%c0_8, %c0_9] : memref<2x2048xf32, #tpu.memory_space<vmem>>, vector<2x2048xf32>
      %c0_10 = arith.constant 0 : index
      %c0_11 = arith.constant 0 : index
      %17 = vector.load %arg13[%c0_10, %c0_11] : memref<1x2048xf32, #tpu.memory_space<vmem>>, vector<1x2048xf32>
      %18 = vector.broadcast %17 : vector<1x2048xf32> to vector<2x2048xf32>
      %19 = arith.mulf %16, %18 : vector<2x2048xf32>
      %c0_12 = arith.constant 0 : index
      %c0_13 = arith.constant 0 : index
      %20 = vector.load %arg14[%c0_12, %c0_13] : memref<1x2048xf32, #tpu.memory_space<vmem>>, vector<1x2048xf32>
      %21 = vector.broadcast %20 : vector<1x2048xf32> to vector<2x2048xf32>
      %22 = arith.addf %19, %21 : vector<2x2048xf32>
      %cst_14 = arith.constant 0.000000e+00 : f32
      %23 = vector.broadcast %cst_14 : f32 to vector<2x2048xf32>
      %24 = arith.maximumf %22, %23 : vector<2x2048xf32>
      %25 = arith.truncf %24 : vector<2x2048xf32> to vector<2x2048xbf16>
      %c0_15 = arith.constant 0 : index
      %c0_16 = arith.constant 0 : index
      %26 = vector.load %arg15[%c0_15, %c0_16] : memref<2x2048xbf16, #tpu.memory_space<vmem>>, vector<2x2048xbf16>
      tpu.vector_store %arg15[%c0_15, %c0_16], %25 {strides = array<i32>} : memref<2x2048xbf16, #tpu.memory_space<vmem>>, vector<2x2048xbf16>,
    } else {
    }
    return
  }
  func.func @transform_0(%arg0: i32, %arg1: i32) -> (i32, i32) {
    %c0_i32 = arith.constant 0 : i32
    %c0_i32_0 = arith.constant 0 : i32
    %c0_i32_1 = arith.constant 0 : i32
    return %c0_i32, %c0_i32_0 : i32, i32
  }
  func.func @transform_1(%arg0: i32, %arg1: i32) -> (i32, i32) {
    %c0_i32 = arith.constant 0 : i32
    %c0_i32_0 = arith.constant 0 : i32
    %c0_i32_1 = arith.constant 0 : i32
    return %c0_i32, %c0_i32_0 : i32, i32
  }
  func.func @transform_2(%arg0: i32, %arg1: i32) -> (i32, i32) {
    %c0_i32 = arith.constant 0 : i32
    %c0_i32_0 = arith.constant 0 : i32
    %c0_i32_1 = arith.constant 0 : i32
    return %c0_i32, %c0_i32_0 : i32, i32
  }
  func.func @transform_3(%arg0: i32, %arg1: i32) -> (i32, i32) {
    %c0_i32 = arith.constant 0 : i32
    %c0_i32_0 = arith.constant 0 : i32
    %c0_i32_1 = arith.constant 0 : i32
    return %c0_i32, %c0_i32_0 : i32, i32
  }
  func.func @transform_4(%arg0: i32, %arg1: i32) -> (i32, i32) {
    %c0_i32 = arith.constant 0 : i32
    %c0_i32_0 = arith.constant 0 : i32
    %c0_i32_1 = arith.constant 0 : i32
    return %c0_i32, %c0_i32_0 : i32, i32
  }
  func.func @transform_5(%arg0: i32, %arg1: i32) -> (i32, i32) {
    %c0_i32 = arith.constant 0 : i32
    %c0_i32_0 = arith.constant 0 : i32
    %c0_i32_1 = arith.constant 0 : i32
    return %c0_i32, %c0_i32_0 : i32, i32
  }
  func.func @transform_6(%arg0: i32, %arg1: i32) -> (i32, i32) {
    %c0_i32 = arith.constant 0 : i32
    %c0_i32_0 = arith.constant 0 : i32
    %c0_i32_1 = arith.constant 0 : i32
    return %c0_i32, %c0_i32_0 : i32, i32
  }
  func.func @transform_7(%arg0: i32, %arg1: i32) -> (i32, i32) {
    %c0_i32 = arith.constant 0 : i32
    %c0_i32_0 = arith.constant 0 : i32
    %c0_i32_1 = arith.constant 0 : i32
    return %c0_i32, %c0_i32_0 : i32, i32
  }
  func.func @transform_8(%arg0: i32, %arg1: i32) -> (i32, i32) {
    %c0_i32 = arith.constant 0 : i32
    %c0_i32_0 = arith.constant 0 : i32
    %c0_i32_1 = arith.constant 0 : i32
    return %c0_i32, %c0_i32_0 : i32, i32
  }
  func.func @transform_9(%arg0: i32, %arg1: i32) -> (i32, i32) {
    %c0_i32 = arith.constant 0 : i32
    %c0_i32_0 = arith.constant 0 : i32
    %c0_i32_1 = arith.constant 0 : i32
    return %c0_i32, %c0_i32_0 : i32, i32
  }
  func.func @transform_10(%arg0: i32, %arg1: i32) -> (i32, i32) {
    %c0_i32 = arith.constant 0 : i32
    return %arg1, %arg0 : i32, i32
  }
  func.func @transform_11(%arg0: i32, %arg1: i32) -> (i32, i32) {
    %c0_i32 = arith.constant 0 : i32
    %c0_i32_0 = arith.constant 0 : i32
    return %c0_i32, %arg0 : i32, i32
  }
  func.func @transform_12(%arg0: i32, %arg1: i32) -> (i32, i32) {
    %c0_i32 = arith.constant 0 : i32
    %c0_i32_0 = arith.constant 0 : i32
    return %c0_i32, %arg0 : i32, i32
  }
  func.func @transform_13(%arg0: i32, %arg1: i32) -> (i32, i32) {
    %c0_i32 = arith.constant 0 : i32
    %c0_i32_0 = arith.constant 0 : i32
    return %c0_i32, %arg0 : i32, i32
  }
}

module attributes {stable_mosaic.version = 11 : i64} {
  func.func @_stage_b_kernel(%arg0: i32, %arg1: memref<2x4096xbf16, #tpu.memory_space<vmem>>, %arg2: memref<1024x2048xi8, #tpu.memory_space<vmem>>, %arg3: memref<1x2048xf32, #tpu.memory_space<vmem>>, %arg4: memref<1x2048xf32, #tpu.memory_space<vmem>>, %arg5: memref<2048x256xbf16, #tpu.memory_space<vmem>>, %arg6: memref<1x256xf32, #tpu.memory_space<vmem>>, %arg7: memref<1x256xf32, #tpu.memory_space<vmem>>, %arg8: memref<1x1xf32, #tpu.memory_space<vmem>>, %arg9: memref<2x1xf32, #tpu.memory_space<vmem>>, %arg10: memref<2x2048xf32, #tpu.memory_space<vmem>>) attributes {dimension_semantics = [#tpu.dimension_semantics<arbitrary>], iteration_bounds = array<i64: 4>, scalar_prefetch = 0 : i64, scratch_operands = 1 : i64, tpu.core_type = #tpu.core_type<tc>, window_params = [{pipeline_mode = #tpu.pipeline_mode<synchronous>, transform_indices = @transform_0, window_bounds = array<i64: 2, 4096>}, {transform_indices = @transform_1, window_bounds = array<i64: 1024, 2048>}, {pipeline_mode = #tpu.pipeline_mode<synchronous>, transform_indices = @transform_2, window_bounds = array<i64: 1, 2048>}, {pipeline_mode = #tpu.pipeline_mode<synchronous>, transform_indices = @transform_3, window_bounds = array<i64: 1, 2048>}, {pipeline_mode = #tpu.pipeline_mode<synchronous>, transform_indices = @transform_4, window_bounds = array<i64: 2048, 256>}, {pipeline_mode = #tpu.pipeline_mode<synchronous>, transform_indices = @transform_5, window_bounds = array<i64: 1, 256>}, {pipeline_mode = #tpu.pipeline_mode<synchronous>, transform_indices = @transform_6, window_bounds = array<i64: 1, 256>}, {pipeline_mode = #tpu.pipeline_mode<synchronous>, transform_indices = @transform_7, window_bounds = array<i64: 1, 1>}, {pipeline_mode = #tpu.pipeline_mode<synchronous>, transform_indices = @transform_8, window_bounds = array<i64: 2, 1>}]} {
    %c0_i32 = arith.constant 0 : i32
    %0 = arith.cmpi eq, %arg0, %c0_i32 : i32
    %1 = arith.extui %0 : i1 to i32
    %c0_i32_0 = arith.constant 0 : i32
    %2 = arith.cmpi ne, %1, %c0_i32_0 : i32
    scf.if %2 {
      %cst_8 = arith.constant 0.000000e+00 : f32
      %16 = vector.broadcast %cst_8 : f32 to vector<2x2048xf32>
      %c0_9 = arith.constant 0 : index
      %c0_10 = arith.constant 0 : index
      %17 = vector.load %arg10[%c0_9, %c0_10] : memref<2x2048xf32, #tpu.memory_space<vmem>>, vector<2x2048xf32>
      tpu.vector_store %arg10[%c0_9, %c0_10], %16 {strides = array<i32>} : memref<2x2048xf32, #tpu.memory_space<vmem>>, vector<2x2048xf32>,
    } else {
    }
    %c1024_i32 = arith.constant 1024 : i32
    %3 = arith.muli %arg0, %c1024_i32 : i32
    %4 = tpu.assume_multiple %3, 1024 : i32
    %c0 = arith.constant 0 : index
    %5 = arith.index_cast %4 : i32 to index
    %6 = vector.load %arg1[%c0, %5] : memref<2x4096xbf16, #tpu.memory_space<vmem>>, vector<2x1024xbf16>
    %c0_1 = arith.constant 0 : index
    %c0_2 = arith.constant 0 : index
    %7 = vector.load %arg10[%c0_1, %c0_2] : memref<2x2048xf32, #tpu.memory_space<vmem>>, vector<2x2048xf32>
    %c0_3 = arith.constant 0 : index
    %c0_4 = arith.constant 0 : index
    %8 = vector.load %arg2[%c0_3, %c0_4] : memref<1024x2048xi8, #tpu.memory_space<vmem>>, vector<1024x2048xi8>
    %9 = arith.sitofp %8 : vector<1024x2048xi8> to vector<1024x2048xbf16>
    %cst = arith.constant dense<0.000000e+00> : vector<2x2048xf32>
    %10 = tpu.matmul %6, %9, %cst {dimension_numbers = #tpu.dot_dimension_numbers<[1], [0], [0], [1], [0, 0, 1, 1], [], []>} : vector<2x1024xbf16>, vector<1024x2048xbf16>, vector<2x2048xf32> -> vector<2x2048xf32>
    %11 = arith.addf %7, %10 : vector<2x2048xf32>
    %c0_5 = arith.constant 0 : index
    %c0_6 = arith.constant 0 : index
    %12 = vector.load %arg10[%c0_5, %c0_6] : memref<2x2048xf32, #tpu.memory_space<vmem>>, vector<2x2048xf32>
    tpu.vector_store %arg10[%c0_5, %c0_6], %11 {strides = array<i32>} : memref<2x2048xf32, #tpu.memory_space<vmem>>, vector<2x2048xf32>,
    %c3_i32 = arith.constant 3 : i32
    %13 = arith.cmpi eq, %arg0, %c3_i32 : i32
    %14 = arith.extui %13 : i1 to i32
    %c0_i32_7 = arith.constant 0 : i32
    %15 = arith.cmpi ne, %14, %c0_i32_7 : i32
    scf.if %15 {
      %c0_8 = arith.constant 0 : index
      %c0_9 = arith.constant 0 : index
      %16 = vector.load %arg10[%c0_8, %c0_9] : memref<2x2048xf32, #tpu.memory_space<vmem>>, vector<2x2048xf32>
      %c0_10 = arith.constant 0 : index
      %c0_11 = arith.constant 0 : index
      %17 = vector.load %arg3[%c0_10, %c0_11] : memref<1x2048xf32, #tpu.memory_space<vmem>>, vector<1x2048xf32>
      %18 = vector.broadcast %17 : vector<1x2048xf32> to vector<2x2048xf32>
      %19 = arith.mulf %16, %18 : vector<2x2048xf32>
      %c0_12 = arith.constant 0 : index
      %c0_13 = arith.constant 0 : index
      %20 = vector.load %arg4[%c0_12, %c0_13] : memref<1x2048xf32, #tpu.memory_space<vmem>>, vector<1x2048xf32>
      %21 = vector.broadcast %20 : vector<1x2048xf32> to vector<2x2048xf32>
      %22 = arith.addf %19, %21 : vector<2x2048xf32>
      %cst_14 = arith.constant 0.000000e+00 : f32
      %23 = vector.broadcast %cst_14 : f32 to vector<2x2048xf32>
      %24 = arith.maximumf %22, %23 : vector<2x2048xf32>
      %25 = arith.truncf %24 : vector<2x2048xf32> to vector<2x2048xbf16>
      %c0_15 = arith.constant 0 : index
      %c0_16 = arith.constant 0 : index
      %26 = vector.load %arg5[%c0_15, %c0_16] : memref<2048x256xbf16, #tpu.memory_space<vmem>>, vector<2048x256xbf16>
      %cst_17 = arith.constant dense<0.000000e+00> : vector<2x256xf32>
      %27 = tpu.matmul %25, %26, %cst_17 {dimension_numbers = #tpu.dot_dimension_numbers<[1], [0], [0], [1], [0, 0, 1, 1], [], []>} : vector<2x2048xbf16>, vector<2048x256xbf16>, vector<2x256xf32> -> vector<2x256xf32>
      %c0_18 = arith.constant 0 : index
      %c0_19 = arith.constant 0 : index
      %28 = vector.load %arg6[%c0_18, %c0_19] : memref<1x256xf32, #tpu.memory_space<vmem>>, vector<1x256xf32>
      %29 = vector.broadcast %28 : vector<1x256xf32> to vector<2x256xf32>
      %30 = arith.addf %27, %29 : vector<2x256xf32>
      %cst_20 = arith.constant 0.000000e+00 : f32
      %31 = vector.broadcast %cst_20 : f32 to vector<2x256xf32>
      %32 = arith.maximumf %30, %31 : vector<2x256xf32>
      %c0_21 = arith.constant 0 : index
      %c0_22 = arith.constant 0 : index
      %33 = vector.load %arg7[%c0_21, %c0_22] : memref<1x256xf32, #tpu.memory_space<vmem>>, vector<1x256xf32>
      %34 = vector.broadcast %33 : vector<1x256xf32> to vector<2x256xf32>
      %35 = arith.mulf %32, %34 : vector<2x256xf32>
      %cst_23 = arith.constant dense<0.000000e+00> : vector<2xf32>
      %36 = vector.multi_reduction <add>, %35, %cst_23 [1] : vector<2x256xf32> to vector<2xf32>
      %37 = vector.shape_cast %36 : vector<2xf32> to vector<2x1xf32>
      %c0_24 = arith.constant 0 : index
      %c0_25 = arith.constant 0 : index
      %38 = vector.load %arg8[%c0_24, %c0_25] : memref<1x1xf32, #tpu.memory_space<vmem>>, vector<1x1xf32>
      %39 = vector.broadcast %38 : vector<1x1xf32> to vector<2x1xf32>
      %40 = arith.addf %37, %39 : vector<2x1xf32>
      %c0_26 = arith.constant 0 : index
      %c0_27 = arith.constant 0 : index
      %41 = vector.load %arg9[%c0_26, %c0_27] : memref<2x1xf32, #tpu.memory_space<vmem>>, vector<2x1xf32>
      tpu.vector_store %arg9[%c0_26, %c0_27], %40 {strides = array<i32>} : memref<2x1xf32, #tpu.memory_space<vmem>>, vector<2x1xf32>,
    } else {
    }
    return
  }
  func.func @transform_0(%arg0: i32) -> (i32, i32) {
    %c0_i32 = arith.constant 0 : i32
    %c0_i32_0 = arith.constant 0 : i32
    %c0_i32_1 = arith.constant 0 : i32
    return %c0_i32, %c0_i32_0 : i32, i32
  }
  func.func @transform_1(%arg0: i32) -> (i32, i32) {
    %c0_i32 = arith.constant 0 : i32
    %c0_i32_0 = arith.constant 0 : i32
    return %arg0, %c0_i32 : i32, i32
  }
  func.func @transform_2(%arg0: i32) -> (i32, i32) {
    %c0_i32 = arith.constant 0 : i32
    %c0_i32_0 = arith.constant 0 : i32
    %c0_i32_1 = arith.constant 0 : i32
    return %c0_i32, %c0_i32_0 : i32, i32
  }
  func.func @transform_3(%arg0: i32) -> (i32, i32) {
    %c0_i32 = arith.constant 0 : i32
    %c0_i32_0 = arith.constant 0 : i32
    %c0_i32_1 = arith.constant 0 : i32
    return %c0_i32, %c0_i32_0 : i32, i32
  }
  func.func @transform_4(%arg0: i32) -> (i32, i32) {
    %c0_i32 = arith.constant 0 : i32
    %c0_i32_0 = arith.constant 0 : i32
    %c0_i32_1 = arith.constant 0 : i32
    return %c0_i32, %c0_i32_0 : i32, i32
  }
  func.func @transform_5(%arg0: i32) -> (i32, i32) {
    %c0_i32 = arith.constant 0 : i32
    %c0_i32_0 = arith.constant 0 : i32
    %c0_i32_1 = arith.constant 0 : i32
    return %c0_i32, %c0_i32_0 : i32, i32
  }
  func.func @transform_6(%arg0: i32) -> (i32, i32) {
    %c0_i32 = arith.constant 0 : i32
    %c0_i32_0 = arith.constant 0 : i32
    %c0_i32_1 = arith.constant 0 : i32
    return %c0_i32, %c0_i32_0 : i32, i32
  }
  func.func @transform_7(%arg0: i32) -> (i32, i32) {
    %c0_i32 = arith.constant 0 : i32
    %c0_i32_0 = arith.constant 0 : i32
    %c0_i32_1 = arith.constant 0 : i32
    return %c0_i32, %c0_i32_0 : i32, i32
  }
  func.func @transform_8(%arg0: i32) -> (i32, i32) {
    %c0_i32 = arith.constant 0 : i32
    %c0_i32_0 = arith.constant 0 : i32
    %c0_i32_1 = arith.constant 0 : i32
    return %c0_i32, %c0_i32_0 : i32, i32
  }
}

</mosaic_0001>

<bundles_post_ra>
// kernel: pointcnn_forward.2
= control target key start
LH: loop header
LB: loop body
LE: loop exit
PB: predicated region body
PF: predicated region fallthrough
CT: control target
= control target key end

     0   :  { %s6791_s0 = inlined_call_operand.vmem [shape: bf16[58,16], index: 0, kind: input, shape index: {}]   ;;  %s6792_s1 = inlined_call_operand.vmem [shape: f32[2,58], index: 1, kind: input, shape index: {}]   ;;  %s6793_s2 = inlined_call_operand.hbm [shape: bf16[16,512], index: 2, kind: input, shape index: {}]   ;;  %s6794_s3 = inlined_call_operand.hbm [shape: f32[1,512], index: 3, kind: input, shape index: {}]   ;;  %s6795_s4 = inlined_call_operand.hbm [shape: bf16[512,256], index: 4, kind: input, shape index: {}]   ;;  %s6796_s5 = inlined_call_operand.hbm [shape: f32[1,256], index: 5, kind: input, shape index: {}]   ;;  %s6797_s6 = inlined_call_operand.hbm [shape: bf16[256,128], index: 6, kind: input, shape index: {}]   ;;  %s6798_s7 = inlined_call_operand.hbm [shape: f32[1,128], index: 7, kind: input, shape index: {}]   ;;  %s6799_s8 = inlined_call_operand.hbm [shape: bf16[128,1024], index: 8, kind: input, shape index: {}]   ;;  %s6800_s9 = inlined_call_operand.hbm [shape: f32[1,1024], index: 9, kind: input, shape index: {}]   ;;  %s6801_s10 = inlined_call_operand.hbm [shape: s8[1024,4096], index: 10, kind: input, shape index: {}]   ;;  %s6802_s11 = inlined_call_operand.hbm [shape: f32[1,4096], index: 11, kind: input, shape index: {}]   ;;  %s6803_s12 = inlined_call_operand.hbm [shape: f32[1,4096], index: 12, kind: input, shape index: {}]   ;;  %s6804_s13 = inlined_call_operand.vmem [shape: bf16[2,4096], index: 13, kind: output, shape index: {}]  }
   0x1   :  { %6824 = sst [smem:[#allocation32_spill]] %s6791_s0 }
   0x2   :  { %6825 = sst [smem:[#allocation33_spill]] %s6792_s1 }
   0x3   :  { %6826 = sst [smem:[#allocation34_spill]] %s6793_s2 }
   0x4   :  { %6827 = sst [smem:[#allocation35_spill]] %s6794_s3 }
   0x5   :  { %6828 = sst [smem:[#allocation36_spill]] %s6795_s4 }
   0x6   :  { %6829 = sst [smem:[#allocation37_spill]] %s6796_s5 }
   0x7   :  { %6830 = sst [smem:[#allocation38_spill]] %s6797_s6 }
   0x8   :  { %6831 = sst [smem:[#allocation39_spill]] %s6798_s7 }
   0x9   :  { %6832 = sst [smem:[#allocation40_spill]] %s6799_s8 }
   0xa   :  { %6833 = sst [smem:[#allocation41_spill]] %s6800_s9 }
   0xb   :  { %6834 = sst [smem:[#allocation42_spill]] %s6801_s10 }
   0xc   :  { %6835 = sst [smem:[#allocation43_spill]] %s6802_s11 }
   0xd   :  { %6836 = sst [smem:[#allocation44_spill]] %s6803_s12 }
   0xe   :  { %6837 = sst [smem:[#allocation45_spill]] %s6804_s13 }
   0xf   :  { %18 = vsyncpa [#allocation5], 0 }
  0x10   :  { %19 = vsyncpa [#allocation7], 0 }
  0x11   :  { %20 = vsyncpa [#allocation10], 0 }
  0x12   :  { %21 = vsyncpa [#allocation13], 0 }
  0x13   :  { %22 = vsyncpa [#allocation16], 0  ;;  %s5856_s25 = smov 0   ;;  %s5858_s26 = smov 0  }
  0x14   :  { %s5860_s27 = smov 0   ;;  %s5862_s28 = smov 0  }
  0x15   :  { %s5864_s29 = smov 0   ;;  %s5866_s30 = smov 0  }
  0x16   :  { %s5868_s14 = smov 0   ;;  %s5870_s15 = smov 0  }
  0x17   :  { %s5872_s16 = smov 0   ;;  %s5874_s17 = smov 0  }
  0x18   :  { %s5876_s18 = smov 0  }
  0x19 LB: > { %6838 = sst [smem:[#allocation27_spill]] %s5733_s29  ;;  %s6805_s19 = sadd.s32 4294967295, %s5757_s18   ;;  %s5757_s18 = sphi %s5876_s18, %s28_s18   ;;  %s5753_s17 = sphi %s5874_s17, %s6897_s17   ;;  %s5749_s16 = sphi %s5872_s16, %s6896_s16   ;;  %s5745_s15 = sphi %s5870_s15, %s6895_s15   ;;  %s5741_s14 = sphi %s5868_s14, %s6894_s14   ;;  %s5737_s30 = sphi %s5866_s30, %s6893_s30   ;;  %s5733_s29 = sphi %s5864_s29, %s6892_s29   ;;  %s5729_s28 = sphi %s5862_s28, %s6888_s28   ;;  %s5725_s27 = sphi %s5860_s27, %s6891_s27   ;;  %s5721_s26 = sphi %s5858_s26, %s6890_s26   ;;  %s5717_s25 = sphi %s5856_s25, %s6889_s25  }
  0x1a   : > { %6839 = sst [smem:[#allocation28_spill]] %s5741_s14  ;;  %p4741_p0 = scmp.ge.s32.totalorder %s5757_s18, 1 }
  0x1b   : > { %6840 = sst [smem:[#allocation29_spill]] %s5745_s15  ;;  %p5915_p1 = scmp.eq.s32.totalorder %s6805_s19, 0 }
  0x1c   : > { %p361_p2 = scmp.lt.s32.totalorder %s5757_s18, 5  ;;  %s5759_s22 = smov [#allocation4]  }
  0x1d   : > { %s6841_s20 = scalar_select %p5915_p1, 1, 0 }
  0x1e   : > { %p5920_p3 = pnand %p4741_p0, %p361_p2  ;;  %s379_s23 = sshll.u32 %s5759_s22, 4  ;;  %s380_s23 = int_to_ptr.vmem [resolvable:$true] %s379_s23 }
  0x1f   : > { %s5362_s1 = scalar_lea.vmem %s380_s23, 512  ;;  %p5370_p10 = scmp.lt.s32.totalorder %s380_s23, %s380_s23 }
  0x20   : > { %s6842_s21 = scalar_select %p5920_p3, 1, 0 }
  0x21   : > { %p5065_p4 = pneg %p5920_p3  ;;  %p5363_p7 = scmp.ne.s32.totalorder %s380_s23, %s5362_s1 }
  0x22   : > { %6843 = sst [smem:[#allocation30_spill]] %s6842_s21  ;;  %p5371_p11 = scmp.lt.s32.totalorder %s5362_s1, %s5362_s1 }
  0x23   : > { %p5928_p5 = pnand %p5065_p4, %p5915_p1 }
  0x24   : > { %p5372_p12 = por %p5371_p11, %p5370_p10 }
  0x25   : > { %s6844_s24 = scalar_select %p5928_p5, 1, 0 }
  0x26   : > { %p5934_p6 = pneg %p5928_p5 }
  0x28   : > { %p5365_p8 = pnand %p5363_p7, %p5934_p6 }
  0x2a   : > { %p5366_p9 = pneg %p5365_p8 }
  0x2c   : > { %p5373_p13 = pnand %p5372_p12, %p5366_p9 }
  0x2e   : > { %5376 = shalt.err (!%p5373_p13)
}
  0x2f   : > { %s5760_s22 = smov 256   ;;  %s5761_s0 = smov 16  }
  0x30   : > { %s6846_s2 = sld [smem:[#allocation34_spill]]  ;;  %s37_s13 = sadd.s32 1, %s5749_s16 }
  0x31   : > { %p5946_p0 = scmp.ge.s32.totalorder %s37_s13, 2  ;;  %p266_p2 = scmp.ne.s32.totalorder %s5737_s30, %s5733_s29 }
  0x32   : > { %p6813_p4 = scmp.eq.s32.totalorder %s5757_s18, 0  ;;  %p272_p8 = scmp.ne.s32.totalorder %s5733_s29, %s5729_s28 }
  0x33   : > { %s6847_s15 = scalar_select %p5946_p0, 1, 0 }
  0x34   : > { %s6899_s13 = smov (%p5946_p0, %s37_s13), 0  ;;  %p5960_p7 = por %p6813_p4, %p266_p2 }
  0x35   : > { %p5970_p9 = por %p5915_p1, %p272_p8  ;;  %p6812_p10 = scmp.lt.s32.totalorder %s5757_s18, 4 }
  0x36   : > { %5068 = dma.hbm_to_vmem [thread:$0]  (!%p5928_p5), %s6846_s2, 512, %s380_s23, [#allocation5], %s5760_s22, %s5760_s22, %s5761_s0  }
  0x37   : > { %s6849_s23 = scalar_select %p5970_p9, 1, 0 }
  0x38   : > { %s476_s22 = sand.u32 1, %s5757_s18   ;;  %s478_s1 = sand.u32 1, %s5737_s30  }
  0x39   : > { %6850 = sst [smem:[#allocation31_spill]] %s6849_s23  ;;  %s4751_s21 = sshll.u32 %s478_s1, 11 }
  0x3a   : > { %s4753_s2 = sshll.u32 %s5753_s17, 4  ;;  %s4956_s9 = sshll.u32 %s5749_s16, 9 }
  0x3b   : > { %s480_s12 = scalar_lea.vmem [#allocation17], %s4751_s21  ;;  %s487_s6 = sadd.s32 %s4956_s9, %s4753_s2 }
  0x3c   : > { %s490_s8 = sshll.u32 %s480_s12, 4  ;;  %s4755_s4 = sshll.u32 %s487_s6, 7  ;;  %s491_s8 = int_to_ptr.vmem [resolvable:$true] %s490_s8 }
  0x3d   : > { %p5983_p11 = pnand %p6812_p10, %p5960_p7  ;;  %s6852_s10 = sld [smem:[#allocation42_spill]] }
  0x3e   : > { %s5990_s11 = scalar_lea.sflag [#allocation5], %s476_s22  ;;  %s5390_s21 = scalar_lea.vmem %s491_s8, 32768 }
  0x3f   : > { %p5379_p12 = pneg %p5983_p11  ;;  %p5391_p13 = scmp.ne.s32.totalorder %s491_s8, %s5390_s21 }
  0x40   : > { %s5762_s2 = smov [#allocation17]  }
  0x41   : > { %p5393_p2 = pnand %p5391_p13, %p5379_p12  ;;  %s5395_s6 = sshll.u32 %s5762_s2, 4  ;;  %s5396_s6 = int_to_ptr.vmem [resolvable:$false] %s5395_s6 }
  0x42   : > { %s5397_s9 = scalar_lea.vmem %s5396_s6, 65536  ;;  %p5398_p7 = scmp.lt.s32.totalorder %s491_s8, %s5396_s6 }
  0x43   : > { %s489_s23 = scalar_lea.hbm %s6852_s10, %s4755_s4  ;;  %p5394_p8 = pneg %p5393_p2 }
  0x44   : > { %p5399_p10 = scmp.lt.s32.totalorder %s5397_s9, %s5390_s21 }
  0x46   : > { %p5400_p4 = por %p5399_p10, %p5398_p7 }
  0x48   : > { %p5401_p9 = pnand %p5400_p4, %p5394_p8 }
  0x4a   : > { %5404 = shalt.err (!%p5401_p9)
}
  0x4b   : > { %s5763_s12 = smov 4096   ;;  %s5764_s4 = smov 2048  }
  0x4c   : > { %s6819_s29 = smov 128   ;;  %s5766_s14 = smov [#allocation6]  }
  0x4d   : > { %5093 = dma.hbm_to_vmem [thread:$0]  (!%p5983_p11), %s489_s23, 32768, %s491_s8, %s5990_s11, %s5763_s12, %s5764_s4, %s6819_s29  }
  0x4e   : > { %s393_s0 = sshll.u32 %s5766_s14, 4  ;;  %s5767_s22 = smov [#allocation9]   ;;  %s394_s0 = int_to_ptr.vmem [resolvable:$true] %s393_s0 }
  0x4f   : > { %s417_s1 = sshll.u32 %s5767_s22, 4  ;;  %s5416_s2 = scalar_lea.vmem %s394_s0, 64  ;;  %s418_s1 = int_to_ptr.vmem [resolvable:$true] %s417_s1 }
  0x50   : > { %p5417_p12 = scmp.ne.s32.totalorder %s394_s0, %s5416_s2  ;;  %p5424_p10 = scmp.lt.s32.totalorder %s394_s0, %s394_s0 }
  0x51   : > { %p5425_p13 = scmp.lt.s32.totalorder %s5416_s2, %s5416_s2 }
  0x52   : > { %p5419_p4 = pnand %p5417_p12, %p5934_p6 }
  0x53   : > { %p5426_p2 = por %p5425_p13, %p5424_p10 }
  0x54   : > { %p5420_p9 = pneg %p5419_p4 }
  0x56   : > { %p5427_p8 = pnand %p5426_p2, %p5420_p9 }
  0x58   : > { %5430 = shalt.err (!%p5427_p8)
}
  0x59   : > { %s6853_s3 = sld [smem:[#allocation35_spill]]  ;;  %s5442_s23 = scalar_lea.vmem %s418_s1, 32 }
  0x5a   : > { %p5443_p11 = scmp.ne.s32.totalorder %s418_s1, %s5442_s23  ;;  %p5450_p1 = scmp.lt.s32.totalorder %s418_s1, %s418_s1 }
  0x5b   : > { %p5451_p12 = scmp.lt.s32.totalorder %s5442_s23, %s5442_s23 }
  0x5c   : > { %p5445_p7 = pnand %p5443_p11, %p5934_p6 }
  0x5d   : > { %p5452_p4 = por %p5451_p12, %p5450_p1 }
  0x5e   : > { %p5446_p3 = pneg %p5445_p7 }
  0x5f   : > { %5071 = dma.hbm_to_vmem [thread:$0]  (!%p5928_p5), %s6853_s3, 64, %s394_s0, [#allocation7]  }
  0x60   : > { %p5453_p0 = pnand %p5452_p4, %p5446_p3 }
  0x62   : > { %5456 = shalt.err (!%p5453_p0)
}
  0x63   : > { %s6854_s5 = sld [smem:[#allocation37_spill]]  ;;  %s5768_s9 = smov [#allocation12]  }
  0x64   : > { %s441_s12 = sshll.u32 %s5768_s9, 4  ;;  %s442_s12 = int_to_ptr.vmem [resolvable:$true] %s441_s12 }
  0x65   : > { %s5468_s4 = scalar_lea.vmem %s442_s12, 16  ;;  %s5475_s14 = scalar_lea.vmem %s442_s12, 32 }
  0x66   : > { %p5469_p9 = scmp.ne.s32.totalorder %s442_s12, %s5468_s4  ;;  %p5476_p2 = scmp.lt.s32.totalorder %s442_s12, %s442_s12 }
  0x67   : > { %p5477_p1 = scmp.lt.s32.totalorder %s5475_s14, %s5468_s4 }
  0x68   : > { %p5471_p10 = pnand %p5469_p9, %p5934_p6 }
  0x69   : > { %5077 = dma.hbm_to_vmem [thread:$0]  (!%p5928_p5), %s6854_s5, 32, %s418_s1, [#allocation10]  }
  0x6a   : > { %p5472_p13 = pneg %p5471_p10  ;;  %p5478_p3 = por %p5477_p1, %p5476_p2 }
  0x6c   : > { %p5479_p0 = pnand %p5478_p3, %p5472_p13 }
  0x6e   : > { %5482 = shalt.err (!%p5479_p0)
}
  0x6f   : > { %s6855_s7 = sld [smem:[#allocation39_spill]]  ;;  %s40_s1 = sadd.s32 1, %s5753_s17 }
  0x70   : > { %p6856_p8 = scmp.ne.s32.totalorder %s6847_s15, 0  ;;  %s285_s2 = sadd.s32 1, %s5725_s27 }
  0x71   : > { %p292_p11 = scmp.ne.s32.totalorder %s5725_s27, %s5721_s26  ;;  %p298_p12 = scmp.ne.s32.totalorder %s5721_s26, %s5717_s25 }
  0x72   : > { %s6901_s1 = smov (!%p6856_p8, %s40_s1), %s5753_s17  ;;  %p6857_p4 = scmp.eq.s32.totalorder %s5757_s18, 0 }
  0x73   : > { %p42_p7 = scmp.ge.s32.totalorder %s6901_s1, 2  ;;  %s502_s8 = sand.u32 1, %s5725_s27  }
  0x74   : > { %p6030_p9 = por %p292_p11, %p6857_p4  ;;  %p6859_p10 = scmp.ne.s32.totalorder %s6841_s20, 0 }
  0x75   : > { %5083 = dma.hbm_to_vmem [thread:$0]  (!%p5928_p5), %s6855_s7, 16, %s442_s12, [#allocation13]  }
  0x76   : > { %s6903_s1 = smov (%p42_p7, %s6901_s1), 0  ;;  %p6039_p13 = por %p298_p12, %p6859_p10 }
  0x77   : > { %s6043_s23 = sshll.u32 %s502_s8, 4  ;;  %s255_s25 = ssub.s32 %s5753_s17, %s6903_s1 }
  0x78   : > { %s6860_s15 = scalar_select %p6039_p13, 1, 0 }
  0x79   : > { %s6861_s21 = ssub.s32 %s5749_s16, %s6899_s13  ;;  %p283_p2 = scmp.eq.s32.totalorder %s255_s25, 0 }
  0x7a   : > { %s256_s6 = sor.u32 %s255_s25, %s6861_s21  ;;  %s4957_s9 = sshll.u32 %s5753_s17, 8 }
  0x7b   : > { %p257_p1 = scmp.eq.s32.totalorder %s256_s6, 0  ;;  %s6862_s4 = sadd.s32 1, %s5737_s30 }
  0x7c   : > { %s6052_s12 = scalar_select %p283_p2, %s5725_s27, %s285_s2  }
  0x7d   : > { %s6057_s14 = scalar_select %p257_p1, %s5737_s30, %s6862_s4  }
  0x7e   : > { %s6863_s29 = sld [smem:[#allocation43_spill]]  ;;  %s504_s5 = scalar_lea.vmem [#allocation18], %s6043_s23 }
  0x7f   : > { %s512_s8 = sshll.u32 %s504_s5, 4  ;;  %p6864_p3 = scmp.lt.s32.totalorder %s5757_s18, 4  ;;  %s513_s8 = int_to_ptr.vmem [resolvable:$true] %s512_s8 }
  0x80   : > { %s5769_s2 = smov [#allocation8]   ;;  %s5496_s6 = scalar_lea.vmem %s513_s8, 256 }
  0x81   : > { %p6069_p0 = pnand %p6864_p3, %p6030_p9  ;;  %s403_s25 = sshll.u32 %s5769_s2, 4  ;;  %s404_s25 = int_to_ptr.vmem [resolvable:$true] %s403_s25 }
  0x82   : > { %p5497_p11 = scmp.ne.s32.totalorder %s513_s8, %s5496_s6  ;;  %s5770_s5 = smov [#allocation18]  }
  0x83   : > { %p6820_p8 = pneg %p6069_p0 }
  0x84   : > { %s510_s3 = scalar_lea.hbm %s6863_s29, %s4957_s9  ;;  %s5501_s29 = sshll.u32 %s5770_s5, 4  ;;  %s5502_s29 = int_to_ptr.vmem [resolvable:$false] %s5501_s29 }
  0x85   : > { %p5499_p7 = pnand %p5497_p11, %p6820_p8  ;;  %s5503_s28 = scalar_lea.vmem %s5502_s29, 512 }
  0x86   : > { %p5504_p4 = scmp.lt.s32.totalorder %s513_s8, %s5502_s29  ;;  %p5505_p9 = scmp.lt.s32.totalorder %s5503_s28, %s5496_s6 }
  0x87   : > { %p5500_p12 = pneg %p5499_p7 }
  0x88   : > { %p5506_p10 = por %p5505_p9, %p5504_p4 }
  0x8a   : > { %p5507_p2 = pnand %p5506_p10, %p5500_p12 }
  0x8c   : > { %5510 = shalt.err (!%p5507_p2)
}
  0x8d   : > { %5096 = dma.hbm_to_vmem [thread:$0]  (!%p6069_p0), %s510_s3, 256, %s513_s8, %s5990_s11  }
  0x8e   : > { %s5522_s4 = scalar_lea.vmem %s404_s25, 8192  ;;  %p5530_p7 = scmp.lt.s32.totalorder %s404_s25, %s404_s25 }
  0x8f   : > { %p5523_p1 = scmp.ne.s32.totalorder %s404_s25, %s5522_s4  ;;  %p5531_p8 = scmp.lt.s32.totalorder %s5522_s4, %s5522_s4 }
  0x91   : > { %p5525_p3 = pnand %p5523_p1, %p5934_p6  ;;  %p5532_p13 = por %p5531_p8, %p5530_p7 }
  0x93   : > { %p5526_p11 = pneg %p5525_p3 }
  0x95   : > { %p5533_p5 = pnand %p5532_p13, %p5526_p11 }
  0x97   : > { %5536 = shalt.err (!%p5533_p5)
}
  0x98   : > { %s5771_s0 = smov 8   ;;  %p6866_p12 = scmp.ne.s32.totalorder %s6844_s24, 0 }
  0x99   : > { %s6867_s22 = smov 128   ;;  %s6868_s5 = sld [smem:[#allocation36_spill]] }
  0x9a   : > { %s5772_s3 = smov [#allocation11]  }
  0x9b   : > { %s427_s8 = sshll.u32 %s5772_s3, 4  ;;  %s428_s8 = int_to_ptr.vmem [resolvable:$true] %s427_s8 }
  0x9c   : > { %s5548_s29 = scalar_lea.vmem %s428_s8, 2048  ;;  %p5556_p13 = scmp.lt.s32.totalorder %s428_s8, %s428_s8 }
  0x9d   : > { %p5549_p4 = scmp.ne.s32.totalorder %s428_s8, %s5548_s29  ;;  %p5557_p5 = scmp.lt.s32.totalorder %s5548_s29, %s5548_s29 }
  0x9f   : > { %5074 = dma.hbm_to_vmem [thread:$0]  (!%p6866_p12), %s6868_s5, 8192, %s404_s25, [#allocation7], %s6867_s22, %s6867_s22, %s5771_s0  }
  0xa0   : > { %p5551_p9 = pnand %p5549_p4, %p5934_p6  ;;  %p5558_p10 = por %p5557_p5, %p5556_p13 }
  0xa2   : > { %p5552_p8 = pneg %p5551_p9 }
  0xa4   : > { %p5559_p2 = pnand %p5558_p10, %p5552_p8 }
  0xa6   : > { %5562 = shalt.err (!%p5559_p2)
}
  0xa7   : > { %s5773_s28 = smov 64   ;;  %s5774_s4 = smov 4  }
  0xa8   : > { %s6869_s0 = sld [smem:[#allocation38_spill]]  ;;  %s5775_s22 = smov [#allocation14]  }
  0xa9   : > { %s451_s6 = sshll.u32 %s5775_s22, 4  ;;  %s452_s6 = int_to_ptr.vmem [resolvable:$true] %s451_s6 }
  0xaa   : > { %s5574_s5 = scalar_lea.vmem %s452_s6, 8192  ;;  %p5582_p7 = scmp.lt.s32.totalorder %s452_s6, %s452_s6 }
  0xab   : > { %p5575_p1 = scmp.ne.s32.totalorder %s452_s6, %s5574_s5  ;;  %p5583_p4 = scmp.lt.s32.totalorder %s5574_s5, %s5574_s5 }
  0xad   : > { %p5577_p3 = pnand %p5575_p1, %p5934_p6  ;;  %p5584_p9 = por %p5583_p4, %p5582_p7 }
  0xae   : > { %5080 = dma.hbm_to_vmem [thread:$0]  (!%p6866_p12), %s6869_s0, 2048, %s428_s8, [#allocation10], %s5773_s28, %s5773_s28, %s5774_s4  }
  0xaf   : > { %p5578_p11 = pneg %p5577_p3 }
  0xb1   : > { %p5585_p8 = pnand %p5584_p9, %p5578_p11 }
  0xb3   : > { %5588 = shalt.err (!%p5585_p8)
}
  0xb4   : > { %s5776_s3 = smov 512   ;;  %s5777_s29 = smov 32  }
  0xb5   : > { %s6870_s4 = sld [smem:[#allocation40_spill]]  ;;  %s5778_s2 = smov [#allocation15]  }
  0xb6   : > { %s465_s25 = sshll.u32 %s5778_s2, 4  ;;  %s6871_s5 = sld [smem:[#allocation44_spill]]  ;;  %s466_s25 = int_to_ptr.vmem [resolvable:$true] %s465_s25 }
  0xb7   : > { %s5600_s10 = scalar_lea.vmem %s466_s25, 128  ;;  %p5608_p2 = scmp.lt.s32.totalorder %s466_s25, %s466_s25 }
  0xb8   : > { %p5601_p13 = scmp.ne.s32.totalorder %s466_s25, %s5600_s10  ;;  %p5609_p1 = scmp.lt.s32.totalorder %s5600_s10, %s5600_s10 }
  0xba   : > { %p5603_p5 = pnand %p5601_p13, %p5934_p6  ;;  %p5610_p3 = por %p5609_p1, %p5608_p2 }
  0xbb   : > { %5086 = dma.hbm_to_vmem [thread:$0]  (!%p6866_p12), %s6870_s4, 8192, %s452_s6, [#allocation13], %s5776_s3, %s5776_s3, %s5777_s29  }
  0xbc   : > { %s529_s7 = scalar_lea.hbm %s6871_s5, %s4957_s9  ;;  %p5604_p10 = pneg %p5603_p5 }
  0xbe   : > { %p5611_p11 = pnand %p5610_p3, %p5604_p10 }
  0xc0   : > { %5614 = shalt.err (!%p5611_p11)
}
  0xc1   : > { %s6872_s29 = sld [smem:[#allocation41_spill]]  ;;  %s523_s8 = scalar_lea.vmem [#allocation19], %s6043_s23 }
  0xc2   : > { %s531_s9 = sshll.u32 %s523_s8, 4  ;;  %p6873_p6 = pneg %p6069_p0  ;;  %s532_s9 = int_to_ptr.vmem [resolvable:$true] %s531_s9 }
  0xc3   : > { %s5628_s28 = scalar_lea.vmem %s532_s9, 256  ;;  %s5779_s10 = smov [#allocation19]  }
  0xc4   : > { %p5629_p7 = scmp.ne.s32.totalorder %s532_s9, %s5628_s28  ;;  %s5633_s19 = sshll.u32 %s5779_s10, 4  ;;  %s5634_s19 = int_to_ptr.vmem [resolvable:$false] %s5633_s19 }
  0xc5   : > { %s5635_s4 = scalar_lea.vmem %s5634_s19, 512  ;;  %p5636_p8 = scmp.lt.s32.totalorder %s532_s9, %s5634_s19 }
  0xc6   : > { %p5631_p4 = pnand %p5629_p7, %p6873_p6  ;;  %p5637_p13 = scmp.lt.s32.totalorder %s5635_s4, %s5628_s28 }
  0xc7   : > { %5089 = dma.hbm_to_vmem [thread:$0]  (!%p6866_p12), %s6872_s29, 128, %s466_s25, [#allocation16]  }
  0xc8   : > { %p5632_p9 = pneg %p5631_p4  ;;  %p5638_p5 = por %p5637_p13, %p5636_p8 }
  0xca   : > { %p5639_p10 = pnand %p5638_p5, %p5632_p9 }
  0xcc   : > { %5642 = shalt.err (!%p5639_p10)
}
  0xcd   : > { %5099 = dma.hbm_to_vmem [thread:$0]  (!%p6069_p0), %s529_s7, 256, %s532_s9, %s5990_s11  }
  0xce   : > { %s6874_s24 = sld [smem:[#allocation30_spill]] }
  0xd4   : > { %p6875_p12 = scmp.ne.s32.totalorder %s6874_s24, 0 }
  0xd5   : > { %p6876_p2 = scmp.ne.s32.totalorder (!%p6875_p12), %s6841_s20, 0 }
  0xd6   : > { %540 = sbr.rel (%p6875_p12) target bundleno = 2124 (0x84c), region = 72 }
  0xdb   : > { %5688 = dma.done.wait (%p6876_p2), [#allocation5], 512  }
  0xdc   : > { %5690 = vsyncadd (%p6876_p2), [#allocation5], 4294966784 }
  0xdd   : > { %5692 = dma.done.wait (%p6876_p2), [#allocation7], 8256  }
  0xde   : > { %5694 = vsyncadd (%p6876_p2), [#allocation7], 4294959040 }
  0xdf   : > { %5696 = dma.done.wait (%p6876_p2), [#allocation10], 2080  }
  0xe0   : > { %5698 = vsyncadd (%p6876_p2), [#allocation10], 4294965216 }
  0xe1   : > { %5700 = dma.done.wait (%p6876_p2), [#allocation13], 8208  }
  0xe2   : > { %5702 = vsyncadd (%p6876_p2), [#allocation13], 4294959088 }
  0xe3   : > { %5704 = dma.done.wait (%p6876_p2), [#allocation16], 128  }
  0xe4   : > { %5706 = vsyncadd (%p6876_p2), [#allocation16], 4294967168  ;;  %s6877_s7 = sadd.s32 4294967295, %s5757_s18   ;;  %s6878_s11 = sld [smem:[#allocation27_spill]] }
  0xe5   : > { %s6879_s23 = sld [smem:[#allocation31_spill]]  ;;  %s574_s21 = sand.u32 1, %s6877_s7  }
  0xe6   : > { %s575_s0 = scalar_lea.sflag [#allocation5], %s574_s21 }
  0xea   : > { %s576_s2 = sand.u32 1, %s6878_s11  }
  0xeb   : > { %s4771_s25 = sshll.u32 %s576_s2, 11  ;;  %p6880_p0 = scmp.ne.s32.totalorder %s6879_s23, 0 }
  0xec   : > { %s6148_s22 = scalar_lea.vmem [#allocation17], %s4771_s25 }
  0xed   : > { %5708 = dma.done.wait (%p6880_p0), %s575_s0, 32768  }
  0xee   : > { %5710 = vsyncadd (%p6880_p0), %s575_s0, 4294934528  ;;  %s585_s5 = sand.u32 1, %s5721_s26   ;;  %p6881_p1 = scmp.ne.s32.totalorder %s6860_s15, 0 }
  0xef   : > { %s6155_s20 = sshll.u32 %s585_s5, 4 }
  0xf0   : > { %s587_s6 = scalar_lea.vmem [#allocation18], %s6155_s20 }
  0xf1   : > { %5712 = dma.done.wait (%p6881_p1), %s575_s0, 512  }
  0xf2   : > { %5714 = vsyncadd (%p6881_p1), %s575_s0, 4294966784  ;;  %s6882_s3 = sld [smem:[#allocation29_spill]]  ;;  %s596_s19 = scalar_lea.vmem [#allocation19], %s6155_s20 }
  0xf3   : > { %s6883_s28 = sld [smem:[#allocation45_spill]] }
  0xf4   : > { %s6884_s4 = sld [smem:[#allocation28_spill]] }
  0xf8   : > { %s4774_s29 = sshll.u32 %s6882_s3, 4 }
  0xf9   : > { %p653_p3 = scmp.lt.s32.totalorder %s4774_s29, 31 }
  0xfa   : > { %p4775_p11 = scmp.ne.s32.totalorder %s6884_s4, 0 }
  0xfb   : > { %s6905_s29 = smov (!%p653_p3, %s4774_s29), 31  ;;  %s6885_s7 = sld [smem:[#allocation32_spill]] (!%p4775_p11) }
  0xfc   : > { %s6166_s10 = scalar_lea.vmem %s6883_s28, %s6905_s29  ;;  %661 = sbr.rel (%p4775_p11) target bundleno = 1358 (0x54e), region = 120 }
  0xfd   : > { %s6886_s29 = sld [smem:[#allocation33_spill]] (!%p4775_p11) }
 0x101   : > { %v5229_v0 = vld [vmem:[#allocation4 + $0x4] ss:$16 sps:$4 sm:$0xff]   ;;  %v5231_v1 = vld [vmem:[#allocation4 + $0xc] ss:$16 sps:$4 sm:$0xff]   ;;  %v5780_v2 = vmov 0   ;;  %vm736_vm0 = vcmask 130048  }
 0x102   : > { %781 = vmatprep.mubr.bf16.mxu0 %v5780_v2  ;;  %854 = vmatprep.mubr.bf16.mxu1 %v5780_v2  ;;  %v5233_v3 = vld [vmem:[#allocation4] ss:$16 sps:$4 sm:$0xff]   ;;  %v5234_v4 = vld [vmem:[#allocation4 + $0x8] ss:$16 sps:$4 sm:$0xff]   ;;  %v5239_v6 = vld [vmem:[#allocation8 + $0x70] ss:$8 sps:$4 sm:$0xff]  }
 0x103   : > { %763 = vmatprep.subr.bf16.mxu0 %v5229_v0  ;;  %836 = vmatprep.subr.bf16.mxu1 %v5231_v1  ;;  %v5235_v5 = vld [vmem:[%s6885_s7] sm:$0xff]   ;;  %v5245_v10 = vld [vmem:[#allocation8 + $0x60] ss:$8 sps:$4 sm:$0xff]   ;;  %v5247_v11 = vld [vmem:[#allocation8 + $0x64] ss:$8 sps:$4 sm:$0xff]   ;;  %vm5782_vm1 = vmmov 0  }
 0x104   : > { %764 = vmatpush1.bf16.msra.mxu0 %v5233_v3  ;;  %837 = vmatpush1.bf16.msra.mxu1 %v5234_v4  ;;  %v5241_v7 = vld [vmem:[#allocation8 + $0x74] ss:$8 sps:$4 sm:$0xff]   ;;  %v5242_v8 = vld [vmem:[#allocation8 + $0x170] ss:$8 sps:$4 sm:$0xff]   ;;  %v5250_v13 = vld [vmem:[#allocation8 + $0x164] ss:$8 sps:$4 sm:$0xff]  }
 0x105   : > { %1339 = vmatprep.subr.bf16.mxu0 %v5241_v7  ;;  %v5244_v9 = vld [vmem:[#allocation8 + $0x174] ss:$8 sps:$4 sm:$0xff]   ;;  %v5248_v14 = vld [vmem:[#allocation8 + $0x160] ss:$8 sps:$4 sm:$0xff]   ;;  %v5251_v16 = vld [vmem:[#allocation8 + $0x50] ss:$8 sps:$4 sm:$0xff]  }
 0x106   : > { %v5236_v12 = vld [vmem:[%s6885_s7 + $0x8] sm:$0xff]   ;;  %1412 = vmatprep.subr.bf16.mxu1 %v5244_v9  ;;  %v5259_v18 = vld [vmem:[#allocation8 + $0x44] ss:$8 sps:$4 sm:$0xff]   ;;  %v5254_v19 = vld [vmem:[#allocation8 + $0x150] ss:$8 sps:$4 sm:$0xff]   ;;  %vm1722_vm2 = vcmask 1041408  }
 0x107   : > { %4784 = vmatmul.mubr.msk.bf16.vlgmr.msra.gmra.mxu0 %vm736_vm0, %v5235_v5  ;;  %4788 = vmatmul.mubr.msk.bf16.vlgmr.msra.gmra.mxu1 %vm736_vm0, %v5235_v5  ;;  %v5253_v15 = vld [vmem:[#allocation8 + $0x54] ss:$8 sps:$4 sm:$0xff]   ;;  %v5257_v20 = vld [vmem:[#allocation8 + $0x40] ss:$8 sps:$4 sm:$0xff]   ;;  %v5262_v21 = vld [vmem:[#allocation8 + $0x144] ss:$8 sps:$4 sm:$0xff]  }
 0x108   : > { %791 = vmatprep.mubr.bf16.mxu0 %v5780_v2  ;;  %864 = vmatprep.mubr.bf16.mxu1 %v5780_v2  ;;  %v5256_v17 = vld [vmem:[#allocation8 + $0x154] ss:$8 sps:$4 sm:$0xff]   ;;  %v5237_v22 = vld [vmem:[%s6885_s7 + $0x10] sm:$0xff]   ;;  %v5263_v25 = vld [vmem:[#allocation8 + $0x30] ss:$8 sps:$4 sm:$0xff]   ;;  %vm1718_vm3 = vcmask 474112  }
 0x109   : > { %1340 = vmatpush1.bf16.msra.mxu0 %v5239_v6  ;;  %1413 = vmatpush1.bf16.msra.mxu1 %v5242_v8  ;;  %v5260_v23 = vld [vmem:[#allocation8 + $0x140] ss:$8 sps:$4 sm:$0xff]   ;;  %v5265_v24 = vld [vmem:[#allocation8 + $0x34] ss:$8 sps:$4 sm:$0xff]   ;;  %v5271_v27 = vld [vmem:[#allocation8 + $0x24] ss:$8 sps:$4 sm:$0xff]  }
 0x10a   : > { %1341 = vmatprep.subr.bf16.mxu0 %v5247_v11  ;;  %1414 = vmatprep.subr.bf16.mxu1 %v5250_v13  ;;  %v5268_v26 = vld [vmem:[#allocation8 + $0x134] ss:$8 sps:$4 sm:$0xff]   ;;  %v5266_v28 = vld [vmem:[#allocation8 + $0x130] ss:$8 sps:$4 sm:$0xff]   ;;  %v5269_v29 = vld [vmem:[#allocation8 + $0x20] ss:$8 sps:$4 sm:$0xff]   ;;  %v676_v11 = vlaneseq }
 0x10b   : > { %v5274_v30 = vld [vmem:[#allocation8 + $0x124] ss:$8 sps:$4 sm:$0xff]   ;;  %v5277_v32 = vld [vmem:[#allocation8 + $0x14] ss:$8 sps:$4 sm:$0xff]   ;;  %v5272_v33 = vld [vmem:[#allocation8 + $0x120] ss:$8 sps:$4 sm:$0xff]  }
 0x10c   : > { %v5238_v31 = vld [vmem:[%s6885_s7 + $0x18] sm:$0x1f]   ;;  %v5280_v35 = vld [vmem:[#allocation8 + $0x114] ss:$8 sps:$4 sm:$0xff]   ;;  %v5281_v38 = vld [vmem:[#allocation8] ss:$8 sps:$4 sm:$0xff]  }
 0x10d   : > { %1342 = vmatpush1.bf16.msra.mxu0 %v5245_v10  ;;  %1415 = vmatpush1.bf16.msra.mxu1 %v5248_v14  ;;  %v5275_v34 = vld [vmem:[#allocation8 + $0x10] ss:$8 sps:$4 sm:$0xff]   ;;  %v5283_v36 = vld [vmem:[#allocation8 + $0x4] ss:$8 sps:$4 sm:$0xff]   ;;  %v5289_v40 = vld [vmem:[#allocation8 + $0xf4] ss:$8 sps:$4 sm:$0xff]  }
 0x10e   : > { %1343 = vmatprep.subr.bf16.mxu0 %v5253_v15  ;;  %1416 = vmatprep.subr.bf16.mxu1 %v5256_v17  ;;  %v5278_v37 = vld [vmem:[#allocation8 + $0x110] ss:$8 sps:$4 sm:$0xff]   ;;  %v5286_v39 = vld [vmem:[#allocation8 + $0x104] ss:$8 sps:$4 sm:$0xff]   ;;  %v5284_v41 = vld [vmem:[#allocation8 + $0x100] ss:$8 sps:$4 sm:$0xff]  }
 0x10f   : > { %4785 = vmatmul.mubr.msk.bf16.gmra.mxu0 %vm736_vm0, %v5236_v12  ;;  %4789 = vmatmul.mubr.msk.bf16.gmra.mxu1 %vm736_vm0, %v5236_v12  ;;  %v5287_v42 = vld [vmem:[#allocation8 + $0xf0] ss:$8 sps:$4 sm:$0xff]   ;;  %v5292_v43 = vld [vmem:[#allocation8 + $0x1f4] ss:$8 sps:$4 sm:$0xff]   ;;  %v5295_v45 = vld [vmem:[#allocation8 + $0xe4] ss:$8 sps:$4 sm:$0xff]  }
 0x110   : > { %801 = vmatprep.mubr.bf16.mxu0 %v5780_v2  ;;  %874 = vmatprep.mubr.bf16.mxu1 %v5780_v2  ;;  %v5290_v44 = vld [vmem:[#allocation8 + $0x1f0] ss:$8 sps:$4 sm:$0xff]   ;;  %v5293_v46 = vld [vmem:[#allocation8 + $0xe0] ss:$8 sps:$4 sm:$0xff]   ;;  %v5298_v47 = vld [vmem:[#allocation8 + $0x1e4] ss:$8 sps:$4 sm:$0xff]  }
 0x111   : > { %1344 = vmatpush1.bf16.msra.mxu0 %v5251_v16  ;;  %1417 = vmatpush1.bf16.msra.mxu1 %v5254_v19  ;;  %v5301_v48 = vld [vmem:[#allocation8 + $0xd4] ss:$8 sps:$4 sm:$0xff]   ;;  %v5296_v49 = vld [vmem:[#allocation8 + $0x1e0] ss:$8 sps:$4 sm:$0xff]   ;;  %v5299_v50 = vld [vmem:[#allocation8 + $0xd0] ss:$8 sps:$4 sm:$0xff]  }
 0x112   : > { %1345 = vmatprep.subr.bf16.mxu0 %v5259_v18  ;;  %1418 = vmatprep.subr.bf16.mxu1 %v5262_v21  ;;  %v5304_v51 = vld [vmem:[#allocation8 + $0x1d4] ss:$8 sps:$4 sm:$0xff]   ;;  %v5307_v52 = vld [vmem:[#allocation8 + $0xc4] ss:$8 sps:$4 sm:$0xff]   ;;  %v5302_v53 = vld [vmem:[#allocation8 + $0x1d0] ss:$8 sps:$4 sm:$0xff]  }
 0x113   : > { %v5305_v54 = vld [vmem:[#allocation8 + $0xc0] ss:$8 sps:$4 sm:$0xff]   ;;  %v5310_v55 = vld [vmem:[#allocation8 + $0x1c4] ss:$8 sps:$4 sm:$0xff]   ;;  %v5313_v56 = vld [vmem:[#allocation8 + $0xb4] ss:$8 sps:$4 sm:$0xff]  }
 0x114   : > { %v5308_v57 = vld [vmem:[#allocation8 + $0x1c0] ss:$8 sps:$4 sm:$0xff]   ;;  %v5311_v58 = vld [vmem:[#allocation8 + $0xb0] ss:$8 sps:$4 sm:$0xff]   ;;  %v5316_v59 = vld [vmem:[#allocation8 + $0x1b4] ss:$8 sps:$4 sm:$0xff]  }
 0x115   : > { %1346 = vmatpush1.bf16.msra.mxu0 %v5257_v20  ;;  %1419 = vmatpush1.bf16.msra.mxu1 %v5260_v23  ;;  %v5314_v60 = vld [vmem:[#allocation8 + $0x1b0] ss:$8 sps:$4 sm:$0xff]   ;;  %v5319_v61 = vld [vmem:[#allocation8 + $0xa4] ss:$8 sps:$4 sm:$0xff]   ;;  %v5317_v63 = vld [vmem:[#allocation8 + $0xa0] ss:$8 sps:$4 sm:$0xff]  }
 0x116   : > { %1347 = vmatprep.subr.bf16.mxu0 %v5265_v24  ;;  %1420 = vmatprep.subr.bf16.mxu1 %v5268_v26  ;;  %v5322_v62 = vld [vmem:[#allocation8 + $0x1a4] ss:$8 sps:$4 sm:$0xff]   ;;  %v5320_v0 = vld [vmem:[#allocation8 + $0x1a0] ss:$8 sps:$4 sm:$0xff]   ;;  %v5325_v1 = vld [vmem:[#allocation8 + $0x94] ss:$8 sps:$4 sm:$0xff]  }
 0x117   : > { %4786 = vmatmul.mubr.msk.bf16.gmra.mxu0 %vm736_vm0, %v5237_v22  ;;  %4790 = vmatmul.mubr.msk.bf16.gmra.mxu1 %vm736_vm0, %v5237_v22  ;;  %v5328_v3 = vld [vmem:[#allocation8 + $0x194] ss:$8 sps:$4 sm:$0xff]   ;;  %v5323_v4 = vld [vmem:[#allocation8 + $0x90] ss:$8 sps:$4 sm:$0xff]   ;;  %v5331_v6 = vld [vmem:[#allocation8 + $0x84] ss:$8 sps:$4 sm:$0xff]  }
 0x118   : > { %811 = vmatprep.mubr.bf16.mxu0 %v5780_v2  ;;  %884 = vmatprep.mubr.bf16.mxu1 %v5780_v2  ;;  %v5326_v5 = vld [vmem:[#allocation8 + $0x190] ss:$8 sps:$4 sm:$0xff]   ;;  %v5334_v7 = vld [vmem:[#allocation8 + $0x184] ss:$8 sps:$4 sm:$0xff]   ;;  %v5329_v8 = vld [vmem:[#allocation8 + $0x80] ss:$8 sps:$4 sm:$0xff]  }
 0x119   : > { %1348 = vmatpush1.bf16.msra.mxu0 %v5263_v25  ;;  %1421 = vmatpush1.bf16.msra.mxu1 %v5266_v28  ;;  %v5332_v9 = vld [vmem:[#allocation8 + $0x180] ss:$8 sps:$4 sm:$0xff]   ;;  %v6198_v12 = vshrl.u32 %v676_v11, 7  ;;  %v674_v17 = vld [vmem:[#allocation6] sm:$0xf] }
 0x11a   : > { %1349 = vmatprep.subr.bf16.mxu0 %v5271_v27  ;;  %1422 = vmatprep.subr.bf16.mxu1 %v5274_v30  ;;  %v5335_v10 = vld [vmem:[#allocation11 + $0x78] sm:$0xff]  }
 0x11b   : > { %v6201_v13 = vsub.s32 1, %v6198_v12  ;;  %v690_v14 = vsub.s32 3, %v6198_v12  ;;  %v6205_v15 = vsub.s32 0, %v6198_v12  ;;  %v686_v16 = vsub.s32 2, %v6198_v12 }
 0x11d   : > { %1350 = vmatpush1.bf16.msra.mxu0 %v5269_v29  ;;  %1423 = vmatpush1.bf16.msra.mxu1 %v5272_v33  ;;  %v6209_v20 = vrot.slane %v674_v17, %v6201_v13  ;;  %v6213_v21 = vrot.slane %v674_v17, %v690_v14  ;;  %v6216_v22 = vrot.slane %v674_v17, %v6205_v15 }
 0x11e   : > { %1351 = vmatprep.subr.bf16.mxu0 %v5277_v32  ;;  %1424 = vmatprep.subr.bf16.mxu1 %v5280_v35  ;;  %v6220_v23 = vrot.slane %v674_v17, %v686_v16 }
 0x11f   : > { %4787 = vmatmul.mubr.msk.bf16.gmra.mxu0 %vm736_vm0, %v5238_v31  ;;  %4791 = vmatmul.mubr.msk.bf16.gmra.mxu1 %vm736_vm0, %v5238_v31 }
 0x121   : > { %1352 = vmatpush1.bf16.msra.mxu0 %v5275_v34  ;;  %1425 = vmatpush1.bf16.msra.mxu1 %v5278_v37 }
 0x122   : > { %1353 = vmatprep.subr.bf16.mxu0 %v5283_v36  ;;  %1426 = vmatprep.subr.bf16.mxu1 %v5286_v39 }
 0x125   : > { %1354 = vmatpush1.bf16.msra.mxu0 %v5281_v38  ;;  %1427 = vmatpush1.bf16.msra.mxu1 %v5284_v41 }
 0x126   : > { %1355 = vmatprep.subr.bf16.mxu0 %v5289_v40  ;;  %1428 = vmatprep.subr.bf16.mxu1 %v5292_v43 }
 0x129   : > { %1356 = vmatpush2.bf16.msra.mxu0 %v5287_v42  ;;  %1429 = vmatpush2.bf16.msra.mxu1 %v5290_v44 }
 0x12a   : > { %1357 = vmatprep.subr.bf16.mxu0 %v5295_v45  ;;  %1430 = vmatprep.subr.bf16.mxu1 %v5298_v47 }
 0x12d   : > { %1358 = vmatpush2.bf16.msra.mxu0 %v5293_v46  ;;  %1431 = vmatpush2.bf16.msra.mxu1 %v5296_v49 }
 0x12e   : > { %1359 = vmatprep.subr.bf16.mxu0 %v5301_v48  ;;  %1432 = vmatprep.subr.bf16.mxu1 %v5304_v51 }
 0x131   : > { %1360 = vmatpush2.bf16.msra.mxu0 %v5299_v50  ;;  %1433 = vmatpush2.bf16.msra.mxu1 %v5302_v53 }
 0x132   : > { %1361 = vmatprep.subr.bf16.mxu0 %v5307_v52  ;;  %1434 = vmatprep.subr.bf16.mxu1 %v5310_v55  ;;  %v5336_v52 = vld [vmem:[#allocation11 + $0x38] sm:$0xff]  }
 0x135   : > { %1362 = vmatpush2.bf16.msra.mxu0 %v5305_v54  ;;  %1435 = vmatpush2.bf16.msra.mxu1 %v5308_v57 }
 0x136   : > { %1363 = vmatprep.subr.bf16.mxu0 %v5313_v56  ;;  %1436 = vmatprep.subr.bf16.mxu1 %v5316_v59 }
 0x139   : > { %1364 = vmatpush2.bf16.msra.mxu0 %v5311_v58  ;;  %1437 = vmatpush2.bf16.msra.mxu1 %v5314_v60  ;;  %v5337_v58 = vld [vmem:[#allocation11 + $0x70] sm:$0xff]  }
 0x13a   : > { %1365 = vmatprep.subr.bf16.mxu0 %v5319_v61  ;;  %1438 = vmatprep.subr.bf16.mxu1 %v5322_v62 }
 0x13d   : > { %1366 = vmatpush2.bf16.msra.mxu0 %v5317_v63  ;;  %1439 = vmatpush2.bf16.msra.mxu1 %v5320_v0 }
 0x13e   : > { %1367 = vmatprep.subr.bf16.mxu0 %v5325_v1  ;;  %1440 = vmatprep.subr.bf16.mxu1 %v5328_v3 }
 0x141   : > { %1368 = vmatpush2.bf16.msra.mxu0 %v5323_v4  ;;  %1441 = vmatpush2.bf16.msra.mxu1 %v5326_v5  ;;  %v5338_v5 = vld [vmem:[#allocation11 + $0x30] sm:$0xff]  }
 0x142   : > { %1369 = vmatprep.subr.bf16.mxu0 %v5331_v6  ;;  %1442 = vmatprep.subr.bf16.mxu1 %v5334_v7 }
 0x145   : > { %1370 = vmatpush2.bf16.msra.mxu0 %v5329_v8  ;;  %1443 = vmatpush2.bf16.msra.mxu1 %v5332_v9 }
 0x146   : > { %4959 = vmatprep.subr.bf16.mxu0 %v5335_v10  ;;  %v5339_v10 = vld [vmem:[#allocation11 + $0x68] sm:$0xff]  }
 0x1c7   : > { %v783_v18 = vpop.f32.mrf.mxu0  ;;  %v856_v19 = vpop.f32.mrf.mxu1 }
 0x1c8   : > { %v784_v32 = vadd.f32 %v783_v18, %v6216_v22  ;;  %v857_v33 = vadd.f32 %v856_v19, %v6220_v23 }
 0x1c9   : > { %v785_v24 = vpop.f32.mrf.mxu0  ;;  %v858_v25 = vpop.f32.mrf.mxu1 }
 0x1ca   : > { %v786_v28 = vadd.f32 %v785_v24, %v6209_v20  ;;  %v859_v29 = vadd.f32 %v858_v25, %v6213_v21  ;;  %v895_v46 = vmax.f32 %v784_v32, 0.0  ;;  %v897_v47 = vmax.f32 %v857_v33, 0.0 }
 0x1cb   : > { %v787_v26 = vpop.f32.mrf.mxu0  ;;  %v860_v27 = vpop.f32.mrf.mxu1 }
 0x1cc   : > { %v788_v30 = vadd.f32 %v787_v26, %v6216_v22  ;;  %v861_v31 = vadd.f32 %v860_v27, %v6220_v23  ;;  %v896_v42 = vmax.f32 %v786_v28, 0.0  ;;  %v898_v43 = vmax.f32 %v859_v29, 0.0 }
 0x1cd   : > { %v789_v34 = vpop.f32.mrf.mxu0  ;;  %v862_v35 = vpop.f32.mrf.mxu1 }
 0x1ce   : > { %v790_v36 = vadd.f32 %v789_v34, %v6209_v20  ;;  %v863_v37 = vadd.f32 %v862_v35, %v6213_v21  ;;  %v899_v38 = vmax.f32 %v788_v30, 0.0  ;;  %v901_v39 = vmax.f32 %v861_v31, 0.0  ;;  %v5340_v30 = vld [vmem:[#allocation11 + $0x28] sm:$0xff]  }
 0x1cf   : > { %v793_v40 = vpop.f32.mrf.mxu0  ;;  %v866_v41 = vpop.f32.mrf.mxu1 }
 0x1d0   : > { %v900_v44 = vmax.f32 %v790_v36, 0.0  ;;  %v902_v45 = vmax.f32 %v863_v37, 0.0  ;;  %v927_v53 = vpack.c.bf16 %v899_v38, %v895_v46  ;;  %v929_v54 = vpack.c.bf16 %v901_v39, %v897_v47  ;;  %v5341_v36 = vld [vmem:[#allocation11 + $0x60] sm:$0xff]  }
 0x1d1   : > { %v795_v48 = vpop.f32.mrf.mxu0  ;;  %v868_v49 = vpop.f32.mrf.mxu1  ;;  %v794_v62 = vadd.f32 %v793_v40, %v6216_v22  ;;  %v867_v63 = vadd.f32 %v866_v41, %v6220_v23  ;;  %v5342_v46 = vld [vmem:[#allocation11 + $0x20] sm:$0xff]  }
 0x1d2   : > { %v928_v50 = vpack.c.bf16 %v900_v44, %v896_v42  ;;  %v930_v51 = vpack.c.bf16 %v902_v45, %v898_v43  ;;  %v796_v55 = vadd.f32 %v795_v48, %v6209_v20  ;;  %v869_v59 = vadd.f32 %v868_v49, %v6213_v21 }
 0x1d3   : > { %v797_v56 = vpop.f32.mrf.mxu0  ;;  %v870_v57 = vpop.f32.mrf.mxu1  ;;  %v903_v24 = vmax.f32 %v794_v62, 0.0  ;;  %v905_v25 = vmax.f32 %v867_v63, 0.0 }
 0x1d4   : > { %v798_v60 = vadd.f32 %v797_v56, %v6216_v22  ;;  %v871_v61 = vadd.f32 %v870_v57, %v6220_v23  ;;  %1371 = vmatprep.mubr.bf16.mxu0 %v928_v50  ;;  %1444 = vmatprep.mubr.bf16.mxu1 %v930_v51  ;;  %v904_v11 = vmax.f32 %v796_v55, 0.0  ;;  %v906_v17 = vmax.f32 %v869_v59, 0.0 }
 0x1d5   : > { %v799_v0 = vpop.f32.mrf.mxu0  ;;  %v872_v1 = vpop.f32.mrf.mxu1  ;;  %1372 = vmatmul.mubr.bf16.vlgmr.msra.gmra.mxu0 %v927_v53  ;;  %1445 = vmatmul.mubr.bf16.vlgmr.msra.gmra.mxu1 %v929_v54 }
 0x1d6   : > { %v800_v3 = vadd.f32 %v799_v0, %v6209_v20  ;;  %v873_v4 = vadd.f32 %v872_v1, %v6213_v21  ;;  %4960 = vmatpush3.bf16.msra.mxu0 %v5336_v52  ;;  %v907_v6 = vmax.f32 %v798_v60, 0.0  ;;  %v909_v7 = vmax.f32 %v871_v61, 0.0 }
 0x1d7   : > { %v803_v8 = vpop.f32.mrf.mxu0  ;;  %v876_v9 = vpop.f32.mrf.mxu1  ;;  %4961 = vmatprep.subr.bf16.mxu0 %v5337_v58 }
 0x1d8   : > { %v908_v18 = vmax.f32 %v800_v3, 0.0  ;;  %v910_v19 = vmax.f32 %v873_v4, 0.0  ;;  %v931_v31 = vpack.c.bf16 %v907_v6, %v903_v24  ;;  %v933_v32 = vpack.c.bf16 %v909_v7, %v905_v25 }
 0x1d9   : > { %v805_v26 = vpop.f32.mrf.mxu0  ;;  %v878_v27 = vpop.f32.mrf.mxu1  ;;  %v804_v40 = vadd.f32 %v803_v8, %v6216_v22  ;;  %v877_v41 = vadd.f32 %v876_v9, %v6220_v23 }
 0x1da   : > { %v932_v28 = vpack.c.bf16 %v908_v18, %v904_v11  ;;  %v934_v29 = vpack.c.bf16 %v910_v19, %v906_v17  ;;  %4962 = vmatpush3.bf16.msra.mxu0 %v5338_v5  ;;  %v806_v33 = vadd.f32 %v805_v26, %v6209_v20  ;;  %v879_v37 = vadd.f32 %v878_v27, %v6213_v21 }
 0x1db   : > { %v807_v34 = vpop.f32.mrf.mxu0  ;;  %v880_v35 = vpop.f32.mrf.mxu1  ;;  %4963 = vmatprep.subr.bf16.mxu0 %v5339_v10  ;;  %v911_v55 = vmax.f32 %v804_v40, 0.0  ;;  %v913_v56 = vmax.f32 %v877_v41, 0.0 }
 0x1dc   : > { %v808_v38 = vadd.f32 %v807_v34, %v6216_v22  ;;  %v881_v39 = vadd.f32 %v880_v35, %v6220_v23  ;;  %1381 = vmatprep.mubr.bf16.mxu0 %v932_v28  ;;  %1454 = vmatprep.mubr.bf16.mxu1 %v934_v29  ;;  %v912_v51 = vmax.f32 %v806_v33, 0.0  ;;  %v914_v52 = vmax.f32 %v879_v37, 0.0  ;;  %v5347_v33 = vld [vmem:[#allocation11 + $0x48] sm:$0xff]   ;;  %v5349_v35 = vld [vmem:[#allocation11 + $0x40] sm:$0xff]   ;;  %v1007_v37 = vld [vmem:[#allocation9] sm:$0x3] }
 0x1dd   : > { %v809_v42 = vpop.f32.mrf.mxu0  ;;  %v882_v43 = vpop.f32.mrf.mxu1  ;;  %1382 = vmatmul.mubr.bf16.gmra.mxu0 %v931_v31  ;;  %1455 = vmatmul.mubr.bf16.gmra.mxu1 %v933_v32  ;;  %v5343_v31 = vld [vmem:[#allocation11 + $0x58] sm:$0xff]   ;;  %v5346_v32 = vld [vmem:[#allocation11 + $0x10] sm:$0xff]   ;;  %v5348_v34 = vld [vmem:[#allocation11 + $0x8] sm:$0xff]  }
 0x1de   : > { %v810_v44 = vadd.f32 %v809_v42, %v6209_v20  ;;  %v883_v45 = vadd.f32 %v882_v43, %v6213_v21  ;;  %4964 = vmatpush3.bf16.msra.mxu0 %v5340_v30  ;;  %v915_v47 = vmax.f32 %v808_v38, 0.0  ;;  %v917_v48 = vmax.f32 %v881_v39, 0.0 }
 0x1df   : > { %v813_v49 = vpop.f32.mrf.mxu0  ;;  %v886_v50 = vpop.f32.mrf.mxu1  ;;  %4965 = vmatprep.subr.bf16.mxu0 %v5341_v36  ;;  %v5350_v36 = vld [vmem:[#allocation11] sm:$0xff]   ;;  %v6255_v38 = vrot.slane %v1007_v37, %v6201_v13  ;;  %v6258_v39 = vrot.slane %v1007_v37, %v6205_v15 }
 0x1e0   : > { %v916_v53 = vmax.f32 %v810_v44, 0.0  ;;  %v918_v54 = vmax.f32 %v883_v45, 0.0  ;;  %v935_v61 = vpack.c.bf16 %v915_v47, %v911_v55  ;;  %v937_v62 = vpack.c.bf16 %v917_v48, %v913_v56 }
 0x1e1   : > { %v815_v57 = vpop.f32.mrf.mxu0  ;;  %v888_v58 = vpop.f32.mrf.mxu1  ;;  %v814_v6 = vadd.f32 %v813_v49, %v6216_v22  ;;  %v887_v7 = vadd.f32 %v886_v50, %v6220_v23 }
 0x1e2   : > { %v936_v59 = vpack.c.bf16 %v916_v53, %v912_v51  ;;  %v938_v60 = vpack.c.bf16 %v918_v54, %v914_v52  ;;  %4966 = vmatpush3.bf16.msra.mxu0 %v5342_v46  ;;  %v816_v63 = vadd.f32 %v815_v57, %v6209_v20  ;;  %v889_v3 = vadd.f32 %v888_v58, %v6213_v21 }
 0x1e3   : > { %v817_v0 = vpop.f32.mrf.mxu0  ;;  %v890_v1 = vpop.f32.mrf.mxu1  ;;  %v919_v27 = vmax.f32 %v814_v6, 0.0  ;;  %v921_v28 = vmax.f32 %v887_v7, 0.0  ;;  %4967 = vmatprep.subr.bf16.mxu0 %v5343_v31 }
 0x1e4   : > { %v818_v4 = vadd.f32 %v817_v0, %v6216_v22  ;;  %v891_v5 = vadd.f32 %v890_v1, %v6220_v23  ;;  %1391 = vmatprep.mubr.bf16.mxu0 %v936_v59  ;;  %1464 = vmatprep.mubr.bf16.mxu1 %v938_v60  ;;  %v920_v19 = vmax.f32 %v816_v63, 0.0  ;;  %v922_v24 = vmax.f32 %v889_v3, 0.0 }
 0x1e5   : > { %v819_v8 = vpop.f32.mrf.mxu0  ;;  %v892_v9 = vpop.f32.mrf.mxu1  ;;  %1392 = vmatmul.mubr.bf16.gmra.mxu0 %v935_v61  ;;  %1465 = vmatmul.mubr.bf16.gmra.mxu1 %v937_v62 }
 0x1e6   : > { %v820_v10 = vadd.f32 %v819_v8, %v6209_v20  ;;  %v893_v11 = vadd.f32 %v892_v9, %v6213_v21  ;;  %v923_v17 = vmax.f32 %v818_v4, 0.0  ;;  %v925_v18 = vmax.f32 %v891_v5, 0.0  ;;  %v5344_v20 = vld [vmem:[#allocation11 + $0x18] sm:$0xff]   ;;  %v5345_v21 = vld [vmem:[#allocation11 + $0x50] sm:$0xff]  }
 0x1e7   : > { %4968 = vmatpush3.bf16.msra.mxu0 %v5344_v20 }
 0x1e8   : > { %v924_v25 = vmax.f32 %v820_v10, 0.0  ;;  %v926_v26 = vmax.f32 %v893_v11, 0.0  ;;  %v939_v30 = vpack.c.bf16 %v923_v17, %v919_v27  ;;  %v941_v23 = vpack.c.bf16 %v925_v18, %v921_v28  ;;  %4969 = vmatprep.subr.bf16.mxu0 %v5345_v21 }
 0x1ea   : > { %v940_v29 = vpack.c.bf16 %v924_v25, %v920_v19  ;;  %v942_v22 = vpack.c.bf16 %v926_v26, %v922_v24 }
 0x1eb   : > { %4970 = vmatpush3.bf16.msra.mxu0 %v5346_v32 }
 0x1ec   : > { %1401 = vmatprep.mubr.bf16.mxu0 %v940_v29  ;;  %1474 = vmatprep.mubr.bf16.mxu1 %v942_v22 }
 0x1ed   : > { %1402 = vmatmul.mubr.bf16.gmra.mxu0 %v939_v30  ;;  %1475 = vmatmul.mubr.bf16.gmra.mxu1 %v941_v23 }
 0x1ee   : > { %4971 = vmatprep.subr.bf16.mxu0 %v5347_v33 }
 0x1ef   : > { %4972 = vmatpush3.bf16.msra.mxu0 %v5348_v34 }
 0x1f0   : > { %4973 = vmatprep.subr.bf16.mxu0 %v5349_v35 }
 0x1f3   : > { %4974 = vmatpush3.bf16.msra.mxu0 %v5350_v36 }
 0x295   : > { %v1373_v40 = vpop.f32.mrf.mxu0  ;;  %v1446_v41 = vpop.f32.mrf.mxu1 }
 0x296   : > { %v1374_v45 = vadd.f32 %v1373_v40, %v6258_v39 }
 0x297   : > { %v1375_v42 = vpop.f32.mrf.mxu0  ;;  %v1448_v43 = vpop.f32.mrf.mxu1 }
 0x298   : > { %v1376_v44 = vadd.f32 %v1375_v42, %v6255_v38  ;;  %v1447_v54 = vadd.f32 %v1446_v41, %v1374_v45 }
 0x299   : > { %v1377_v46 = vpop.f32.mrf.mxu0  ;;  %v1450_v47 = vpop.f32.mrf.mxu1 }
 0x29a   : > { %v1378_v48 = vadd.f32 %v1377_v46, %v6258_v39  ;;  %v1449_v51 = vadd.f32 %v1448_v43, %v1376_v44  ;;  %v1485_v0 = vmax.f32 %v1447_v54, 0.0 }
 0x29b   : > { %v1379_v49 = vpop.f32.mrf.mxu0  ;;  %v1452_v50 = vpop.f32.mrf.mxu1 }
 0x29c   : > { %v1451_v52 = vadd.f32 %v1450_v47, %v1378_v48  ;;  %v1380_v53 = vadd.f32 %v1379_v49, %v6255_v38  ;;  %v1486_v61 = vmax.f32 %v1449_v51, 0.0 }
 0x29d   : > { %v1383_v55 = vpop.f32.mrf.mxu0  ;;  %v1456_v56 = vpop.f32.mrf.mxu1 }
 0x29e   : > { %v1453_v57 = vadd.f32 %v1452_v50, %v1380_v53  ;;  %v1487_v58 = vmax.f32 %v1451_v52, 0.0  ;;  %v1384_v1 = vadd.f32 %v1383_v55, %v6258_v39 }
 0x29f   : > { %v1385_v59 = vpop.f32.mrf.mxu0  ;;  %v1458_v60 = vpop.f32.mrf.mxu1 }
 0x2a0   : > { %v1488_v62 = vmax.f32 %v1453_v57, 0.0  ;;  %v1386_v63 = vadd.f32 %v1385_v59, %v6255_v38  ;;  %v1501_v7 = vpack.c.bf16 %v1487_v58, %v1485_v0  ;;  %v1457_v18 = vadd.f32 %v1456_v56, %v1384_v1 }
 0x2a1   : > { %v1387_v3 = vpop.f32.mrf.mxu0  ;;  %v1460_v4 = vpop.f32.mrf.mxu1 }
 0x2a2   : > { %v1502_v5 = vpack.c.bf16 %v1488_v62, %v1486_v61  ;;  %v1388_v6 = vadd.f32 %v1387_v3, %v6258_v39  ;;  %v1459_v10 = vadd.f32 %v1458_v60, %v1386_v63  ;;  %v1489_v23 = vmax.f32 %v1457_v18, 0.0  ;;  %v1849_v18 = vld [vmem:[#allocation14 + $0x1a0] sm:$0xff] }
 0x2a3   : > { %v1389_v8 = vpop.f32.mrf.mxu0  ;;  %v1462_v9 = vpop.f32.mrf.mxu1 }
 0x2a4   : > { %v1461_v11 = vadd.f32 %v1460_v4, %v1388_v6  ;;  %v1390_v17 = vadd.f32 %v1389_v8, %v6255_v38  ;;  %1676 = vmatprep.mubr.bf16.mxu0 %v1502_v5  ;;  %v1490_v29 = vmax.f32 %v1459_v10, 0.0 }
 0x2a5   : > { %v1393_v19 = vpop.f32.mrf.mxu0  ;;  %v1466_v24 = vpop.f32.mrf.mxu1  ;;  %1677 = vmatmul.mubr.bf16.vlgmr.msra.gmra.mxu0 %v1501_v7 }
 0x2a6   : > { %v1463_v25 = vadd.f32 %v1462_v9, %v1390_v17  ;;  %v1491_v26 = vmax.f32 %v1461_v11, 0.0  ;;  %v1394_v31 = vadd.f32 %v1393_v19, %v6258_v39  ;;  %v1857_v9 = vld [vmem:[#allocation14 + $0x1e0] sm:$0xff] }
 0x2a7   : > { %v1395_v27 = vpop.f32.mrf.mxu0  ;;  %v1468_v28 = vpop.f32.mrf.mxu1  ;;  %v1845_v17 = vld [vmem:[#allocation14 + $0x180] sm:$0xff] }
 0x2a8   : > { %v1492_v22 = vmax.f32 %v1463_v25, 0.0  ;;  %v1396_v30 = vadd.f32 %v1395_v27, %v6255_v38  ;;  %v1503_v34 = vpack.c.bf16 %v1491_v26, %v1489_v23  ;;  %v1467_v42 = vadd.f32 %v1466_v24, %v1394_v31  ;;  %v1837_v25 = vld [vmem:[#allocation14 + $0x140] sm:$0xff] }
 0x2a9   : > { %v1397_v20 = vpop.f32.mrf.mxu0  ;;  %v1470_v21 = vpop.f32.mrf.mxu1  ;;  %v4924_v19 = vcombine.high %v1845_v17, %v1849_v18  ;;  %v4923_v24 = vcombine.low %v1845_v17, %v1849_v18  ;;  %v1841_v26 = vld [vmem:[#allocation14 + $0x160] sm:$0xff] }
 0x2aa   : > { %v1504_v32 = vpack.c.bf16 %v1492_v22, %v1490_v29  ;;  %v1398_v33 = vadd.f32 %v1397_v20, %v6258_v39  ;;  %v1469_v37 = vadd.f32 %v1468_v28, %v1396_v30  ;;  %v1493_v52 = vmax.f32 %v1467_v42, 0.0  ;;  %v1829_v29 = vld [vmem:[#allocation14 + $0x100] sm:$0xff] }
 0x2ab   : > { %v1399_v35 = vpop.f32.mrf.mxu0  ;;  %v1472_v36 = vpop.f32.mrf.mxu1  ;;  %v4916_v27 = vcombine.high %v1837_v25, %v1841_v26  ;;  %v4915_v28 = vcombine.low %v1837_v25, %v1841_v26  ;;  %v1833_v22 = vld [vmem:[#allocation14 + $0x120] sm:$0xff] }
 0x2ac   : > { %v1471_v40 = vadd.f32 %v1470_v21, %v1398_v33  ;;  %v1400_v41 = vadd.f32 %v1399_v35, %v6255_v38  ;;  %1684 = vmatprep.mubr.bf16.mxu0 %v1504_v32  ;;  %v1494_v49 = vmax.f32 %v1469_v37, 0.0  ;;  %v4908_v30 = vcombine.high %v1829_v29, %v1833_v22  ;;  %v1821_v31 = vld [vmem:[#allocation14 + $0xc0] sm:$0xff] }
 0x2ad   : > { %v1403_v43 = vpop.f32.mrf.mxu0  ;;  %v1476_v44 = vpop.f32.mrf.mxu1  ;;  %1685 = vmatmul.mubr.bf16.gmra.mxu0 %v1503_v34  ;;  %v4907_v23 = vcombine.low %v1829_v29, %v1833_v22  ;;  %v1825_v20 = vld [vmem:[#allocation14 + $0xe0] sm:$0xff] }
 0x2ae   : > { %v1473_v45 = vadd.f32 %v1472_v36, %v1400_v41  ;;  %v1495_v46 = vmax.f32 %v1471_v40, 0.0  ;;  %v1404_v53 = vadd.f32 %v1403_v43, %v6258_v39  ;;  %v4900_v21 = vcombine.high %v1821_v31, %v1825_v20  ;;  %v1813_v33 = vld [vmem:[#allocation14 + $0x80] sm:$0xff] }
 0x2af   : > { %v1405_v47 = vpop.f32.mrf.mxu0  ;;  %v1478_v48 = vpop.f32.mrf.mxu1  ;;  %v4899_v32 = vcombine.low %v1821_v31, %v1825_v20  ;;  %v1817_v34 = vld [vmem:[#allocation14 + $0xa0] sm:$0xff]  ;;  %v1846_v20 = vld [vmem:[#allocation14 + $0x188] sm:$0xff] }
 0x2b0   : > { %v1496_v50 = vmax.f32 %v1473_v45, 0.0  ;;  %v1406_v51 = vadd.f32 %v1405_v47, %v6255_v38  ;;  %v1505_v58 = vpack.c.bf16 %v1495_v46, %v1493_v52  ;;  %v1477_v63 = vadd.f32 %v1476_v44, %v1404_v53  ;;  %v1805_v37 = vld [vmem:[#allocation14 + $0x40] sm:$0xff] }
 0x2b1   : > { %v1407_v54 = vpop.f32.mrf.mxu0  ;;  %v1480_v55 = vpop.f32.mrf.mxu1  ;;  %v4892_v35 = vcombine.high %v1813_v33, %v1817_v34  ;;  %v4891_v36 = vcombine.low %v1813_v33, %v1817_v34  ;;  %v1809_v40 = vld [vmem:[#allocation14 + $0x60] sm:$0xff]  ;;  %v1717_v34 = vld [vmem:[%s6886_s29] sm:$0x3] }
 0x2b2   : > { %v1506_v56 = vpack.c.bf16 %v1496_v50, %v1494_v49  ;;  %v1408_v57 = vadd.f32 %v1407_v54, %v6258_v39  ;;  %v1479_v60 = vadd.f32 %v1478_v48, %v1406_v51  ;;  %v1497_v6 = vmax.f32 %v1477_v63, 0.0  ;;  %v1797_v43 = vld [vmem:[#allocation14] sm:$0xff] }
 0x2b3   : > { %v1409_v59 = vpop.f32.mrf.mxu0  ;;  %v1482_v0 = vpop.f32.mrf.mxu1  ;;  %v5781_v39 = vmov 0.0   ;;  %v4884_v41 = vcombine.high %v1805_v37, %v1809_v40  ;;  %v4883_v42 = vcombine.low %v1805_v37, %v1809_v40  ;;  %v1801_v44 = vld [vmem:[#allocation14 + $0x20] sm:$0xff]  ;;  %v1838_v37 = vld [vmem:[#allocation14 + $0x148] sm:$0xff] }
 0x2b4   : > { %v1481_v61 = vadd.f32 %v1480_v55, %v1408_v57  ;;  %v1410_v62 = vadd.f32 %v1409_v59, %v6255_v38  ;;  %1692 = vmatprep.mubr.bf16.mxu0 %v1506_v56  ;;  %v1498_v4 = vmax.f32 %v1479_v60, 0.0  ;;  %5008 = vmatprep.subr.mxu1 %v5781_v39  ;;  %2462 = vst [vmem:[#allocation3 + $0x10] sm:$0xff] %v5781_v39  ;;  %2463 = vst [vmem:[#allocation3] sm:$0xff] %v5781_v39  ;;  %v1853_v38 = vld [vmem:[#allocation14 + $0x1c0] sm:$0xff]  ;;  %v1842_v40 = vld [vmem:[#allocation14 + $0x168] sm:$0xff] }
 0x2b5   : > { %1693 = vmatmul.mubr.bf16.gmra.mxu0 %v1505_v58  ;;  %2464 = vst [vmem:[#allocation3 + $0x18] sm:$0xff] %v5781_v39  ;;  %2465 = vst [vmem:[#allocation3 + $0x8] sm:$0xff] %v5781_v39  ;;  %5024 = vmatprep.mubr.msk.f32.mxu1 %vm5782_vm1, %v5781_v39  ;;  %v4931_v10 = vcombine.low %v1853_v38, %v1857_v9  ;;  %v4932_v11 = vcombine.high %v1853_v38, %v1857_v9 }
 0x2b6   : > { %v1483_v1 = vadd.f32 %v1482_v0, %v1410_v62  ;;  %v1499_v3 = vmax.f32 %v1481_v61, 0.0  ;;  %v4876_v45 = vcombine.high %v1797_v43, %v1801_v44  ;;  %v4875_v46 = vcombine.low %v1797_v43, %v1801_v44  ;;  %v1830_v43 = vld [vmem:[#allocation14 + $0x108] sm:$0xff] }
 0x2b7   : > { %2223 = vmatprep.subr.bf16.mxu0 %v4932_v11  ;;  %v1834_v44 = vld [vmem:[#allocation14 + $0x128] sm:$0xff] }
 0x2b8   : > { %v1500_v5 = vmax.f32 %v1483_v1, 0.0  ;;  %v1507_v8 = vpack.c.bf16 %v1499_v3, %v1497_v6  ;;  %2224 = vmatpush1.bf16.msra.mxu0 %v4931_v10  ;;  %v4856_v3 = vld [vmem:[#allocation12] ss:$0 sm:$0xff] }
 0x2b9   : > { %2225 = vmatprep.subr.bf16.mxu0 %v4924_v19 }
 0x2ba   : > { %v1508_v7 = vpack.c.bf16 %v1500_v5, %v1498_v4 }
 0x2bc   : > { %1700 = vmatprep.mubr.bf16.mxu0 %v1508_v7  ;;  %2226 = vmatpush1.bf16.msra.mxu0 %v4923_v24 }
 0x2bd   : > { %1701 = vmatmul.mubr.bf16.gmra.mxu0 %v1507_v8  ;;  %2227 = vmatprep.subr.bf16.mxu0 %v4916_v27 }
 0x2be   : > { %2255 = vmatprep.mubr.bf16.mxu0 %v5780_v2 }
 0x2c0   : > { %2228 = vmatpush1.bf16.msra.mxu0 %v4915_v28 }
 0x2c1   : > { %2229 = vmatprep.subr.bf16.mxu0 %v4908_v30  ;;  %v1854_v30 = vld [vmem:[#allocation14 + $0x1c8] sm:$0xff] }
 0x2c4   : > { %2230 = vmatpush1.bf16.msra.mxu0 %v4907_v23  ;;  %v1858_v23 = vld [vmem:[#allocation14 + $0x1e8] sm:$0xff] }
 0x2c5   : > { %2231 = vmatprep.subr.bf16.mxu0 %v4900_v21  ;;  %v1850_v21 = vld [vmem:[#allocation14 + $0x1a8] sm:$0xff] }
 0x2c8   : > { %2232 = vmatpush1.bf16.msra.mxu0 %v4899_v32  ;;  %v4934_v32 = vcombine.high %v1854_v30, %v1858_v23 }
 0x2c9   : > { %2233 = vmatprep.subr.bf16.mxu0 %v4892_v35  ;;  %v4933_v35 = vcombine.low %v1854_v30, %v1858_v23 }
 0x2cc   : > { %2234 = vmatpush1.bf16.msra.mxu0 %v4891_v36  ;;  %v4926_v36 = vcombine.high %v1846_v20, %v1850_v21 }
 0x2cd   : > { %2235 = vmatprep.subr.bf16.mxu0 %v4884_v41  ;;  %v4925_v41 = vcombine.low %v1846_v20, %v1850_v21  ;;  %v1835_v20 = vld [vmem:[#allocation14 + $0x130] sm:$0xff]  ;;  %v1832_v21 = vld [vmem:[#allocation14 + $0x118] sm:$0xff] }
 0x2d0   : > { %2236 = vmatpush1.bf16.msra.mxu0 %v4883_v42  ;;  %v4918_v42 = vcombine.high %v1838_v37, %v1842_v40 }
 0x2d1   : > { %2237 = vmatprep.subr.bf16.mxu0 %v4876_v45  ;;  %v4917_v45 = vcombine.low %v1838_v37, %v1842_v40  ;;  %v1823_v37 = vld [vmem:[#allocation14 + $0xd0] sm:$0xff] }
 0x2d2   : > { %v1827_v40 = vld [vmem:[#allocation14 + $0xf0] sm:$0xff] }
 0x2d4   : > { %2238 = vmatpush1.bf16.msra.mxu0 %v4875_v46  ;;  %v4910_v46 = vcombine.high %v1830_v43, %v1834_v44 }
 0x365   : > { %v4975_v47 = vpop.f32.mrf.mxu0 }
 0x367   : > { %v4976_v48 = vpop.f32.mrf.mxu0 }
 0x368   : > { %v4977_v24 = vadd.f32 %v4976_v48, %v4975_v47  ;;  %v1822_v47 = vld [vmem:[#allocation14 + $0xc8] sm:$0xff]  ;;  %v4909_v48 = vcombine.low %v1830_v43, %v1834_v44 }
 0x369   : > { %v4978_v49 = vpop.f32.mrf.mxu0 }
 0x36a   : > { %v1679_v29 = vadd.f32 %v4977_v24, %v4856_v3  ;;  %v1839_v24 = vld [vmem:[#allocation14 + $0x150] sm:$0xff] }
 0x36b   : > { %v4979_v50 = vpop.f32.mrf.mxu0 }
 0x36c   : > { %v4980_v17 = vadd.f32 %v4979_v50, %v4978_v49  ;;  %v1709_v33 = vmax.f32 %v1679_v29, 0.0  ;;  %v1814_v50 = vld [vmem:[#allocation14 + $0x88] sm:$0xff] }
 0x36d   : > { %v4981_v51 = vpop.f32.mrf.mxu0 }
 0x36e   : > { %v1682_v27 = vadd.f32 %v4980_v17, %v4856_v3 }
 0x36f   : > { %v4982_v52 = vpop.f32.mrf.mxu0 }
 0x370   : > { %v4983_v9 = vadd.f32 %v4982_v52, %v4981_v51  ;;  %v1710_v31 = vmax.f32 %v1682_v27, 0.0  ;;  %v1818_v51 = vld [vmem:[#allocation14 + $0xa8] sm:$0xff]  ;;  %v1844_v27 = vld [vmem:[#allocation14 + $0x178] sm:$0xff] }
 0x371   : > { %v4984_v53 = vpop.f32.mrf.mxu0 }
 0x372   : > { %v1687_v25 = vadd.f32 %v4983_v9, %v4856_v3  ;;  %v1848_v9 = vld [vmem:[#allocation14 + $0x198] sm:$0xff] }
 0x373   : > { %v4985_v54 = vpop.f32.mrf.mxu0 }
 0x374   : > { %v4986_v7 = vadd.f32 %v4985_v54, %v4984_v53  ;;  %v1711_v22 = vmax.f32 %v1687_v25, 0.0  ;;  %v4894_v53 = vcombine.high %v1814_v50, %v1818_v51  ;;  %v1806_v54 = vld [vmem:[#allocation14 + $0x48] sm:$0xff]  ;;  %v1843_v25 = vld [vmem:[#allocation14 + $0x170] sm:$0xff] }
 0x375   : > { %v4987_v55 = vpop.f32.mrf.mxu0  ;;  %v4920_v30 = vcombine.high %v1839_v24, %v1843_v25 }
 0x376   : > { %v1690_v18 = vadd.f32 %v4986_v7, %v4856_v3 }
 0x377   : > { %v4988_v56 = vpop.f32.mrf.mxu0 }
 0x378   : > { %v4989_v4 = vadd.f32 %v4988_v56, %v4987_v55  ;;  %v1712_v28 = vmax.f32 %v1690_v18, 0.0  ;;  %v1810_v55 = vld [vmem:[#allocation14 + $0x68] sm:$0xff]  ;;  %v4893_v56 = vcombine.low %v1814_v50, %v1818_v51 }
 0x379   : > { %v4990_v57 = vpop.f32.mrf.mxu0 }
 0x37a   : > { %v1695_v10 = vadd.f32 %v4989_v4, %v4856_v3 }
 0x37b   : > { %v4991_v58 = vpop.f32.mrf.mxu0 }
 0x37c   : > { %v4992_v0 = vadd.f32 %v4991_v58, %v4990_v57  ;;  %v1713_v26 = vmax.f32 %v1695_v10, 0.0  ;;  %v4886_v57 = vcombine.high %v1806_v54, %v1810_v55  ;;  %v1798_v58 = vld [vmem:[#allocation14 + $0x8] sm:$0xff]  ;;  %v1852_v10 = vld [vmem:[#allocation14 + $0x1b8] sm:$0xff] }
 0x37d   : > { %v4993_v59 = vpop.f32.mrf.mxu0 }
 0x37e   : > { %v1698_v8 = vadd.f32 %v4992_v0, %v4856_v3  ;;  %v1859_v0 = vld [vmem:[#allocation14 + $0x1f0] sm:$0xff] }
 0x37f   : > { %v4994_v60 = vpop.f32.mrf.mxu0 }
 0x380   : > { %v4995_v62 = vadd.f32 %v4994_v60, %v4993_v59  ;;  %v1714_v19 = vmax.f32 %v1698_v8, 0.0  ;;  %v1802_v59 = vld [vmem:[#allocation14 + $0x28] sm:$0xff]  ;;  %v4885_v60 = vcombine.low %v1806_v54, %v1810_v55  ;;  %v1847_v8 = vld [vmem:[#allocation14 + $0x190] sm:$0xff]  ;;  %v1808_v55 = vld [vmem:[#allocation14 + $0x58] sm:$0xff] }
 0x381   : > { %v4996_v61 = vpop.f32.mrf.mxu0  ;;  %v1811_v54 = vld [vmem:[#allocation14 + $0x70] sm:$0xff] }
 0x382   : > { %v1703_v5 = vadd.f32 %v4995_v62, %v4856_v3  ;;  %v4877_v62 = vcombine.low %v1798_v58, %v1802_v59 }
 0x383   : > { %v4997_v63 = vpop.f32.mrf.mxu0 }
 0x384   : > { %v4998_v1 = vadd.f32 %v4997_v63, %v4996_v61  ;;  %v1715_v11 = vmax.f32 %v1703_v5, 0.0  ;;  %v4878_v61 = vcombine.high %v1798_v58, %v1802_v59  ;;  %v1855_v63 = vld [vmem:[#allocation14 + $0x1d0] sm:$0xff]  ;;  %v1860_v5 = vld [vmem:[#allocation14 + $0x1f8] sm:$0xff] }
 0x385   : > { %v4936_v4 = vcombine.high %v1855_v63, %v1859_v0 }
 0x386   : > { %v1706_v6 = vadd.f32 %v4998_v1, %v4856_v3  ;;  %v1856_v1 = vld [vmem:[#allocation14 + $0x1d8] sm:$0xff]  ;;  %v4935_v3 = vcombine.low %v1855_v63, %v1859_v0 }
 0x387   : > { %v4938_v7 = vcombine.high %v1856_v1, %v1860_v5  ;;  %2305 = vmatprep.subr.bf16.mxu0 %v4936_v4  ;;  %v1800_v63 = vld [vmem:[#allocation14 + $0x18] sm:$0xff] }
 0x388   : > { %v1716_v38 = vmax.f32 %v1706_v6, 0.0  ;;  %v4937_v6 = vcombine.low %v1856_v1, %v1860_v5  ;;  %v1804_v0 = vld [vmem:[#allocation14 + $0x38] sm:$0xff] }
 0x389   : > { %v4882_v5 = vcombine.high %v1800_v63, %v1804_v0 }
 0x38a   : > { %5009 = vmatpush3.msk.msra.mxu1 %vm1722_vm2, %v1716_v38  ;;  %v1851_v38 = vld [vmem:[#allocation14 + $0x1b0] sm:$0xff] }
 0x38b   : > { %5010 = vmatprep.subr.mxu1 %v5781_v39  ;;  %v4928_v18 = vcombine.high %v1847_v8, %v1851_v38  ;;  %v4927_v29 = vcombine.low %v1847_v8, %v1851_v38 }
 0x38c   : > { %5011 = vmatpush3.msra.mxu1 %v1715_v11 }
 0x38d   : > { %5012 = vmatprep.subr.mxu1 %v5781_v39 }
 0x38e   : > { %5013 = vmatpush3.msra.mxu1 %v1714_v19  ;;  %v4930_v19 = vcombine.high %v1848_v9, %v1852_v10 }
 0x38f   : > { %5014 = vmatprep.subr.mxu1 %v5781_v39 }
 0x390   : > { %5015 = vmatpush3.msra.mxu1 %v1713_v26  ;;  %v1840_v26 = vld [vmem:[#allocation14 + $0x158] sm:$0xff] }
 0x391   : > { %5016 = vmatprep.subr.mxu1 %v5781_v39  ;;  %v4922_v23 = vcombine.high %v1840_v26, %v1844_v27 }
 0x392   : > { %5017 = vmatpush3.msra.mxu1 %v1712_v28 }
 0x393   : > { %5018 = vmatprep.subr.mxu1 %v5781_v39 }
 0x394   : > { %5019 = vmatpush3.msra.mxu1 %v1711_v22  ;;  %v4929_v22 = vcombine.low %v1848_v9, %v1852_v10 }
 0x395   : > { %5020 = vmatprep.subr.mxu1 %v5781_v39 }
 0x396   : > { %5021 = vmatpush3.msra.mxu1 %v1710_v31  ;;  %v1831_v31 = vld [vmem:[#allocation14 + $0x110] sm:$0xff] }
 0x397   : > { %5022 = vmatprep.subr.mxu1 %v5781_v39  ;;  %v1826_v39 = vld [vmem:[#allocation14 + $0xe8] sm:$0xff]  ;;  %v4911_v43 = vcombine.low %v1831_v31, %v1835_v20 }
 0x398   : > { %5023 = vmatpush3.msra.mxu1 %v1709_v33  ;;  %v4902_v49 = vcombine.high %v1822_v47, %v1826_v39  ;;  %v4901_v52 = vcombine.low %v1822_v47, %v1826_v39  ;;  %v4919_v33 = vcombine.low %v1839_v24, %v1843_v25  ;;  %v1819_v47 = vld [vmem:[#allocation14 + $0xb0] sm:$0xff]  ;;  %v1816_v39 = vld [vmem:[#allocation14 + $0x98] sm:$0xff]  ;;  %v1861_v25 = vld [vmem:[#allocation15] sm:$0xff] }
 0x399   : > { %5025 = vmatmul.mubr.msk.f32.vlgmr.msra.gmra.mxu1 %vm1718_vm3, %v1717_v34  ;;  %2264 = vmatprep.subr.bf16.mxu1 %v4934_v32  ;;  %v1836_v32 = vld [vmem:[#allocation14 + $0x138] sm:$0xff]  ;;  %v4921_v34 = vcombine.low %v1840_v26, %v1844_v27  ;;  %v1870_v26 = vrot.slane %v1861_v25, %v6201_v13  ;;  %v1878_v27 = vrot.slane %v1861_v25, %v690_v14  ;;  %v1885_v13 = vsub.s32 5, %v6198_v12 }
 0x39a   : > { %2265 = vmatpush1.bf16.msra.mxu1 %v4933_v35  ;;  %2296 = vmatprep.mubr.bf16.mxu1 %v5780_v2  ;;  %v4912_v35 = vcombine.high %v1831_v31, %v1835_v20  ;;  %v4913_v44 = vcombine.low %v1832_v21, %v1836_v32  ;;  %v1881_v31 = vsub.s32 4, %v6198_v12  ;;  %v1889_v20 = vsub.s32 6, %v6198_v12 }
 0x39b   : > { %2266 = vmatprep.subr.bf16.mxu1 %v4926_v36  ;;  %v4914_v36 = vcombine.high %v1832_v21, %v1836_v32 }
 0x39e   : > { %2267 = vmatpush1.bf16.msra.mxu1 %v4925_v41  ;;  %v1824_v41 = vld [vmem:[#allocation14 + $0xd8] sm:$0xff] }
 0x39f   : > { %2268 = vmatprep.subr.bf16.mxu1 %v4918_v42  ;;  %v1828_v42 = vld [vmem:[#allocation14 + $0xf8] sm:$0xff] }
 0x3a0   : > { %v4905_v50 = vcombine.low %v1824_v41, %v1828_v42 }
 0x3a2   : > { %2269 = vmatpush1.bf16.msra.mxu1 %v4917_v45  ;;  %v4904_v45 = vcombine.high %v1823_v37, %v1827_v40 }
 0x3a3   : > { %2270 = vmatprep.subr.bf16.mxu1 %v4910_v46  ;;  %v1815_v46 = vld [vmem:[#allocation14 + $0x90] sm:$0xff] }
 0x3a4   : > { %v4896_v51 = vcombine.high %v1815_v46, %v1819_v47 }
 0x3a6   : > { %2271 = vmatpush1.bf16.msra.mxu1 %v4909_v48  ;;  %v1820_v48 = vld [vmem:[#allocation14 + $0xb8] sm:$0xff] }
 0x3a7   : > { %2272 = vmatprep.subr.bf16.mxu1 %v4902_v49  ;;  %v4903_v49 = vcombine.low %v1823_v37, %v1827_v40  ;;  %v4897_v58 = vcombine.low %v1816_v39, %v1820_v48  ;;  %v1886_v40 = vrot.slane %v1861_v25, %v1885_v13 }
 0x3aa   : > { %2273 = vmatpush1.bf16.msra.mxu1 %v4901_v52  ;;  %v4898_v52 = vcombine.high %v1816_v39, %v1820_v48 }
 0x3ab   : > { %2274 = vmatprep.subr.bf16.mxu1 %v4894_v53  ;;  %v1807_v53 = vld [vmem:[#allocation14 + $0x50] sm:$0xff] }
 0x3ac   : > { %v4888_v59 = vcombine.high %v1807_v53, %v1811_v54  ;;  %v4887_v1 = vcombine.low %v1807_v53, %v1811_v54 }
 0x3ae   : > { %2275 = vmatpush1.bf16.msra.mxu1 %v4893_v56  ;;  %v1812_v56 = vld [vmem:[#allocation14 + $0x78] sm:$0xff] }
 0x3af   : > { %2276 = vmatprep.subr.bf16.mxu1 %v4886_v57  ;;  %v4895_v57 = vcombine.low %v1815_v46, %v1819_v47 }
 0x3b2   : > { %2277 = vmatpush1.bf16.msra.mxu1 %v4885_v60  ;;  %v4890_v60 = vcombine.high %v1808_v55, %v1812_v56 }
 0x3b3   : > { %2278 = vmatprep.subr.bf16.mxu1 %v4878_v61  ;;  %v1799_v61 = vld [vmem:[#allocation14 + $0x10] sm:$0xff] }
 0x3b6   : > { %2279 = vmatpush1.bf16.msra.mxu1 %v4877_v62  ;;  %v1803_v62 = vld [vmem:[#allocation14 + $0x30] sm:$0xff] }
 0x3b7   : > { %2346 = vmatprep.subr.bf16.mxu1 %v4938_v7  ;;  %v4880_v4 = vcombine.high %v1799_v61, %v1803_v62  ;;  %v4881_v7 = vcombine.low %v1800_v63, %v1804_v0 }
 0x459   : > { %v1792_v11 = vpop.f32.mrf.mxu1 }
 0x45a   : > { %v6294_v17 = vpack.c.bf16 %v1792_v11, %v1792_v11 }
 0x45b   : > { %v5026_v28 = vpop.f32.mrf.mxu1 }
 0x45c   : > { %2256 = vmatmul.mubr.bf16.vlgmr.msra.gmra.mxu0 %v6294_v17  ;;  %2297 = vmatmul.mubr.bf16.vlgmr.msra.gmra.mxu1 %v6294_v17  ;;  %v1866_v28 = vrot.slane %v1861_v25, %v6205_v15 }
 0x45d   : > { %2306 = vmatpush1.bf16.msra.mxu0 %v4935_v3  ;;  %2347 = vmatpush1.bf16.msra.mxu1 %v4937_v6  ;;  %v4889_v3 = vcombine.low %v1808_v55, %v1812_v56  ;;  %v4879_v6 = vcombine.low %v1799_v61, %v1803_v62 }
 0x45e   : > { %2307 = vmatprep.subr.bf16.mxu0 %v4928_v18  ;;  %2348 = vmatprep.subr.bf16.mxu1 %v4930_v19 }
 0x45f   : > { %2337 = vmatprep.mubr.bf16.mxu0 %v5780_v2  ;;  %2378 = vmatprep.mubr.bf16.mxu1 %v5780_v2  ;;  %v4906_v2 = vcombine.high %v1824_v41, %v1828_v42 }
 0x461   : > { %2308 = vmatpush1.bf16.msra.mxu0 %v4927_v29  ;;  %2349 = vmatpush1.bf16.msra.mxu1 %v4929_v22  ;;  %v1874_v29 = vrot.slane %v1861_v25, %v686_v16  ;;  %v5783_v22 = vmov 1966171168  }
 0x462   : > { %2309 = vmatprep.subr.bf16.mxu0 %v4920_v30  ;;  %2350 = vmatprep.subr.bf16.mxu1 %v4922_v23  ;;  %v2416_v30 = vunpack.c.l.s4 %v5783_v22 }
 0x465   : > { %2310 = vmatpush1.bf16.msra.mxu0 %v4919_v33  ;;  %2351 = vmatpush1.bf16.msra.mxu1 %v4921_v34  ;;  %v1893_v33 = vsub.s32 7, %v6198_v12  ;;  %v2417_v34 = vunpack.c.0.s8 %v2416_v30 }
 0x466   : > { %2311 = vmatprep.subr.bf16.mxu0 %v4912_v35  ;;  %2352 = vmatprep.subr.bf16.mxu1 %v4914_v36  ;;  %v1882_v35 = vrot.slane %v1861_v25, %v1881_v31  ;;  %v1890_v36 = vrot.slane %v1861_v25, %v1889_v20 }
 0x467   : > { %v1894_v41 = vrot.slane %v1861_v25, %v1893_v33 }
 0x469   : > { %2312 = vmatpush1.bf16.msra.mxu0 %v4911_v43  ;;  %2353 = vmatpush1.bf16.msra.mxu1 %v4913_v44  ;;  %v2420_v43 = vsub.s32 %v2417_v34, %v6198_v12 }
 0x46a   : > { %2313 = vmatprep.subr.bf16.mxu0 %v4904_v45  ;;  %2354 = vmatprep.subr.bf16.mxu1 %v4906_v2 }
 0x46d   : > { %2314 = vmatpush1.bf16.msra.mxu0 %v4903_v49  ;;  %2355 = vmatpush1.bf16.msra.mxu1 %v4905_v50 }
 0x46e   : > { %2315 = vmatprep.subr.bf16.mxu0 %v4896_v51  ;;  %2356 = vmatprep.subr.bf16.mxu1 %v4898_v52 }
 0x471   : > { %2316 = vmatpush1.bf16.msra.mxu0 %v4895_v57  ;;  %2357 = vmatpush1.bf16.msra.mxu1 %v4897_v58 }
 0x472   : > { %2317 = vmatprep.subr.bf16.mxu0 %v4888_v59  ;;  %2358 = vmatprep.subr.bf16.mxu1 %v4890_v60 }
 0x475   : > { %2318 = vmatpush1.bf16.msra.mxu0 %v4887_v1  ;;  %2359 = vmatpush1.bf16.msra.mxu1 %v4889_v3 }
 0x476   : > { %2319 = vmatprep.subr.bf16.mxu0 %v4880_v4  ;;  %2360 = vmatprep.subr.bf16.mxu1 %v4882_v5 }
 0x479   : > { %2320 = vmatpush1.bf16.msra.mxu0 %v4879_v6  ;;  %2361 = vmatpush1.bf16.msra.mxu1 %v4881_v7 }
 0x47c   : > { %2338 = vmatmul.mubr.bf16.vlgmr.msra.gmra.mxu0 %v6294_v17  ;;  %2379 = vmatmul.mubr.bf16.vlgmr.msra.gmra.mxu1 %v6294_v17 }
 0x51c   : > { %v2257_v8 = vpop.f32.mrf.mxu0  ;;  %v2298_v38 = vpop.f32.mrf.mxu1 }
 0x51d   : > { %v2258_v21 = vadd.f32 %v2257_v8, %v1866_v28  ;;  %v2299_v32 = vadd.f32 %v2298_v38, %v1874_v29 }
 0x51e   : > { %v2259_v9 = vpop.f32.mrf.mxu0  ;;  %v2300_v10 = vpop.f32.mrf.mxu1 }
 0x51f   : > { %v2260_v17 = vadd.f32 %v2259_v9, %v1870_v26  ;;  %v2301_v23 = vadd.f32 %v2300_v10, %v1878_v27  ;;  %v2387_v16 = vmax.f32 %v2258_v21, 0.0  ;;  %v2389_v37 = vmax.f32 %v2299_v32, 0.0 }
 0x520   : > { %v2261_v11 = vpop.f32.mrf.mxu0  ;;  %v2302_v18 = vpop.f32.mrf.mxu1 }
 0x521   : > { %v2388_v14 = vmax.f32 %v2260_v17, 0.0  ;;  %v2390_v15 = vmax.f32 %v2301_v23, 0.0 }
 0x522   : > { %v2262_v19 = vpop.f32.mrf.mxu0  ;;  %v2303_v24 = vpop.f32.mrf.mxu1 }
 0x523   : > { %v4939_v42 = vpack.c.bf16 %v2388_v14, %v2387_v16  ;;  %v4940_v44 = vpack.c.bf16 %v2390_v15, %v2389_v37 }
 0x525   : > { %v2421_v51 = vrot.slane %v4939_v42, %v2420_v43  ;;  %v2428_v52 = vrot.slane %v4940_v44, %v2420_v43 }
 0x527   : > { %v2443_v62 = vcombine.low %v2421_v51, %v2428_v52 }
 0x529   : > { %v2451_v3 = vrot.slane %v2443_v62, %v2420_v43 }
 0x53c   : > { %v2339_v45 = vpop.f32.mrf.mxu0  ;;  %v2380_v2 = vpop.f32.mrf.mxu1 }
 0x53d   : > { %v2340_v46 = vadd.f32 %v2339_v45, %v1882_v35  ;;  %v2381_v47 = vadd.f32 %v2380_v2, %v1890_v36 }
 0x53e   : > { %v2341_v39 = vpop.f32.mrf.mxu0  ;;  %v2382_v48 = vpop.f32.mrf.mxu1 }
 0x53f   : > { %v2342_v49 = vadd.f32 %v2341_v39, %v1886_v40  ;;  %v2383_v50 = vadd.f32 %v2382_v48, %v1894_v41  ;;  %v2391_v55 = vmax.f32 %v2340_v46, 0.0  ;;  %v2393_v56 = vmax.f32 %v2381_v47, 0.0 }
 0x540   : > { %v2343_v53 = vpop.f32.mrf.mxu0  ;;  %v2384_v54 = vpop.f32.mrf.mxu1 }
 0x541   : > { %v2392_v57 = vmax.f32 %v2342_v49, 0.0  ;;  %v2394_v58 = vmax.f32 %v2383_v50, 0.0 }
 0x542   : > { %v2344_v59 = vpop.f32.mrf.mxu0  ;;  %v2385_v60 = vpop.f32.mrf.mxu1 }
 0x543   : > { %v4941_v12 = vpack.c.bf16 %v2392_v57, %v2391_v55  ;;  %v4942_v61 = vpack.c.bf16 %v2394_v58, %v2393_v56 }
 0x545   : > { %v2435_v63 = vrot.slane %v4941_v12, %v2420_v43  ;;  %v2442_v0 = vrot.slane %v4942_v61, %v2420_v43 }
 0x547   : > { %v2444_v1 = vcombine.low %v2435_v63, %v2442_v0 }
 0x549   : > { %v2458_v4 = vrot.slane %v2444_v1, %v2420_v43 }
 0x54b   : > { %v2459_v5 = vcombine.low %v2451_v3, %v2458_v4 }
 0x54d   : > { %2461 = vst [vmem:[#allocation2] sm:$0xff] %v2459_v5 }
 0x54e PF: > { %v2524_v6 = vld [vmem:[%s6148_s22 + $0x188] sm:$0xff]  ;;  %v2523_v8 = vld [vmem:[%s6148_s22 + $0x180] sm:$0xff]  ;;  %s6887_s8 = sld [smem:[#allocation28_spill]]  ;;  %v3255_v16 = vlaneseq  ;;  %v5784_v44 = vmov 1966171168  }
 0x54f   : > { %v2652_v7 = vld [vmem:[%s6148_s22 + $0x588] sm:$0xff]  ;;  %v2828_v38 = vunpack.c.l.s8.bf16 %v2524_v6  ;;  %v2844_v9 = vunpack.c.h.s8.bf16 %v2524_v6  ;;  %v2651_v18 = vld [vmem:[%s6148_s22 + $0x580] sm:$0xff]  ;;  %v2843_v19 = vunpack.c.h.s8.bf16 %v2523_v8  ;;  %v2827_v27 = vunpack.c.l.s8.bf16 %v2523_v8 }
 0x550   : > { %v3084_v10 = vunpack.c.l.s8.bf16 %v2652_v7  ;;  %v3100_v11 = vunpack.c.h.s8.bf16 %v2652_v7  ;;  %v3099_v24 = vunpack.c.h.s8.bf16 %v2651_v18  ;;  %v2508_v25 = vld [vmem:[%s6148_s22 + $0x108] sm:$0xff]  ;;  %v3083_v28 = vunpack.c.l.s8.bf16 %v2651_v18  ;;  %v2507_v22 = vld [vmem:[%s6148_s22 + $0x100] sm:$0xff] }
 0x551   : > { %v2636_v26 = vld [vmem:[%s6148_s22 + $0x508] sm:$0xff]  ;;  %3272 = vmatprep.subr.bf16.mxu0 %v2844_v9  ;;  %v2812_v29 = vunpack.c.h.s8.bf16 %v2508_v25  ;;  %v2635_v30 = vld [vmem:[%s6148_s22 + $0x500] sm:$0xff]  ;;  %v2811_v23 = vunpack.c.h.s8.bf16 %v2507_v22  ;;  %v2796_v20 = vunpack.c.l.s8.bf16 %v2508_v25  ;;  %v2795_v33 = vunpack.c.l.s8.bf16 %v2507_v22 }
 0x552   : > { %3313 = vmatprep.subr.bf16.mxu1 %v3100_v11  ;;  %3273 = vmatpush1.bf16.msra.mxu0 %v2843_v19  ;;  %v3068_v17 = vunpack.c.h.s8.bf16 %v2636_v26  ;;  %v3067_v31 = vunpack.c.h.s8.bf16 %v2635_v30  ;;  %v3052_v21 = vunpack.c.l.s8.bf16 %v2636_v26  ;;  %v2492_v32 = vld [vmem:[%s6148_s22 + $0x88] sm:$0xff]  ;;  %v3051_v14 = vunpack.c.l.s8.bf16 %v2635_v30  ;;  %v2491_v35 = vld [vmem:[%s6148_s22 + $0x80] sm:$0xff] }
 0x553   : > { %3314 = vmatpush1.bf16.msra.mxu1 %v3099_v24  ;;  %3274 = vmatprep.subr.bf16.mxu0 %v2828_v38  ;;  %v2620_v13 = vld [vmem:[%s6148_s22 + $0x488] sm:$0xff]  ;;  %v2780_v34 = vunpack.c.h.s8.bf16 %v2492_v32  ;;  %v2619_v36 = vld [vmem:[%s6148_s22 + $0x480] sm:$0xff]  ;;  %v2779_v37 = vunpack.c.h.s8.bf16 %v2491_v35  ;;  %v2764_v42 = vunpack.c.l.s8.bf16 %v2492_v32  ;;  %v3253_v45 = vunpack.c.l.s4 %v5784_v44 }
 0x554   : > { %3315 = vmatprep.subr.bf16.mxu1 %v3084_v10  ;;  %s4943_s9 = sshll.u32 %s6887_s8, 9  ;;  %v3036_v15 = vunpack.c.h.s8.bf16 %v2620_v13  ;;  %v3035_v40 = vunpack.c.h.s8.bf16 %v2619_v36  ;;  %v3020_v43 = vunpack.c.l.s8.bf16 %v2620_v13  ;;  %v6328_v2 = vshrl.u32 %v3255_v16, 7  ;;  %v2476_v46 = vld [vmem:[%s6148_s22 + $0x8] sm:$0xff]  ;;  %v2475_v53 = vld [vmem:[%s6148_s22] sm:$0xff]  ;;  %p4945_p7 = scmp.ne.s32.totalorder %s6887_s8, 1 }
 0x555   : > { %s2467_s28 = sshra.s32 %s4943_s9, 7  ;;  %v2604_v47 = vld [vmem:[%s6148_s22 + $0x408] sm:$0xff]  ;;  %v3254_v48 = vunpack.c.0.s8 %v3253_v45  ;;  %v2763_v49 = vunpack.c.l.s8.bf16 %v2491_v35  ;;  %v3019_v50 = vunpack.c.l.s8.bf16 %v2619_v36  ;;  %v2748_v51 = vunpack.c.h.s8.bf16 %v2476_v46  ;;  %v2603_v54 = vld [vmem:[%s6148_s22 + $0x400] sm:$0xff] }
 0x556   : > { %3275 = vmatpush1.bf16.msra.mxu0 %v2827_v27  ;;  %s2469_s4 = scalar_lea.vmem [#allocation2], %s2467_s28  ;;  %v3004_v52 = vunpack.c.h.s8.bf16 %v2604_v47  ;;  %v2747_v57 = vunpack.c.h.s8.bf16 %v2475_v53  ;;  %v3003_v58 = vunpack.c.h.s8.bf16 %v2603_v54  ;;  %v2732_v59 = vunpack.c.l.s8.bf16 %v2476_v46  ;;  %v2588_v61 = vld [vmem:[%s6148_s22 + $0x388] sm:$0xff]  ;;  %v2587_v4 = vld [vmem:[%s6148_s22 + $0x380] sm:$0xff] }
 0x557   : > { %3316 = vmatpush1.bf16.msra.mxu1 %v3083_v28  ;;  %3276 = vmatprep.subr.bf16.mxu0 %v2812_v29  ;;  %v6326_v41 = vld.sshfl [vmem:[%s2469_s4] sm:$0x33 pattern:$0x75316420]  ;;  %v6337_v55 = vsub.s32 %v3254_v48, %v6328_v2  ;;  %v2988_v60 = vunpack.c.l.s8.bf16 %v2604_v47  ;;  %v2731_v63 = vunpack.c.l.s8.bf16 %v2475_v53  ;;  %v2987_v0 = vunpack.c.l.s8.bf16 %v2603_v54  ;;  %v2715_v5 = vld [vmem:[%s6148_s22 + $0x780] sm:$0xff]  ;;  %v2526_v48 = vld [vmem:[%s6148_s22 + $0x198] sm:$0xff] }
 0x558   : > { %3317 = vmatprep.subr.bf16.mxu1 %v3068_v17  ;;  %v3251_v39 = vcombine.high %v6326_v41, %v6326_v41  ;;  %v2716_v62 = vld [vmem:[%s6148_s22 + $0x788] sm:$0xff]  ;;  %v2972_v1 = vunpack.c.h.s8.bf16 %v2588_v61  ;;  %v2971_v6 = vunpack.c.h.s8.bf16 %v2587_v4  ;;  %v3227_v7 = vunpack.c.h.s8.bf16 %v2715_v5  ;;  %v2571_v25 = vld [vmem:[%s6148_s22 + $0x300] sm:$0xff] }
 0x559   : > { %v3228_v3 = vunpack.c.h.s8.bf16 %v2716_v62  ;;  %v2956_v8 = vunpack.c.l.s8.bf16 %v2588_v61  ;;  %v3212_v38 = vunpack.c.l.s8.bf16 %v2716_v62  ;;  %v2572_v9 = vld [vmem:[%s6148_s22 + $0x308] sm:$0xff]  ;;  %v2955_v11 = vunpack.c.l.s8.bf16 %v2587_v4  ;;  %v2699_v26 = vld [vmem:[%s6148_s22 + $0x700] sm:$0xff] }
 0x55a   : > { %3277 = vmatpush1.bf16.msra.mxu0 %v2811_v23  ;;  %v6340_v56 = vrot.slane %v3251_v39, %v6337_v55  ;;  %v2700_v10 = vld [vmem:[%s6148_s22 + $0x708] sm:$0xff]  ;;  %v3211_v18 = vunpack.c.l.s8.bf16 %v2715_v5  ;;  %v2940_v19 = vunpack.c.h.s8.bf16 %v2572_v9  ;;  %v2939_v27 = vunpack.c.h.s8.bf16 %v2571_v25  ;;  %v2555_v32 = vld [vmem:[%s6148_s22 + $0x280] sm:$0xff] }
 0x55b   : > { %3318 = vmatpush1.bf16.msra.mxu1 %v3067_v31  ;;  %3278 = vmatprep.subr.bf16.mxu0 %v2796_v20  ;;  %v3196_v24 = vunpack.c.h.s8.bf16 %v2700_v10  ;;  %v3195_v28 = vunpack.c.h.s8.bf16 %v2699_v26  ;;  %v2924_v29 = vunpack.c.l.s8.bf16 %v2572_v9  ;;  %v3180_v17 = vunpack.c.l.s8.bf16 %v2700_v10  ;;  %v2556_v22 = vld [vmem:[%s6148_s22 + $0x288] sm:$0xff]  ;;  %v2683_v13 = vld [vmem:[%s6148_s22 + $0x680] sm:$0xff] }
 0x55c   : > { %3319 = vmatprep.subr.bf16.mxu1 %v3052_v21  ;;  %v6344_v12 = vcombine.high %v6340_v56, %v6340_v56  ;;  %3304 = vmatprep.mubr.bf16.mxu0 %v6340_v56  ;;  %v2684_v30 = vld [vmem:[%s6148_s22 + $0x688] sm:$0xff]  ;;  %v2923_v23 = vunpack.c.l.s8.bf16 %v2571_v25  ;;  %v3179_v31 = vunpack.c.l.s8.bf16 %v2699_v26  ;;  %v2908_v20 = vunpack.c.h.s8.bf16 %v2556_v22  ;;  %v2667_v44 = vld [vmem:[%s6148_s22 + $0x600] sm:$0xff] }
 0x55d   : > { %v3164_v21 = vunpack.c.h.s8.bf16 %v2684_v30  ;;  %v2540_v35 = vld [vmem:[%s6148_s22 + $0x208] sm:$0xff]  ;;  %v2891_v16 = vunpack.c.l.s8.bf16 %v2555_v32  ;;  %v3131_v46 = vunpack.c.h.s8.bf16 %v2667_v44  ;;  %v2846_v53 = vunpack.c.h.s8.bf16 %v2526_v48 }
 0x55e   : > { %3279 = vmatpush1.bf16.msra.mxu0 %v2795_v33  ;;  %3345 = vmatprep.mubr.bf16.mxu1 %v6344_v12  ;;  %v2907_v33 = vunpack.c.h.s8.bf16 %v2555_v32  ;;  %v2668_v36 = vld [vmem:[%s6148_s22 + $0x608] sm:$0xff]  ;;  %v2860_v47 = vunpack.c.l.s8.bf16 %v2540_v35  ;;  %v2830_v61 = vunpack.c.l.s8.bf16 %v2526_v48 }
 0x55f   : > { %3320 = vmatpush1.bf16.msra.mxu1 %v3051_v14  ;;  %3280 = vmatprep.subr.bf16.mxu0 %v2780_v34  ;;  %v3163_v14 = vunpack.c.h.s8.bf16 %v2683_v13  ;;  %v2892_v34 = vunpack.c.l.s8.bf16 %v2556_v22  ;;  %v3116_v39 = vunpack.c.l.s8.bf16 %v2668_v36 }
 0x560   : > { %3321 = vmatprep.subr.bf16.mxu1 %v3036_v15  ;;  %v3148_v15 = vunpack.c.l.s8.bf16 %v2684_v30 }
 0x562   : > { %3281 = vmatpush1.bf16.msra.mxu0 %v2779_v37  ;;  %v3147_v37 = vunpack.c.l.s8.bf16 %v2683_v13 }
 0x563   : > { %3322 = vmatpush1.bf16.msra.mxu1 %v3035_v40  ;;  %3282 = vmatprep.subr.bf16.mxu0 %v2764_v42  ;;  %v2876_v40 = vunpack.c.h.s8.bf16 %v2540_v35  ;;  %v3132_v42 = vunpack.c.h.s8.bf16 %v2668_v36 }
 0x564   : > { %3323 = vmatprep.subr.bf16.mxu1 %v3020_v43  ;;  %v2539_v43 = vld [vmem:[%s6148_s22 + $0x200] sm:$0xff] }
 0x565   : > { %v2875_v45 = vunpack.c.h.s8.bf16 %v2539_v43 }
 0x566   : > { %3283 = vmatpush1.bf16.msra.mxu0 %v2763_v49  ;;  %v2654_v49 = vld [vmem:[%s6148_s22 + $0x598] sm:$0xff] }
 0x567   : > { %3324 = vmatpush1.bf16.msra.mxu1 %v3019_v50  ;;  %3284 = vmatprep.subr.bf16.mxu0 %v2748_v51  ;;  %v6368_v50 = vrot.slane %v6326_v41, %v6337_v55  ;;  %v2859_v51 = vunpack.c.l.s8.bf16 %v2539_v43  ;;  %v3102_v54 = vunpack.c.h.s8.bf16 %v2654_v49  ;;  %v3086_v62 = vunpack.c.l.s8.bf16 %v2654_v49 }
 0x568   : > { %3325 = vmatprep.subr.bf16.mxu1 %v3004_v52  ;;  %v3115_v52 = vunpack.c.l.s8.bf16 %v2667_v44 }
 0x56a   : > { %3285 = vmatpush1.bf16.msra.mxu0 %v2747_v57  ;;  %v2525_v57 = vld [vmem:[%s6148_s22 + $0x190] sm:$0xff] }
 0x56b   : > { %3326 = vmatpush1.bf16.msra.mxu1 %v3003_v58  ;;  %3286 = vmatprep.subr.bf16.mxu0 %v2732_v59  ;;  %v2653_v58 = vld [vmem:[%s6148_s22 + $0x590] sm:$0xff]  ;;  %v6374_v59 = vcombine.high %v6368_v50, %v6368_v50  ;;  %v2845_v41 = vunpack.c.h.s8.bf16 %v2525_v57 }
 0x56c   : > { %3327 = vmatprep.subr.bf16.mxu1 %v2988_v60  ;;  %v3101_v60 = vunpack.c.h.s8.bf16 %v2653_v58 }
 0x56e   : > { %3287 = vmatpush1.bf16.msra.mxu0 %v2731_v63  ;;  %v2510_v63 = vld [vmem:[%s6148_s22 + $0x118] sm:$0xff] }
 0x56f   : > { %3328 = vmatpush1.bf16.msra.mxu1 %v2987_v0  ;;  %3288 = vmatprep.subr.bf16.mxu0 %v2972_v1  ;;  %v2638_v0 = vld [vmem:[%s6148_s22 + $0x518] sm:$0xff]  ;;  %v2829_v1 = vunpack.c.l.s8.bf16 %v2525_v57  ;;  %v2814_v4 = vunpack.c.h.s8.bf16 %v2510_v63  ;;  %v2798_v9 = vunpack.c.l.s8.bf16 %v2510_v63 }
 0x570   : > { %3329 = vmatprep.subr.bf16.mxu1 %v3228_v3  ;;  %v3085_v3 = vunpack.c.l.s8.bf16 %v2653_v58  ;;  %v3070_v5 = vunpack.c.h.s8.bf16 %v2638_v0  ;;  %v3054_v10 = vunpack.c.l.s8.bf16 %v2638_v0 }
 0x572   : > { %3289 = vmatpush2.bf16.msra.mxu0 %v2971_v6  ;;  %v2509_v6 = vld [vmem:[%s6148_s22 + $0x110] sm:$0xff] }
 0x573   : > { %3330 = vmatpush2.bf16.msra.mxu1 %v3227_v7  ;;  %3290 = vmatprep.subr.bf16.mxu0 %v2956_v8  ;;  %v2637_v7 = vld [vmem:[%s6148_s22 + $0x510] sm:$0xff]  ;;  %v2813_v8 = vunpack.c.h.s8.bf16 %v2509_v6 }
 0x574   : > { %3331 = vmatprep.subr.bf16.mxu1 %v3212_v38  ;;  %v3069_v38 = vunpack.c.h.s8.bf16 %v2637_v7 }
 0x576   : > { %3291 = vmatpush2.bf16.msra.mxu0 %v2955_v11  ;;  %v2494_v11 = vld [vmem:[%s6148_s22 + $0x98] sm:$0xff] }
 0x577   : > { %3332 = vmatpush2.bf16.msra.mxu1 %v3211_v18  ;;  %3292 = vmatprep.subr.bf16.mxu0 %v2940_v19  ;;  %v2622_v18 = vld [vmem:[%s6148_s22 + $0x498] sm:$0xff]  ;;  %v2797_v19 = vunpack.c.l.s8.bf16 %v2509_v6  ;;  %v2782_v25 = vunpack.c.h.s8.bf16 %v2494_v11  ;;  %v2766_v22 = vunpack.c.l.s8.bf16 %v2494_v11 }
 0x578   : > { %3333 = vmatprep.subr.bf16.mxu1 %v3196_v24  ;;  %v3053_v24 = vunpack.c.l.s8.bf16 %v2637_v7  ;;  %v3038_v26 = vunpack.c.h.s8.bf16 %v2622_v18  ;;  %v3022_v30 = vunpack.c.l.s8.bf16 %v2622_v18 }
 0x57a   : > { %3293 = vmatpush2.bf16.msra.mxu0 %v2939_v27  ;;  %v2493_v27 = vld [vmem:[%s6148_s22 + $0x90] sm:$0xff] }
 0x57b   : > { %3334 = vmatpush2.bf16.msra.mxu1 %v3195_v28  ;;  %3294 = vmatprep.subr.bf16.mxu0 %v2924_v29  ;;  %v2621_v28 = vld [vmem:[%s6148_s22 + $0x490] sm:$0xff]  ;;  %v2781_v29 = vunpack.c.h.s8.bf16 %v2493_v27 }
 0x57c   : > { %3335 = vmatprep.subr.bf16.mxu1 %v3180_v17  ;;  %v3037_v17 = vunpack.c.h.s8.bf16 %v2621_v28 }
 0x57e   : > { %3295 = vmatpush2.bf16.msra.mxu0 %v2923_v23  ;;  %v2478_v23 = vld [vmem:[%s6148_s22 + $0x18] sm:$0xff] }
 0x57f   : > { %3336 = vmatpush2.bf16.msra.mxu1 %v3179_v31  ;;  %3296 = vmatprep.subr.bf16.mxu0 %v2908_v20  ;;  %v2606_v31 = vld [vmem:[%s6148_s22 + $0x418] sm:$0xff]  ;;  %v2765_v20 = vunpack.c.l.s8.bf16 %v2493_v27  ;;  %v2750_v32 = vunpack.c.h.s8.bf16 %v2478_v23  ;;  %v2734_v35 = vunpack.c.l.s8.bf16 %v2478_v23 }
 0x580   : > { %3337 = vmatprep.subr.bf16.mxu1 %v3164_v21  ;;  %v3021_v21 = vunpack.c.l.s8.bf16 %v2621_v28  ;;  %v3006_v13 = vunpack.c.h.s8.bf16 %v2606_v31  ;;  %v2990_v36 = vunpack.c.l.s8.bf16 %v2606_v31 }
 0x582   : > { %3297 = vmatpush2.bf16.msra.mxu0 %v2907_v33  ;;  %v2477_v33 = vld [vmem:[%s6148_s22 + $0x10] sm:$0xff] }
 0x583   : > { %3338 = vmatpush2.bf16.msra.mxu1 %v3163_v14  ;;  %3298 = vmatprep.subr.bf16.mxu0 %v2892_v34  ;;  %v2605_v14 = vld [vmem:[%s6148_s22 + $0x410] sm:$0xff]  ;;  %v2749_v34 = vunpack.c.h.s8.bf16 %v2477_v33 }
 0x584   : > { %3339 = vmatprep.subr.bf16.mxu1 %v3148_v15  ;;  %v3005_v15 = vunpack.c.h.s8.bf16 %v2605_v14 }
 0x586   : > { %3299 = vmatpush2.bf16.msra.mxu0 %v2891_v16  ;;  %v2590_v16 = vld [vmem:[%s6148_s22 + $0x398] sm:$0xff] }
 0x587   : > { %3340 = vmatpush2.bf16.msra.mxu1 %v3147_v37  ;;  %3300 = vmatprep.subr.bf16.mxu0 %v2876_v40  ;;  %v2718_v37 = vld [vmem:[%s6148_s22 + $0x798] sm:$0xff]  ;;  %v2733_v40 = vunpack.c.l.s8.bf16 %v2477_v33  ;;  %v2974_v43 = vunpack.c.h.s8.bf16 %v2590_v16  ;;  %v2958_v48 = vunpack.c.l.s8.bf16 %v2590_v16 }
 0x588   : > { %3341 = vmatprep.subr.bf16.mxu1 %v3132_v42  ;;  %v2989_v42 = vunpack.c.l.s8.bf16 %v2605_v14  ;;  %v3230_v44 = vunpack.c.h.s8.bf16 %v2718_v37  ;;  %v3214_v49 = vunpack.c.l.s8.bf16 %v2718_v37 }
 0x58a   : > { %3301 = vmatpush2.bf16.msra.mxu0 %v2875_v45  ;;  %v2589_v45 = vld [vmem:[%s6148_s22 + $0x390] sm:$0xff] }
 0x58b   : > { %3342 = vmatpush2.bf16.msra.mxu1 %v3131_v46  ;;  %3302 = vmatprep.subr.bf16.mxu0 %v2860_v47  ;;  %v2717_v46 = vld [vmem:[%s6148_s22 + $0x790] sm:$0xff]  ;;  %v2973_v47 = vunpack.c.h.s8.bf16 %v2589_v45 }
 0x58c   : > { %3343 = vmatprep.subr.bf16.mxu1 %v3116_v39  ;;  %v3229_v39 = vunpack.c.h.s8.bf16 %v2717_v46 }
 0x58e   : > { %3303 = vmatpush2.bf16.msra.mxu0 %v2859_v51  ;;  %v2574_v51 = vld [vmem:[%s6148_s22 + $0x318] sm:$0xff] }
 0x58f   : > { %3344 = vmatpush2.bf16.msra.mxu1 %v3115_v52  ;;  %3354 = vmatprep.subr.bf16.mxu0 %v2846_v53  ;;  %v2702_v52 = vld [vmem:[%s6148_s22 + $0x718] sm:$0xff]  ;;  %v2957_v53 = vunpack.c.l.s8.bf16 %v2589_v45  ;;  %v2942_v57 = vunpack.c.h.s8.bf16 %v2574_v51  ;;  %v2926_v63 = vunpack.c.l.s8.bf16 %v2574_v51 }
 0x590   : > { %3395 = vmatprep.subr.bf16.mxu1 %v3102_v54  ;;  %v3213_v54 = vunpack.c.l.s8.bf16 %v2717_v46  ;;  %v3198_v58 = vunpack.c.h.s8.bf16 %v2702_v52  ;;  %v3182_v0 = vunpack.c.l.s8.bf16 %v2702_v52 }
 0x591   : > { %3305 = vmatmul.mubr.bf16.vlgmr.msra.gmra.mxu0 %v6368_v50 }
 0x592   : > { %3346 = vmatmul.mubr.bf16.vlgmr.msra.gmra.mxu1 %v6374_v59  ;;  %3355 = vmatpush1.bf16.msra.mxu0 %v2845_v41  ;;  %v2573_v41 = vld [vmem:[%s6148_s22 + $0x310] sm:$0xff] }
 0x593   : > { %3396 = vmatpush1.bf16.msra.mxu1 %v3101_v60  ;;  %3356 = vmatprep.subr.bf16.mxu0 %v2830_v61  ;;  %v2701_v60 = vld [vmem:[%s6148_s22 + $0x710] sm:$0xff]  ;;  %v2941_v61 = vunpack.c.h.s8.bf16 %v2573_v41 }
 0x594   : > { %3397 = vmatprep.subr.bf16.mxu1 %v3086_v62  ;;  %3386 = vmatprep.mubr.bf16.mxu0 %v6340_v56  ;;  %v3197_v62 = vunpack.c.h.s8.bf16 %v2701_v60 }
 0x595   : > { %3427 = vmatprep.mubr.bf16.mxu1 %v6344_v12 }
 0x596   : > { %3357 = vmatpush1.bf16.msra.mxu0 %v2829_v1  ;;  %v2558_v1 = vld [vmem:[%s6148_s22 + $0x298] sm:$0xff] }
 0x597   : > { %3398 = vmatpush1.bf16.msra.mxu1 %v3085_v3  ;;  %3358 = vmatprep.subr.bf16.mxu0 %v2814_v4  ;;  %v2686_v3 = vld [vmem:[%s6148_s22 + $0x698] sm:$0xff]  ;;  %v2925_v4 = vunpack.c.l.s8.bf16 %v2573_v41  ;;  %v2910_v6 = vunpack.c.h.s8.bf16 %v2558_v1  ;;  %v2894_v11 = vunpack.c.l.s8.bf16 %v2558_v1 }
 0x598   : > { %3399 = vmatprep.subr.bf16.mxu1 %v3070_v5  ;;  %v3181_v5 = vunpack.c.l.s8.bf16 %v2701_v60  ;;  %v3166_v7 = vunpack.c.h.s8.bf16 %v2686_v3  ;;  %v3150_v18 = vunpack.c.l.s8.bf16 %v2686_v3 }
 0x59a   : > { %3359 = vmatpush1.bf16.msra.mxu0 %v2813_v8  ;;  %v2557_v8 = vld [vmem:[%s6148_s22 + $0x290] sm:$0xff] }
 0x59b   : > { %3400 = vmatpush1.bf16.msra.mxu1 %v3069_v38  ;;  %3360 = vmatprep.subr.bf16.mxu0 %v2798_v9  ;;  %v2685_v38 = vld [vmem:[%s6148_s22 + $0x690] sm:$0xff]  ;;  %v2909_v9 = vunpack.c.h.s8.bf16 %v2557_v8 }
 0x59c   : > { %3401 = vmatprep.subr.bf16.mxu1 %v3054_v10  ;;  %v3165_v10 = vunpack.c.h.s8.bf16 %v2685_v38 }
 0x59e   : > { %3361 = vmatpush1.bf16.msra.mxu0 %v2797_v19  ;;  %v2542_v19 = vld [vmem:[%s6148_s22 + $0x218] sm:$0xff] }
 0x59f   : > { %3402 = vmatpush1.bf16.msra.mxu1 %v3053_v24  ;;  %3362 = vmatprep.subr.bf16.mxu0 %v2782_v25  ;;  %v2670_v24 = vld [vmem:[%s6148_s22 + $0x618] sm:$0xff]  ;;  %v2893_v25 = vunpack.c.l.s8.bf16 %v2557_v8  ;;  %v2878_v27 = vunpack.c.h.s8.bf16 %v2542_v19  ;;  %v2862_v23 = vunpack.c.l.s8.bf16 %v2542_v19 }
 0x5a0   : > { %3403 = vmatprep.subr.bf16.mxu1 %v3038_v26  ;;  %v3149_v26 = vunpack.c.l.s8.bf16 %v2685_v38  ;;  %v3134_v28 = vunpack.c.h.s8.bf16 %v2670_v24  ;;  %v3118_v31 = vunpack.c.l.s8.bf16 %v2670_v24 }
 0x5a2   : > { %3363 = vmatpush1.bf16.msra.mxu0 %v2781_v29  ;;  %v2541_v29 = vld [vmem:[%s6148_s22 + $0x210] sm:$0xff] }
 0x5a3   : > { %3404 = vmatpush1.bf16.msra.mxu1 %v3037_v17  ;;  %3364 = vmatprep.subr.bf16.mxu0 %v2766_v22  ;;  %v2669_v17 = vld [vmem:[%s6148_s22 + $0x610] sm:$0xff]  ;;  %v2877_v22 = vunpack.c.h.s8.bf16 %v2541_v29 }
 0x5a4   : > { %3405 = vmatprep.subr.bf16.mxu1 %v3022_v30  ;;  %v3133_v30 = vunpack.c.h.s8.bf16 %v2669_v17 }
 0x5a6   : > { %3365 = vmatpush1.bf16.msra.mxu0 %v2765_v20  ;;  %v2528_v20 = vld [vmem:[%s6148_s22 + $0x1a8] sm:$0xff] }
 0x5a7   : > { %3406 = vmatpush1.bf16.msra.mxu1 %v3021_v21  ;;  %3366 = vmatprep.subr.bf16.mxu0 %v2750_v32  ;;  %v2656_v21 = vld [vmem:[%s6148_s22 + $0x5a8] sm:$0xff]  ;;  %v2861_v32 = vunpack.c.l.s8.bf16 %v2541_v29  ;;  %v2848_v33 = vunpack.c.h.s8.bf16 %v2528_v20  ;;  %v2832_v16 = vunpack.c.l.s8.bf16 %v2528_v20 }
 0x5a8   : > { %3407 = vmatprep.subr.bf16.mxu1 %v3006_v13  ;;  %v3117_v13 = vunpack.c.l.s8.bf16 %v2669_v17  ;;  %v3104_v14 = vunpack.c.h.s8.bf16 %v2656_v21  ;;  %v3088_v37 = vunpack.c.l.s8.bf16 %v2656_v21 }
 0x5aa   : > { %3367 = vmatpush1.bf16.msra.mxu0 %v2749_v34  ;;  %v2527_v34 = vld [vmem:[%s6148_s22 + $0x1a0] sm:$0xff] }
 0x5ab   : > { %3408 = vmatpush1.bf16.msra.mxu1 %v3005_v15  ;;  %3368 = vmatprep.subr.bf16.mxu0 %v2734_v35  ;;  %v2655_v15 = vld [vmem:[%s6148_s22 + $0x5a0] sm:$0xff]  ;;  %v2847_v35 = vunpack.c.h.s8.bf16 %v2527_v34 }
 0x5ac   : > { %3409 = vmatprep.subr.bf16.mxu1 %v2990_v36  ;;  %v3103_v36 = vunpack.c.h.s8.bf16 %v2655_v15 }
 0x5ae   : > { %3369 = vmatpush1.bf16.msra.mxu0 %v2733_v40  ;;  %v2512_v40 = vld [vmem:[%s6148_s22 + $0x128] sm:$0xff] }
 0x5af   : > { %3410 = vmatpush1.bf16.msra.mxu1 %v2989_v42  ;;  %3370 = vmatprep.subr.bf16.mxu0 %v2974_v43  ;;  %v2640_v42 = vld [vmem:[%s6148_s22 + $0x528] sm:$0xff]  ;;  %v2831_v43 = vunpack.c.l.s8.bf16 %v2527_v34  ;;  %v2816_v45 = vunpack.c.h.s8.bf16 %v2512_v40  ;;  %v2800_v51 = vunpack.c.l.s8.bf16 %v2512_v40 }
 0x5b0   : > { %3411 = vmatprep.subr.bf16.mxu1 %v3230_v44  ;;  %v3087_v44 = vunpack.c.l.s8.bf16 %v2655_v15  ;;  %v3072_v46 = vunpack.c.h.s8.bf16 %v2640_v42  ;;  %v3056_v52 = vunpack.c.l.s8.bf16 %v2640_v42 }
 0x5b2   : > { %3371 = vmatpush2.bf16.msra.mxu0 %v2973_v47  ;;  %v2511_v47 = vld [vmem:[%s6148_s22 + $0x120] sm:$0xff] }
 0x5b3   : > { %3412 = vmatpush2.bf16.msra.mxu1 %v3229_v39  ;;  %3372 = vmatprep.subr.bf16.mxu0 %v2958_v48  ;;  %v2639_v39 = vld [vmem:[%s6148_s22 + $0x520] sm:$0xff]  ;;  %v2815_v48 = vunpack.c.h.s8.bf16 %v2511_v47 }
 0x5b4   : > { %3413 = vmatprep.subr.bf16.mxu1 %v3214_v49  ;;  %v3071_v49 = vunpack.c.h.s8.bf16 %v2639_v39 }
 0x5b6   : > { %3373 = vmatpush2.bf16.msra.mxu0 %v2957_v53  ;;  %v2496_v53 = vld [vmem:[%s6148_s22 + $0xa8] sm:$0xff] }
 0x5b7   : > { %3414 = vmatpush2.bf16.msra.mxu1 %v3213_v54  ;;  %3374 = vmatprep.subr.bf16.mxu0 %v2942_v57  ;;  %v2624_v54 = vld [vmem:[%s6148_s22 + $0x4a8] sm:$0xff]  ;;  %v2799_v57 = vunpack.c.l.s8.bf16 %v2511_v47  ;;  %v2784_v41 = vunpack.c.h.s8.bf16 %v2496_v53  ;;  %v2768_v1 = vunpack.c.l.s8.bf16 %v2496_v53 }
 0x5b8   : > { %3415 = vmatprep.subr.bf16.mxu1 %v3198_v58  ;;  %v3055_v58 = vunpack.c.l.s8.bf16 %v2639_v39  ;;  %v3040_v60 = vunpack.c.h.s8.bf16 %v2624_v54  ;;  %v3024_v3 = vunpack.c.l.s8.bf16 %v2624_v54 }
 0x5ba   : > { %3375 = vmatpush2.bf16.msra.mxu0 %v2941_v61  ;;  %v2495_v61 = vld [vmem:[%s6148_s22 + $0xa0] sm:$0xff] }
 0x5bb   : > { %3416 = vmatpush2.bf16.msra.mxu1 %v3197_v62  ;;  %3376 = vmatprep.subr.bf16.mxu0 %v2926_v63  ;;  %v2623_v62 = vld [vmem:[%s6148_s22 + $0x4a0] sm:$0xff]  ;;  %v2783_v63 = vunpack.c.h.s8.bf16 %v2495_v61 }
 0x5bc   : > { %3417 = vmatprep.subr.bf16.mxu1 %v3182_v0  ;;  %v3039_v0 = vunpack.c.h.s8.bf16 %v2623_v62 }
 0x5be   : > { %3377 = vmatpush2.bf16.msra.mxu0 %v2925_v4  ;;  %v2480_v4 = vld [vmem:[%s6148_s22 + $0x28] sm:$0xff] }
 0x5bf   : > { %3418 = vmatpush2.bf16.msra.mxu1 %v3181_v5  ;;  %3378 = vmatprep.subr.bf16.mxu0 %v2910_v6  ;;  %v2608_v5 = vld [vmem:[%s6148_s22 + $0x428] sm:$0xff]  ;;  %v2767_v6 = vunpack.c.l.s8.bf16 %v2495_v61  ;;  %v2752_v8 = vunpack.c.h.s8.bf16 %v2480_v4  ;;  %v2736_v19 = vunpack.c.l.s8.bf16 %v2480_v4 }
 0x5c0   : > { %3419 = vmatprep.subr.bf16.mxu1 %v3166_v7  ;;  %v3023_v7 = vunpack.c.l.s8.bf16 %v2623_v62  ;;  %v3008_v38 = vunpack.c.h.s8.bf16 %v2608_v5  ;;  %v2992_v24 = vunpack.c.l.s8.bf16 %v2608_v5 }
 0x5c2   : > { %3379 = vmatpush2.bf16.msra.mxu0 %v2909_v9  ;;  %v2479_v9 = vld [vmem:[%s6148_s22 + $0x20] sm:$0xff] }
 0x5c3   : > { %3420 = vmatpush2.bf16.msra.mxu1 %v3165_v10  ;;  %3380 = vmatprep.subr.bf16.mxu0 %v2894_v11  ;;  %v2607_v10 = vld [vmem:[%s6148_s22 + $0x420] sm:$0xff]  ;;  %v2751_v11 = vunpack.c.h.s8.bf16 %v2479_v9 }
 0x5c4   : > { %3421 = vmatprep.subr.bf16.mxu1 %v3150_v18  ;;  %v3007_v18 = vunpack.c.h.s8.bf16 %v2607_v10 }
 0x5c6   : > { %3381 = vmatpush2.bf16.msra.mxu0 %v2893_v25  ;;  %v2592_v25 = vld [vmem:[%s6148_s22 + $0x3a8] sm:$0xff] }
 0x5c7   : > { %3422 = vmatpush2.bf16.msra.mxu1 %v3149_v26  ;;  %3382 = vmatprep.subr.bf16.mxu0 %v2878_v27  ;;  %v2720_v26 = vld [vmem:[%s6148_s22 + $0x7a8] sm:$0xff]  ;;  %v2735_v27 = vunpack.c.l.s8.bf16 %v2479_v9  ;;  %v2976_v29 = vunpack.c.h.s8.bf16 %v2592_v25  ;;  %v2960_v20 = vunpack.c.l.s8.bf16 %v2592_v25 }
 0x5c8   : > { %3423 = vmatprep.subr.bf16.mxu1 %v3134_v28  ;;  %v2991_v28 = vunpack.c.l.s8.bf16 %v2607_v10  ;;  %v3232_v17 = vunpack.c.h.s8.bf16 %v2720_v26  ;;  %v3216_v21 = vunpack.c.l.s8.bf16 %v2720_v26 }
 0x5ca   : > { %3383 = vmatpush2.bf16.msra.mxu0 %v2877_v22  ;;  %v2591_v22 = vld [vmem:[%s6148_s22 + $0x3a0] sm:$0xff] }
 0x5cb   : > { %3424 = vmatpush2.bf16.msra.mxu1 %v3133_v30  ;;  %3384 = vmatprep.subr.bf16.mxu0 %v2862_v23  ;;  %v2719_v30 = vld [vmem:[%s6148_s22 + $0x7a0] sm:$0xff]  ;;  %v2975_v23 = vunpack.c.h.s8.bf16 %v2591_v22 }
 0x5cc   : > { %3425 = vmatprep.subr.bf16.mxu1 %v3118_v31  ;;  %v3231_v31 = vunpack.c.h.s8.bf16 %v2719_v30 }
 0x5ce   : > { %3385 = vmatpush2.bf16.msra.mxu0 %v2861_v32  ;;  %v2576_v32 = vld [vmem:[%s6148_s22 + $0x328] sm:$0xff] }
 0x5cf   : > { %3426 = vmatpush2.bf16.msra.mxu1 %v3117_v13  ;;  %3436 = vmatprep.subr.bf16.mxu0 %v2848_v33  ;;  %v2704_v13 = vld [vmem:[%s6148_s22 + $0x728] sm:$0xff]  ;;  %v2959_v33 = vunpack.c.l.s8.bf16 %v2591_v22  ;;  %v2944_v34 = vunpack.c.h.s8.bf16 %v2576_v32  ;;  %v2928_v40 = vunpack.c.l.s8.bf16 %v2576_v32 }
 0x5d0   : > { %3477 = vmatprep.subr.bf16.mxu1 %v3104_v14  ;;  %v3215_v14 = vunpack.c.l.s8.bf16 %v2719_v30  ;;  %v3200_v15 = vunpack.c.h.s8.bf16 %v2704_v13  ;;  %v3184_v42 = vunpack.c.l.s8.bf16 %v2704_v13 }
 0x5d1   : > { %3387 = vmatmul.mubr.bf16.vlgmr.msra.gmra.mxu0 %v6368_v50 }
 0x5d2   : > { %3428 = vmatmul.mubr.bf16.vlgmr.msra.gmra.mxu1 %v6374_v59  ;;  %3437 = vmatpush1.bf16.msra.mxu0 %v2847_v35  ;;  %v2575_v35 = vld [vmem:[%s6148_s22 + $0x320] sm:$0xff] }
 0x5d3   : > { %3478 = vmatpush1.bf16.msra.mxu1 %v3103_v36  ;;  %3438 = vmatprep.subr.bf16.mxu0 %v2832_v16  ;;  %v2703_v36 = vld [vmem:[%s6148_s22 + $0x720] sm:$0xff]  ;;  %v2943_v16 = vunpack.c.h.s8.bf16 %v2575_v35 }
 0x5d4   : > { %3479 = vmatprep.subr.bf16.mxu1 %v3088_v37  ;;  %3468 = vmatprep.mubr.bf16.mxu0 %v6340_v56  ;;  %v3199_v37 = vunpack.c.h.s8.bf16 %v2703_v36 }
 0x5d5   : > { %3509 = vmatprep.mubr.bf16.mxu1 %v6344_v12 }
 0x5d6   : > { %3439 = vmatpush1.bf16.msra.mxu0 %v2831_v43  ;;  %v2560_v43 = vld [vmem:[%s6148_s22 + $0x2a8] sm:$0xff] }
 0x5d7   : > { %3480 = vmatpush1.bf16.msra.mxu1 %v3087_v44  ;;  %3440 = vmatprep.subr.bf16.mxu0 %v2816_v45  ;;  %v2688_v44 = vld [vmem:[%s6148_s22 + $0x6a8] sm:$0xff]  ;;  %v2927_v45 = vunpack.c.l.s8.bf16 %v2575_v35  ;;  %v2912_v47 = vunpack.c.h.s8.bf16 %v2560_v43  ;;  %v2896_v53 = vunpack.c.l.s8.bf16 %v2560_v43 }
 0x5d8   : > { %3481 = vmatprep.subr.bf16.mxu1 %v3072_v46  ;;  %v3183_v46 = vunpack.c.l.s8.bf16 %v2703_v36  ;;  %v3168_v39 = vunpack.c.h.s8.bf16 %v2688_v44  ;;  %v3152_v54 = vunpack.c.l.s8.bf16 %v2688_v44 }
 0x5da   : > { %3441 = vmatpush1.bf16.msra.mxu0 %v2815_v48  ;;  %v2559_v48 = vld [vmem:[%s6148_s22 + $0x2a0] sm:$0xff] }
 0x5db   : > { %3482 = vmatpush1.bf16.msra.mxu1 %v3071_v49  ;;  %3442 = vmatprep.subr.bf16.mxu0 %v2800_v51  ;;  %v2687_v49 = vld [vmem:[%s6148_s22 + $0x6a0] sm:$0xff]  ;;  %v2911_v51 = vunpack.c.h.s8.bf16 %v2559_v48 }
 0x5dc   : > { %3483 = vmatprep.subr.bf16.mxu1 %v3056_v52  ;;  %v3167_v52 = vunpack.c.h.s8.bf16 %v2687_v49 }
 0x5de   : > { %3443 = vmatpush1.bf16.msra.mxu0 %v2799_v57  ;;  %v2544_v57 = vld [vmem:[%s6148_s22 + $0x228] sm:$0xff] }
 0x5df   : > { %3484 = vmatpush1.bf16.msra.mxu1 %v3055_v58  ;;  %3444 = vmatprep.subr.bf16.mxu0 %v2784_v41  ;;  %v2672_v58 = vld [vmem:[%s6148_s22 + $0x628] sm:$0xff]  ;;  %v2895_v41 = vunpack.c.l.s8.bf16 %v2559_v48  ;;  %v2880_v61 = vunpack.c.h.s8.bf16 %v2544_v57  ;;  %v2864_v4 = vunpack.c.l.s8.bf16 %v2544_v57 }
 0x5e0   : > { %3485 = vmatprep.subr.bf16.mxu1 %v3040_v60  ;;  %v3151_v60 = vunpack.c.l.s8.bf16 %v2687_v49  ;;  %v3136_v62 = vunpack.c.h.s8.bf16 %v2672_v58  ;;  %v3120_v5 = vunpack.c.l.s8.bf16 %v2672_v58 }
 0x5e2   : > { %3445 = vmatpush1.bf16.msra.mxu0 %v2783_v63  ;;  %v2543_v63 = vld [vmem:[%s6148_s22 + $0x220] sm:$0xff] }
 0x5e3   : > { %3486 = vmatpush1.bf16.msra.mxu1 %v3039_v0  ;;  %3446 = vmatprep.subr.bf16.mxu0 %v2768_v1  ;;  %v2671_v0 = vld [vmem:[%s6148_s22 + $0x620] sm:$0xff]  ;;  %v2879_v1 = vunpack.c.h.s8.bf16 %v2543_v63 }
 0x5e4   : > { %3487 = vmatprep.subr.bf16.mxu1 %v3024_v3  ;;  %v3135_v3 = vunpack.c.h.s8.bf16 %v2671_v0 }
 0x5e6   : > { %3447 = vmatpush1.bf16.msra.mxu0 %v2767_v6  ;;  %v2530_v6 = vld [vmem:[%s6148_s22 + $0x1b8] sm:$0xff] }
 0x5e7   : > { %3488 = vmatpush1.bf16.msra.mxu1 %v3023_v7  ;;  %3448 = vmatprep.subr.bf16.mxu0 %v2752_v8  ;;  %v2658_v7 = vld [vmem:[%s6148_s22 + $0x5b8] sm:$0xff]  ;;  %v2863_v8 = vunpack.c.l.s8.bf16 %v2543_v63  ;;  %v2850_v9 = vunpack.c.h.s8.bf16 %v2530_v6  ;;  %v2834_v25 = vunpack.c.l.s8.bf16 %v2530_v6 }
 0x5e8   : > { %3489 = vmatprep.subr.bf16.mxu1 %v3008_v38  ;;  %v3119_v38 = vunpack.c.l.s8.bf16 %v2671_v0  ;;  %v3106_v10 = vunpack.c.h.s8.bf16 %v2658_v7  ;;  %v3090_v26 = vunpack.c.l.s8.bf16 %v2658_v7 }
 0x5ea   : > { %3449 = vmatpush1.bf16.msra.mxu0 %v2751_v11  ;;  %v2529_v11 = vld [vmem:[%s6148_s22 + $0x1b0] sm:$0xff] }
 0x5eb   : > { %3490 = vmatpush1.bf16.msra.mxu1 %v3007_v18  ;;  %3450 = vmatprep.subr.bf16.mxu0 %v2736_v19  ;;  %v2657_v18 = vld [vmem:[%s6148_s22 + $0x5b0] sm:$0xff]  ;;  %v2849_v19 = vunpack.c.h.s8.bf16 %v2529_v11 }
 0x5ec   : > { %3491 = vmatprep.subr.bf16.mxu1 %v2992_v24  ;;  %v3105_v24 = vunpack.c.h.s8.bf16 %v2657_v18 }
 0x5ee   : > { %3451 = vmatpush1.bf16.msra.mxu0 %v2735_v27  ;;  %v2514_v27 = vld [vmem:[%s6148_s22 + $0x138] sm:$0xff] }
 0x5ef   : > { %3492 = vmatpush1.bf16.msra.mxu1 %v2991_v28  ;;  %3452 = vmatprep.subr.bf16.mxu0 %v2976_v29  ;;  %v2642_v28 = vld [vmem:[%s6148_s22 + $0x538] sm:$0xff]  ;;  %v2833_v29 = vunpack.c.l.s8.bf16 %v2529_v11  ;;  %v2818_v22 = vunpack.c.h.s8.bf16 %v2514_v27  ;;  %v2802_v32 = vunpack.c.l.s8.bf16 %v2514_v27 }
 0x5f0   : > { %3493 = vmatprep.subr.bf16.mxu1 %v3232_v17  ;;  %v3089_v17 = vunpack.c.l.s8.bf16 %v2657_v18  ;;  %v3074_v30 = vunpack.c.h.s8.bf16 %v2642_v28  ;;  %v3058_v13 = vunpack.c.l.s8.bf16 %v2642_v28 }
 0x5f2   : > { %3453 = vmatpush2.bf16.msra.mxu0 %v2975_v23  ;;  %v2513_v23 = vld [vmem:[%s6148_s22 + $0x130] sm:$0xff] }
 0x5f3   : > { %3494 = vmatpush2.bf16.msra.mxu1 %v3231_v31  ;;  %3454 = vmatprep.subr.bf16.mxu0 %v2960_v20  ;;  %v2641_v31 = vld [vmem:[%s6148_s22 + $0x530] sm:$0xff]  ;;  %v2817_v20 = vunpack.c.h.s8.bf16 %v2513_v23 }
 0x5f4   : > { %3495 = vmatprep.subr.bf16.mxu1 %v3216_v21  ;;  %v3073_v21 = vunpack.c.h.s8.bf16 %v2641_v31 }
 0x5f6   : > { %3455 = vmatpush2.bf16.msra.mxu0 %v2959_v33  ;;  %v2498_v33 = vld [vmem:[%s6148_s22 + $0xb8] sm:$0xff] }
 0x5f7   : > { %3496 = vmatpush2.bf16.msra.mxu1 %v3215_v14  ;;  %3456 = vmatprep.subr.bf16.mxu0 %v2944_v34  ;;  %v2626_v14 = vld [vmem:[%s6148_s22 + $0x4b8] sm:$0xff]  ;;  %v2801_v34 = vunpack.c.l.s8.bf16 %v2513_v23  ;;  %v2786_v35 = vunpack.c.h.s8.bf16 %v2498_v33  ;;  %v2770_v43 = vunpack.c.l.s8.bf16 %v2498_v33 }
 0x5f8   : > { %3497 = vmatprep.subr.bf16.mxu1 %v3200_v15  ;;  %v3057_v15 = vunpack.c.l.s8.bf16 %v2641_v31  ;;  %v3042_v36 = vunpack.c.h.s8.bf16 %v2626_v14  ;;  %v3026_v44 = vunpack.c.l.s8.bf16 %v2626_v14 }
 0x5fa   : > { %3457 = vmatpush2.bf16.msra.mxu0 %v2943_v16  ;;  %v2497_v16 = vld [vmem:[%s6148_s22 + $0xb0] sm:$0xff] }
 0x5fb   : > { %3498 = vmatpush2.bf16.msra.mxu1 %v3199_v37  ;;  %3458 = vmatprep.subr.bf16.mxu0 %v2928_v40  ;;  %v2625_v37 = vld [vmem:[%s6148_s22 + $0x4b0] sm:$0xff]  ;;  %v2785_v40 = vunpack.c.h.s8.bf16 %v2497_v16 }
 0x5fc   : > { %3499 = vmatprep.subr.bf16.mxu1 %v3184_v42  ;;  %v3041_v42 = vunpack.c.h.s8.bf16 %v2625_v37 }
 0x5fe   : > { %3459 = vmatpush2.bf16.msra.mxu0 %v2927_v45  ;;  %v2482_v45 = vld [vmem:[%s6148_s22 + $0x38] sm:$0xff] }
 0x5ff   : > { %3500 = vmatpush2.bf16.msra.mxu1 %v3183_v46  ;;  %3460 = vmatprep.subr.bf16.mxu0 %v2912_v47  ;;  %v2610_v46 = vld [vmem:[%s6148_s22 + $0x438] sm:$0xff]  ;;  %v2769_v47 = vunpack.c.l.s8.bf16 %v2497_v16  ;;  %v2754_v48 = vunpack.c.h.s8.bf16 %v2482_v45  ;;  %v2738_v57 = vunpack.c.l.s8.bf16 %v2482_v45 }
 0x600   : > { %3501 = vmatprep.subr.bf16.mxu1 %v3168_v39  ;;  %v3025_v39 = vunpack.c.l.s8.bf16 %v2625_v37  ;;  %v3010_v49 = vunpack.c.h.s8.bf16 %v2610_v46  ;;  %v2994_v58 = vunpack.c.l.s8.bf16 %v2610_v46 }
 0x602   : > { %3461 = vmatpush2.bf16.msra.mxu0 %v2911_v51  ;;  %v2481_v51 = vld [vmem:[%s6148_s22 + $0x30] sm:$0xff] }
 0x603   : > { %3502 = vmatpush2.bf16.msra.mxu1 %v3167_v52  ;;  %3462 = vmatprep.subr.bf16.mxu0 %v2896_v53  ;;  %v2609_v52 = vld [vmem:[%s6148_s22 + $0x430] sm:$0xff]  ;;  %v2753_v53 = vunpack.c.h.s8.bf16 %v2481_v51 }
 0x604   : > { %3503 = vmatprep.subr.bf16.mxu1 %v3152_v54  ;;  %v3009_v54 = vunpack.c.h.s8.bf16 %v2609_v52 }
 0x606   : > { %3463 = vmatpush2.bf16.msra.mxu0 %v2895_v41  ;;  %v2594_v41 = vld [vmem:[%s6148_s22 + $0x3b8] sm:$0xff] }
 0x607   : > { %3504 = vmatpush2.bf16.msra.mxu1 %v3151_v60  ;;  %3464 = vmatprep.subr.bf16.mxu0 %v2880_v61  ;;  %v2722_v60 = vld [vmem:[%s6148_s22 + $0x7b8] sm:$0xff]  ;;  %v2737_v61 = vunpack.c.l.s8.bf16 %v2481_v51  ;;  %v2978_v63 = vunpack.c.h.s8.bf16 %v2594_v41  ;;  %v2962_v6 = vunpack.c.l.s8.bf16 %v2594_v41 }
 0x608   : > { %3505 = vmatprep.subr.bf16.mxu1 %v3136_v62  ;;  %v2993_v62 = vunpack.c.l.s8.bf16 %v2609_v52  ;;  %v3234_v0 = vunpack.c.h.s8.bf16 %v2722_v60  ;;  %v3218_v7 = vunpack.c.l.s8.bf16 %v2722_v60 }
 0x60a   : > { %3465 = vmatpush2.bf16.msra.mxu0 %v2879_v1  ;;  %v2593_v1 = vld [vmem:[%s6148_s22 + $0x3b0] sm:$0xff] }
 0x60b   : > { %3506 = vmatpush2.bf16.msra.mxu1 %v3135_v3  ;;  %3466 = vmatprep.subr.bf16.mxu0 %v2864_v4  ;;  %v2721_v3 = vld [vmem:[%s6148_s22 + $0x7b0] sm:$0xff]  ;;  %v2977_v4 = vunpack.c.h.s8.bf16 %v2593_v1 }
 0x60c   : > { %3507 = vmatprep.subr.bf16.mxu1 %v3120_v5  ;;  %v3233_v5 = vunpack.c.h.s8.bf16 %v2721_v3 }
 0x60e   : > { %3467 = vmatpush2.bf16.msra.mxu0 %v2863_v8  ;;  %v2578_v8 = vld [vmem:[%s6148_s22 + $0x338] sm:$0xff] }
 0x60f   : > { %3508 = vmatpush2.bf16.msra.mxu1 %v3119_v38  ;;  %3518 = vmatprep.subr.bf16.mxu0 %v2850_v9  ;;  %v2706_v38 = vld [vmem:[%s6148_s22 + $0x738] sm:$0xff]  ;;  %v2961_v9 = vunpack.c.l.s8.bf16 %v2593_v1  ;;  %v2946_v11 = vunpack.c.h.s8.bf16 %v2578_v8  ;;  %v2930_v27 = vunpack.c.l.s8.bf16 %v2578_v8 }
 0x610   : > { %3559 = vmatprep.subr.bf16.mxu1 %v3106_v10  ;;  %v3217_v10 = vunpack.c.l.s8.bf16 %v2721_v3  ;;  %v3202_v18 = vunpack.c.h.s8.bf16 %v2706_v38  ;;  %v3186_v28 = vunpack.c.l.s8.bf16 %v2706_v38  ;;  %v2515_v38 = vld [vmem:[%s6148_s22 + $0x140] sm:$0xff] }
 0x611   : > { %3469 = vmatmul.mubr.bf16.vlgmr.msra.gmra.mxu0 %v6368_v50 }
 0x612   : > { %3510 = vmatmul.mubr.bf16.vlgmr.msra.gmra.mxu1 %v6374_v59  ;;  %3519 = vmatpush1.bf16.msra.mxu0 %v2849_v19  ;;  %v2577_v19 = vld [vmem:[%s6148_s22 + $0x330] sm:$0xff] }
 0x613   : > { %3560 = vmatpush1.bf16.msra.mxu1 %v3105_v24  ;;  %3520 = vmatprep.subr.bf16.mxu0 %v2834_v25  ;;  %v2705_v24 = vld [vmem:[%s6148_s22 + $0x730] sm:$0xff]  ;;  %v2945_v25 = vunpack.c.h.s8.bf16 %v2577_v19 }
 0x614   : > { %3561 = vmatprep.subr.bf16.mxu1 %v3090_v26  ;;  %3550 = vmatprep.mubr.bf16.mxu0 %v6340_v56  ;;  %v3201_v26 = vunpack.c.h.s8.bf16 %v2705_v24 }
 0x615   : > { %3591 = vmatprep.mubr.bf16.mxu1 %v6344_v12 }
 0x616   : > { %3521 = vmatpush1.bf16.msra.mxu0 %v2833_v29  ;;  %v2562_v29 = vld [vmem:[%s6148_s22 + $0x2b8] sm:$0xff] }
 0x617   : > { %3562 = vmatpush1.bf16.msra.mxu1 %v3089_v17  ;;  %3522 = vmatprep.subr.bf16.mxu0 %v2818_v22  ;;  %v2690_v17 = vld [vmem:[%s6148_s22 + $0x6b8] sm:$0xff]  ;;  %v2929_v22 = vunpack.c.l.s8.bf16 %v2577_v19  ;;  %v2914_v23 = vunpack.c.h.s8.bf16 %v2562_v29  ;;  %v2898_v33 = vunpack.c.l.s8.bf16 %v2562_v29 }
 0x618   : > { %3563 = vmatprep.subr.bf16.mxu1 %v3074_v30  ;;  %v3185_v30 = vunpack.c.l.s8.bf16 %v2705_v24  ;;  %v3170_v31 = vunpack.c.h.s8.bf16 %v2690_v17  ;;  %v3154_v14 = vunpack.c.l.s8.bf16 %v2690_v17  ;;  %v2819_v24 = vunpack.c.h.s8.bf16 %v2515_v38  ;;  %v2500_v17 = vld [vmem:[%s6148_s22 + $0xc8] sm:$0xff] }
 0x61a   : > { %3523 = vmatpush1.bf16.msra.mxu0 %v2817_v20  ;;  %v2561_v20 = vld [vmem:[%s6148_s22 + $0x2b0] sm:$0xff] }
 0x61b   : > { %3564 = vmatpush1.bf16.msra.mxu1 %v3073_v21  ;;  %3524 = vmatprep.subr.bf16.mxu0 %v2802_v32  ;;  %v2689_v21 = vld [vmem:[%s6148_s22 + $0x6b0] sm:$0xff]  ;;  %v2913_v32 = vunpack.c.h.s8.bf16 %v2561_v20 }
 0x61c   : > { %3565 = vmatprep.subr.bf16.mxu1 %v3058_v13  ;;  %v3169_v13 = vunpack.c.h.s8.bf16 %v2689_v21 }
 0x61e   : > { %3525 = vmatpush1.bf16.msra.mxu0 %v2801_v34  ;;  %v2546_v34 = vld [vmem:[%s6148_s22 + $0x238] sm:$0xff] }
 0x61f   : > { %3566 = vmatpush1.bf16.msra.mxu1 %v3057_v15  ;;  %3526 = vmatprep.subr.bf16.mxu0 %v2786_v35  ;;  %v2674_v15 = vld [vmem:[%s6148_s22 + $0x638] sm:$0xff]  ;;  %v2897_v35 = vunpack.c.l.s8.bf16 %v2561_v20  ;;  %v2882_v16 = vunpack.c.h.s8.bf16 %v2546_v34  ;;  %v2866_v45 = vunpack.c.l.s8.bf16 %v2546_v34 }
 0x620   : > { %3567 = vmatprep.subr.bf16.mxu1 %v3042_v36  ;;  %v3153_v36 = vunpack.c.l.s8.bf16 %v2689_v21  ;;  %v3138_v37 = vunpack.c.h.s8.bf16 %v2674_v15  ;;  %v3122_v46 = vunpack.c.l.s8.bf16 %v2674_v15  ;;  %v2499_v21 = vld [vmem:[%s6148_s22 + $0xc0] sm:$0xff]  ;;  %v2484_v15 = vld [vmem:[%s6148_s22 + $0x48] sm:$0xff] }
 0x622   : > { %3527 = vmatpush1.bf16.msra.mxu0 %v2785_v40  ;;  %v2545_v40 = vld [vmem:[%s6148_s22 + $0x230] sm:$0xff] }
 0x623   : > { %3568 = vmatpush1.bf16.msra.mxu1 %v3041_v42  ;;  %3528 = vmatprep.subr.bf16.mxu0 %v2770_v43  ;;  %v2673_v42 = vld [vmem:[%s6148_s22 + $0x630] sm:$0xff]  ;;  %v2881_v43 = vunpack.c.h.s8.bf16 %v2545_v40 }
 0x624   : > { %3569 = vmatprep.subr.bf16.mxu1 %v3026_v44  ;;  %v3137_v44 = vunpack.c.h.s8.bf16 %v2673_v42 }
 0x626   : > { %3529 = vmatpush1.bf16.msra.mxu0 %v2769_v47  ;;  %v2532_v47 = vld [vmem:[%s6148_s22 + $0x1c8] sm:$0xff] }
 0x627   : > { %3570 = vmatpush1.bf16.msra.mxu1 %v3025_v39  ;;  %3530 = vmatprep.subr.bf16.mxu0 %v2754_v48  ;;  %v2660_v39 = vld [vmem:[%s6148_s22 + $0x5c8] sm:$0xff]  ;;  %v2865_v48 = vunpack.c.l.s8.bf16 %v2545_v40  ;;  %v2852_v51 = vunpack.c.h.s8.bf16 %v2532_v47  ;;  %v2836_v41 = vunpack.c.l.s8.bf16 %v2532_v47 }
 0x628   : > { %3571 = vmatprep.subr.bf16.mxu1 %v3010_v49  ;;  %v3121_v49 = vunpack.c.l.s8.bf16 %v2673_v42  ;;  %v3108_v52 = vunpack.c.h.s8.bf16 %v2660_v39  ;;  %v3092_v60 = vunpack.c.l.s8.bf16 %v2660_v39  ;;  %v2483_v42 = vld [vmem:[%s6148_s22 + $0x40] sm:$0xff]  ;;  %v2596_v39 = vld [vmem:[%s6148_s22 + $0x3c8] sm:$0xff] }
 0x62a   : > { %3531 = vmatpush1.bf16.msra.mxu0 %v2753_v53  ;;  %v2531_v53 = vld [vmem:[%s6148_s22 + $0x1c0] sm:$0xff] }
 0x62b   : > { %3572 = vmatpush1.bf16.msra.mxu1 %v3009_v54  ;;  %3532 = vmatprep.subr.bf16.mxu0 %v2738_v57  ;;  %v2659_v54 = vld [vmem:[%s6148_s22 + $0x5c0] sm:$0xff]  ;;  %v2851_v57 = vunpack.c.h.s8.bf16 %v2531_v53  ;;  %v2835_v3 = vunpack.c.l.s8.bf16 %v2531_v53 }
 0x62c   : > { %3573 = vmatprep.subr.bf16.mxu1 %v2994_v58  ;;  %v3107_v58 = vunpack.c.h.s8.bf16 %v2659_v54 }
 0x62e   : > { %3533 = vmatpush1.bf16.msra.mxu0 %v2737_v61  ;;  %v2516_v61 = vld [vmem:[%s6148_s22 + $0x148] sm:$0xff] }
 0x62f   : > { %3574 = vmatpush1.bf16.msra.mxu1 %v2993_v62  ;;  %3534 = vmatprep.subr.bf16.mxu0 %v2978_v63  ;;  %v2644_v62 = vld [vmem:[%s6148_s22 + $0x548] sm:$0xff] }
 0x630   : > { %3575 = vmatprep.subr.bf16.mxu1 %v3234_v0  ;;  %v3076_v8 = vunpack.c.h.s8.bf16 %v2644_v62  ;;  %v3060_v29 = vunpack.c.l.s8.bf16 %v2644_v62  ;;  %v2580_v62 = vld [vmem:[%s6148_s22 + $0x348] sm:$0xff] }
 0x632   : > { %3535 = vmatpush2.bf16.msra.mxu0 %v2977_v4  ;;  %v3091_v4 = vunpack.c.l.s8.bf16 %v2659_v54  ;;  %v2595_v54 = vld [vmem:[%s6148_s22 + $0x3c0] sm:$0xff] }
 0x633   : > { %3576 = vmatpush2.bf16.msra.mxu1 %v3233_v5  ;;  %3536 = vmatprep.subr.bf16.mxu0 %v2962_v6 }
 0x634   : > { %3577 = vmatprep.subr.bf16.mxu1 %v3218_v7  ;;  %v2820_v7 = vunpack.c.h.s8.bf16 %v2516_v61 }
 0x636   : > { %3537 = vmatpush2.bf16.msra.mxu0 %v2961_v9  ;;  %v2643_v9 = vld [vmem:[%s6148_s22 + $0x540] sm:$0xff] }
 0x637   : > { %3578 = vmatpush2.bf16.msra.mxu1 %v3217_v10  ;;  %3538 = vmatprep.subr.bf16.mxu0 %v2946_v11 }
 0x638   : > { %3579 = vmatprep.subr.bf16.mxu1 %v3202_v18 }
 0x63a   : > { %3539 = vmatpush2.bf16.msra.mxu0 %v2945_v25  ;;  %v3075_v25 = vunpack.c.h.s8.bf16 %v2643_v9 }
 0x63b   : > { %3580 = vmatpush2.bf16.msra.mxu1 %v3201_v26  ;;  %3540 = vmatprep.subr.bf16.mxu0 %v2930_v27 }
 0x63c   : > { %3581 = vmatprep.subr.bf16.mxu1 %v3186_v28  ;;  %v2804_v28 = vunpack.c.l.s8.bf16 %v2516_v61 }
 0x63e   : > { %3541 = vmatpush2.bf16.msra.mxu0 %v2929_v22  ;;  %v2628_v22 = vld [vmem:[%s6148_s22 + $0x4c8] sm:$0xff] }
 0x63f   : > { %3582 = vmatpush2.bf16.msra.mxu1 %v3185_v30  ;;  %3542 = vmatprep.subr.bf16.mxu0 %v2914_v23  ;;  %v2803_v30 = vunpack.c.l.s8.bf16 %v2515_v38  ;;  %v3059_v23 = vunpack.c.l.s8.bf16 %v2643_v9  ;;  %v3044_v20 = vunpack.c.h.s8.bf16 %v2628_v22  ;;  %v3028_v34 = vunpack.c.l.s8.bf16 %v2628_v22 }
 0x640   : > { %3583 = vmatprep.subr.bf16.mxu1 %v3170_v31  ;;  %v2788_v31 = vunpack.c.h.s8.bf16 %v2500_v17  ;;  %v2932_v9 = vunpack.c.l.s8.bf16 %v2580_v62 }
 0x642   : > { %3543 = vmatpush2.bf16.msra.mxu0 %v2913_v32  ;;  %v2627_v32 = vld [vmem:[%s6148_s22 + $0x4c0] sm:$0xff] }
 0x643   : > { %3584 = vmatpush2.bf16.msra.mxu1 %v3169_v13  ;;  %3544 = vmatprep.subr.bf16.mxu0 %v2898_v33  ;;  %v2787_v13 = vunpack.c.h.s8.bf16 %v2499_v21  ;;  %v3043_v33 = vunpack.c.h.s8.bf16 %v2627_v32 }
 0x644   : > { %3585 = vmatprep.subr.bf16.mxu1 %v3154_v14  ;;  %v2772_v14 = vunpack.c.l.s8.bf16 %v2500_v17  ;;  %v2691_v17 = vld [vmem:[%s6148_s22 + $0x6c0] sm:$0xff] }
 0x646   : > { %3545 = vmatpush2.bf16.msra.mxu0 %v2897_v35  ;;  %v2612_v35 = vld [vmem:[%s6148_s22 + $0x448] sm:$0xff] }
 0x647   : > { %3586 = vmatpush2.bf16.msra.mxu1 %v3153_v36  ;;  %3546 = vmatprep.subr.bf16.mxu0 %v2882_v16  ;;  %v2771_v36 = vunpack.c.l.s8.bf16 %v2499_v21  ;;  %v3027_v16 = vunpack.c.l.s8.bf16 %v2627_v32  ;;  %v3012_v40 = vunpack.c.h.s8.bf16 %v2612_v35  ;;  %v2996_v47 = vunpack.c.l.s8.bf16 %v2612_v35  ;;  %v2676_v21 = vld [vmem:[%s6148_s22 + $0x648] sm:$0xff] }
 0x648   : > { %3587 = vmatprep.subr.bf16.mxu1 %v3138_v37  ;;  %v2756_v37 = vunpack.c.h.s8.bf16 %v2484_v15 }
 0x64a   : > { %3547 = vmatpush2.bf16.msra.mxu0 %v2881_v43  ;;  %v2611_v43 = vld [vmem:[%s6148_s22 + $0x440] sm:$0xff] }
 0x64b   : > { %3588 = vmatpush2.bf16.msra.mxu1 %v3137_v44  ;;  %3548 = vmatprep.subr.bf16.mxu0 %v2866_v45  ;;  %v2755_v44 = vunpack.c.h.s8.bf16 %v2483_v42  ;;  %v3011_v45 = vunpack.c.h.s8.bf16 %v2611_v43 }
 0x64c   : > { %3589 = vmatprep.subr.bf16.mxu1 %v3122_v46  ;;  %v2740_v46 = vunpack.c.l.s8.bf16 %v2484_v15  ;;  %v2675_v15 = vld [vmem:[%s6148_s22 + $0x640] sm:$0xff] }
 0x64e   : > { %3549 = vmatpush2.bf16.msra.mxu0 %v2865_v48  ;;  %v2724_v48 = vld [vmem:[%s6148_s22 + $0x7c8] sm:$0xff] }
 0x64f   : > { %3590 = vmatpush2.bf16.msra.mxu1 %v3121_v49  ;;  %3600 = vmatprep.subr.bf16.mxu0 %v2852_v51  ;;  %v2739_v49 = vunpack.c.l.s8.bf16 %v2483_v42  ;;  %v2995_v51 = vunpack.c.l.s8.bf16 %v2611_v43  ;;  %v3236_v53 = vunpack.c.h.s8.bf16 %v2724_v48  ;;  %v3220_v61 = vunpack.c.l.s8.bf16 %v2724_v48  ;;  %v2662_v42 = vld [vmem:[%s6148_s22 + $0x5d8] sm:$0xff] }
 0x650   : > { %3641 = vmatprep.subr.bf16.mxu1 %v3108_v52  ;;  %v2980_v52 = vunpack.c.h.s8.bf16 %v2596_v39  ;;  %v5785_v48 = vmov 1983009808  }
 0x651   : > { %v3306_v63 = vpop.f32.mrf.mxu0  ;;  %3551 = vmatmul.mubr.bf16.vlgmr.msra.gmra.mxu0 %v6368_v50 }
 0x652   : > { %v3347_v0 = vpop.f32.mrf.mxu1  ;;  %3592 = vmatmul.mubr.bf16.vlgmr.msra.gmra.mxu1 %v6374_v59  ;;  %3601 = vmatpush1.bf16.msra.mxu0 %v2851_v57  ;;  %v2723_v57 = vld [vmem:[%s6148_s22 + $0x7c0] sm:$0xff] }
 0x653   : > { %v6488_v1 = vadd.f32 %v3347_v0, %v3306_v63  ;;  %3642 = vmatpush1.bf16.msra.mxu1 %v3107_v58  ;;  %v3308_v5 = vpop.f32.mrf.mxu0  ;;  %3602 = vmatprep.subr.bf16.mxu0 %v2836_v41  ;;  %v2979_v58 = vunpack.c.h.s8.bf16 %v2595_v54  ;;  %v3235_v41 = vunpack.c.h.s8.bf16 %v2723_v57  ;;  %v2708_v63 = vld [vmem:[%s6148_s22 + $0x748] sm:$0xff]  ;;  %v2963_v0 = vunpack.c.l.s8.bf16 %v2595_v54 }
 0x654   : > { %v3349_v6 = vpop.f32.mrf.mxu1  ;;  %3643 = vmatprep.subr.bf16.mxu1 %v3092_v60  ;;  %3632 = vmatprep.mubr.bf16.mxu0 %v6340_v56  ;;  %v2964_v60 = vunpack.c.l.s8.bf16 %v2596_v39  ;;  %v2661_v39 = vld [vmem:[%s6148_s22 + $0x5d0] sm:$0xff]  ;;  %v3094_v54 = vunpack.c.l.s8.bf16 %v2662_v42 }
 0x655   : > { %v6492_v10 = vadd.f32 %v3349_v6, %v3308_v5  ;;  %3673 = vmatprep.mubr.bf16.mxu1 %v6344_v12  ;;  %v3310_v11 = vpop.f32.mrf.mxu0  ;;  %v3204_v5 = vunpack.c.h.s8.bf16 %v2708_v63  ;;  %v2579_v6 = vld [vmem:[%s6148_s22 + $0x340] sm:$0xff] }
 0x656   : > { %v3351_v18 = vpop.f32.mrf.mxu1  ;;  %3603 = vmatpush1.bf16.msra.mxu0 %v2835_v3  ;;  %v3219_v3 = vunpack.c.l.s8.bf16 %v2723_v57  ;;  %v3188_v11 = vunpack.c.l.s8.bf16 %v2708_v63 }
 0x657   : > { %v3944_v19 = vcombine.low %v6488_v1, %v6492_v10  ;;  %3644 = vmatpush1.bf16.msra.mxu1 %v3091_v4  ;;  %v3311_v26 = vpop.f32.mrf.mxu0  ;;  %3604 = vmatprep.subr.bf16.mxu0 %v2820_v7  ;;  %v2948_v4 = vunpack.c.h.s8.bf16 %v2580_v62  ;;  %v2707_v7 = vld [vmem:[%s6148_s22 + $0x740] sm:$0xff]  ;;  %v2564_v18 = vld [vmem:[%s6148_s22 + $0x2c8] sm:$0xff]  ;;  %v2629_v1 = vld [vmem:[%s6148_s22 + $0x4d0] sm:$0xff] }
 0x658   : > { %v3352_v27 = vpop.f32.mrf.mxu1  ;;  %3645 = vmatprep.subr.bf16.mxu1 %v3076_v8  ;;  %v2947_v8 = vunpack.c.h.s8.bf16 %v2579_v6  ;;  %v3203_v38 = vunpack.c.h.s8.bf16 %v2707_v7  ;;  %v3187_v26 = vunpack.c.l.s8.bf16 %v2707_v7  ;;  %v2517_v7 = vld [vmem:[%s6148_s22 + $0x150] sm:$0xff] }
 0x659   : > { %v2916_v27 = vunpack.c.h.s8.bf16 %v2564_v18 }
 0x65a   : > { %3605 = vmatpush1.bf16.msra.mxu0 %v2819_v24  ;;  %v2692_v24 = vld [vmem:[%s6148_s22 + $0x6c8] sm:$0xff] }
 0x65b   : > { %3646 = vmatpush1.bf16.msra.mxu1 %v3075_v25  ;;  %3606 = vmatprep.subr.bf16.mxu0 %v2804_v28  ;;  %v2931_v25 = vunpack.c.l.s8.bf16 %v2579_v6  ;;  %v3172_v28 = vunpack.c.h.s8.bf16 %v2692_v24 }
 0x65c   : > { %3647 = vmatprep.subr.bf16.mxu1 %v3060_v29  ;;  %v2563_v29 = vld [vmem:[%s6148_s22 + $0x2c0] sm:$0xff] }
 0x65d   : > { %v2915_v22 = vunpack.c.h.s8.bf16 %v2563_v29  ;;  %v2899_v32 = vunpack.c.l.s8.bf16 %v2563_v29 }
 0x65e   : > { %3607 = vmatpush1.bf16.msra.mxu0 %v2803_v30  ;;  %v3171_v30 = vunpack.c.h.s8.bf16 %v2691_v17 }
 0x65f   : > { %3648 = vmatpush1.bf16.msra.mxu1 %v3059_v23  ;;  %3608 = vmatprep.subr.bf16.mxu0 %v2788_v31  ;;  %v2900_v23 = vunpack.c.l.s8.bf16 %v2564_v18  ;;  %v3156_v31 = vunpack.c.l.s8.bf16 %v2692_v24 }
 0x660   : > { %3649 = vmatprep.subr.bf16.mxu1 %v3044_v20  ;;  %v2548_v20 = vld [vmem:[%s6148_s22 + $0x248] sm:$0xff] }
 0x662   : > { %3609 = vmatpush1.bf16.msra.mxu0 %v2787_v13  ;;  %v3155_v13 = vunpack.c.l.s8.bf16 %v2691_v17 }
 0x663   : > { %3650 = vmatpush1.bf16.msra.mxu1 %v3043_v33  ;;  %3610 = vmatprep.subr.bf16.mxu0 %v2772_v14  ;;  %v2884_v33 = vunpack.c.h.s8.bf16 %v2548_v20  ;;  %v3140_v14 = vunpack.c.h.s8.bf16 %v2676_v21 }
 0x664   : > { %3651 = vmatprep.subr.bf16.mxu1 %v3028_v34  ;;  %v2547_v34 = vld [vmem:[%s6148_s22 + $0x240] sm:$0xff] }
 0x665   : > { %v2883_v35 = vunpack.c.h.s8.bf16 %v2547_v34  ;;  %v2867_v43 = vunpack.c.l.s8.bf16 %v2547_v34  ;;  %v2501_v34 = vld [vmem:[%s6148_s22 + $0xd0] sm:$0xff] }
 0x666   : > { %3611 = vmatpush1.bf16.msra.mxu0 %v2771_v36  ;;  %v3139_v36 = vunpack.c.h.s8.bf16 %v2675_v15 }
 0x667   : > { %3652 = vmatpush1.bf16.msra.mxu1 %v3027_v16  ;;  %3612 = vmatprep.subr.bf16.mxu0 %v2756_v37  ;;  %v2868_v16 = vunpack.c.l.s8.bf16 %v2548_v20  ;;  %v3124_v37 = vunpack.c.l.s8.bf16 %v2676_v21  ;;  %v2471_v20 = vld [vmem:[#allocation3 + $0x10] sm:$0xff] }
 0x668   : > { %3653 = vmatprep.subr.bf16.mxu1 %v3012_v40  ;;  %v2534_v40 = vld [vmem:[%s6148_s22 + $0x1d8] sm:$0xff] }
 0x66a   : > { %3613 = vmatpush1.bf16.msra.mxu0 %v2755_v44  ;;  %v3123_v44 = vunpack.c.l.s8.bf16 %v2675_v15  ;;  %v3045_v15 = vunpack.c.h.s8.bf16 %v2629_v1 }
 0x66b   : > { %3654 = vmatpush1.bf16.msra.mxu1 %v3011_v45  ;;  %3614 = vmatprep.subr.bf16.mxu0 %v2740_v46  ;;  %v2854_v45 = vunpack.c.h.s8.bf16 %v2534_v40  ;;  %v3110_v46 = vunpack.c.h.s8.bf16 %v2662_v42  ;;  %v3029_v42 = vunpack.c.l.s8.bf16 %v2629_v1 }
 0x66c   : > { %3655 = vmatprep.subr.bf16.mxu1 %v2996_v47  ;;  %v2533_v47 = vld [vmem:[%s6148_s22 + $0x1d0] sm:$0xff] }
 0x66d   : > { %v2837_v63 = vunpack.c.l.s8.bf16 %v2533_v47 }
 0x66e   : > { %3615 = vmatpush1.bf16.msra.mxu0 %v2739_v49  ;;  %v3947_v49 = vunpack.c.l.s4 %v5785_v48 }
 0x66f   : > { %3656 = vmatpush1.bf16.msra.mxu1 %v2995_v51  ;;  %3616 = vmatprep.subr.bf16.mxu0 %v2980_v52  ;;  %v2853_v51 = vunpack.c.h.s8.bf16 %v2533_v47  ;;  %v3109_v52 = vunpack.c.h.s8.bf16 %v2661_v39 }
 0x670   : > { %3657 = vmatprep.subr.bf16.mxu1 %v3236_v53  ;;  %v2838_v53 = vunpack.c.l.s8.bf16 %v2534_v40  ;;  %v3948_v57 = vunpack.c.0.s8 %v3947_v49  ;;  %v2773_v40 = vunpack.c.l.s8.bf16 %v2501_v34 }
 0x672   : > { %3617 = vmatpush2.bf16.msra.mxu0 %v2979_v58  ;;  %v2518_v58 = vld [vmem:[%s6148_s22 + $0x158] sm:$0xff] }
 0x673   : > { %3658 = vmatpush2.bf16.msra.mxu1 %v3235_v41  ;;  %3618 = vmatprep.subr.bf16.mxu0 %v2964_v60  ;;  %v2646_v41 = vld [vmem:[%s6148_s22 + $0x558] sm:$0xff]  ;;  %v2806_v29 = vunpack.c.l.s8.bf16 %v2518_v58 }
 0x674   : > { %3659 = vmatprep.subr.bf16.mxu1 %v3220_v61  ;;  %v3078_v6 = vunpack.c.h.s8.bf16 %v2646_v41  ;;  %v3062_v17 = vunpack.c.l.s8.bf16 %v2646_v41  ;;  %v2597_v41 = vld [vmem:[%s6148_s22 + $0x3d0] sm:$0xff] }
 0x676   : > { %3619 = vmatpush2.bf16.msra.mxu0 %v2963_v0  ;;  %v3093_v0 = vunpack.c.l.s8.bf16 %v2661_v39 }
 0x677   : > { %3660 = vmatpush2.bf16.msra.mxu1 %v3219_v3  ;;  %3620 = vmatprep.subr.bf16.mxu0 %v2948_v4 }
 0x678   : > { %3661 = vmatprep.subr.bf16.mxu1 %v3204_v5  ;;  %v2822_v5 = vunpack.c.h.s8.bf16 %v2518_v58 }
 0x67a   : > { %3621 = vmatpush2.bf16.msra.mxu0 %v2947_v8  ;;  %v2645_v8 = vld [vmem:[%s6148_s22 + $0x550] sm:$0xff] }
 0x67b   : > { %3662 = vmatpush2.bf16.msra.mxu1 %v3203_v38  ;;  %3622 = vmatprep.subr.bf16.mxu0 %v2932_v9  ;;  %v6533_v38 = vsub.s32 %v3948_v57, %v6328_v2 }
 0x67c   : > { %3663 = vmatprep.subr.bf16.mxu1 %v3188_v11 }
 0x67e   : > { %3623 = vmatpush2.bf16.msra.mxu0 %v2931_v25  ;;  %v2821_v25 = vunpack.c.h.s8.bf16 %v2517_v7 }
 0x67f   : > { %3664 = vmatpush2.bf16.msra.mxu1 %v3187_v26  ;;  %3624 = vmatprep.subr.bf16.mxu0 %v2916_v27  ;;  %v3077_v26 = vunpack.c.h.s8.bf16 %v2645_v8 }
 0x680   : > { %3665 = vmatprep.subr.bf16.mxu1 %v3172_v28 }
 0x682   : > { %3625 = vmatpush2.bf16.msra.mxu0 %v2915_v22  ;;  %v3952_v22 = vrot.slane %v3944_v19, %v6533_v38  ;;  %v2789_v19 = vunpack.c.h.s8.bf16 %v2501_v34 }
 0x683   : > { %3666 = vmatpush2.bf16.msra.mxu1 %v3171_v30  ;;  %3626 = vmatprep.subr.bf16.mxu0 %v2900_v23  ;;  %v2502_v23 = vld [vmem:[%s6148_s22 + $0xd8] sm:$0xff] }
 0x684   : > { %3667 = vmatprep.subr.bf16.mxu1 %v3156_v31  ;;  %v2630_v31 = vld [vmem:[%s6148_s22 + $0x4d8] sm:$0xff] }
 0x686   : > { %3627 = vmatpush2.bf16.msra.mxu0 %v2899_v32  ;;  %v2805_v32 = vunpack.c.l.s8.bf16 %v2517_v7 }
 0x687   : > { %3668 = vmatpush2.bf16.msra.mxu1 %v3155_v13  ;;  %3628 = vmatprep.subr.bf16.mxu0 %v2884_v33  ;;  %v3061_v13 = vunpack.c.l.s8.bf16 %v2645_v8  ;;  %v2790_v33 = vunpack.c.h.s8.bf16 %v2502_v23 }
 0x688   : > { %3669 = vmatprep.subr.bf16.mxu1 %v3140_v14  ;;  %v3046_v14 = vunpack.c.h.s8.bf16 %v2630_v31 }
 0x68a   : > { %3629 = vmatpush2.bf16.msra.mxu0 %v2883_v35  ;;  %v2774_v35 = vunpack.c.l.s8.bf16 %v2502_v23  ;;  %v2565_v23 = vld [vmem:[%s6148_s22 + $0x2d0] sm:$0xff] }
 0x68b   : > { %3670 = vmatpush2.bf16.msra.mxu1 %v3139_v36  ;;  %3630 = vmatprep.subr.bf16.mxu0 %v2868_v16  ;;  %v3030_v36 = vunpack.c.l.s8.bf16 %v2630_v31  ;;  %v2486_v16 = vld [vmem:[%s6148_s22 + $0x58] sm:$0xff]  ;;  %v2693_v31 = vld [vmem:[%s6148_s22 + $0x6d0] sm:$0xff]  ;;  %v2901_v34 = vunpack.c.l.s8.bf16 %v2565_v23 }
 0x68c   : > { %3671 = vmatprep.subr.bf16.mxu1 %v3124_v37  ;;  %v2614_v37 = vld [vmem:[%s6148_s22 + $0x458] sm:$0xff]  ;;  %v2742_v48 = vunpack.c.l.s8.bf16 %v2486_v16  ;;  %v3157_v1 = vunpack.c.l.s8.bf16 %v2693_v31 }
 0x68d   : > { %v2998_v49 = vunpack.c.l.s8.bf16 %v2614_v37 }
 0x68e   : > { %3631 = vmatpush2.bf16.msra.mxu0 %v2867_v43  ;;  %v2758_v43 = vunpack.c.h.s8.bf16 %v2486_v16 }
 0x68f   : > { %3672 = vmatpush2.bf16.msra.mxu1 %v3123_v44  ;;  %3682 = vmatprep.subr.bf16.mxu0 %v2854_v45  ;;  %v3014_v44 = vunpack.c.h.s8.bf16 %v2614_v37  ;;  %v2485_v45 = vld [vmem:[%s6148_s22 + $0x50] sm:$0xff] }
 0x690   : > { %3723 = vmatprep.subr.bf16.mxu1 %v3110_v46  ;;  %v2613_v46 = vld [vmem:[%s6148_s22 + $0x450] sm:$0xff]  ;;  %v2757_v47 = vunpack.c.h.s8.bf16 %v2485_v45 }
 0x691   : > { %v3388_v60 = vpop.f32.mrf.mxu0  ;;  %3633 = vmatmul.mubr.bf16.vlgmr.msra.gmra.mxu0 %v6368_v50  ;;  %v3013_v39 = vunpack.c.h.s8.bf16 %v2613_v46 }
 0x692   : > { %v3429_v61 = vpop.f32.mrf.mxu1  ;;  %3674 = vmatmul.mubr.bf16.vlgmr.msra.gmra.mxu1 %v6374_v59  ;;  %3683 = vmatpush1.bf16.msra.mxu0 %v2853_v51  ;;  %v2598_v51 = vld [vmem:[%s6148_s22 + $0x3d8] sm:$0xff] }
 0x693   : > { %v3430_v62 = vadd.f32 %v3429_v61, %v3388_v60  ;;  %3724 = vmatpush1.bf16.msra.mxu1 %v3109_v52  ;;  %v3390_v3 = vpop.f32.mrf.mxu0  ;;  %3684 = vmatprep.subr.bf16.mxu0 %v2838_v53  ;;  %v2726_v52 = vld [vmem:[%s6148_s22 + $0x7d8] sm:$0xff]  ;;  %v2741_v53 = vunpack.c.l.s8.bf16 %v2485_v45  ;;  %v2982_v57 = vunpack.c.h.s8.bf16 %v2598_v51  ;;  %v2725_v60 = vld [vmem:[%s6148_s22 + $0x7d0] sm:$0xff]  ;;  %v2981_v61 = vunpack.c.h.s8.bf16 %v2597_v41 }
 0x694   : > { %v3431_v4 = vpop.f32.mrf.mxu1  ;;  %3725 = vmatprep.subr.bf16.mxu1 %v3094_v54  ;;  %3714 = vmatprep.mubr.bf16.mxu0 %v6340_v56  ;;  %v2997_v54 = vunpack.c.l.s8.bf16 %v2613_v46  ;;  %v3238_v58 = vunpack.c.h.s8.bf16 %v2726_v52 }
 0x695   : > { %v3432_v9 = vadd.f32 %v3431_v4, %v3390_v3  ;;  %3755 = vmatprep.mubr.bf16.mxu1 %v6344_v12  ;;  %v3392_v11 = vpop.f32.mrf.mxu0  ;;  %v2582_v3 = vld [vmem:[%s6148_s22 + $0x358] sm:$0xff] }
 0x696   : > { %v3433_v18 = vpop.f32.mrf.mxu1  ;;  %3685 = vmatpush1.bf16.msra.mxu0 %v2837_v63  ;;  %v2966_v63 = vunpack.c.l.s8.bf16 %v2598_v51  ;;  %v2710_v4 = vld [vmem:[%s6148_s22 + $0x758] sm:$0xff]  ;;  %v2950_v7 = vunpack.c.h.s8.bf16 %v2582_v3  ;;  %v2709_v11 = vld [vmem:[%s6148_s22 + $0x750] sm:$0xff] }
 0x697   : > { %v3945_v24 = vcombine.low %v3430_v62, %v3432_v9  ;;  %3726 = vmatpush1.bf16.msra.mxu1 %v3093_v0  ;;  %v3393_v27 = vpop.f32.mrf.mxu0  ;;  %3686 = vmatprep.subr.bf16.mxu0 %v2822_v5  ;;  %v3237_v62 = vunpack.c.h.s8.bf16 %v2725_v60  ;;  %v3222_v0 = vunpack.c.l.s8.bf16 %v2726_v52  ;;  %v2965_v5 = vunpack.c.l.s8.bf16 %v2597_v41  ;;  %v2581_v9 = vld [vmem:[%s6148_s22 + $0x350] sm:$0xff] }
 0x698   : > { %v3434_v28 = vpop.f32.mrf.mxu1  ;;  %3727 = vmatprep.subr.bf16.mxu1 %v3078_v6  ;;  %v3221_v6 = vunpack.c.l.s8.bf16 %v2725_v60  ;;  %v3206_v8 = vunpack.c.h.s8.bf16 %v2710_v4  ;;  %v2949_v18 = vunpack.c.h.s8.bf16 %v2581_v9  ;;  %v2566_v27 = vld [vmem:[%s6148_s22 + $0x2d8] sm:$0xff] }
 0x699   : > { %v3959_v30 = vrot.slane %v3945_v24, %v6533_v38  ;;  %v3205_v24 = vunpack.c.h.s8.bf16 %v2709_v11  ;;  %v2694_v28 = vld [vmem:[%s6148_s22 + $0x6d8] sm:$0xff] }
 0x69a   : > { %3687 = vmatpush1.bf16.msra.mxu0 %v2821_v25  ;;  %v2934_v25 = vunpack.c.l.s8.bf16 %v2582_v3 }
 0x69b   : > { %v3960_v21 = vcombine.low %v3952_v22, %v3959_v30  ;;  %3728 = vmatpush1.bf16.msra.mxu1 %v3077_v26  ;;  %3688 = vmatprep.subr.bf16.mxu0 %v2806_v29  ;;  %v3190_v26 = vunpack.c.l.s8.bf16 %v2710_v4  ;;  %v2933_v29 = vunpack.c.l.s8.bf16 %v2581_v9  ;;  %v2918_v22 = vunpack.c.h.s8.bf16 %v2566_v27 }
 0x69c   : > { %3729 = vmatprep.subr.bf16.mxu1 %v3062_v17  ;;  %v3189_v17 = vunpack.c.l.s8.bf16 %v2709_v11  ;;  %v3174_v30 = vunpack.c.h.s8.bf16 %v2694_v28 }
 0x69d   : > { %v4016_v10 = vadd.f32 %v3960_v21, %v2471_v20  ;;  %v2917_v20 = vunpack.c.h.s8.bf16 %v2565_v23  ;;  %v3173_v21 = vunpack.c.h.s8.bf16 %v2693_v31 }
 0x69e   : > { %3689 = vmatpush1.bf16.msra.mxu0 %v2805_v32  ;;  %v2902_v32 = vunpack.c.l.s8.bf16 %v2566_v27 }
 0x69f   : > { %4020 = vst [vmem:[#allocation3 + $0x10] sm:$0xff] %v4016_v10  ;;  %3730 = vmatpush1.bf16.msra.mxu1 %v3061_v13  ;;  %3690 = vmatprep.subr.bf16.mxu0 %v2790_v33  ;;  %v3158_v13 = vunpack.c.l.s8.bf16 %v2694_v28  ;;  %v2550_v33 = vld [vmem:[%s6148_s22 + $0x258] sm:$0xff] }
 0x6a0   : > { %3731 = vmatprep.subr.bf16.mxu1 %v3046_v14  ;;  %v2678_v14 = vld [vmem:[%s6148_s22 + $0x658] sm:$0xff]  ;;  %v2886_v10 = vunpack.c.h.s8.bf16 %v2550_v33  ;;  %v2870_v37 = vunpack.c.l.s8.bf16 %v2550_v33 }
 0x6a2   : > { %3691 = vmatpush1.bf16.msra.mxu0 %v2789_v19  ;;  %v3142_v19 = vunpack.c.h.s8.bf16 %v2678_v14 }
 0x6a3   : > { %3732 = vmatpush1.bf16.msra.mxu1 %v3045_v15  ;;  %3692 = vmatprep.subr.bf16.mxu0 %v2774_v35  ;;  %v2549_v15 = vld [vmem:[%s6148_s22 + $0x250] sm:$0xff] }
 0x6a4   : > { %3733 = vmatprep.subr.bf16.mxu1 %v3030_v36  ;;  %v2677_v35 = vld [vmem:[%s6148_s22 + $0x650] sm:$0xff]  ;;  %v2885_v36 = vunpack.c.h.s8.bf16 %v2549_v15 }
 0x6a5   : > { %v3141_v16 = vunpack.c.h.s8.bf16 %v2677_v35  ;;  %v3125_v45 = vunpack.c.l.s8.bf16 %v2677_v35 }
 0x6a6   : > { %3693 = vmatpush1.bf16.msra.mxu0 %v2773_v40  ;;  %v3126_v40 = vunpack.c.l.s8.bf16 %v2678_v14 }
 0x6a7   : > { %3734 = vmatpush1.bf16.msra.mxu1 %v3029_v42  ;;  %3694 = vmatprep.subr.bf16.mxu0 %v2758_v43  ;;  %v2536_v42 = vld [vmem:[%s6148_s22 + $0x1e8] sm:$0xff] }
 0x6a8   : > { %3735 = vmatprep.subr.bf16.mxu1 %v3014_v44  ;;  %v2664_v43 = vld [vmem:[%s6148_s22 + $0x5e8] sm:$0xff]  ;;  %v2869_v44 = vunpack.c.l.s8.bf16 %v2549_v15  ;;  %v2856_v46 = vunpack.c.h.s8.bf16 %v2536_v42  ;;  %v2840_v52 = vunpack.c.l.s8.bf16 %v2536_v42 }
 0x6aa   : > { %3695 = vmatpush1.bf16.msra.mxu0 %v2757_v47  ;;  %v3112_v47 = vunpack.c.h.s8.bf16 %v2664_v43 }
 0x6ab   : > { %3736 = vmatpush1.bf16.msra.mxu1 %v3013_v39  ;;  %3696 = vmatprep.subr.bf16.mxu0 %v2742_v48  ;;  %v2535_v39 = vld [vmem:[%s6148_s22 + $0x1e0] sm:$0xff] }
 0x6ac   : > { %3737 = vmatprep.subr.bf16.mxu1 %v2998_v49  ;;  %v2663_v48 = vld [vmem:[%s6148_s22 + $0x5e0] sm:$0xff]  ;;  %v2855_v49 = vunpack.c.h.s8.bf16 %v2535_v39 }
 0x6ad   : > { %v3111_v51 = vunpack.c.h.s8.bf16 %v2663_v48 }
 0x6ae   : > { %3697 = vmatpush1.bf16.msra.mxu0 %v2741_v53  ;;  %v3096_v53 = vunpack.c.l.s8.bf16 %v2664_v43 }
 0x6af   : > { %3738 = vmatpush1.bf16.msra.mxu1 %v2997_v54  ;;  %3698 = vmatprep.subr.bf16.mxu0 %v2982_v57  ;;  %v2520_v54 = vld [vmem:[%s6148_s22 + $0x168] sm:$0xff] }
 0x6b0   : > { %3739 = vmatprep.subr.bf16.mxu1 %v3238_v58  ;;  %v2648_v57 = vld [vmem:[%s6148_s22 + $0x568] sm:$0xff]  ;;  %v2824_v3 = vunpack.c.h.s8.bf16 %v2520_v54  ;;  %v2808_v27 = vunpack.c.l.s8.bf16 %v2520_v54 }
 0x6b1   : > { %v3080_v4 = vunpack.c.h.s8.bf16 %v2648_v57  ;;  %v3064_v28 = vunpack.c.l.s8.bf16 %v2648_v57 }
 0x6b2   : > { %3699 = vmatpush2.bf16.msra.mxu0 %v2981_v61  ;;  %v2839_v61 = vunpack.c.l.s8.bf16 %v2535_v39 }
 0x6b3   : > { %3740 = vmatpush2.bf16.msra.mxu1 %v3237_v62  ;;  %3700 = vmatprep.subr.bf16.mxu0 %v2966_v63  ;;  %v3095_v62 = vunpack.c.l.s8.bf16 %v2663_v48 }
 0x6b4   : > { %3741 = vmatprep.subr.bf16.mxu1 %v3222_v0 }
 0x6b6   : > { %3701 = vmatpush2.bf16.msra.mxu0 %v2965_v5  ;;  %v2519_v5 = vld [vmem:[%s6148_s22 + $0x160] sm:$0xff] }
 0x6b7   : > { %3742 = vmatpush2.bf16.msra.mxu1 %v3221_v6  ;;  %3702 = vmatprep.subr.bf16.mxu0 %v2950_v7  ;;  %v2647_v6 = vld [vmem:[%s6148_s22 + $0x560] sm:$0xff] }
 0x6b8   : > { %3743 = vmatprep.subr.bf16.mxu1 %v3206_v8 }
 0x6ba   : > { %3703 = vmatpush2.bf16.msra.mxu0 %v2949_v18  ;;  %v2823_v18 = vunpack.c.h.s8.bf16 %v2519_v5 }
 0x6bb   : > { %3744 = vmatpush2.bf16.msra.mxu1 %v3205_v24  ;;  %3704 = vmatprep.subr.bf16.mxu0 %v2934_v25  ;;  %v3079_v24 = vunpack.c.h.s8.bf16 %v2647_v6 }
 0x6bc   : > { %3745 = vmatprep.subr.bf16.mxu1 %v3190_v26 }
 0x6be   : > { %3705 = vmatpush2.bf16.msra.mxu0 %v2933_v29  ;;  %v2504_v29 = vld [vmem:[%s6148_s22 + $0xe8] sm:$0xff] }
 0x6bf   : > { %3746 = vmatpush2.bf16.msra.mxu1 %v3189_v17  ;;  %3706 = vmatprep.subr.bf16.mxu0 %v2918_v22  ;;  %v2632_v17 = vld [vmem:[%s6148_s22 + $0x4e8] sm:$0xff]  ;;  %v2807_v22 = vunpack.c.l.s8.bf16 %v2519_v5  ;;  %v2792_v23 = vunpack.c.h.s8.bf16 %v2504_v29  ;;  %v2776_v33 = vunpack.c.l.s8.bf16 %v2504_v29  ;;  %v2567_v29 = vld [vmem:[%s6148_s22 + $0x2e0] sm:$0xff] }
 0x6c0   : > { %3747 = vmatprep.subr.bf16.mxu1 %v3174_v30  ;;  %v3063_v30 = vunpack.c.l.s8.bf16 %v2647_v6  ;;  %v3048_v31 = vunpack.c.h.s8.bf16 %v2632_v17  ;;  %v3032_v14 = vunpack.c.l.s8.bf16 %v2632_v17  ;;  %v2695_v17 = vld [vmem:[%s6148_s22 + $0x6e0] sm:$0xff] }
 0x6c2   : > { %3707 = vmatpush2.bf16.msra.mxu0 %v2917_v20  ;;  %v2503_v20 = vld [vmem:[%s6148_s22 + $0xe0] sm:$0xff] }
 0x6c3   : > { %3748 = vmatpush2.bf16.msra.mxu1 %v3173_v21  ;;  %3708 = vmatprep.subr.bf16.mxu0 %v2902_v32  ;;  %v2631_v21 = vld [vmem:[%s6148_s22 + $0x4e0] sm:$0xff]  ;;  %v2791_v32 = vunpack.c.h.s8.bf16 %v2503_v20 }
 0x6c4   : > { %3749 = vmatprep.subr.bf16.mxu1 %v3158_v13  ;;  %v3047_v13 = vunpack.c.h.s8.bf16 %v2631_v21 }
 0x6c6   : > { %3709 = vmatpush2.bf16.msra.mxu0 %v2901_v34  ;;  %v2488_v34 = vld [vmem:[%s6148_s22 + $0x68] sm:$0xff] }
 0x6c7   : > { %3750 = vmatpush2.bf16.msra.mxu1 %v3157_v1  ;;  %3710 = vmatprep.subr.bf16.mxu0 %v2886_v10  ;;  %v2616_v1 = vld [vmem:[%s6148_s22 + $0x468] sm:$0xff]  ;;  %v2775_v10 = vunpack.c.l.s8.bf16 %v2503_v20  ;;  %v2760_v15 = vunpack.c.h.s8.bf16 %v2488_v34  ;;  %v2744_v42 = vunpack.c.l.s8.bf16 %v2488_v34  ;;  %v2551_v34 = vld [vmem:[%s6148_s22 + $0x260] sm:$0xff] }
 0x6c8   : > { %3751 = vmatprep.subr.bf16.mxu1 %v3142_v19  ;;  %v3031_v19 = vunpack.c.l.s8.bf16 %v2631_v21  ;;  %v3016_v35 = vunpack.c.h.s8.bf16 %v2616_v1  ;;  %v3000_v43 = vunpack.c.l.s8.bf16 %v2616_v1  ;;  %v2552_v20 = vld [vmem:[%s6148_s22 + $0x268] sm:$0xff]  ;;  %v2679_v1 = vld [vmem:[%s6148_s22 + $0x660] sm:$0xff] }
 0x6c9   : > { %v2680_v21 = vld [vmem:[%s6148_s22 + $0x668] sm:$0xff] }
 0x6ca   : > { %3711 = vmatpush2.bf16.msra.mxu0 %v2885_v36  ;;  %v2487_v36 = vld [vmem:[%s6148_s22 + $0x60] sm:$0xff] }
 0x6cb   : > { %3752 = vmatpush2.bf16.msra.mxu1 %v3141_v16  ;;  %3712 = vmatprep.subr.bf16.mxu0 %v2870_v37  ;;  %v2615_v16 = vld [vmem:[%s6148_s22 + $0x460] sm:$0xff]  ;;  %v2759_v37 = vunpack.c.h.s8.bf16 %v2487_v36 }
 0x6cc   : > { %3753 = vmatprep.subr.bf16.mxu1 %v3126_v40  ;;  %v3015_v40 = vunpack.c.h.s8.bf16 %v2615_v16 }
 0x6ce   : > { %3713 = vmatpush2.bf16.msra.mxu0 %v2869_v44  ;;  %v2600_v44 = vld [vmem:[%s6148_s22 + $0x3e8] sm:$0xff] }
 0x6cf   : > { %3754 = vmatpush2.bf16.msra.mxu1 %v3125_v45  ;;  %3764 = vmatprep.subr.bf16.mxu0 %v2856_v46  ;;  %v2728_v45 = vld [vmem:[%s6148_s22 + $0x7e8] sm:$0xff]  ;;  %v2743_v46 = vunpack.c.l.s8.bf16 %v2487_v36  ;;  %v2984_v39 = vunpack.c.h.s8.bf16 %v2600_v44  ;;  %v2968_v54 = vunpack.c.l.s8.bf16 %v2600_v44  ;;  %v2538_v36 = vld [vmem:[%s6148_s22 + $0x1f8] sm:$0xff]  ;;  %v2537_v44 = vld [vmem:[%s6148_s22 + $0x1f0] sm:$0xff] }
 0x6d0   : > { %3805 = vmatprep.subr.bf16.mxu1 %v3112_v47  ;;  %v2999_v47 = vunpack.c.l.s8.bf16 %v2615_v16  ;;  %v3240_v48 = vunpack.c.h.s8.bf16 %v2728_v45  ;;  %v3224_v57 = vunpack.c.l.s8.bf16 %v2728_v45  ;;  %v2666_v16 = vld [vmem:[%s6148_s22 + $0x5f8] sm:$0xff]  ;;  %v2665_v45 = vld [vmem:[%s6148_s22 + $0x5f0] sm:$0xff] }
 0x6d1   : > { %v3470_v58 = vpop.f32.mrf.mxu0  ;;  %3715 = vmatmul.mubr.bf16.vlgmr.msra.gmra.mxu0 %v6368_v50 }
 0x6d2   : > { %v3511_v41 = vpop.f32.mrf.mxu1  ;;  %3756 = vmatmul.mubr.bf16.vlgmr.msra.gmra.mxu1 %v6374_v59  ;;  %3765 = vmatpush1.bf16.msra.mxu0 %v2855_v49  ;;  %v2599_v49 = vld [vmem:[%s6148_s22 + $0x3e0] sm:$0xff] }
 0x6d3   : > { %v6574_v60 = vadd.f32 %v3511_v41, %v3470_v58  ;;  %3806 = vmatpush1.bf16.msra.mxu1 %v3111_v51  ;;  %v3472_v63 = vpop.f32.mrf.mxu0  ;;  %3766 = vmatprep.subr.bf16.mxu0 %v2840_v52  ;;  %v2727_v51 = vld [vmem:[%s6148_s22 + $0x7e0] sm:$0xff]  ;;  %v2983_v52 = vunpack.c.h.s8.bf16 %v2599_v49  ;;  %v2584_v58 = vld [vmem:[%s6148_s22 + $0x368] sm:$0xff] }
 0x6d4   : > { %v3513_v0 = vpop.f32.mrf.mxu1  ;;  %3807 = vmatprep.subr.bf16.mxu1 %v3096_v53  ;;  %3796 = vmatprep.mubr.bf16.mxu0 %v6340_v56  ;;  %v3239_v53 = vunpack.c.h.s8.bf16 %v2727_v51  ;;  %v2712_v41 = vld [vmem:[%s6148_s22 + $0x768] sm:$0xff] }
 0x6d5   : > { %v6578_v7 = vadd.f32 %v3513_v0, %v3472_v63  ;;  %3837 = vmatprep.mubr.bf16.mxu1 %v6344_v12  ;;  %v3474_v8 = vpop.f32.mrf.mxu0  ;;  %v2952_v63 = vunpack.c.h.s8.bf16 %v2584_v58  ;;  %v3208_v0 = vunpack.c.h.s8.bf16 %v2712_v41 }
 0x6d6   : > { %v3515_v9 = vpop.f32.mrf.mxu1  ;;  %3767 = vmatpush1.bf16.msra.mxu0 %v2839_v61  ;;  %v2967_v61 = vunpack.c.l.s8.bf16 %v2599_v49  ;;  %v2936_v8 = vunpack.c.l.s8.bf16 %v2584_v58  ;;  %v2522_v49 = vld [vmem:[%s6148_s22 + $0x178] sm:$0xff]  ;;  %v3097_v58 = vunpack.c.l.s8.bf16 %v2665_v45 }
 0x6d7   : > { %v3961_v11 = vcombine.low %v6574_v60, %v6578_v7  ;;  %3808 = vmatpush1.bf16.msra.mxu1 %v3095_v62  ;;  %v3475_v25 = vpop.f32.mrf.mxu0  ;;  %3768 = vmatprep.subr.bf16.mxu0 %v2824_v3  ;;  %v3223_v62 = vunpack.c.l.s8.bf16 %v2727_v51  ;;  %v2583_v3 = vld [vmem:[%s6148_s22 + $0x360] sm:$0xff]  ;;  %v3192_v9 = vunpack.c.l.s8.bf16 %v2712_v41  ;;  %v2650_v51 = vld [vmem:[%s6148_s22 + $0x578] sm:$0xff]  ;;  %v2633_v60 = vld [vmem:[%s6148_s22 + $0x4f0] sm:$0xff] }
 0x6d8   : > { %v3516_v26 = vpop.f32.mrf.mxu1  ;;  %3809 = vmatprep.subr.bf16.mxu1 %v3080_v4  ;;  %v2711_v4 = vld [vmem:[%s6148_s22 + $0x760] sm:$0xff]  ;;  %v2951_v5 = vunpack.c.h.s8.bf16 %v2583_v3  ;;  %v2935_v25 = vunpack.c.l.s8.bf16 %v2583_v3  ;;  %v2649_v3 = vld [vmem:[%s6148_s22 + $0x570] sm:$0xff] }
 0x6d9   : > { %v3207_v6 = vunpack.c.h.s8.bf16 %v2711_v4  ;;  %v3191_v26 = vunpack.c.l.s8.bf16 %v2711_v4 }
 0x6da   : > { %3769 = vmatpush1.bf16.msra.mxu0 %v2823_v18  ;;  %v2568_v18 = vld [vmem:[%s6148_s22 + $0x2e8] sm:$0xff] }
 0x6db   : > { %3810 = vmatpush1.bf16.msra.mxu1 %v3079_v24  ;;  %3770 = vmatprep.subr.bf16.mxu0 %v2808_v27  ;;  %v2696_v24 = vld [vmem:[%s6148_s22 + $0x6e8] sm:$0xff]  ;;  %v2920_v27 = vunpack.c.h.s8.bf16 %v2568_v18 }
 0x6dc   : > { %3811 = vmatprep.subr.bf16.mxu1 %v3064_v28  ;;  %v3176_v28 = vunpack.c.h.s8.bf16 %v2696_v24 }
 0x6de   : > { %3771 = vmatpush1.bf16.msra.mxu0 %v2807_v22  ;;  %v2919_v22 = vunpack.c.h.s8.bf16 %v2567_v29 }
 0x6df   : > { %3812 = vmatpush1.bf16.msra.mxu1 %v3063_v30  ;;  %3772 = vmatprep.subr.bf16.mxu0 %v2792_v23  ;;  %v3175_v30 = vunpack.c.h.s8.bf16 %v2695_v17  ;;  %v2904_v23 = vunpack.c.l.s8.bf16 %v2568_v18  ;;  %v3081_v18 = vunpack.c.h.s8.bf16 %v2649_v3 }
 0x6e0   : > { %3813 = vmatprep.subr.bf16.mxu1 %v3048_v31  ;;  %v3160_v31 = vunpack.c.l.s8.bf16 %v2696_v24 }
 0x6e2   : > { %3773 = vmatpush1.bf16.msra.mxu0 %v2791_v32  ;;  %v2903_v32 = vunpack.c.l.s8.bf16 %v2567_v29  ;;  %v2634_v29 = vld [vmem:[%s6148_s22 + $0x4f8] sm:$0xff] }
 0x6e3   : > { %3814 = vmatpush1.bf16.msra.mxu1 %v3047_v13  ;;  %3774 = vmatprep.subr.bf16.mxu0 %v2776_v33  ;;  %v3159_v13 = vunpack.c.l.s8.bf16 %v2695_v17  ;;  %v2888_v33 = vunpack.c.h.s8.bf16 %v2552_v20  ;;  %v2472_v17 = vld [vmem:[#allocation3] sm:$0xff] }
 0x6e4   : > { %3815 = vmatprep.subr.bf16.mxu1 %v3032_v14  ;;  %v3144_v14 = vunpack.c.h.s8.bf16 %v2680_v21 }
 0x6e6   : > { %3775 = vmatpush1.bf16.msra.mxu0 %v2775_v10  ;;  %v2887_v10 = vunpack.c.h.s8.bf16 %v2551_v34 }
 0x6e7   : > { %3816 = vmatpush1.bf16.msra.mxu1 %v3031_v19  ;;  %3776 = vmatprep.subr.bf16.mxu0 %v2760_v15  ;;  %v3143_v19 = vunpack.c.h.s8.bf16 %v2679_v1  ;;  %v2872_v15 = vunpack.c.l.s8.bf16 %v2552_v20  ;;  %v3050_v20 = vunpack.c.h.s8.bf16 %v2634_v29 }
 0x6e8   : > { %3817 = vmatprep.subr.bf16.mxu1 %v3016_v35  ;;  %v3128_v35 = vunpack.c.l.s8.bf16 %v2680_v21  ;;  %v2505_v21 = vld [vmem:[%s6148_s22 + $0xf0] sm:$0xff] }
 0x6ea   : > { %3777 = vmatpush1.bf16.msra.mxu0 %v2759_v37  ;;  %v2871_v37 = vunpack.c.l.s8.bf16 %v2551_v34  ;;  %v2618_v34 = vld [vmem:[%s6148_s22 + $0x478] sm:$0xff] }
 0x6eb   : > { %3818 = vmatpush1.bf16.msra.mxu1 %v3015_v40  ;;  %3778 = vmatprep.subr.bf16.mxu0 %v2744_v42  ;;  %v3127_v40 = vunpack.c.l.s8.bf16 %v2679_v1  ;;  %v2858_v42 = vunpack.c.h.s8.bf16 %v2538_v36  ;;  %v2777_v1 = vunpack.c.l.s8.bf16 %v2505_v21 }
 0x6ec   : > { %3819 = vmatprep.subr.bf16.mxu1 %v3000_v43  ;;  %v3114_v43 = vunpack.c.h.s8.bf16 %v2666_v16 }
 0x6ee   : > { %3779 = vmatpush1.bf16.msra.mxu0 %v2743_v46  ;;  %v2857_v46 = vunpack.c.h.s8.bf16 %v2537_v44 }
 0x6ef   : > { %3820 = vmatpush1.bf16.msra.mxu1 %v2999_v47  ;;  %3780 = vmatprep.subr.bf16.mxu0 %v2984_v39  ;;  %v3113_v47 = vunpack.c.h.s8.bf16 %v2665_v45  ;;  %v2842_v39 = vunpack.c.l.s8.bf16 %v2538_v36  ;;  %v2617_v36 = vld [vmem:[%s6148_s22 + $0x470] sm:$0xff] }
 0x6f0   : > { %3821 = vmatprep.subr.bf16.mxu1 %v3240_v48  ;;  %v3098_v48 = vunpack.c.l.s8.bf16 %v2666_v16 }
 0x6f2   : > { %3781 = vmatpush2.bf16.msra.mxu0 %v2983_v52 }
 0x6f3   : > { %3822 = vmatpush2.bf16.msra.mxu1 %v3239_v53  ;;  %3782 = vmatprep.subr.bf16.mxu0 %v2968_v54 }
 0x6f4   : > { %3823 = vmatprep.subr.bf16.mxu1 %v3224_v57  ;;  %v2841_v57 = vunpack.c.l.s8.bf16 %v2537_v44  ;;  %v2730_v44 = vld [vmem:[%s6148_s22 + $0x7f8] sm:$0xff] }
 0x6f6   : > { %3783 = vmatpush2.bf16.msra.mxu0 %v2967_v61 }
 0x6f7   : > { %3824 = vmatpush2.bf16.msra.mxu1 %v3223_v62  ;;  %3784 = vmatprep.subr.bf16.mxu0 %v2952_v63  ;;  %v2826_v62 = vunpack.c.h.s8.bf16 %v2522_v49  ;;  %v3082_v63 = vunpack.c.h.s8.bf16 %v2650_v51 }
 0x6f8   : > { %3825 = vmatprep.subr.bf16.mxu1 %v3208_v0  ;;  %v2521_v0 = vld [vmem:[%s6148_s22 + $0x170] sm:$0xff] }
 0x6fa   : > { %3785 = vmatpush2.bf16.msra.mxu0 %v2951_v5 }
 0x6fb   : > { %3826 = vmatpush2.bf16.msra.mxu1 %v3207_v6  ;;  %3786 = vmatprep.subr.bf16.mxu0 %v2936_v8 }
 0x6fc   : > { %3827 = vmatprep.subr.bf16.mxu1 %v3192_v9  ;;  %v2825_v9 = vunpack.c.h.s8.bf16 %v2521_v0 }
 0x6fe   : > { %3787 = vmatpush2.bf16.msra.mxu0 %v2935_v25 }
 0x6ff   : > { %3828 = vmatpush2.bf16.msra.mxu1 %v3191_v26  ;;  %3788 = vmatprep.subr.bf16.mxu0 %v2920_v27  ;;  %v2810_v26 = vunpack.c.l.s8.bf16 %v2522_v49  ;;  %v3066_v27 = vunpack.c.l.s8.bf16 %v2650_v51  ;;  %v2729_v49 = vld [vmem:[%s6148_s22 + $0x7f0] sm:$0xff] }
 0x700   : > { %3829 = vmatprep.subr.bf16.mxu1 %v3176_v28  ;;  %v2506_v28 = vld [vmem:[%s6148_s22 + $0xf8] sm:$0xff] }
 0x702   : > { %3789 = vmatpush2.bf16.msra.mxu0 %v2919_v22 }
 0x703   : > { %3830 = vmatpush2.bf16.msra.mxu1 %v3175_v30  ;;  %3790 = vmatprep.subr.bf16.mxu0 %v2904_v23  ;;  %v2809_v30 = vunpack.c.l.s8.bf16 %v2521_v0  ;;  %v3065_v23 = vunpack.c.l.s8.bf16 %v2649_v3  ;;  %v2585_v0 = vld [vmem:[%s6148_s22 + $0x370] sm:$0xff] }
 0x704   : > { %3831 = vmatprep.subr.bf16.mxu1 %v3160_v31  ;;  %v2794_v31 = vunpack.c.h.s8.bf16 %v2506_v28  ;;  %v2713_v3 = vld [vmem:[%s6148_s22 + $0x770] sm:$0xff] }
 0x706   : > { %3791 = vmatpush2.bf16.msra.mxu0 %v2903_v32  ;;  %v3049_v32 = vunpack.c.h.s8.bf16 %v2633_v60 }
 0x707   : > { %3832 = vmatpush2.bf16.msra.mxu1 %v3159_v13  ;;  %3792 = vmatprep.subr.bf16.mxu0 %v2888_v33  ;;  %v2778_v13 = vunpack.c.l.s8.bf16 %v2506_v28  ;;  %v3034_v33 = vunpack.c.l.s8.bf16 %v2634_v29 }
 0x708   : > { %3833 = vmatprep.subr.bf16.mxu1 %v3144_v14  ;;  %v2490_v14 = vld [vmem:[%s6148_s22 + $0x78] sm:$0xff] }
 0x70a   : > { %3793 = vmatpush2.bf16.msra.mxu0 %v2887_v10  ;;  %v3033_v10 = vunpack.c.l.s8.bf16 %v2633_v60 }
 0x70b   : > { %3834 = vmatpush2.bf16.msra.mxu1 %v3143_v19  ;;  %3794 = vmatprep.subr.bf16.mxu0 %v2872_v15  ;;  %v2762_v19 = vunpack.c.h.s8.bf16 %v2490_v14  ;;  %v3018_v15 = vunpack.c.h.s8.bf16 %v2618_v34 }
 0x70c   : > { %3835 = vmatprep.subr.bf16.mxu1 %v3128_v35  ;;  %v2489_v35 = vld [vmem:[%s6148_s22 + $0x70] sm:$0xff] }
 0x70d   : > { %v2761_v16 = vunpack.c.h.s8.bf16 %v2489_v35  ;;  %v2745_v45 = vunpack.c.l.s8.bf16 %v2489_v35 }
 0x70e   : > { %3795 = vmatpush2.bf16.msra.mxu0 %v2871_v37  ;;  %v3017_v37 = vunpack.c.h.s8.bf16 %v2617_v36 }
 0x70f   : > { %3836 = vmatpush2.bf16.msra.mxu1 %v3127_v40  ;;  %3846 = vmatprep.subr.bf16.mxu0 %v2858_v42  ;;  %v2746_v40 = vunpack.c.l.s8.bf16 %v2490_v14  ;;  %v3002_v42 = vunpack.c.l.s8.bf16 %v2618_v34 }
 0x710   : > { %3887 = vmatprep.subr.bf16.mxu1 %v3114_v43  ;;  %v2602_v43 = vld [vmem:[%s6148_s22 + $0x3f8] sm:$0xff] }
 0x711   : > { %v3552_v52 = vpop.f32.mrf.mxu0  ;;  %3797 = vmatmul.mubr.bf16.vlgmr.msra.gmra.mxu0 %v6368_v50 }
 0x712   : > { %v3593_v53 = vpop.f32.mrf.mxu1  ;;  %3838 = vmatmul.mubr.bf16.vlgmr.msra.gmra.mxu1 %v6374_v59  ;;  %3847 = vmatpush1.bf16.msra.mxu0 %v2857_v46  ;;  %v3001_v46 = vunpack.c.l.s8.bf16 %v2617_v36 }
 0x713   : > { %v3594_v54 = vadd.f32 %v3593_v53, %v3552_v52  ;;  %3888 = vmatpush1.bf16.msra.mxu1 %v3113_v47  ;;  %v3554_v41 = vpop.f32.mrf.mxu0  ;;  %3848 = vmatprep.subr.bf16.mxu0 %v2842_v39  ;;  %v2986_v47 = vunpack.c.h.s8.bf16 %v2602_v43  ;;  %v3242_v39 = vunpack.c.h.s8.bf16 %v2730_v44  ;;  %v3241_v52 = vunpack.c.h.s8.bf16 %v2729_v49 }
 0x714   : > { %v3595_v61 = vpop.f32.mrf.mxu1  ;;  %3889 = vmatprep.subr.bf16.mxu1 %v3098_v48  ;;  %3878 = vmatprep.mubr.bf16.mxu0 %v6340_v56  ;;  %v3969_v56 = vrot.slane %v3961_v11, %v6533_v38  ;;  %v2793_v11 = vunpack.c.h.s8.bf16 %v2505_v21  ;;  %v2601_v48 = vld [vmem:[%s6148_s22 + $0x3f0] sm:$0xff]  ;;  %v2970_v53 = vunpack.c.l.s8.bf16 %v2602_v43 }
 0x715   : > { %v3596_v4 = vadd.f32 %v3595_v61, %v3554_v41  ;;  %3919 = vmatprep.mubr.bf16.mxu1 %v6344_v12  ;;  %v3556_v5 = vpop.f32.mrf.mxu0  ;;  %v2985_v51 = vunpack.c.h.s8.bf16 %v2601_v48  ;;  %v2969_v41 = vunpack.c.l.s8.bf16 %v2601_v48  ;;  %v3225_v61 = vunpack.c.l.s8.bf16 %v2729_v49 }
 0x716   : > { %v3597_v6 = vpop.f32.mrf.mxu1  ;;  %3849 = vmatpush1.bf16.msra.mxu0 %v2841_v57  ;;  %v2586_v57 = vld [vmem:[%s6148_s22 + $0x378] sm:$0xff]  ;;  %v3209_v5 = vunpack.c.h.s8.bf16 %v2713_v3 }
 0x717   : > { %v3962_v8 = vcombine.low %v3594_v54, %v3596_v4  ;;  %3890 = vmatpush1.bf16.msra.mxu1 %v3097_v58  ;;  %v3557_v24 = vpop.f32.mrf.mxu0  ;;  %3850 = vmatprep.subr.bf16.mxu0 %v2826_v62  ;;  %v3226_v54 = vunpack.c.l.s8.bf16 %v2730_v44  ;;  %v2714_v58 = vld [vmem:[%s6148_s22 + $0x778] sm:$0xff]  ;;  %v2954_v62 = vunpack.c.h.s8.bf16 %v2586_v57  ;;  %v2953_v4 = vunpack.c.h.s8.bf16 %v2585_v0 }
 0x718   : > { %v3598_v25 = vpop.f32.mrf.mxu1  ;;  %3891 = vmatprep.subr.bf16.mxu1 %v3082_v63  ;;  %v3210_v63 = vunpack.c.h.s8.bf16 %v2714_v58  ;;  %v2938_v6 = vunpack.c.l.s8.bf16 %v2586_v57  ;;  %v2937_v24 = vunpack.c.l.s8.bf16 %v2585_v0 }
 0x719   : > { %v3976_v12 = vrot.slane %v3962_v8, %v6533_v38  ;;  %v3194_v8 = vunpack.c.l.s8.bf16 %v2714_v58  ;;  %v3193_v25 = vunpack.c.l.s8.bf16 %v2713_v3  ;;  %v2473_v58 = vld [vmem:[#allocation3 + $0x18] sm:$0xff] }
 0x71a   : > { %3851 = vmatpush1.bf16.msra.mxu0 %v2825_v9  ;;  %v2570_v9 = vld [vmem:[%s6148_s22 + $0x2f8] sm:$0xff] }
 0x71b   : > { %v3977_v22 = vcombine.low %v3969_v56, %v3976_v12  ;;  %3892 = vmatpush1.bf16.msra.mxu1 %v3081_v18  ;;  %3852 = vmatprep.subr.bf16.mxu0 %v2810_v26  ;;  %v2698_v18 = vld [vmem:[%s6148_s22 + $0x6f8] sm:$0xff]  ;;  %v2922_v26 = vunpack.c.h.s8.bf16 %v2570_v9  ;;  %v2569_v56 = vld [vmem:[%s6148_s22 + $0x2f0] sm:$0xff] }
 0x71c   : > { %3893 = vmatprep.subr.bf16.mxu1 %v3066_v27  ;;  %v3178_v27 = vunpack.c.h.s8.bf16 %v2698_v18  ;;  %v2697_v12 = vld [vmem:[%s6148_s22 + $0x6f0] sm:$0xff]  ;;  %v2921_v28 = vunpack.c.h.s8.bf16 %v2569_v56 }
 0x71d   : > { %v4017_v7 = vadd.f32 %v3977_v22, %v2472_v17  ;;  %v3177_v29 = vunpack.c.h.s8.bf16 %v2697_v12  ;;  %v2906_v17 = vunpack.c.l.s8.bf16 %v2570_v9  ;;  %v3162_v22 = vunpack.c.l.s8.bf16 %v2698_v18 }
 0x71e   : > { %3853 = vmatpush1.bf16.msra.mxu0 %v2809_v30  ;;  %v2554_v30 = vld [vmem:[%s6148_s22 + $0x278] sm:$0xff] }
 0x71f   : > { %4021 = vst [vmem:[#allocation3] sm:$0xff] %v4017_v7  ;;  %3894 = vmatpush1.bf16.msra.mxu1 %v3065_v23  ;;  %3854 = vmatprep.subr.bf16.mxu0 %v2794_v31  ;;  %v2682_v23 = vld [vmem:[%s6148_s22 + $0x678] sm:$0xff]  ;;  %v2905_v31 = vunpack.c.l.s8.bf16 %v2569_v56  ;;  %v2890_v21 = vunpack.c.h.s8.bf16 %v2554_v30  ;;  %v2553_v7 = vld [vmem:[%s6148_s22 + $0x270] sm:$0xff] }
 0x720   : > { %3895 = vmatprep.subr.bf16.mxu1 %v3050_v20  ;;  %v3161_v20 = vunpack.c.l.s8.bf16 %v2697_v12  ;;  %v3146_v60 = vunpack.c.h.s8.bf16 %v2682_v23  ;;  %v3130_v14 = vunpack.c.l.s8.bf16 %v2682_v23  ;;  %v2873_v34 = vunpack.c.l.s8.bf16 %v2553_v7 }
 0x722   : > { %3855 = vmatpush1.bf16.msra.mxu0 %v2793_v11  ;;  %v2681_v11 = vld [vmem:[%s6148_s22 + $0x670] sm:$0xff] }
 0x723   : > { %3896 = vmatpush1.bf16.msra.mxu1 %v3049_v32  ;;  %3856 = vmatprep.subr.bf16.mxu0 %v2778_v13  ;;  %v2889_v32 = vunpack.c.h.s8.bf16 %v2553_v7  ;;  %v3145_v13 = vunpack.c.h.s8.bf16 %v2681_v11 }
 0x724   : > { %3897 = vmatprep.subr.bf16.mxu1 %v3034_v33  ;;  %v2874_v33 = vunpack.c.l.s8.bf16 %v2554_v30 }
 0x726   : > { %3857 = vmatpush1.bf16.msra.mxu0 %v2777_v1  ;;  %v3129_v1 = vunpack.c.l.s8.bf16 %v2681_v11 }
 0x727   : > { %3898 = vmatpush1.bf16.msra.mxu1 %v3033_v10  ;;  %3858 = vmatprep.subr.bf16.mxu0 %v2762_v19 }
 0x728   : > { %3899 = vmatprep.subr.bf16.mxu1 %v3018_v15 }
 0x72a   : > { %3859 = vmatpush1.bf16.msra.mxu0 %v2761_v16 }
 0x72b   : > { %3900 = vmatpush1.bf16.msra.mxu1 %v3017_v37  ;;  %3860 = vmatprep.subr.bf16.mxu0 %v2746_v40 }
 0x72c   : > { %3901 = vmatprep.subr.bf16.mxu1 %v3002_v42 }
 0x72e   : > { %3861 = vmatpush1.bf16.msra.mxu0 %v2745_v45 }
 0x72f   : > { %3902 = vmatpush1.bf16.msra.mxu1 %v3001_v46  ;;  %3862 = vmatprep.subr.bf16.mxu0 %v2986_v47 }
 0x730   : > { %3903 = vmatprep.subr.bf16.mxu1 %v3242_v39 }
 0x732   : > { %3863 = vmatpush2.bf16.msra.mxu0 %v2985_v51 }
 0x733   : > { %3904 = vmatpush2.bf16.msra.mxu1 %v3241_v52  ;;  %3864 = vmatprep.subr.bf16.mxu0 %v2970_v53 }
 0x734   : > { %3905 = vmatprep.subr.bf16.mxu1 %v3226_v54 }
 0x736   : > { %3865 = vmatpush2.bf16.msra.mxu0 %v2969_v41 }
 0x737   : > { %3906 = vmatpush2.bf16.msra.mxu1 %v3225_v61  ;;  %3866 = vmatprep.subr.bf16.mxu0 %v2954_v62 }
 0x738   : > { %3907 = vmatprep.subr.bf16.mxu1 %v3210_v63 }
 0x73a   : > { %3867 = vmatpush2.bf16.msra.mxu0 %v2953_v4 }
 0x73b   : > { %3908 = vmatpush2.bf16.msra.mxu1 %v3209_v5  ;;  %3868 = vmatprep.subr.bf16.mxu0 %v2938_v6 }
 0x73c   : > { %3909 = vmatprep.subr.bf16.mxu1 %v3194_v8 }
 0x73e   : > { %3869 = vmatpush2.bf16.msra.mxu0 %v2937_v24 }
 0x73f   : > { %3910 = vmatpush2.bf16.msra.mxu1 %v3193_v25  ;;  %3870 = vmatprep.subr.bf16.mxu0 %v2922_v26 }
 0x740   : > { %3911 = vmatprep.subr.bf16.mxu1 %v3178_v27 }
 0x742   : > { %3871 = vmatpush2.bf16.msra.mxu0 %v2921_v28 }
 0x743   : > { %3912 = vmatpush2.bf16.msra.mxu1 %v3177_v29  ;;  %3872 = vmatprep.subr.bf16.mxu0 %v2906_v17 }
 0x744   : > { %3913 = vmatprep.subr.bf16.mxu1 %v3162_v22 }
 0x746   : > { %3873 = vmatpush2.bf16.msra.mxu0 %v2905_v31 }
 0x747   : > { %3914 = vmatpush2.bf16.msra.mxu1 %v3161_v20  ;;  %3874 = vmatprep.subr.bf16.mxu0 %v2890_v21  ;;  %v2474_v21 = vld [vmem:[#allocation3 + $0x8] sm:$0xff] }
 0x748   : > { %3915 = vmatprep.subr.bf16.mxu1 %v3146_v60 }
 0x74a   : > { %3875 = vmatpush2.bf16.msra.mxu0 %v2889_v32 }
 0x74b   : > { %3916 = vmatpush2.bf16.msra.mxu1 %v3145_v13  ;;  %3876 = vmatprep.subr.bf16.mxu0 %v2874_v33 }
 0x74c   : > { %3917 = vmatprep.subr.bf16.mxu1 %v3130_v14 }
 0x74e   : > { %3877 = vmatpush2.bf16.msra.mxu0 %v2873_v34 }
 0x74f   : > { %3918 = vmatpush2.bf16.msra.mxu1 %v3129_v1 }
 0x751   : > { %v3634_v10 = vpop.f32.mrf.mxu0  ;;  %3879 = vmatmul.mubr.bf16.vlgmr.msra.gmra.mxu0 %v6368_v50 }
 0x752   : > { %v3675_v19 = vpop.f32.mrf.mxu1  ;;  %3920 = vmatmul.mubr.bf16.vlgmr.msra.gmra.mxu1 %v6374_v59 }
 0x753   : > { %v3676_v15 = vadd.f32 %v3675_v19, %v3634_v10  ;;  %v3636_v35 = vpop.f32.mrf.mxu0 }
 0x754   : > { %v3677_v36 = vpop.f32.mrf.mxu1 }
 0x755   : > { %v3678_v16 = vadd.f32 %v3677_v36, %v3636_v35  ;;  %v3638_v37 = vpop.f32.mrf.mxu0 }
 0x756   : > { %v3679_v40 = vpop.f32.mrf.mxu1 }
 0x757   : > { %v3978_v42 = vcombine.low %v3676_v15, %v3678_v16  ;;  %v3639_v43 = vpop.f32.mrf.mxu0 }
 0x758   : > { %v3680_v44 = vpop.f32.mrf.mxu1 }
 0x759   : > { %v3986_v54 = vrot.slane %v3978_v42, %v6533_v38 }
 0x791   : > { %v3716_v45 = vpop.f32.mrf.mxu0 }
 0x792   : > { %v3757_v46 = vpop.f32.mrf.mxu1 }
 0x793   : > { %v3758_v47 = vadd.f32 %v3757_v46, %v3716_v45  ;;  %v3718_v39 = vpop.f32.mrf.mxu0 }
 0x794   : > { %v3759_v48 = vpop.f32.mrf.mxu1 }
 0x795   : > { %v3760_v49 = vadd.f32 %v3759_v48, %v3718_v39  ;;  %v3720_v51 = vpop.f32.mrf.mxu0 }
 0x796   : > { %v3761_v52 = vpop.f32.mrf.mxu1 }
 0x797   : > { %v3979_v50 = vcombine.low %v3758_v47, %v3760_v49  ;;  %v3721_v53 = vpop.f32.mrf.mxu0 }
 0x798   : > { %v3762_v59 = vpop.f32.mrf.mxu1 }
 0x799   : > { %v3993_v57 = vrot.slane %v3979_v50, %v6533_v38 }
 0x79b   : > { %v3994_v41 = vcombine.low %v3986_v54, %v3993_v57 }
 0x79d   : > { %v4018_v61 = vadd.f32 %v3994_v41, %v2473_v58 }
 0x79f   : > { %4022 = vst [vmem:[#allocation3 + $0x18] sm:$0xff] %v4018_v61 }
 0x7d1   : > { %v3798_v62 = vpop.f32.mrf.mxu0 }
 0x7d2   : > { %v3839_v63 = vpop.f32.mrf.mxu1 }
 0x7d3   : > { %v3840_v0 = vadd.f32 %v3839_v63, %v3798_v62  ;;  %v3800_v3 = vpop.f32.mrf.mxu0 }
 0x7d4   : > { %v3841_v4 = vpop.f32.mrf.mxu1 }
 0x7d5   : > { %v3842_v5 = vadd.f32 %v3841_v4, %v3800_v3  ;;  %v3802_v6 = vpop.f32.mrf.mxu0 }
 0x7d6   : > { %v3843_v8 = vpop.f32.mrf.mxu1 }
 0x7d7   : > { %v3995_v9 = vcombine.low %v3840_v0, %v3842_v5  ;;  %v3803_v18 = vpop.f32.mrf.mxu0 }
 0x7d8   : > { %v3844_v24 = vpop.f32.mrf.mxu1 }
 0x7d9   : > { %v4003_v31 = vrot.slane %v3995_v9, %v6533_v38 }
 0x811   : > { %v3880_v25 = vpop.f32.mrf.mxu0 }
 0x812   : > { %v3921_v26 = vpop.f32.mrf.mxu1 }
 0x813   : > { %v3882_v27 = vpop.f32.mrf.mxu0  ;;  %v3922_v12 = vadd.f32 %v3921_v26, %v3880_v25 }
 0x814   : > { %v3923_v56 = vpop.f32.mrf.mxu1 }
 0x815   : > { %v3924_v28 = vadd.f32 %v3923_v56, %v3882_v27  ;;  %v3884_v29 = vpop.f32.mrf.mxu0 }
 0x816   : > { %v3925_v17 = vpop.f32.mrf.mxu1 }
 0x817   : > { %v3996_v22 = vcombine.low %v3922_v12, %v3924_v28  ;;  %v3885_v30 = vpop.f32.mrf.mxu0 }
 0x818   : > { %v3926_v23 = vpop.f32.mrf.mxu1 }
 0x819   : > { %v4010_v20 = vrot.slane %v3996_v22, %v6533_v38 }
 0x81b   : > { %v4011_v60 = vcombine.low %v4003_v31, %v4010_v20  ;;  %4027 = sbr.rel (%p4945_p7) target bundleno = 2124 (0x84c), region = 124 }
 0x81d   : > { %v4019_v7 = vadd.f32 %v4011_v60, %v2474_v21 }
 0x81f   : > { %4023 = vst [vmem:[#allocation3 + $0x8] sm:$0xff] %v4019_v7 }
 0x820   : > { %v6657_v11 = vsub.s32 0, %v6328_v2  ;;  %v6660_v32 = vsub.s32 1, %v6328_v2  ;;  %v6663_v13 = vsub.s32 2, %v6328_v2  ;;  %v4032_v33 = vld [vmem:[%s587_s6] sm:$0xff]  ;;  %v4033_v14 = vld [vmem:[%s587_s6 + $0x8] sm:$0xff]  ;;  %v6670_v34 = vsub.s32 3, %v6328_v2 }
 0x821   : > { %v6673_v1 = vsub.s32 4, %v6328_v2  ;;  %v6676_v10 = vsub.s32 5, %v6328_v2  ;;  %v6682_v36 = vsub.s32 6, %v6328_v2  ;;  %v6688_v42 = vsub.s32 7, %v6328_v2  ;;  %v4176_v63 = vld [vmem:[%s596_s19] sm:$0xff]  ;;  %v4030_v25 = vld [vmem:[#allocation3 + $0x18] sm:$0xff] }
 0x822   : > { %v4039_v19 = vrot.slane %v4032_v33, %v6657_v11  ;;  %v4043_v15 = vrot.slane %v4032_v33, %v6660_v32  ;;  %v4047_v35 = vrot.slane %v4032_v33, %v6663_v13  ;;  %v4051_v16 = vrot.slane %v4032_v33, %v6670_v34  ;;  %v4028_v0 = vld [vmem:[#allocation3 + $0x10] sm:$0xff]  ;;  %v4029_v8 = vld [vmem:[#allocation3] sm:$0xff]  ;;  %v4177_v56 = vld [vmem:[%s596_s19 + $0x8] sm:$0xff] }
 0x823   : > { %v4055_v37 = vrot.slane %v4032_v33, %v6673_v1  ;;  %v4059_v40 = vrot.slane %v4032_v33, %v6676_v10  ;;  %v4063_v43 = vrot.slane %v4032_v33, %v6682_v36  ;;  %v4071_v44 = vrot.slane %v4033_v14, %v6657_v11 }
 0x824   : > { %v4075_v45 = vrot.slane %v4033_v14, %v6660_v32  ;;  %v4079_v46 = vrot.slane %v4033_v14, %v6663_v13  ;;  %v4067_v47 = vrot.slane %v4032_v33, %v6688_v42  ;;  %v4083_v39 = vrot.slane %v4033_v14, %v6670_v34 }
 0x825   : > { %v4087_v48 = vrot.slane %v4033_v14, %v6673_v1  ;;  %v4091_v49 = vrot.slane %v4033_v14, %v6676_v10  ;;  %v4095_v2 = vrot.slane %v4033_v14, %v6682_v36  ;;  %v4099_v51 = vrot.slane %v4033_v14, %v6688_v42 }
 0x826   : > { %v4100_v52 = vcombine.low %v4039_v19, %v4043_v15  ;;  %v4101_v50 = vcombine.low %v4047_v35, %v4051_v16  ;;  %v4117_v53 = vcombine.low %v4055_v37, %v4059_v40  ;;  %v4118_v59 = vcombine.low %v4063_v43, %v4067_v47 }
 0x827   : > { %v4134_v54 = vcombine.low %v4071_v44, %v4075_v45  ;;  %v4135_v57 = vcombine.low %v4079_v46, %v4083_v39  ;;  %v4151_v61 = vcombine.low %v4087_v48, %v4091_v49  ;;  %v4152_v62 = vcombine.low %v4095_v2, %v4099_v51  ;;  %v4031_v45 = vld [vmem:[#allocation3 + $0x8] sm:$0xff] }
 0x828   : > { %v4108_v58 = vrot.slane %v4100_v52, %v6533_v38  ;;  %v4115_v41 = vrot.slane %v4101_v50, %v6533_v38  ;;  %v4125_v3 = vrot.slane %v4117_v53, %v6533_v38  ;;  %v4132_v4 = vrot.slane %v4118_v59, %v6533_v38 }
 0x829   : > { %v4142_v5 = vrot.slane %v4134_v54, %v6533_v38  ;;  %v4149_v6 = vrot.slane %v4135_v57, %v6533_v38  ;;  %v4159_v18 = vrot.slane %v4151_v61, %v6533_v38  ;;  %v4166_v24 = vrot.slane %v4152_v62, %v6533_v38 }
 0x82a   : > { %v4116_v9 = vcombine.low %v4108_v58, %v4115_v41  ;;  %v4133_v26 = vcombine.low %v4125_v3, %v4132_v4  ;;  %v4183_v12 = vrot.slane %v4176_v63, %v6657_v11  ;;  %v4187_v28 = vrot.slane %v4176_v63, %v6660_v32 }
 0x82b   : > { %v4150_v27 = vcombine.low %v4142_v5, %v4149_v6  ;;  %v4167_v29 = vcombine.low %v4159_v18, %v4166_v24  ;;  %v4191_v22 = vrot.slane %v4176_v63, %v6663_v13  ;;  %v4195_v30 = vrot.slane %v4176_v63, %v6670_v34 }
 0x82c   : > { %v4172_v17 = vmul.f32 %v4116_v9, %v4028_v0  ;;  %v4173_v23 = vmul.f32 %v4133_v26, %v4029_v8  ;;  %v4199_v31 = vrot.slane %v4176_v63, %v6673_v1  ;;  %v4203_v20 = vrot.slane %v4176_v63, %v6676_v10 }
 0x82d   : > { %v4207_v21 = vrot.slane %v4176_v63, %v6682_v36  ;;  %v4174_v60 = vmul.f32 %v4150_v27, %v4030_v25  ;;  %v4211_v7 = vrot.slane %v4176_v63, %v6688_v42  ;;  %v4215_v33 = vrot.slane %v4177_v56, %v6657_v11 }
 0x82e   : > { %v4219_v14 = vrot.slane %v4177_v56, %v6660_v32  ;;  %v4223_v19 = vrot.slane %v4177_v56, %v6663_v13  ;;  %v4227_v15 = vrot.slane %v4177_v56, %v6670_v34  ;;  %v4231_v35 = vrot.slane %v4177_v56, %v6673_v1 }
 0x82f   : > { %v4235_v16 = vrot.slane %v4177_v56, %v6676_v10  ;;  %v4239_v37 = vrot.slane %v4177_v56, %v6682_v36  ;;  %v4243_v40 = vrot.slane %v4177_v56, %v6688_v42  ;;  %v4244_v43 = vcombine.low %v4183_v12, %v4187_v28 }
 0x830   : > { %v4245_v44 = vcombine.low %v4191_v22, %v4195_v30  ;;  %v4261_v46 = vcombine.low %v4199_v31, %v4203_v20  ;;  %v4262_v47 = vcombine.low %v4207_v21, %v4211_v7  ;;  %v4278_v11 = vcombine.low %v4215_v33, %v4219_v14 }
 0x831   : > { %v4279_v39 = vcombine.low %v4223_v19, %v4227_v15  ;;  %v4252_v32 = vrot.slane %v4244_v43, %v6533_v38  ;;  %v4295_v34 = vcombine.low %v4231_v35, %v4235_v16  ;;  %v4296_v48 = vcombine.low %v4239_v37, %v4243_v40 }
 0x832   : > { %v4259_v13 = vrot.slane %v4245_v44, %v6533_v38  ;;  %v4269_v1 = vrot.slane %v4261_v46, %v6533_v38  ;;  %v4276_v10 = vrot.slane %v4262_v47, %v6533_v38  ;;  %v4286_v36 = vrot.slane %v4278_v11, %v6533_v38 }
 0x833   : > { %v4293_v42 = vrot.slane %v4279_v39, %v6533_v38  ;;  %v4175_v49 = vmul.f32 %v4167_v29, %v4031_v45  ;;  %v4303_v51 = vrot.slane %v4295_v34, %v6533_v38  ;;  %v4310_v52 = vrot.slane %v4296_v48, %v6533_v38 }
 0x834   : > { %v4260_v2 = vcombine.low %v4252_v32, %v4259_v13  ;;  %v4277_v50 = vcombine.low %v4269_v1, %v4276_v10 }
 0x835   : > { %v4294_v53 = vcombine.low %v4286_v36, %v4293_v42  ;;  %v4311_v59 = vcombine.low %v4303_v51, %v4310_v52 }
 0x836   : > { %v4316_v54 = vadd.f32 %v4260_v2, %v4172_v17  ;;  %v4317_v57 = vadd.f32 %v4277_v50, %v4173_v23 }
 0x837   : > { %v4318_v58 = vadd.f32 %v4294_v53, %v4174_v60  ;;  %v4319_v41 = vadd.f32 %v4311_v59, %v4175_v49 }
 0x838   : > { %v4320_v61 = vmax.f32 %v4316_v54, 0.0  ;;  %v4321_v62 = vmax.f32 %v4317_v57, 0.0 }
 0x839   : > { %v4322_v63 = vmax.f32 %v4318_v58, 0.0  ;;  %v4323_v0 = vmax.f32 %v4319_v41, 0.0 }
 0x83a   : > { %v4328_v3 = vcombine.high %v4320_v61, %v4320_v61  ;;  %v4335_v4 = vrot.slane %v4320_v61, %v6533_v38  ;;  %v4345_v5 = vcombine.high %v4321_v62, %v4321_v62  ;;  %v4352_v6 = vrot.slane %v4321_v62, %v6533_v38 }
 0x83b   : > { %v4362_v8 = vcombine.high %v4322_v63, %v4322_v63  ;;  %v4369_v9 = vrot.slane %v4322_v63, %v6533_v38  ;;  %v4379_v25 = vcombine.high %v4323_v0, %v4323_v0  ;;  %v4386_v26 = vrot.slane %v4323_v0, %v6533_v38 }
 0x83c   : > { %v4342_v18 = vrot.slane %v4328_v3, %v6533_v38  ;;  %v4343_v24 = vcombine.high %v4335_v4, %v4335_v4  ;;  %v4359_v27 = vrot.slane %v4345_v5, %v6533_v38  ;;  %v4360_v56 = vcombine.high %v4352_v6, %v4352_v6 }
 0x83d   : > { %v4376_v12 = vrot.slane %v4362_v8, %v6533_v38  ;;  %v4377_v28 = vcombine.high %v4369_v9, %v4369_v9  ;;  %v4393_v17 = vrot.slane %v4379_v25, %v6533_v38  ;;  %v4394_v22 = vcombine.high %v4386_v26, %v4386_v26 }
 0x83e   : > { %v4344_v29 = vcombine.high %v4342_v18, %v4342_v18  ;;  %v4946_v30 = vpack.c.bf16 %v4343_v24, %v4335_v4  ;;  %v4361_v23 = vcombine.high %v4359_v27, %v4359_v27  ;;  %v4948_v20 = vpack.c.bf16 %v4360_v56, %v4352_v6 }
 0x83f   : > { %v4378_v31 = vcombine.high %v4376_v12, %v4376_v12  ;;  %v4950_v21 = vpack.c.bf16 %v4377_v28, %v4369_v9  ;;  %v4395_v60 = vcombine.high %v4393_v17, %v4393_v17  ;;  %v4952_v14 = vpack.c.bf16 %v4394_v22, %v4386_v26 }
 0x840   : > { %v4947_v7 = vpack.c.bf16 %v4344_v29, %v4342_v18  ;;  %v4454_v33 = vrot.slane %v4946_v30, %v6337_v55  ;;  %v4949_v19 = vpack.c.bf16 %v4361_v23, %v4359_v27  ;;  %v4468_v15 = vrot.slane %v4948_v20, %v6337_v55 }
 0x841   : > { %v4951_v35 = vpack.c.bf16 %v4378_v31, %v4376_v12  ;;  %v4503_v16 = vrot.slane %v4950_v21, %v6337_v55  ;;  %v4953_v38 = vpack.c.bf16 %v4395_v60, %v4393_v17  ;;  %v4517_v40 = vrot.slane %v4952_v14, %v6337_v55 }
 0x842   : > { %v4461_v37 = vrot.slane %v4947_v7, %v6337_v55  ;;  %v4475_v43 = vrot.slane %v4949_v19, %v6337_v55 }
 0x843   : > { %v4510_v44 = vrot.slane %v4951_v35, %v6337_v55  ;;  %v4524_v46 = vrot.slane %v4953_v38, %v6337_v55 }
 0x844   : > { %v4476_v45 = vcombine.low %v4454_v33, %v4461_v37  ;;  %v4477_v47 = vcombine.low %v4468_v15, %v4475_v43 }
 0x845   : > { %v4525_v11 = vcombine.low %v4503_v16, %v4510_v44  ;;  %v4526_v32 = vcombine.low %v4517_v40, %v4524_v46 }
 0x846   : > { %v4484_v39 = vrot.slane %v4476_v45, %v6337_v55  ;;  %v4491_v13 = vrot.slane %v4477_v47, %v6337_v55 }
 0x847   : > { %v4533_v34 = vrot.slane %v4525_v11, %v6337_v55  ;;  %v4540_v48 = vrot.slane %v4526_v32, %v6337_v55 }
 0x848   : > { %v4492_v1 = vcombine.low %v4484_v39, %v4491_v13 }
 0x849   : > { %v4541_v10 = vcombine.low %v4533_v34, %v4540_v48 }
 0x84a   : > { %4544 = vst [vmem:[%s6166_s10] sm:$0xff] %v4492_v1 }
 0x84b   : > { %4545 = vst [vmem:[%s6166_s10 + $0x8] sm:$0xff] %v4541_v10 }
 0x84c PF: > { %s28_s18 = sadd.s32 1, %s5757_s18   ;;  %s6888_s28 = sld [smem:[#allocation27_spill]] }
 0x84d   : > { %p25_p6 = scmp.ge.s32.totalorder %s28_s18, 6   ;;  %s6889_s25 = smov %s5721_s26 }
 0x84e   : > { %s6890_s26 = smov %s5725_s27  ;;  %s6891_s27 = smov %s6052_s12 }
 0x84f   : > { %s6892_s29 = smov %s5737_s30  ;;  %s6893_s30 = smov %s6057_s14 }
 0x850   : > { %s6894_s14 = smov %s5749_s16  ;;  %s6895_s15 = smov %s5753_s17 }
 0x851   : > { %s6896_s16 = smov %s6899_s13  ;;  %s6897_s17 = smov %s6903_s1 }
 0x852   :  { %27 = sbr.rel (!%p25_p6) target bundleno = 25 (0x19), region = 174 }
 0x857   :  { %4566 = vsyncpa [#allocation5], 1 }
 0x858   :  { %4568 = vsyncpa [#allocation5 + $0x1], 1 }
 0x859   :  { %4569 = vsyncpa [#allocation7], 1 }
 0x85a   :  { %4570 = vsyncpa [#allocation10], 1 }
 0x85b   :  { %4571 = vsyncpa [#allocation13], 1 }
 0x85c   :  { %4572 = vsyncpa [#allocation16], 1 }

// kernel: pointcnn_forward.3
= control target key start
LH: loop header
LB: loop body
LE: loop exit
PB: predicated region body
PF: predicated region fallthrough
CT: control target
= control target key end

     0   :  { %s7889_s0 = inlined_call_operand.vmem [shape: bf16[2,4096], index: 0, kind: input, shape index: {}]   ;;  %s7890_s1 = inlined_call_operand.hbm [shape: s8[4096,2048], index: 1, kind: input, shape index: {}]   ;;  %s7891_s2 = inlined_call_operand.hbm [shape: f32[1,2048], index: 2, kind: input, shape index: {}]   ;;  %s7892_s3 = inlined_call_operand.hbm [shape: f32[1,2048], index: 3, kind: input, shape index: {}]   ;;  %s7893_s4 = inlined_call_operand.hbm [shape: bf16[2048,256], index: 4, kind: input, shape index: {}]   ;;  %s7894_s5 = inlined_call_operand.hbm [shape: f32[1,256], index: 5, kind: input, shape index: {}]   ;;  %s7895_s6 = inlined_call_operand.hbm [shape: f32[1,256], index: 6, kind: input, shape index: {}]   ;;  %s7896_s7 = inlined_call_operand.<no memory space> [shape: f32[1,1], index: 7, kind: input, shape index: {}]   ;;  %s7897_s8 = inlined_call_operand.vmem [shape: f32[2,1], index: 8, kind: output, shape index: {}]  }
   0x1   :  { %v13_v0 = vstv %s7896_s7 }
   0x2   :  { %14 = vst [vmem:[#allocation3] sm:$0x1] %v13_v0 }
   0x3   :  { %15 = vsyncpa [#allocation5], 0 }
   0x4   :  { %17 = vsyncpa [#allocation5 + $0x1], 0 }
   0x5   :  { %18 = vsyncpa [#allocation7], 0 }
   0x6   :  { %19 = vsyncpa [#allocation10], 0 }
   0x7   :  { %20 = vsyncpa [#allocation13], 0  ;;  %s6829_s29 = smov 0   ;;  %s6831_s30 = smov 0  }
   0x8   :  { %s6833_s9 = smov 0   ;;  %s6835_s10 = smov 0  }
   0x9 LB: > { %s6769_s7 = smov [#allocation6]   ;;  %s6850_s12 = sadd.s32 4294967295, %s6767_s10   ;;  %s6767_s10 = sphi %s6835_s10, %s7919_s10   ;;  %s6763_s9 = sphi %s6833_s9, %s7918_s9   ;;  %s6759_s30 = sphi %s6831_s30, %s7917_s30   ;;  %s6755_s29 = sphi %s6829_s29, %s7916_s29  }
   0xa   : > { %s241_s11 = sshll.u32 %s6769_s7, 4  ;;  %p5800_p0 = scmp.ge.s32.totalorder %s6767_s10, 1  ;;  %s242_s11 = int_to_ptr.vmem [resolvable:$true] %s241_s11 }
   0xb   : > { %p7898_p1 = scmp.eq.s32.totalorder %s6850_s12, 0  ;;  %p225_p2 = scmp.lt.s32.totalorder %s6767_s10, 5 }
   0xc   : > { %s6770_s14 = smov [#allocation9]   ;;  %s6771_s17 = smov [#allocation8]  }
   0xd   : > { %p6856_p4 = pnand %p5800_p0, %p225_p2  ;;  %s262_s15 = sshll.u32 %s6770_s14, 4  ;;  %s6862_s15 = int_to_ptr.vmem [resolvable:$true] %s262_s15 }
   0xe   : > { %s252_s18 = sshll.u32 %s6771_s17, 4  ;;  %s6574_s20 = scalar_lea.vmem %s242_s11, 256  ;;  %s6870_s18 = int_to_ptr.vmem [resolvable:$true] %s252_s18 }
   0xf   : > { %s7901_s13 = scalar_select %p6856_p4, 1, 0 }
  0x10   : > { %p6104_p5 = pneg %p6856_p4  ;;  %p6575_p8 = scmp.ne.s32.totalorder %s242_s11, %s6574_s20 }
  0x11   : > { %p6582_p11 = scmp.lt.s32.totalorder %s242_s11, %s242_s11  ;;  %p6583_p12 = scmp.lt.s32.totalorder %s6574_s20, %s6574_s20 }
  0x12   : > { %p6866_p6 = pnand %p6104_p5, %p7898_p1 }
  0x13   : > { %p6584_p13 = por %p6583_p12, %p6582_p11 }
  0x14   : > { %p6874_p7 = pneg %p6866_p6 }
  0x16   : > { %p6577_p9 = pnand %p6575_p8, %p6874_p7 }
  0x18   : > { %p6578_p10 = pneg %p6577_p9 }
  0x1a   : > { %p6585_p0 = pnand %p6584_p13, %p6578_p10 }
  0x1c   : > { %6588 = shalt.err (!%p6585_p0)
}
  0x1d   : > { %6107 = dma.hbm_to_vmem [thread:$0]  (!%p6866_p6), %s7891_s2, 256, %s242_s11, [#allocation7]  }
  0x1e   : > { %s6600_s23 = scalar_lea.vmem %s6862_s15, 32768  ;;  %p6608_p9 = scmp.lt.s32.totalorder %s6862_s15, %s6862_s15 }
  0x1f   : > { %p6601_p2 = scmp.ne.s32.totalorder %s6862_s15, %s6600_s23  ;;  %p6609_p11 = scmp.lt.s32.totalorder %s6600_s23, %s6600_s23 }
  0x21   : > { %p6603_p5 = pnand %p6601_p2, %p6874_p7  ;;  %p6610_p10 = por %p6609_p11, %p6608_p9 }
  0x23   : > { %p6604_p8 = pneg %p6603_p5 }
  0x25   : > { %p6611_p12 = pnand %p6610_p10, %p6604_p8 }
  0x27   : > { %6614 = shalt.err (!%p6611_p12)
}
  0x28   : > { %s6772_s24 = smov 128   ;;  %s6773_s25 = smov 8  }
  0x29   : > { %6113 = dma.hbm_to_vmem [thread:$0]  (!%p6866_p6), %s7893_s4, 32768, %s6862_s15, [#allocation10], %s6772_s24, %s6772_s24, %s6773_s25  }
  0x2a   : > { %s6626_s28 = scalar_lea.vmem %s6870_s18, 256  ;;  %p6634_p5 = scmp.lt.s32.totalorder %s6870_s18, %s6870_s18 }
  0x2b   : > { %p6627_p13 = scmp.ne.s32.totalorder %s6870_s18, %s6626_s28  ;;  %p6635_p8 = scmp.lt.s32.totalorder %s6626_s28, %s6626_s28 }
  0x2d   : > { %p6629_p0 = pnand %p6627_p13, %p6874_p7  ;;  %p6636_p9 = por %p6635_p8, %p6634_p5 }
  0x2f   : > { %p6630_p2 = pneg %p6629_p0 }
  0x31   : > { %p6637_p11 = pnand %p6636_p9, %p6630_p2 }
  0x33   : > { %6640 = shalt.err (!%p6637_p11)
}
  0x34   : > { %6110 = dma.hbm_to_vmem [thread:$0]  (!%p6866_p6), %s7892_s3, 256, %s6870_s18, [#allocation7]  }
  0x35   : > { %s6774_s14 = smov [#allocation11]   ;;  %s6775_s17 = smov [#allocation12]  }
  0x36   : > { %s276_s15 = sshll.u32 %s6774_s14, 4  ;;  %s287_s20 = sshll.u32 %s6775_s17, 4  ;;  %s277_s15 = int_to_ptr.vmem [resolvable:$true] %s276_s15  ;;  %s288_s20 = int_to_ptr.vmem [resolvable:$true] %s287_s20 }
  0x37   : > { %s6652_s21 = scalar_lea.vmem %s277_s15, 32  ;;  %p6660_p0 = scmp.lt.s32.totalorder %s277_s15, %s277_s15 }
  0x38   : > { %p6653_p10 = scmp.ne.s32.totalorder %s277_s15, %s6652_s21  ;;  %p6661_p2 = scmp.lt.s32.totalorder %s6652_s21, %s6652_s21 }
  0x3a   : > { %p6655_p12 = pnand %p6653_p10, %p6874_p7  ;;  %p6662_p5 = por %p6661_p2, %p6660_p0 }
  0x3c   : > { %p6656_p13 = pneg %p6655_p12 }
  0x3e   : > { %p6663_p8 = pnand %p6662_p5, %p6656_p13 }
  0x40   : > { %6666 = shalt.err (!%p6663_p8)
}
  0x41   : > { %6116 = dma.hbm_to_vmem [thread:$0]  (!%p6866_p6), %s7894_s5, 32, %s277_s15, [#allocation10]  }
  0x42   : > { %s6678_s18 = scalar_lea.vmem %s288_s20, 32  ;;  %p6686_p10 = scmp.lt.s32.totalorder %s288_s20, %s288_s20 }
  0x43   : > { %p6679_p9 = scmp.ne.s32.totalorder %s288_s20, %s6678_s18  ;;  %p6687_p12 = scmp.lt.s32.totalorder %s6678_s18, %s6678_s18 }
  0x45   : > { %p6681_p11 = pnand %p6679_p9, %p6874_p7  ;;  %p6688_p1 = por %p6687_p12, %p6686_p10 }
  0x47   : > { %p6682_p3 = pneg %p6681_p11 }
  0x49   : > { %p6689_p4 = pnand %p6688_p1, %p6682_p3 }
  0x4b   : > { %6692 = shalt.err (!%p6689_p4)
}
  0x4c   : > { %6119 = dma.hbm_to_vmem [thread:$0]  (!%p6866_p6), %s7895_s6, 32, %s288_s20, [#allocation13]  }
  0x4d   : > { %s6926_s19 = sadd.s32 1, %s6767_s10   ;;  %s54_s27 = sadd.s32 1, %s6763_s9 }
  0x4e   : > { %s51_s16 = ssub.s32 %s6767_s10, %s6926_s19  ;;  %p61_p3 = scmp.ne.s32.totalorder %s6763_s9, %s6759_s30 }
  0x4f   : > { %p52_p1 = scmp.eq.s32.totalorder %s51_s16, 0  ;;  %p62_p4 = scmp.eq.s32.totalorder %s6767_s10, 0 }
  0x50   : > { %p67_p7 = scmp.ne.s32.totalorder %s6759_s30, %s6755_s29  ;;  %p7904_p0 = scmp.eq.s32.totalorder %s6850_s12, 0 }
  0x51   : > { %s6937_s28 = scalar_select %p52_p1, %s6763_s9, %s54_s27  }
  0x52   : > { %p63_p13 = por %p62_p4, %p61_p3  ;;  %p6941_p2 = por %p7904_p0, %p67_p7 }
  0x53   : > { %p6129_p5 = scmp.lt.s32.totalorder %s6767_s10, 4  ;;  %s301_s11 = sand.u32 1, %s6763_s9  }
  0x54   : > { %s7905_s7 = scalar_select %p6941_p2, 1, 0 }
  0x55   : > { %s5807_s14 = sshll.u32 %s301_s11, 12  ;;  %s6081_s15 = sshll.u32 %s6767_s10, 16 }
  0x56   : > { %s6951_s21 = scalar_lea.hbm %s7890_s1, %s6081_s15  ;;  %s305_s29 = scalar_lea.vmem [#allocation4], %s5807_s14 }
  0x57   : > { %s313_s22 = sshll.u32 %s305_s29, 4  ;;  %p6955_p6 = pnand %p6129_p5, %p63_p13  ;;  %s6953_s22 = int_to_ptr.vmem [resolvable:$true] %s313_s22 }
  0x58   : > { %s6959_s18 = scalar_lea.sflag [#allocation5], %s301_s11  ;;  %s6693_s10 = scalar_lea.hbm %s6951_s21, 65536 }
  0x59   : > { %p6694_p8 = scmp.ne.s32.totalorder %s6951_s21, %s6693_s10  ;;  %p6695_p9 = pneg %p6955_p6 }
  0x5a   : > { %s6698_s16 = scalar_lea.hbm %s7890_s1, 262144  ;;  %p6699_p12 = scmp.lt.s32.totalorder %s6951_s21, %s7890_s1 }
  0x5b   : > { %p6696_p11 = pnand %p6695_p9, %p6694_p8  ;;  %p6700_p1 = scmp.lt.s32.totalorder %s6698_s16, %s6693_s10 }
  0x5d   : > { %p6697_p10 = pneg %p6696_p11  ;;  %p6701_p3 = por %p6700_p1, %p6699_p12 }
  0x5f   : > { %p6702_p4 = pnand %p6701_p3, %p6697_p10 }
  0x61   : > { %6705 = shalt.err (!%p6702_p4)
}
  0x62   : > { %s6706_s11 = scalar_lea.vmem %s6953_s22, 65536  ;;  %s6776_s15 = smov [#allocation4]  }
  0x63   : > { %p6707_p7 = scmp.ne.s32.totalorder %s6953_s22, %s6706_s11  ;;  %s6711_s17 = sshll.u32 %s6776_s15, 4  ;;  %s6712_s17 = int_to_ptr.vmem [resolvable:$false] %s6711_s17 }
  0x64   : > { %s6713_s20 = scalar_lea.vmem %s6712_s17, 131072  ;;  %p6714_p5 = scmp.lt.s32.totalorder %s6953_s22, %s6712_s17 }
  0x65   : > { %p6709_p13 = pnand %p6707_p7, %p6695_p9  ;;  %p6715_p8 = scmp.lt.s32.totalorder %s6713_s20, %s6706_s11 }
  0x67   : > { %p6710_p0 = pneg %p6709_p13  ;;  %p6716_p11 = por %p6715_p8, %p6714_p5 }
  0x69   : > { %p6717_p2 = pnand %p6716_p11, %p6710_p0 }
  0x6b   : > { %6720 = shalt.err (!%p6717_p2)
}
  0x6c   : > { %s6777_s29 = smov 2048   ;;  %p7907_p9 = scmp.ne.s32.totalorder %s7901_s13, 0 }
  0x6d   : > { %6123 = dma.hbm_to_vmem [thread:$0]  (!%p6955_p6), %s6951_s21, 65536, %s6953_s22, %s6959_s18, %s6777_s29, %s6777_s29, %s6772_s24  }
  0x6e   : > { %325 = sbr.rel (%p7907_p9) target bundleno = 1975 (0x7b7), region = 52  ;;  %s327_s10 = sand.u32 (!%p7907_p9), 1, %s6759_s30  }
  0x6f   : > { %s5812_s25 = sshll.u32 (!%p7907_p9), %s327_s10, 12  ;;  %s328_s26 = scalar_lea.sflag (!%p7907_p9), [#allocation5], %s327_s10 }
  0x70   : > { %s6984_s16 = scalar_lea.vmem (!%p7907_p9), [#allocation4], %s5812_s25  ;;  %p7908_p10 = scmp.ne.s32.totalorder (!%p7907_p9), %s7905_s7, 0 }
  0x73   : > { %6738 = dma.done.wait (%p7908_p10), %s328_s26, 65536  }
  0x74   : > { %6740 = vsyncadd (%p7908_p10), %s328_s26, 4294901760  ;;  %p7909_p2 = scmp.eq.s32.totalorder %s6850_s12, 0 }
  0x76   : > { %6742 = dma.done.wait (%p7909_p2), [#allocation7], 512   ;;  %p7910_p6 = pmov %p7909_p2 }
  0x77   : > { %p7911_p12 = pmov %p7909_p2 }
  0x78   : > { %6744 = vsyncadd (%p7910_p6), [#allocation7], 4294966784 }
  0x79   : > { %6746 = dma.done.wait (%p7911_p12), [#allocation10], 32800   ;;  %p7912_p1 = pmov %p7909_p2 }
  0x7b   : > { %6748 = vsyncadd (%p7912_p1), [#allocation10], 4294934496  ;;  %p7913_p3 = pmov %p7912_p1 }
  0x7c   : > { %p7914_p4 = pmov %p7912_p1 }
  0x7d   : > { %6750 = dma.done.wait (%p7913_p3), [#allocation13], 32  }
  0x7e   : > { %6752 = vsyncadd (%p7914_p4), [#allocation13], 4294967264  ;;  %p7915_p7 = scmp.ne.s32.totalorder %s6850_s12, 0 }
  0x80   : > { %383 = sbr.rel (%p7915_p7) target bundleno = 136 (0x88), region = 80 }
  0x85   : > { %v6778_v1 = vmov 0.0  }
  0x86   : > { %384 = vst [vmem:[#allocation2 + $0x10] sm:$0xff] %v6778_v1  ;;  %385 = vst [vmem:[#allocation2] sm:$0xff] %v6778_v1 }
  0x87   : > { %386 = vst [vmem:[#allocation2 + $0x18] sm:$0xff] %v6778_v1  ;;  %387 = vst [vmem:[#allocation2 + $0x8] sm:$0xff] %v6778_v1 }
  0x88 PF: > { %v446_v2 = vld [vmem:[%s6984_s16 + $0x188] sm:$0xff]  ;;  %v445_v4 = vld [vmem:[%s6984_s16 + $0x180] sm:$0xff]  ;;  %s5819_s13 = sshll.u32 %s6850_s12, 10  ;;  %v1938_v32 = vlaneseq  ;;  %v6779_v37 = vmov 1966171168   ;;  %p5820_p13 = scmp.ne.s32.totalorder %s6850_s12, 3 }
  0x89   : > { %v574_v3 = vld [vmem:[%s6984_s16 + $0x588] sm:$0xff]  ;;  %v1006_v5 = vunpack.c.l.s8.bf16 %v446_v2  ;;  %v1022_v6 = vunpack.c.h.s8.bf16 %v446_v2  ;;  %v573_v9 = vld [vmem:[%s6984_s16 + $0x580] sm:$0xff]  ;;  %v1021_v10 = vunpack.c.h.s8.bf16 %v445_v4  ;;  %v1005_v14 = vunpack.c.l.s8.bf16 %v445_v4  ;;  %s389_s24 = sshra.s32 %s5819_s13, 7 }
  0x8a   : > { %v1262_v7 = vunpack.c.l.s8.bf16 %v574_v3  ;;  %v1278_v8 = vunpack.c.h.s8.bf16 %v574_v3  ;;  %v1277_v11 = vunpack.c.h.s8.bf16 %v573_v9  ;;  %v430_v12 = vld [vmem:[%s6984_s16 + $0x108] sm:$0xff]  ;;  %v1261_v15 = vunpack.c.l.s8.bf16 %v573_v9  ;;  %v429_v18 = vld [vmem:[%s6984_s16 + $0x100] sm:$0xff]  ;;  %s391_s22 = scalar_lea.vmem %s7889_s0, %s389_s24 }
  0x8b   : > { %v558_v13 = vld [vmem:[%s6984_s16 + $0x508] sm:$0xff]  ;;  %1991 = vmatprep.subr.bf16.mxu0 %v1022_v6  ;;  %v990_v16 = vunpack.c.h.s8.bf16 %v430_v12  ;;  %v557_v19 = vld [vmem:[%s6984_s16 + $0x500] sm:$0xff]  ;;  %v989_v20 = vunpack.c.h.s8.bf16 %v429_v18  ;;  %v974_v22 = vunpack.c.l.s8.bf16 %v430_v12  ;;  %v973_v26 = vunpack.c.l.s8.bf16 %v429_v18 }
  0x8c   : > { %2032 = vmatprep.subr.bf16.mxu1 %v1278_v8  ;;  %1992 = vmatpush1.bf16.msra.mxu0 %v1021_v10  ;;  %v1246_v17 = vunpack.c.h.s8.bf16 %v558_v13  ;;  %v1245_v21 = vunpack.c.h.s8.bf16 %v557_v19  ;;  %v1230_v23 = vunpack.c.l.s8.bf16 %v558_v13  ;;  %v414_v24 = vld [vmem:[%s6984_s16 + $0x88] sm:$0xff]  ;;  %v1229_v27 = vunpack.c.l.s8.bf16 %v557_v19  ;;  %v413_v30 = vld [vmem:[%s6984_s16 + $0x80] sm:$0xff] }
  0x8d   : > { %2033 = vmatpush1.bf16.msra.mxu1 %v1277_v11  ;;  %1993 = vmatprep.subr.bf16.mxu0 %v1006_v5  ;;  %v542_v25 = vld [vmem:[%s6984_s16 + $0x488] sm:$0xff]  ;;  %v958_v28 = vunpack.c.h.s8.bf16 %v414_v24  ;;  %v541_v31 = vld [vmem:[%s6984_s16 + $0x480] sm:$0xff]  ;;  %v957_v33 = vunpack.c.h.s8.bf16 %v413_v30  ;;  %v942_v35 = vunpack.c.l.s8.bf16 %v414_v24  ;;  %v1936_v38 = vunpack.c.l.s4 %v6779_v37 }
  0x8e   : > { %2034 = vmatprep.subr.bf16.mxu1 %v1262_v7  ;;  %v1214_v29 = vunpack.c.h.s8.bf16 %v542_v25  ;;  %v1213_v34 = vunpack.c.h.s8.bf16 %v541_v31  ;;  %v1198_v36 = vunpack.c.l.s8.bf16 %v542_v25  ;;  %v7020_v39 = vshrl.u32 %v1938_v32, 7  ;;  %v398_v40 = vld [vmem:[%s6984_s16 + $0x8] sm:$0xff]  ;;  %v392_v45 = vld [vmem:[%s391_s22] sm:$0xff] }
  0x8f   : > { %v526_v41 = vld [vmem:[%s6984_s16 + $0x408] sm:$0xff]  ;;  %v1937_v42 = vunpack.c.0.s8 %v1936_v38  ;;  %v941_v43 = vunpack.c.l.s8.bf16 %v413_v30  ;;  %v1197_v44 = vunpack.c.l.s8.bf16 %v541_v31  ;;  %v926_v46 = vunpack.c.h.s8.bf16 %v398_v40  ;;  %v397_v48 = vld [vmem:[%s6984_s16] sm:$0xff] }
  0x90   : > { %1994 = vmatpush1.bf16.msra.mxu0 %v1005_v14  ;;  %v1182_v47 = vunpack.c.h.s8.bf16 %v526_v41  ;;  %v525_v49 = vld [vmem:[%s6984_s16 + $0x400] sm:$0xff]  ;;  %v925_v52 = vunpack.c.h.s8.bf16 %v397_v48  ;;  %v910_v54 = vunpack.c.l.s8.bf16 %v398_v40  ;;  %v1166_v55 = vunpack.c.l.s8.bf16 %v526_v41  ;;  %v510_v57 = vld [vmem:[%s6984_s16 + $0x388] sm:$0xff] }
  0x91   : > { %2035 = vmatpush1.bf16.msra.mxu1 %v1261_v15  ;;  %1995 = vmatprep.subr.bf16.mxu0 %v990_v16  ;;  %v7027_v50 = vsub.s32 %v1937_v42, %v7020_v39  ;;  %v1181_v53 = vunpack.c.h.s8.bf16 %v525_v49  ;;  %v638_v58 = vld [vmem:[%s6984_s16 + $0x788] sm:$0xff]  ;;  %v909_v60 = vunpack.c.l.s8.bf16 %v397_v48  ;;  %v1165_v61 = vunpack.c.l.s8.bf16 %v525_v49  ;;  %v509_v0 = vld [vmem:[%s6984_s16 + $0x380] sm:$0xff] }
  0x92   : > { %2036 = vmatprep.subr.bf16.mxu1 %v1246_v17  ;;  %v1150_v62 = vunpack.c.h.s8.bf16 %v510_v57  ;;  %v1406_v63 = vunpack.c.h.s8.bf16 %v638_v58  ;;  %v637_v1 = vld [vmem:[%s6984_s16 + $0x780] sm:$0xff]  ;;  %v1149_v3 = vunpack.c.h.s8.bf16 %v509_v0  ;;  %v1134_v5 = vunpack.c.l.s8.bf16 %v510_v57  ;;  %v494_v7 = vld [vmem:[%s6984_s16 + $0x308] sm:$0xff] }
  0x93   : > { %v7030_v51 = vrot.slane %v392_v45, %v7027_v50  ;;  %v1405_v4 = vunpack.c.h.s8.bf16 %v637_v1  ;;  %v1390_v6 = vunpack.c.l.s8.bf16 %v638_v58  ;;  %v622_v8 = vld [vmem:[%s6984_s16 + $0x708] sm:$0xff]  ;;  %v1934_v9 = vcombine.high %v392_v45, %v392_v45  ;;  %v493_v14 = vld [vmem:[%s6984_s16 + $0x300] sm:$0xff] }
  0x94   : > { %1996 = vmatpush1.bf16.msra.mxu0 %v989_v20  ;;  %v1133_v10 = vunpack.c.l.s8.bf16 %v509_v0  ;;  %v1389_v11 = vunpack.c.l.s8.bf16 %v637_v1  ;;  %v1118_v12 = vunpack.c.h.s8.bf16 %v494_v7  ;;  %v1374_v13 = vunpack.c.h.s8.bf16 %v622_v8  ;;  %v621_v15 = vld [vmem:[%s6984_s16 + $0x700] sm:$0xff]  ;;  %v830_v48 = vld [vmem:[%s6984_s16 + $0xd88] sm:$0xff] }
  0x95   : > { %2037 = vmatpush1.bf16.msra.mxu1 %v1245_v21  ;;  %1997 = vmatprep.subr.bf16.mxu0 %v974_v22  ;;  %v1949_v56 = vcombine.high %v7030_v51, %v7030_v51  ;;  %v7052_v16 = vrot.slane %v1934_v9, %v7027_v50  ;;  %v1117_v18 = vunpack.c.h.s8.bf16 %v493_v14  ;;  %v1373_v19 = vunpack.c.h.s8.bf16 %v621_v15  ;;  %v478_v22 = vld [vmem:[%s6984_s16 + $0x288] sm:$0xff]  ;;  %v461_v41 = vld [vmem:[%s6984_s16 + $0x200] sm:$0xff] }
  0x96   : > { %2038 = vmatprep.subr.bf16.mxu1 %v1230_v23  ;;  %v1102_v20 = vunpack.c.l.s8.bf16 %v494_v7  ;;  %v1358_v21 = vunpack.c.l.s8.bf16 %v622_v8  ;;  %v606_v23 = vld [vmem:[%s6984_s16 + $0x688] sm:$0xff]  ;;  %v1101_v24 = vunpack.c.l.s8.bf16 %v493_v14  ;;  %v1357_v25 = vunpack.c.l.s8.bf16 %v621_v15  ;;  %v589_v42 = vld [vmem:[%s6984_s16 + $0x600] sm:$0xff] }
  0x97   : > { %v7037_v59 = vrot.slane %v1949_v56, %v7027_v50  ;;  %v7056_v17 = vrot.slane %v7052_v16, %v7027_v50  ;;  %v1070_v32 = vunpack.c.l.s8.bf16 %v478_v22  ;;  %v1950_v49 = vcombine.high %v7052_v16, %v7052_v16  ;;  %v701_v57 = vld [vmem:[%s6984_s16 + $0x980] sm:$0xff]  ;;  %v686_v1 = vld [vmem:[%s6984_s16 + $0x908] sm:$0xff] }
  0x98   : > { %1998 = vmatpush1.bf16.msra.mxu0 %v973_v26  ;;  %v1086_v26 = vunpack.c.h.s8.bf16 %v478_v22  ;;  %v1790_v56 = vunpack.c.h.s8.bf16 %v830_v48  ;;  %v829_v58 = vld [vmem:[%s6984_s16 + $0xd80] sm:$0xff]  ;;  %v1774_v0 = vunpack.c.l.s8.bf16 %v830_v48  ;;  %v670_v14 = vld [vmem:[%s6984_s16 + $0x888] sm:$0xff] }
  0x99   : > { %2039 = vmatpush1.bf16.msra.mxu1 %v1229_v27  ;;  %1999 = vmatprep.subr.bf16.mxu0 %v958_v28  ;;  %v7043_v2 = vcombine.high %v7037_v59, %v7037_v59  ;;  %v1342_v27 = vunpack.c.h.s8.bf16 %v606_v23  ;;  %v477_v28 = vld [vmem:[%s6984_s16 + $0x280] sm:$0xff]  ;;  %v798_v15 = vld [vmem:[%s6984_s16 + $0xc88] sm:$0xff] }
  0x9a   : > { %2040 = vmatprep.subr.bf16.mxu1 %v1214_v29  ;;  %2023 = vmatprep.mubr.bf16.mxu0 %v7037_v59  ;;  %v605_v29 = vld [vmem:[%s6984_s16 + $0x680] sm:$0xff]  ;;  %v1085_v30 = vunpack.c.h.s8.bf16 %v477_v28 }
  0x9b   : > { %2064 = vmatprep.mubr.bf16.mxu1 %v7043_v2  ;;  %v1341_v31 = vunpack.c.h.s8.bf16 %v605_v29  ;;  %v1325_v37 = vunpack.c.l.s8.bf16 %v605_v29  ;;  %v685_v8 = vld [vmem:[%s6984_s16 + $0x900] sm:$0xff] }
  0x9c   : > { %2000 = vmatpush1.bf16.msra.mxu0 %v957_v33  ;;  %v1326_v33 = vunpack.c.l.s8.bf16 %v606_v23  ;;  %v813_v9 = vld [vmem:[%s6984_s16 + $0xd00] sm:$0xff]  ;;  %v1485_v16 = vunpack.c.l.s8.bf16 %v685_v8 }
  0x9d   : > { %2041 = vmatpush1.bf16.msra.mxu1 %v1213_v34  ;;  %2001 = vmatprep.subr.bf16.mxu0 %v942_v35  ;;  %v462_v34 = vld [vmem:[%s6984_s16 + $0x208] sm:$0xff]  ;;  %v797_v22 = vld [vmem:[%s6984_s16 + $0xc80] sm:$0xff] }
  0x9e   : > { %2042 = vmatprep.subr.bf16.mxu1 %v1198_v36  ;;  %v590_v35 = vld [vmem:[%s6984_s16 + $0x608] sm:$0xff]  ;;  %v1069_v36 = vunpack.c.l.s8.bf16 %v477_v28  ;;  %v1054_v38 = vunpack.c.h.s8.bf16 %v462_v34  ;;  %v1038_v45 = vunpack.c.l.s8.bf16 %v462_v34  ;;  %v781_v34 = vld [vmem:[%s6984_s16 + $0xc00] sm:$0xff] }
  0x9f   : > { %v1310_v40 = vunpack.c.h.s8.bf16 %v590_v35  ;;  %v782_v28 = vld [vmem:[%s6984_s16 + $0xc08] sm:$0xff] }
  0xa0   : > { %2002 = vmatpush1.bf16.msra.mxu0 %v941_v43  ;;  %v1053_v43 = vunpack.c.h.s8.bf16 %v461_v41 }
  0xa1   : > { %2043 = vmatpush1.bf16.msra.mxu1 %v1197_v44  ;;  %2003 = vmatprep.subr.bf16.mxu0 %v926_v46  ;;  %v1309_v44 = vunpack.c.h.s8.bf16 %v589_v42  ;;  %v1294_v46 = vunpack.c.l.s8.bf16 %v590_v35 }
  0xa2   : > { %2044 = vmatprep.subr.bf16.mxu1 %v1182_v47  ;;  %v702_v47 = vld [vmem:[%s6984_s16 + $0x988] sm:$0xff] }
  0xa4   : > { %2004 = vmatpush1.bf16.msra.mxu0 %v925_v52  ;;  %v7072_v52 = vrot.slane %v7030_v51, %v7027_v50  ;;  %v1533_v51 = vunpack.c.h.s8.bf16 %v701_v57 }
  0xa5   : > { %2045 = vmatpush1.bf16.msra.mxu1 %v1181_v53  ;;  %2005 = vmatprep.subr.bf16.mxu0 %v910_v54  ;;  %v1037_v53 = vunpack.c.l.s8.bf16 %v461_v41  ;;  %v1293_v54 = vunpack.c.l.s8.bf16 %v589_v42  ;;  %v894_v41 = vld [vmem:[%s6984_s16 + $0xf88] sm:$0xff] }
  0xa6   : > { %2046 = vmatprep.subr.bf16.mxu1 %v1166_v55  ;;  %v1534_v55 = vunpack.c.h.s8.bf16 %v702_v47 }
  0xa8   : > { %2006 = vmatpush1.bf16.msra.mxu0 %v909_v60  ;;  %v7077_v60 = vrot.slane %v1950_v49, %v7027_v50 }
  0xa9   : > { %2047 = vmatpush1.bf16.msra.mxu1 %v1165_v61  ;;  %2007 = vmatprep.subr.bf16.mxu0 %v1150_v62  ;;  %v7081_v61 = vcombine.high %v7072_v52, %v7072_v52  ;;  %v1789_v62 = vunpack.c.h.s8.bf16 %v829_v58 }
  0xaa   : > { %2048 = vmatprep.subr.bf16.mxu1 %v1406_v63  ;;  %v1518_v63 = vunpack.c.l.s8.bf16 %v702_v47  ;;  %v7087_v50 = vcombine.high %v7077_v60, %v7077_v60  ;;  %v893_v47 = vld [vmem:[%s6984_s16 + $0xf80] sm:$0xff] }
  0xab   : > { %v1917_v49 = vunpack.c.h.s8.bf16 %v893_v47 }
  0xac   : > { %2008 = vmatpush2.bf16.msra.mxu0 %v1149_v3  ;;  %v814_v3 = vld [vmem:[%s6984_s16 + $0xd08] sm:$0xff] }
  0xad   : > { %2049 = vmatpush2.bf16.msra.mxu1 %v1405_v4  ;;  %2009 = vmatprep.subr.bf16.mxu0 %v1134_v5  ;;  %v1517_v4 = vunpack.c.l.s8.bf16 %v701_v57  ;;  %v1773_v5 = vunpack.c.l.s8.bf16 %v829_v58  ;;  %v1758_v7 = vunpack.c.h.s8.bf16 %v814_v3  ;;  %v1901_v58 = vunpack.c.l.s8.bf16 %v893_v47 }
  0xae   : > { %2050 = vmatprep.subr.bf16.mxu1 %v1390_v6  ;;  %v1502_v6 = vunpack.c.h.s8.bf16 %v686_v1 }
  0xb0   : > { %2010 = vmatpush2.bf16.msra.mxu0 %v1133_v10  ;;  %v1501_v10 = vunpack.c.h.s8.bf16 %v685_v8 }
  0xb1   : > { %2051 = vmatpush2.bf16.msra.mxu1 %v1389_v11  ;;  %2011 = vmatprep.subr.bf16.mxu0 %v1118_v12  ;;  %v1757_v11 = vunpack.c.h.s8.bf16 %v813_v9  ;;  %v1486_v12 = vunpack.c.l.s8.bf16 %v686_v1 }
  0xb2   : > { %2052 = vmatprep.subr.bf16.mxu1 %v1374_v13  ;;  %v1742_v13 = vunpack.c.l.s8.bf16 %v814_v3 }
  0xb4   : > { %2012 = vmatpush2.bf16.msra.mxu0 %v1117_v18  ;;  %v1741_v18 = vunpack.c.l.s8.bf16 %v813_v9 }
  0xb5   : > { %2053 = vmatpush2.bf16.msra.mxu1 %v1373_v19  ;;  %2013 = vmatprep.subr.bf16.mxu0 %v1102_v20  ;;  %v1470_v19 = vunpack.c.h.s8.bf16 %v670_v14  ;;  %v1726_v20 = vunpack.c.h.s8.bf16 %v798_v15 }
  0xb6   : > { %2054 = vmatprep.subr.bf16.mxu1 %v1358_v21  ;;  %v669_v21 = vld [vmem:[%s6984_s16 + $0x880] sm:$0xff] }
  0xb7   : > { %v1469_v23 = vunpack.c.h.s8.bf16 %v669_v21  ;;  %v1453_v29 = vunpack.c.l.s8.bf16 %v669_v21 }
  0xb8   : > { %2014 = vmatpush2.bf16.msra.mxu0 %v1101_v24  ;;  %v1725_v24 = vunpack.c.h.s8.bf16 %v797_v22 }
  0xb9   : > { %2055 = vmatpush2.bf16.msra.mxu1 %v1357_v25  ;;  %2015 = vmatprep.subr.bf16.mxu0 %v1086_v26  ;;  %v1454_v25 = vunpack.c.l.s8.bf16 %v670_v14  ;;  %v1710_v26 = vunpack.c.l.s8.bf16 %v798_v15 }
  0xba   : > { %2056 = vmatprep.subr.bf16.mxu1 %v1342_v27  ;;  %v654_v27 = vld [vmem:[%s6984_s16 + $0x808] sm:$0xff] }
  0xbc   : > { %2016 = vmatpush2.bf16.msra.mxu0 %v1085_v30  ;;  %v1709_v30 = vunpack.c.l.s8.bf16 %v797_v22 }
  0xbd   : > { %2057 = vmatpush2.bf16.msra.mxu1 %v1341_v31  ;;  %2017 = vmatprep.subr.bf16.mxu0 %v1070_v32  ;;  %v1438_v31 = vunpack.c.h.s8.bf16 %v654_v27  ;;  %v1694_v32 = vunpack.c.h.s8.bf16 %v782_v28 }
  0xbe   : > { %2058 = vmatprep.subr.bf16.mxu1 %v1326_v33  ;;  %v653_v33 = vld [vmem:[%s6984_s16 + $0x800] sm:$0xff] }
  0xbf   : > { %v1437_v35 = vunpack.c.h.s8.bf16 %v653_v33  ;;  %v1421_v42 = vunpack.c.l.s8.bf16 %v653_v33 }
  0xc0   : > { %2018 = vmatpush2.bf16.msra.mxu0 %v1069_v36  ;;  %v1693_v36 = vunpack.c.h.s8.bf16 %v781_v34 }
  0xc1   : > { %2059 = vmatpush2.bf16.msra.mxu1 %v1325_v37  ;;  %2019 = vmatprep.subr.bf16.mxu0 %v1054_v38  ;;  %v1422_v37 = vunpack.c.l.s8.bf16 %v654_v27  ;;  %v1678_v38 = vunpack.c.l.s8.bf16 %v782_v28 }
  0xc2   : > { %2060 = vmatprep.subr.bf16.mxu1 %v1310_v40  ;;  %v766_v40 = vld [vmem:[%s6984_s16 + $0xb88] sm:$0xff] }
  0xc4   : > { %2020 = vmatpush2.bf16.msra.mxu0 %v1053_v43  ;;  %v1677_v43 = vunpack.c.l.s8.bf16 %v781_v34 }
  0xc5   : > { %2061 = vmatpush2.bf16.msra.mxu1 %v1309_v44  ;;  %2021 = vmatprep.subr.bf16.mxu0 %v1038_v45  ;;  %v1662_v44 = vunpack.c.h.s8.bf16 %v766_v40  ;;  %v1918_v45 = vunpack.c.h.s8.bf16 %v894_v41 }
  0xc6   : > { %2062 = vmatprep.subr.bf16.mxu1 %v1294_v46  ;;  %v765_v46 = vld [vmem:[%s6984_s16 + $0xb80] sm:$0xff] }
  0xc7   : > { %v1661_v48 = vunpack.c.h.s8.bf16 %v765_v46  ;;  %v1645_v57 = vunpack.c.l.s8.bf16 %v765_v46  ;;  %v560_v46 = vld [vmem:[%s6984_s16 + $0x518] sm:$0xff] }
  0xc8   : > { %2022 = vmatpush2.bf16.msra.mxu0 %v1037_v53  ;;  %v1646_v53 = vunpack.c.l.s8.bf16 %v766_v40  ;;  %v7125_v40 = vcombine.high %v7056_v17, %v7056_v17 }
  0xc9   : > { %2063 = vmatpush2.bf16.msra.mxu1 %v1293_v54  ;;  %2073 = vmatprep.subr.bf16.mxu0 %v1534_v55  ;;  %v1902_v54 = vunpack.c.l.s8.bf16 %v894_v41  ;;  %v750_v55 = vld [vmem:[%s6984_s16 + $0xb08] sm:$0xff] }
  0xca   : > { %2114 = vmatprep.subr.bf16.mxu1 %v1790_v56  ;;  %v878_v56 = vld [vmem:[%s6984_s16 + $0xf08] sm:$0xff] }
  0xcb   : > { %2024 = vmatmul.mubr.bf16.vlgmr.msra.gmra.mxu0 %v7072_v52 }
  0xcc   : > { %2065 = vmatmul.mubr.bf16.vlgmr.msra.gmra.mxu1 %v7081_v61  ;;  %2074 = vmatpush1.bf16.msra.mxu0 %v1533_v51  ;;  %v1630_v51 = vunpack.c.h.s8.bf16 %v750_v55 }
  0xcd   : > { %2115 = vmatpush1.bf16.msra.mxu1 %v1789_v62  ;;  %2075 = vmatprep.subr.bf16.mxu0 %v1518_v63  ;;  %v1886_v62 = vunpack.c.h.s8.bf16 %v878_v56  ;;  %v749_v63 = vld [vmem:[%s6984_s16 + $0xb00] sm:$0xff] }
  0xce   : > { %2116 = vmatprep.subr.bf16.mxu1 %v1774_v0  ;;  %2105 = vmatprep.mubr.bf16.mxu0 %v7077_v60  ;;  %v877_v0 = vld [vmem:[%s6984_s16 + $0xf00] sm:$0xff]  ;;  %v1629_v1 = vunpack.c.h.s8.bf16 %v749_v63  ;;  %v1613_v8 = vunpack.c.l.s8.bf16 %v749_v63  ;;  %v544_v63 = vld [vmem:[%s6984_s16 + $0x498] sm:$0xff] }
  0xcf   : > { %2146 = vmatprep.mubr.bf16.mxu1 %v7087_v50  ;;  %v1885_v3 = vunpack.c.h.s8.bf16 %v877_v0  ;;  %v1869_v9 = vunpack.c.l.s8.bf16 %v877_v0 }
  0xd0   : > { %2076 = vmatpush1.bf16.msra.mxu0 %v1517_v4  ;;  %v1614_v4 = vunpack.c.l.s8.bf16 %v750_v55  ;;  %v559_v55 = vld [vmem:[%s6984_s16 + $0x510] sm:$0xff] }
  0xd1   : > { %2117 = vmatpush1.bf16.msra.mxu1 %v1773_v5  ;;  %2077 = vmatprep.subr.bf16.mxu0 %v1502_v6  ;;  %v1870_v5 = vunpack.c.l.s8.bf16 %v878_v56  ;;  %v734_v6 = vld [vmem:[%s6984_s16 + $0xa88] sm:$0xff] }
  0xd2   : > { %2118 = vmatprep.subr.bf16.mxu1 %v1758_v7  ;;  %v862_v7 = vld [vmem:[%s6984_s16 + $0xe88] sm:$0xff] }
  0xd4   : > { %2078 = vmatpush1.bf16.msra.mxu0 %v1501_v10  ;;  %v1598_v10 = vunpack.c.h.s8.bf16 %v734_v6 }
  0xd5   : > { %2119 = vmatpush1.bf16.msra.mxu1 %v1757_v11  ;;  %2079 = vmatprep.subr.bf16.mxu0 %v1486_v12  ;;  %v1854_v11 = vunpack.c.h.s8.bf16 %v862_v7  ;;  %v733_v12 = vld [vmem:[%s6984_s16 + $0xa80] sm:$0xff] }
  0xd6   : > { %2120 = vmatprep.subr.bf16.mxu1 %v1742_v13  ;;  %v861_v13 = vld [vmem:[%s6984_s16 + $0xe80] sm:$0xff]  ;;  %v1597_v14 = vunpack.c.h.s8.bf16 %v733_v12  ;;  %v1581_v21 = vunpack.c.l.s8.bf16 %v733_v12  ;;  %v528_v12 = vld [vmem:[%s6984_s16 + $0x418] sm:$0xff] }
  0xd7   : > { %v1853_v15 = vunpack.c.h.s8.bf16 %v861_v13  ;;  %v1837_v22 = vunpack.c.l.s8.bf16 %v861_v13 }
  0xd8   : > { %2080 = vmatpush1.bf16.msra.mxu0 %v1485_v16  ;;  %v1582_v16 = vunpack.c.l.s8.bf16 %v734_v6  ;;  %v543_v6 = vld [vmem:[%s6984_s16 + $0x490] sm:$0xff] }
  0xd9   : > { %2121 = vmatpush1.bf16.msra.mxu1 %v1741_v18  ;;  %2081 = vmatprep.subr.bf16.mxu0 %v1470_v19  ;;  %v1838_v18 = vunpack.c.l.s8.bf16 %v862_v7  ;;  %v718_v19 = vld [vmem:[%s6984_s16 + $0xa08] sm:$0xff] }
  0xda   : > { %2122 = vmatprep.subr.bf16.mxu1 %v1726_v20  ;;  %v846_v20 = vld [vmem:[%s6984_s16 + $0xe08] sm:$0xff] }
  0xdc   : > { %2082 = vmatpush1.bf16.msra.mxu0 %v1469_v23  ;;  %v1566_v23 = vunpack.c.h.s8.bf16 %v718_v19 }
  0xdd   : > { %2123 = vmatpush1.bf16.msra.mxu1 %v1725_v24  ;;  %2083 = vmatprep.subr.bf16.mxu0 %v1454_v25  ;;  %v1822_v24 = vunpack.c.h.s8.bf16 %v846_v20  ;;  %v717_v25 = vld [vmem:[%s6984_s16 + $0xa00] sm:$0xff] }
  0xde   : > { %2124 = vmatprep.subr.bf16.mxu1 %v1710_v26  ;;  %v845_v26 = vld [vmem:[%s6984_s16 + $0xe00] sm:$0xff]  ;;  %v1565_v27 = vunpack.c.h.s8.bf16 %v717_v25  ;;  %v1549_v33 = vunpack.c.l.s8.bf16 %v717_v25  ;;  %v640_v25 = vld [vmem:[%s6984_s16 + $0x798] sm:$0xff] }
  0xdf   : > { %v1821_v28 = vunpack.c.h.s8.bf16 %v845_v26  ;;  %v1805_v34 = vunpack.c.l.s8.bf16 %v845_v26 }
  0xe0   : > { %2084 = vmatpush1.bf16.msra.mxu0 %v1453_v29  ;;  %v1550_v29 = vunpack.c.l.s8.bf16 %v718_v19  ;;  %v527_v19 = vld [vmem:[%s6984_s16 + $0x410] sm:$0xff] }
  0xe1   : > { %2125 = vmatpush1.bf16.msra.mxu1 %v1709_v30  ;;  %2085 = vmatprep.subr.bf16.mxu0 %v1438_v31  ;;  %v1806_v30 = vunpack.c.l.s8.bf16 %v846_v20  ;;  %v448_v31 = vld [vmem:[%s6984_s16 + $0x198] sm:$0xff] }
  0xe2   : > { %2126 = vmatprep.subr.bf16.mxu1 %v1694_v32  ;;  %v576_v32 = vld [vmem:[%s6984_s16 + $0x598] sm:$0xff] }
  0xe4   : > { %2086 = vmatpush1.bf16.msra.mxu0 %v1437_v35  ;;  %v1024_v35 = vunpack.c.h.s8.bf16 %v448_v31 }
  0xe5   : > { %2127 = vmatpush1.bf16.msra.mxu1 %v1693_v36  ;;  %2087 = vmatprep.subr.bf16.mxu0 %v1422_v37  ;;  %v1280_v36 = vunpack.c.h.s8.bf16 %v576_v32  ;;  %v447_v37 = vld [vmem:[%s6984_s16 + $0x190] sm:$0xff] }
  0xe6   : > { %2128 = vmatprep.subr.bf16.mxu1 %v1678_v38  ;;  %v575_v38 = vld [vmem:[%s6984_s16 + $0x590] sm:$0xff]  ;;  %v1023_v41 = vunpack.c.h.s8.bf16 %v447_v37  ;;  %v1007_v47 = vunpack.c.l.s8.bf16 %v447_v37  ;;  %v624_v37 = vld [vmem:[%s6984_s16 + $0x718] sm:$0xff] }
  0xe8   : > { %2088 = vmatpush1.bf16.msra.mxu0 %v1421_v42  ;;  %v1279_v42 = vunpack.c.h.s8.bf16 %v575_v38 }
  0xe9   : > { %2129 = vmatpush1.bf16.msra.mxu1 %v1677_v43  ;;  %2089 = vmatprep.subr.bf16.mxu0 %v1662_v44  ;;  %v1008_v43 = vunpack.c.l.s8.bf16 %v448_v31  ;;  %v1264_v44 = vunpack.c.l.s8.bf16 %v576_v32  ;;  %v639_v31 = vld [vmem:[%s6984_s16 + $0x790] sm:$0xff] }
  0xea   : > { %2130 = vmatprep.subr.bf16.mxu1 %v1918_v45  ;;  %v432_v45 = vld [vmem:[%s6984_s16 + $0x118] sm:$0xff] }
  0xec   : > { %2090 = vmatpush2.bf16.msra.mxu0 %v1661_v48  ;;  %v1263_v48 = vunpack.c.l.s8.bf16 %v575_v38 }
  0xed   : > { %2131 = vmatpush2.bf16.msra.mxu1 %v1917_v49  ;;  %2091 = vmatprep.subr.bf16.mxu0 %v1646_v53  ;;  %v992_v49 = vunpack.c.h.s8.bf16 %v432_v45  ;;  %v1248_v53 = vunpack.c.h.s8.bf16 %v560_v46 }
  0xee   : > { %2132 = vmatprep.subr.bf16.mxu1 %v1902_v54  ;;  %v431_v54 = vld [vmem:[%s6984_s16 + $0x110] sm:$0xff] }
  0xef   : > { %v991_v56 = vunpack.c.h.s8.bf16 %v431_v54  ;;  %v975_v0 = vunpack.c.l.s8.bf16 %v431_v54  ;;  %v608_v54 = vld [vmem:[%s6984_s16 + $0x698] sm:$0xff] }
  0xf0   : > { %2092 = vmatpush2.bf16.msra.mxu0 %v1645_v57  ;;  %v1247_v57 = vunpack.c.h.s8.bf16 %v559_v55 }
  0xf1   : > { %2133 = vmatpush2.bf16.msra.mxu1 %v1901_v58  ;;  %2093 = vmatprep.subr.bf16.mxu0 %v1630_v51  ;;  %v976_v58 = vunpack.c.l.s8.bf16 %v432_v45  ;;  %v1232_v51 = vunpack.c.l.s8.bf16 %v560_v46  ;;  %v623_v45 = vld [vmem:[%s6984_s16 + $0x710] sm:$0xff] }
  0xf2   : > { %2134 = vmatprep.subr.bf16.mxu1 %v1886_v62  ;;  %v416_v62 = vld [vmem:[%s6984_s16 + $0x98] sm:$0xff] }
  0xf4   : > { %2094 = vmatpush2.bf16.msra.mxu0 %v1629_v1  ;;  %v1231_v1 = vunpack.c.l.s8.bf16 %v559_v55 }
  0xf5   : > { %2135 = vmatpush2.bf16.msra.mxu1 %v1885_v3  ;;  %2095 = vmatprep.subr.bf16.mxu0 %v1614_v4  ;;  %v960_v3 = vunpack.c.h.s8.bf16 %v416_v62  ;;  %v1216_v4 = vunpack.c.h.s8.bf16 %v544_v63 }
  0xf6   : > { %2136 = vmatprep.subr.bf16.mxu1 %v1870_v5  ;;  %v415_v5 = vld [vmem:[%s6984_s16 + $0x90] sm:$0xff] }
  0xf7   : > { %v959_v7 = vunpack.c.h.s8.bf16 %v415_v5  ;;  %v943_v13 = vunpack.c.l.s8.bf16 %v415_v5  ;;  %v592_v5 = vld [vmem:[%s6984_s16 + $0x618] sm:$0xff] }
  0xf8   : > { %2096 = vmatpush2.bf16.msra.mxu0 %v1613_v8  ;;  %v1215_v8 = vunpack.c.h.s8.bf16 %v543_v6 }
  0xf9   : > { %2137 = vmatpush2.bf16.msra.mxu1 %v1869_v9  ;;  %2097 = vmatprep.subr.bf16.mxu0 %v1598_v10  ;;  %v944_v9 = vunpack.c.l.s8.bf16 %v416_v62  ;;  %v1200_v10 = vunpack.c.l.s8.bf16 %v544_v63  ;;  %v607_v62 = vld [vmem:[%s6984_s16 + $0x690] sm:$0xff] }
  0xfa   : > { %2138 = vmatprep.subr.bf16.mxu1 %v1854_v11  ;;  %v400_v11 = vld [vmem:[%s6984_s16 + $0x18] sm:$0xff] }
  0xfc   : > { %2098 = vmatpush2.bf16.msra.mxu0 %v1597_v14  ;;  %v1199_v14 = vunpack.c.l.s8.bf16 %v543_v6 }
  0xfd   : > { %2139 = vmatpush2.bf16.msra.mxu1 %v1853_v15  ;;  %2099 = vmatprep.subr.bf16.mxu0 %v1582_v16  ;;  %v928_v15 = vunpack.c.h.s8.bf16 %v400_v11  ;;  %v1184_v16 = vunpack.c.h.s8.bf16 %v528_v12 }
  0xfe   : > { %2140 = vmatprep.subr.bf16.mxu1 %v1838_v18  ;;  %v399_v18 = vld [vmem:[%s6984_s16 + $0x10] sm:$0xff] }
  0xff   : > { %v927_v20 = vunpack.c.h.s8.bf16 %v399_v18  ;;  %v911_v26 = vunpack.c.l.s8.bf16 %v399_v18  ;;  %v832_v18 = vld [vmem:[%s6984_s16 + $0xd98] sm:$0xff] }
 0x100   : > { %2100 = vmatpush2.bf16.msra.mxu0 %v1581_v21  ;;  %v1183_v21 = vunpack.c.h.s8.bf16 %v527_v19 }
 0x101   : > { %2141 = vmatpush2.bf16.msra.mxu1 %v1837_v22  ;;  %2101 = vmatprep.subr.bf16.mxu0 %v1566_v23  ;;  %v912_v22 = vunpack.c.l.s8.bf16 %v400_v11  ;;  %v1168_v23 = vunpack.c.l.s8.bf16 %v528_v12  ;;  %v591_v11 = vld [vmem:[%s6984_s16 + $0x610] sm:$0xff] }
 0x102   : > { %2142 = vmatprep.subr.bf16.mxu1 %v1822_v24  ;;  %v512_v24 = vld [vmem:[%s6984_s16 + $0x398] sm:$0xff] }
 0x104   : > { %2102 = vmatpush2.bf16.msra.mxu0 %v1565_v27  ;;  %v1167_v27 = vunpack.c.l.s8.bf16 %v527_v19 }
 0x105   : > { %2143 = vmatpush2.bf16.msra.mxu1 %v1821_v28  ;;  %2103 = vmatprep.subr.bf16.mxu0 %v1550_v29  ;;  %v1152_v28 = vunpack.c.h.s8.bf16 %v512_v24  ;;  %v1408_v29 = vunpack.c.h.s8.bf16 %v640_v25 }
 0x106   : > { %2144 = vmatprep.subr.bf16.mxu1 %v1806_v30  ;;  %v511_v30 = vld [vmem:[%s6984_s16 + $0x390] sm:$0xff] }
 0x107   : > { %v1151_v32 = vunpack.c.h.s8.bf16 %v511_v30  ;;  %v1135_v38 = vunpack.c.l.s8.bf16 %v511_v30  ;;  %v816_v30 = vld [vmem:[%s6984_s16 + $0xd18] sm:$0xff] }
 0x108   : > { %2104 = vmatpush2.bf16.msra.mxu0 %v1549_v33  ;;  %v1407_v33 = vunpack.c.h.s8.bf16 %v639_v31 }
 0x109   : > { %2145 = vmatpush2.bf16.msra.mxu1 %v1805_v34  ;;  %2155 = vmatprep.subr.bf16.mxu0 %v1024_v35  ;;  %v1136_v34 = vunpack.c.l.s8.bf16 %v512_v24  ;;  %v1392_v35 = vunpack.c.l.s8.bf16 %v640_v25  ;;  %v831_v24 = vld [vmem:[%s6984_s16 + $0xd90] sm:$0xff] }
 0x10a   : > { %2196 = vmatprep.subr.bf16.mxu1 %v1280_v36  ;;  %v496_v36 = vld [vmem:[%s6984_s16 + $0x318] sm:$0xff] }
 0x10b   : > { %2106 = vmatmul.mubr.bf16.vlgmr.msra.gmra.mxu0 %v7056_v17 }
 0x10c   : > { %2147 = vmatmul.mubr.bf16.vlgmr.msra.gmra.mxu1 %v7125_v40  ;;  %2156 = vmatpush1.bf16.msra.mxu0 %v1023_v41  ;;  %v1391_v41 = vunpack.c.l.s8.bf16 %v639_v31 }
 0x10d   : > { %2197 = vmatpush1.bf16.msra.mxu1 %v1279_v42  ;;  %2157 = vmatprep.subr.bf16.mxu0 %v1008_v43  ;;  %v1120_v42 = vunpack.c.h.s8.bf16 %v496_v36  ;;  %v1376_v43 = vunpack.c.h.s8.bf16 %v624_v37 }
 0x10e   : > { %2198 = vmatprep.subr.bf16.mxu1 %v1264_v44  ;;  %2187 = vmatprep.mubr.bf16.mxu0 %v7037_v59  ;;  %v495_v44 = vld [vmem:[%s6984_s16 + $0x310] sm:$0xff] }
 0x10f   : > { %2228 = vmatprep.mubr.bf16.mxu1 %v7043_v2  ;;  %v1119_v46 = vunpack.c.h.s8.bf16 %v495_v44  ;;  %v1103_v55 = vunpack.c.l.s8.bf16 %v495_v44  ;;  %v800_v44 = vld [vmem:[%s6984_s16 + $0xc98] sm:$0xff] }
 0x110   : > { %2158 = vmatpush1.bf16.msra.mxu0 %v1007_v47  ;;  %v1375_v47 = vunpack.c.h.s8.bf16 %v623_v45 }
 0x111   : > { %2199 = vmatpush1.bf16.msra.mxu1 %v1263_v48  ;;  %2159 = vmatprep.subr.bf16.mxu0 %v992_v49  ;;  %v1104_v48 = vunpack.c.l.s8.bf16 %v496_v36  ;;  %v1360_v49 = vunpack.c.l.s8.bf16 %v624_v37  ;;  %v815_v36 = vld [vmem:[%s6984_s16 + $0xd10] sm:$0xff] }
 0x112   : > { %2200 = vmatprep.subr.bf16.mxu1 %v1248_v53  ;;  %v480_v53 = vld [vmem:[%s6984_s16 + $0x298] sm:$0xff] }
 0x114   : > { %2160 = vmatpush1.bf16.msra.mxu0 %v991_v56  ;;  %v1359_v56 = vunpack.c.l.s8.bf16 %v623_v45 }
 0x115   : > { %2201 = vmatpush1.bf16.msra.mxu1 %v1247_v57  ;;  %2161 = vmatprep.subr.bf16.mxu0 %v976_v58  ;;  %v1088_v57 = vunpack.c.h.s8.bf16 %v480_v53  ;;  %v1344_v58 = vunpack.c.h.s8.bf16 %v608_v54 }
 0x116   : > { %2202 = vmatprep.subr.bf16.mxu1 %v1232_v51  ;;  %v479_v51 = vld [vmem:[%s6984_s16 + $0x290] sm:$0xff] }
 0x117   : > { %v1087_v63 = vunpack.c.h.s8.bf16 %v479_v51  ;;  %v1071_v6 = vunpack.c.l.s8.bf16 %v479_v51  ;;  %v784_v51 = vld [vmem:[%s6984_s16 + $0xc18] sm:$0xff] }
 0x118   : > { %2162 = vmatpush1.bf16.msra.mxu0 %v975_v0  ;;  %v1343_v0 = vunpack.c.h.s8.bf16 %v607_v62 }
 0x119   : > { %2203 = vmatpush1.bf16.msra.mxu1 %v1231_v1  ;;  %2163 = vmatprep.subr.bf16.mxu0 %v960_v3  ;;  %v1072_v1 = vunpack.c.l.s8.bf16 %v480_v53  ;;  %v1328_v3 = vunpack.c.l.s8.bf16 %v608_v54  ;;  %v799_v53 = vld [vmem:[%s6984_s16 + $0xc90] sm:$0xff] }
 0x11a   : > { %2204 = vmatprep.subr.bf16.mxu1 %v1216_v4  ;;  %v464_v4 = vld [vmem:[%s6984_s16 + $0x218] sm:$0xff] }
 0x11c   : > { %2164 = vmatpush1.bf16.msra.mxu0 %v959_v7  ;;  %v1327_v7 = vunpack.c.l.s8.bf16 %v607_v62 }
 0x11d   : > { %2205 = vmatpush1.bf16.msra.mxu1 %v1215_v8  ;;  %2165 = vmatprep.subr.bf16.mxu0 %v944_v9  ;;  %v1056_v8 = vunpack.c.h.s8.bf16 %v464_v4  ;;  %v1312_v9 = vunpack.c.h.s8.bf16 %v592_v5 }
 0x11e   : > { %2206 = vmatprep.subr.bf16.mxu1 %v1200_v10  ;;  %v463_v10 = vld [vmem:[%s6984_s16 + $0x210] sm:$0xff] }
 0x11f   : > { %v1055_v12 = vunpack.c.h.s8.bf16 %v463_v10  ;;  %v1039_v19 = vunpack.c.l.s8.bf16 %v463_v10  ;;  %v896_v10 = vld [vmem:[%s6984_s16 + $0xf98] sm:$0xff] }
 0x120   : > { %2166 = vmatpush1.bf16.msra.mxu0 %v943_v13  ;;  %v1311_v13 = vunpack.c.h.s8.bf16 %v591_v11 }
 0x121   : > { %2207 = vmatpush1.bf16.msra.mxu1 %v1199_v14  ;;  %2167 = vmatprep.subr.bf16.mxu0 %v928_v15  ;;  %v1040_v14 = vunpack.c.l.s8.bf16 %v464_v4  ;;  %v1296_v15 = vunpack.c.l.s8.bf16 %v592_v5  ;;  %v783_v4 = vld [vmem:[%s6984_s16 + $0xc10] sm:$0xff] }
 0x122   : > { %2208 = vmatprep.subr.bf16.mxu1 %v1184_v16  ;;  %v704_v16 = vld [vmem:[%s6984_s16 + $0x998] sm:$0xff] }
 0x124   : > { %2168 = vmatpush1.bf16.msra.mxu0 %v927_v20  ;;  %v1295_v20 = vunpack.c.l.s8.bf16 %v591_v11 }
 0x125   : > { %2209 = vmatpush1.bf16.msra.mxu1 %v1183_v21  ;;  %2169 = vmatprep.subr.bf16.mxu0 %v912_v22  ;;  %v1536_v21 = vunpack.c.h.s8.bf16 %v704_v16  ;;  %v1792_v22 = vunpack.c.h.s8.bf16 %v832_v18 }
 0x126   : > { %2210 = vmatprep.subr.bf16.mxu1 %v1168_v23  ;;  %v703_v23 = vld [vmem:[%s6984_s16 + $0x990] sm:$0xff] }
 0x127   : > { %v1535_v25 = vunpack.c.h.s8.bf16 %v703_v23  ;;  %v1519_v31 = vunpack.c.l.s8.bf16 %v703_v23  ;;  %v880_v23 = vld [vmem:[%s6984_s16 + $0xf18] sm:$0xff] }
 0x128   : > { %2170 = vmatpush1.bf16.msra.mxu0 %v911_v26  ;;  %v1791_v26 = vunpack.c.h.s8.bf16 %v831_v24 }
 0x129   : > { %2211 = vmatpush1.bf16.msra.mxu1 %v1167_v27  ;;  %2171 = vmatprep.subr.bf16.mxu0 %v1152_v28  ;;  %v1520_v27 = vunpack.c.l.s8.bf16 %v704_v16  ;;  %v1776_v28 = vunpack.c.l.s8.bf16 %v832_v18  ;;  %v895_v16 = vld [vmem:[%s6984_s16 + $0xf90] sm:$0xff] }
 0x12a   : > { %2212 = vmatprep.subr.bf16.mxu1 %v1408_v29  ;;  %v688_v29 = vld [vmem:[%s6984_s16 + $0x918] sm:$0xff] }
 0x12c   : > { %2172 = vmatpush2.bf16.msra.mxu0 %v1151_v32  ;;  %v1775_v32 = vunpack.c.l.s8.bf16 %v831_v24 }
 0x12d   : > { %2213 = vmatpush2.bf16.msra.mxu1 %v1407_v33  ;;  %2173 = vmatprep.subr.bf16.mxu0 %v1136_v34  ;;  %v1504_v33 = vunpack.c.h.s8.bf16 %v688_v29  ;;  %v1760_v34 = vunpack.c.h.s8.bf16 %v816_v30 }
 0x12e   : > { %2214 = vmatprep.subr.bf16.mxu1 %v1392_v35  ;;  %v687_v35 = vld [vmem:[%s6984_s16 + $0x910] sm:$0xff] }
 0x12f   : > { %v1503_v37 = vunpack.c.h.s8.bf16 %v687_v35  ;;  %v1487_v45 = vunpack.c.l.s8.bf16 %v687_v35  ;;  %v864_v35 = vld [vmem:[%s6984_s16 + $0xe98] sm:$0xff] }
 0x130   : > { %2174 = vmatpush2.bf16.msra.mxu0 %v1135_v38  ;;  %v1759_v38 = vunpack.c.h.s8.bf16 %v815_v36 }
 0x131   : > { %2215 = vmatpush2.bf16.msra.mxu1 %v1391_v41  ;;  %2175 = vmatprep.subr.bf16.mxu0 %v1120_v42  ;;  %v1488_v41 = vunpack.c.l.s8.bf16 %v688_v29  ;;  %v1744_v42 = vunpack.c.l.s8.bf16 %v816_v30  ;;  %v879_v29 = vld [vmem:[%s6984_s16 + $0xf10] sm:$0xff] }
 0x132   : > { %2216 = vmatprep.subr.bf16.mxu1 %v1376_v43  ;;  %v672_v43 = vld [vmem:[%s6984_s16 + $0x898] sm:$0xff] }
 0x134   : > { %2176 = vmatpush2.bf16.msra.mxu0 %v1119_v46  ;;  %v1743_v46 = vunpack.c.l.s8.bf16 %v815_v36 }
 0x135   : > { %2217 = vmatpush2.bf16.msra.mxu1 %v1375_v47  ;;  %2177 = vmatprep.subr.bf16.mxu0 %v1104_v48  ;;  %v1472_v47 = vunpack.c.h.s8.bf16 %v672_v43  ;;  %v1728_v48 = vunpack.c.h.s8.bf16 %v800_v44 }
 0x136   : > { %2218 = vmatprep.subr.bf16.mxu1 %v1360_v49  ;;  %v671_v49 = vld [vmem:[%s6984_s16 + $0x890] sm:$0xff] }
 0x137   : > { %v1471_v54 = vunpack.c.h.s8.bf16 %v671_v49  ;;  %v1455_v62 = vunpack.c.l.s8.bf16 %v671_v49  ;;  %v848_v49 = vld [vmem:[%s6984_s16 + $0xe18] sm:$0xff] }
 0x138   : > { %2178 = vmatpush2.bf16.msra.mxu0 %v1103_v55  ;;  %v1727_v55 = vunpack.c.h.s8.bf16 %v799_v53 }
 0x139   : > { %2219 = vmatpush2.bf16.msra.mxu1 %v1359_v56  ;;  %2179 = vmatprep.subr.bf16.mxu0 %v1088_v57  ;;  %v1456_v56 = vunpack.c.l.s8.bf16 %v672_v43  ;;  %v1712_v57 = vunpack.c.l.s8.bf16 %v800_v44  ;;  %v863_v43 = vld [vmem:[%s6984_s16 + $0xe90] sm:$0xff] }
 0x13a   : > { %2220 = vmatprep.subr.bf16.mxu1 %v1344_v58  ;;  %v656_v58 = vld [vmem:[%s6984_s16 + $0x818] sm:$0xff] }
 0x13c   : > { %2180 = vmatpush2.bf16.msra.mxu0 %v1087_v63  ;;  %v1711_v63 = vunpack.c.l.s8.bf16 %v799_v53 }
 0x13d   : > { %2221 = vmatpush2.bf16.msra.mxu1 %v1343_v0  ;;  %2181 = vmatprep.subr.bf16.mxu0 %v1072_v1  ;;  %v1440_v0 = vunpack.c.h.s8.bf16 %v656_v58  ;;  %v1696_v1 = vunpack.c.h.s8.bf16 %v784_v51 }
 0x13e   : > { %2222 = vmatprep.subr.bf16.mxu1 %v1328_v3  ;;  %v655_v3 = vld [vmem:[%s6984_s16 + $0x810] sm:$0xff] }
 0x13f   : > { %v1439_v5 = vunpack.c.h.s8.bf16 %v655_v3  ;;  %v1423_v11 = vunpack.c.l.s8.bf16 %v655_v3  ;;  %v578_v3 = vld [vmem:[%s6984_s16 + $0x5a8] sm:$0xff] }
 0x140   : > { %2182 = vmatpush2.bf16.msra.mxu0 %v1071_v6  ;;  %v1695_v6 = vunpack.c.h.s8.bf16 %v783_v4 }
 0x141   : > { %2223 = vmatpush2.bf16.msra.mxu1 %v1327_v7  ;;  %2183 = vmatprep.subr.bf16.mxu0 %v1056_v8  ;;  %v1424_v7 = vunpack.c.l.s8.bf16 %v656_v58  ;;  %v1680_v8 = vunpack.c.l.s8.bf16 %v784_v51  ;;  %v847_v58 = vld [vmem:[%s6984_s16 + $0xe10] sm:$0xff] }
 0x142   : > { %2224 = vmatprep.subr.bf16.mxu1 %v1312_v9  ;;  %v768_v9 = vld [vmem:[%s6984_s16 + $0xb98] sm:$0xff] }
 0x144   : > { %2184 = vmatpush2.bf16.msra.mxu0 %v1055_v12  ;;  %v1679_v12 = vunpack.c.l.s8.bf16 %v783_v4 }
 0x145   : > { %2225 = vmatpush2.bf16.msra.mxu1 %v1311_v13  ;;  %2185 = vmatprep.subr.bf16.mxu0 %v1040_v14  ;;  %v1664_v13 = vunpack.c.h.s8.bf16 %v768_v9  ;;  %v1920_v14 = vunpack.c.h.s8.bf16 %v896_v10 }
 0x146   : > { %2226 = vmatprep.subr.bf16.mxu1 %v1296_v15  ;;  %v767_v15 = vld [vmem:[%s6984_s16 + $0xb90] sm:$0xff] }
 0x147   : > { %v1663_v18 = vunpack.c.h.s8.bf16 %v767_v15  ;;  %v1647_v24 = vunpack.c.l.s8.bf16 %v767_v15  ;;  %v562_v15 = vld [vmem:[%s6984_s16 + $0x528] sm:$0xff] }
 0x148   : > { %2186 = vmatpush2.bf16.msra.mxu0 %v1039_v19  ;;  %v1919_v19 = vunpack.c.h.s8.bf16 %v895_v16 }
 0x149   : > { %2227 = vmatpush2.bf16.msra.mxu1 %v1295_v20  ;;  %2237 = vmatprep.subr.bf16.mxu0 %v1536_v21  ;;  %v1648_v20 = vunpack.c.l.s8.bf16 %v768_v9  ;;  %v1904_v21 = vunpack.c.l.s8.bf16 %v896_v10  ;;  %v577_v9 = vld [vmem:[%s6984_s16 + $0x5a0] sm:$0xff] }
 0x14a   : > { %2278 = vmatprep.subr.bf16.mxu1 %v1792_v22  ;;  %v752_v22 = vld [vmem:[%s6984_s16 + $0xb18] sm:$0xff] }
 0x14b   : > { %2188 = vmatmul.mubr.bf16.vlgmr.msra.gmra.mxu0 %v7072_v52 }
 0x14c   : > { %2229 = vmatmul.mubr.bf16.vlgmr.msra.gmra.mxu1 %v7081_v61  ;;  %2238 = vmatpush1.bf16.msra.mxu0 %v1535_v25  ;;  %v1903_v25 = vunpack.c.l.s8.bf16 %v895_v16 }
 0x14d   : > { %2279 = vmatpush1.bf16.msra.mxu1 %v1791_v26  ;;  %2239 = vmatprep.subr.bf16.mxu0 %v1520_v27  ;;  %v1632_v26 = vunpack.c.h.s8.bf16 %v752_v22  ;;  %v1888_v27 = vunpack.c.h.s8.bf16 %v880_v23 }
 0x14e   : > { %2280 = vmatprep.subr.bf16.mxu1 %v1776_v28  ;;  %2269 = vmatprep.mubr.bf16.mxu0 %v7077_v60  ;;  %v751_v28 = vld [vmem:[%s6984_s16 + $0xb10] sm:$0xff] }
 0x14f   : > { %2310 = vmatprep.mubr.bf16.mxu1 %v7087_v50  ;;  %v1631_v30 = vunpack.c.h.s8.bf16 %v751_v28  ;;  %v1615_v36 = vunpack.c.l.s8.bf16 %v751_v28 }
 0x150   : > { %2240 = vmatpush1.bf16.msra.mxu0 %v1519_v31  ;;  %v1887_v31 = vunpack.c.h.s8.bf16 %v879_v29 }
 0x151   : > { %2281 = vmatpush1.bf16.msra.mxu1 %v1775_v32  ;;  %2241 = vmatprep.subr.bf16.mxu0 %v1504_v33  ;;  %v1616_v32 = vunpack.c.l.s8.bf16 %v752_v22  ;;  %v1872_v33 = vunpack.c.l.s8.bf16 %v880_v23 }
 0x152   : > { %2282 = vmatprep.subr.bf16.mxu1 %v1760_v34  ;;  %v736_v34 = vld [vmem:[%s6984_s16 + $0xa98] sm:$0xff] }
 0x154   : > { %2242 = vmatpush1.bf16.msra.mxu0 %v1503_v37  ;;  %v1871_v37 = vunpack.c.l.s8.bf16 %v879_v29 }
 0x155   : > { %2283 = vmatpush1.bf16.msra.mxu1 %v1759_v38  ;;  %2243 = vmatprep.subr.bf16.mxu0 %v1488_v41  ;;  %v1600_v38 = vunpack.c.h.s8.bf16 %v736_v34  ;;  %v1856_v41 = vunpack.c.h.s8.bf16 %v864_v35 }
 0x156   : > { %2284 = vmatprep.subr.bf16.mxu1 %v1744_v42  ;;  %v735_v42 = vld [vmem:[%s6984_s16 + $0xa90] sm:$0xff] }
 0x157   : > { %v1599_v44 = vunpack.c.h.s8.bf16 %v735_v42  ;;  %v1583_v53 = vunpack.c.l.s8.bf16 %v735_v42 }
 0x158   : > { %2244 = vmatpush1.bf16.msra.mxu0 %v1487_v45  ;;  %v1855_v45 = vunpack.c.h.s8.bf16 %v863_v43 }
 0x159   : > { %2285 = vmatpush1.bf16.msra.mxu1 %v1743_v46  ;;  %2245 = vmatprep.subr.bf16.mxu0 %v1472_v47  ;;  %v1584_v46 = vunpack.c.l.s8.bf16 %v736_v34  ;;  %v1840_v47 = vunpack.c.l.s8.bf16 %v864_v35 }
 0x15a   : > { %2286 = vmatprep.subr.bf16.mxu1 %v1728_v48  ;;  %v720_v48 = vld [vmem:[%s6984_s16 + $0xa18] sm:$0xff] }
 0x15c   : > { %2246 = vmatpush1.bf16.msra.mxu0 %v1471_v54  ;;  %v1839_v54 = vunpack.c.l.s8.bf16 %v863_v43 }
 0x15d   : > { %2287 = vmatpush1.bf16.msra.mxu1 %v1727_v55  ;;  %2247 = vmatprep.subr.bf16.mxu0 %v1456_v56  ;;  %v1568_v55 = vunpack.c.h.s8.bf16 %v720_v48  ;;  %v1824_v56 = vunpack.c.h.s8.bf16 %v848_v49 }
 0x15e   : > { %2288 = vmatprep.subr.bf16.mxu1 %v1712_v57  ;;  %v719_v57 = vld [vmem:[%s6984_s16 + $0xa10] sm:$0xff] }
 0x15f   : > { %v1567_v51 = vunpack.c.h.s8.bf16 %v719_v57  ;;  %v1551_v4 = vunpack.c.l.s8.bf16 %v719_v57 }
 0x160   : > { %2248 = vmatpush1.bf16.msra.mxu0 %v1455_v62  ;;  %v1823_v62 = vunpack.c.h.s8.bf16 %v847_v58 }
 0x161   : > { %2289 = vmatpush1.bf16.msra.mxu1 %v1711_v63  ;;  %2249 = vmatprep.subr.bf16.mxu0 %v1440_v0  ;;  %v1552_v63 = vunpack.c.l.s8.bf16 %v720_v48  ;;  %v1808_v0 = vunpack.c.l.s8.bf16 %v848_v49 }
 0x162   : > { %2290 = vmatprep.subr.bf16.mxu1 %v1696_v1  ;;  %v450_v1 = vld [vmem:[%s6984_s16 + $0x1a8] sm:$0xff] }
 0x164   : > { %2250 = vmatpush1.bf16.msra.mxu0 %v1439_v5  ;;  %v1807_v5 = vunpack.c.l.s8.bf16 %v847_v58 }
 0x165   : > { %2291 = vmatpush1.bf16.msra.mxu1 %v1695_v6  ;;  %2251 = vmatprep.subr.bf16.mxu0 %v1424_v7  ;;  %v1026_v6 = vunpack.c.h.s8.bf16 %v450_v1  ;;  %v1282_v7 = vunpack.c.h.s8.bf16 %v578_v3 }
 0x166   : > { %2292 = vmatprep.subr.bf16.mxu1 %v1680_v8  ;;  %v449_v8 = vld [vmem:[%s6984_s16 + $0x1a0] sm:$0xff] }
 0x167   : > { %v1025_v10 = vunpack.c.h.s8.bf16 %v449_v8 }
 0x168   : > { %2252 = vmatpush1.bf16.msra.mxu0 %v1423_v11  ;;  %v1281_v11 = vunpack.c.h.s8.bf16 %v577_v9 }
 0x169   : > { %2293 = vmatpush1.bf16.msra.mxu1 %v1679_v12  ;;  %2253 = vmatprep.subr.bf16.mxu0 %v1664_v13  ;;  %v1010_v12 = vunpack.c.l.s8.bf16 %v450_v1  ;;  %v1266_v13 = vunpack.c.l.s8.bf16 %v578_v3 }
 0x16a   : > { %2294 = vmatprep.subr.bf16.mxu1 %v1920_v14  ;;  %v434_v14 = vld [vmem:[%s6984_s16 + $0x128] sm:$0xff] }
 0x16b   : > { %v978_v35 = vunpack.c.l.s8.bf16 %v434_v14 }
 0x16c   : > { %2254 = vmatpush2.bf16.msra.mxu0 %v1663_v18 }
 0x16d   : > { %2295 = vmatpush2.bf16.msra.mxu1 %v1919_v19  ;;  %2255 = vmatprep.subr.bf16.mxu0 %v1648_v20  ;;  %v1009_v20 = vunpack.c.l.s8.bf16 %v449_v8 }
 0x16e   : > { %2296 = vmatprep.subr.bf16.mxu1 %v1904_v21  ;;  %v1265_v21 = vunpack.c.l.s8.bf16 %v577_v9 }
 0x170   : > { %2256 = vmatpush2.bf16.msra.mxu0 %v1647_v24  ;;  %v994_v24 = vunpack.c.h.s8.bf16 %v434_v14 }
 0x171   : > { %2297 = vmatpush2.bf16.msra.mxu1 %v1903_v25  ;;  %2257 = vmatprep.subr.bf16.mxu0 %v1632_v26  ;;  %v1250_v25 = vunpack.c.h.s8.bf16 %v562_v15  ;;  %v433_v26 = vld [vmem:[%s6984_s16 + $0x120] sm:$0xff] }
 0x172   : > { %2298 = vmatprep.subr.bf16.mxu1 %v1888_v27  ;;  %v561_v27 = vld [vmem:[%s6984_s16 + $0x520] sm:$0xff] }
 0x173   : > { %v1233_v42 = vunpack.c.l.s8.bf16 %v561_v27 }
 0x174   : > { %2258 = vmatpush2.bf16.msra.mxu0 %v1631_v30 }
 0x175   : > { %2299 = vmatpush2.bf16.msra.mxu1 %v1887_v31  ;;  %2259 = vmatprep.subr.bf16.mxu0 %v1616_v32  ;;  %v993_v31 = vunpack.c.h.s8.bf16 %v433_v26  ;;  %v1249_v32 = vunpack.c.h.s8.bf16 %v561_v27 }
 0x176   : > { %2300 = vmatprep.subr.bf16.mxu1 %v1872_v33 }
 0x178   : > { %2260 = vmatpush2.bf16.msra.mxu0 %v1615_v36  ;;  %v1234_v36 = vunpack.c.l.s8.bf16 %v562_v15 }
 0x179   : > { %2301 = vmatpush2.bf16.msra.mxu1 %v1871_v37  ;;  %2261 = vmatprep.subr.bf16.mxu0 %v1600_v38  ;;  %v418_v37 = vld [vmem:[%s6984_s16 + $0xa8] sm:$0xff] }
 0x17a   : > { %2302 = vmatprep.subr.bf16.mxu1 %v1856_v41  ;;  %v546_v38 = vld [vmem:[%s6984_s16 + $0x4a8] sm:$0xff]  ;;  %v977_v41 = vunpack.c.l.s8.bf16 %v433_v26  ;;  %v962_v43 = vunpack.c.h.s8.bf16 %v418_v37  ;;  %v946_v49 = vunpack.c.l.s8.bf16 %v418_v37  ;;  %v625_v26 = vld [vmem:[%s6984_s16 + $0x720] sm:$0xff] }
 0x17c   : > { %2262 = vmatpush2.bf16.msra.mxu0 %v1599_v44  ;;  %v1218_v44 = vunpack.c.h.s8.bf16 %v546_v38 }
 0x17d   : > { %2303 = vmatpush2.bf16.msra.mxu1 %v1855_v45  ;;  %2263 = vmatprep.subr.bf16.mxu0 %v1584_v46  ;;  %v417_v45 = vld [vmem:[%s6984_s16 + $0xa0] sm:$0xff] }
 0x17e   : > { %2304 = vmatprep.subr.bf16.mxu1 %v1840_v47  ;;  %v545_v46 = vld [vmem:[%s6984_s16 + $0x4a0] sm:$0xff]  ;;  %v961_v47 = vunpack.c.h.s8.bf16 %v417_v45 }
 0x17f   : > { %v1217_v48 = vunpack.c.h.s8.bf16 %v545_v46  ;;  %v1201_v57 = vunpack.c.l.s8.bf16 %v545_v46  ;;  %v466_v46 = vld [vmem:[%s6984_s16 + $0x228] sm:$0xff] }
 0x180   : > { %2264 = vmatpush2.bf16.msra.mxu0 %v1583_v53  ;;  %v1202_v53 = vunpack.c.l.s8.bf16 %v546_v38  ;;  %v481_v38 = vld [vmem:[%s6984_s16 + $0x2a0] sm:$0xff] }
 0x181   : > { %2305 = vmatpush2.bf16.msra.mxu1 %v1839_v54  ;;  %2265 = vmatprep.subr.bf16.mxu0 %v1568_v55  ;;  %v402_v54 = vld [vmem:[%s6984_s16 + $0x28] sm:$0xff] }
 0x182   : > { %2306 = vmatprep.subr.bf16.mxu1 %v1824_v56  ;;  %v530_v55 = vld [vmem:[%s6984_s16 + $0x428] sm:$0xff]  ;;  %v945_v56 = vunpack.c.l.s8.bf16 %v417_v45  ;;  %v930_v58 = vunpack.c.h.s8.bf16 %v402_v54  ;;  %v914_v3 = vunpack.c.l.s8.bf16 %v402_v54 }
 0x184   : > { %2266 = vmatpush2.bf16.msra.mxu0 %v1567_v51  ;;  %v1186_v51 = vunpack.c.h.s8.bf16 %v530_v55 }
 0x185   : > { %2307 = vmatpush2.bf16.msra.mxu1 %v1823_v62  ;;  %2267 = vmatprep.subr.bf16.mxu0 %v1552_v63  ;;  %v401_v62 = vld [vmem:[%s6984_s16 + $0x20] sm:$0xff] }
 0x186   : > { %2308 = vmatprep.subr.bf16.mxu1 %v1808_v0  ;;  %v529_v63 = vld [vmem:[%s6984_s16 + $0x420] sm:$0xff]  ;;  %v929_v0 = vunpack.c.h.s8.bf16 %v401_v62 }
 0x187   : > { %v1185_v1 = vunpack.c.h.s8.bf16 %v529_v63  ;;  %v1169_v8 = vunpack.c.l.s8.bf16 %v529_v63  ;;  %v706_v63 = vld [vmem:[%s6984_s16 + $0x9a8] sm:$0xff] }
 0x188   : > { %2268 = vmatpush2.bf16.msra.mxu0 %v1551_v4  ;;  %v1170_v4 = vunpack.c.l.s8.bf16 %v530_v55  ;;  %v465_v55 = vld [vmem:[%s6984_s16 + $0x220] sm:$0xff] }
 0x189   : > { %2309 = vmatpush2.bf16.msra.mxu1 %v1807_v5  ;;  %2319 = vmatprep.subr.bf16.mxu0 %v1026_v6  ;;  %v514_v5 = vld [vmem:[%s6984_s16 + $0x3a8] sm:$0xff] }
 0x18a   : > { %2360 = vmatprep.subr.bf16.mxu1 %v1282_v7  ;;  %v642_v6 = vld [vmem:[%s6984_s16 + $0x7a8] sm:$0xff]  ;;  %v913_v7 = vunpack.c.l.s8.bf16 %v401_v62  ;;  %v1154_v9 = vunpack.c.h.s8.bf16 %v514_v5  ;;  %v1138_v15 = vunpack.c.l.s8.bf16 %v514_v5 }
 0x18b   : > { %v2025_v16 = vpop.f32.mrf.mxu0  ;;  %2270 = vmatmul.mubr.bf16.vlgmr.msra.gmra.mxu0 %v7056_v17 }
 0x18c   : > { %v2066_v18 = vpop.f32.mrf.mxu1  ;;  %2311 = vmatmul.mubr.bf16.vlgmr.msra.gmra.mxu1 %v7125_v40  ;;  %2320 = vmatpush1.bf16.msra.mxu0 %v1025_v10  ;;  %v1410_v10 = vunpack.c.h.s8.bf16 %v642_v6 }
 0x18d   : > { %v7203_v19 = vadd.f32 %v2066_v18, %v2025_v16  ;;  %2361 = vmatpush1.bf16.msra.mxu1 %v1281_v11  ;;  %v2027_v22 = vpop.f32.mrf.mxu0  ;;  %2321 = vmatprep.subr.bf16.mxu0 %v1010_v12  ;;  %v513_v11 = vld [vmem:[%s6984_s16 + $0x3a0] sm:$0xff]  ;;  %v1394_v16 = vunpack.c.l.s8.bf16 %v642_v6  ;;  %v498_v18 = vld [vmem:[%s6984_s16 + $0x328] sm:$0xff] }
 0x18e   : > { %v2068_v23 = vpop.f32.mrf.mxu1  ;;  %2362 = vmatprep.subr.bf16.mxu1 %v1266_v13  ;;  %2351 = vmatprep.mubr.bf16.mxu0 %v7037_v59  ;;  %v641_v12 = vld [vmem:[%s6984_s16 + $0x7a0] sm:$0xff]  ;;  %v1153_v13 = vunpack.c.h.s8.bf16 %v513_v11 }
 0x18f   : > { %v7207_v28 = vadd.f32 %v2068_v23, %v2027_v22  ;;  %2392 = vmatprep.mubr.bf16.mxu1 %v7043_v2  ;;  %v2029_v29 = vpop.f32.mrf.mxu0  ;;  %v1409_v14 = vunpack.c.h.s8.bf16 %v641_v12  ;;  %v1393_v22 = vunpack.c.l.s8.bf16 %v641_v12  ;;  %v1122_v23 = vunpack.c.h.s8.bf16 %v498_v18  ;;  %v705_v6 = vld [vmem:[%s6984_s16 + $0x9a0] sm:$0xff]  ;;  %v690_v12 = vld [vmem:[%s6984_s16 + $0x928] sm:$0xff] }
 0x190   : > { %v2070_v30 = vpop.f32.mrf.mxu1  ;;  %2322 = vmatpush1.bf16.msra.mxu0 %v1009_v20  ;;  %v626_v20 = vld [vmem:[%s6984_s16 + $0x728] sm:$0xff]  ;;  %v1377_v29 = vunpack.c.h.s8.bf16 %v625_v26 }
 0x191   : > { %2363 = vmatpush1.bf16.msra.mxu1 %v1265_v21  ;;  %v2030_v33 = vpop.f32.mrf.mxu0  ;;  %2323 = vmatprep.subr.bf16.mxu0 %v994_v24  ;;  %v1137_v21 = vunpack.c.l.s8.bf16 %v513_v11  ;;  %v1378_v24 = vunpack.c.h.s8.bf16 %v626_v20  ;;  %v1106_v30 = vunpack.c.l.s8.bf16 %v498_v18  ;;  %v1521_v18 = vunpack.c.l.s8.bf16 %v705_v6 }
 0x192   : > { %v2071_v34 = vpop.f32.mrf.mxu1  ;;  %2364 = vmatprep.subr.bf16.mxu1 %v1250_v25  ;;  %v497_v25 = vld [vmem:[%s6984_s16 + $0x320] sm:$0xff]  ;;  %v610_v33 = vld [vmem:[%s6984_s16 + $0x6a8] sm:$0xff] }
 0x193   : > { %v1121_v27 = vunpack.c.h.s8.bf16 %v497_v25  ;;  %v1105_v34 = vunpack.c.l.s8.bf16 %v497_v25  ;;  %v1346_v37 = vunpack.c.h.s8.bf16 %v610_v33  ;;  %v1330_v45 = vunpack.c.l.s8.bf16 %v610_v33  ;;  %v689_v25 = vld [vmem:[%s6984_s16 + $0x920] sm:$0xff] }
 0x194   : > { %2324 = vmatpush1.bf16.msra.mxu0 %v993_v31  ;;  %v1362_v31 = vunpack.c.l.s8.bf16 %v626_v20 }
 0x195   : > { %2365 = vmatpush1.bf16.msra.mxu1 %v1249_v32  ;;  %2325 = vmatprep.subr.bf16.mxu0 %v978_v35  ;;  %v482_v32 = vld [vmem:[%s6984_s16 + $0x2a8] sm:$0xff]  ;;  %v1361_v35 = vunpack.c.l.s8.bf16 %v625_v26  ;;  %v817_v26 = vld [vmem:[%s6984_s16 + $0xd20] sm:$0xff] }
 0x196   : > { %2366 = vmatprep.subr.bf16.mxu1 %v1234_v36  ;;  %v1090_v36 = vunpack.c.h.s8.bf16 %v482_v32  ;;  %v1761_v33 = vunpack.c.h.s8.bf16 %v817_v26 }
 0x198   : > { %2326 = vmatpush1.bf16.msra.mxu0 %v977_v41  ;;  %v609_v41 = vld [vmem:[%s6984_s16 + $0x6a0] sm:$0xff] }
 0x199   : > { %2367 = vmatpush1.bf16.msra.mxu1 %v1233_v42  ;;  %2327 = vmatprep.subr.bf16.mxu0 %v962_v43  ;;  %v1089_v42 = vunpack.c.h.s8.bf16 %v481_v38  ;;  %v1345_v43 = vunpack.c.h.s8.bf16 %v609_v41 }
 0x19a   : > { %2368 = vmatprep.subr.bf16.mxu1 %v1218_v44  ;;  %v1074_v44 = vunpack.c.l.s8.bf16 %v482_v32  ;;  %v1505_v32 = vunpack.c.h.s8.bf16 %v689_v25 }
 0x19c   : > { %2328 = vmatpush1.bf16.msra.mxu0 %v961_v47  ;;  %v594_v47 = vld [vmem:[%s6984_s16 + $0x628] sm:$0xff] }
 0x19d   : > { %2369 = vmatpush1.bf16.msra.mxu1 %v1217_v48  ;;  %2329 = vmatprep.subr.bf16.mxu0 %v946_v49  ;;  %v1073_v48 = vunpack.c.l.s8.bf16 %v481_v38  ;;  %v1329_v49 = vunpack.c.l.s8.bf16 %v609_v41  ;;  %v1314_v54 = vunpack.c.h.s8.bf16 %v594_v47  ;;  %v1298_v62 = vunpack.c.l.s8.bf16 %v594_v47  ;;  %v674_v38 = vld [vmem:[%s6984_s16 + $0x8a8] sm:$0xff]  ;;  %v801_v47 = vld [vmem:[%s6984_s16 + $0xca0] sm:$0xff] }
 0x19e   : > { %2370 = vmatprep.subr.bf16.mxu1 %v1202_v53  ;;  %v1058_v53 = vunpack.c.h.s8.bf16 %v466_v46  ;;  %v802_v41 = vld [vmem:[%s6984_s16 + $0xca8] sm:$0xff] }
 0x1a0   : > { %2330 = vmatpush1.bf16.msra.mxu0 %v945_v56  ;;  %v593_v56 = vld [vmem:[%s6984_s16 + $0x620] sm:$0xff] }
 0x1a1   : > { %2371 = vmatpush1.bf16.msra.mxu1 %v1201_v57  ;;  %2331 = vmatprep.subr.bf16.mxu0 %v930_v58  ;;  %v1057_v57 = vunpack.c.h.s8.bf16 %v465_v55  ;;  %v1313_v58 = vunpack.c.h.s8.bf16 %v593_v56 }
 0x1a2   : > { %2372 = vmatprep.subr.bf16.mxu1 %v1186_v51  ;;  %v1042_v51 = vunpack.c.l.s8.bf16 %v466_v46  ;;  %v673_v46 = vld [vmem:[%s6984_s16 + $0x8a0] sm:$0xff] }
 0x1a4   : > { %2332 = vmatpush1.bf16.msra.mxu0 %v929_v0  ;;  %v834_v0 = vld [vmem:[%s6984_s16 + $0xda8] sm:$0xff] }
 0x1a5   : > { %2373 = vmatpush1.bf16.msra.mxu1 %v1185_v1  ;;  %2333 = vmatprep.subr.bf16.mxu0 %v914_v3  ;;  %v1041_v1 = vunpack.c.l.s8.bf16 %v465_v55  ;;  %v1297_v3 = vunpack.c.l.s8.bf16 %v593_v56  ;;  %v1794_v5 = vunpack.c.h.s8.bf16 %v834_v0  ;;  %v1778_v11 = vunpack.c.l.s8.bf16 %v834_v0  ;;  %v658_v55 = vld [vmem:[%s6984_s16 + $0x828] sm:$0xff]  ;;  %v785_v0 = vld [vmem:[%s6984_s16 + $0xc20] sm:$0xff] }
 0x1a6   : > { %2374 = vmatprep.subr.bf16.mxu1 %v1170_v4  ;;  %v1538_v4 = vunpack.c.h.s8.bf16 %v706_v63  ;;  %v786_v56 = vld [vmem:[%s6984_s16 + $0xc28] sm:$0xff] }
 0x1a8   : > { %2334 = vmatpush1.bf16.msra.mxu0 %v913_v7  ;;  %v833_v7 = vld [vmem:[%s6984_s16 + $0xda0] sm:$0xff] }
 0x1a9   : > { %2375 = vmatpush1.bf16.msra.mxu1 %v1169_v8  ;;  %2335 = vmatprep.subr.bf16.mxu0 %v1154_v9  ;;  %v1537_v8 = vunpack.c.h.s8.bf16 %v705_v6  ;;  %v1793_v9 = vunpack.c.h.s8.bf16 %v833_v7  ;;  %v1777_v20 = vunpack.c.l.s8.bf16 %v833_v7  ;;  %v770_v6 = vld [vmem:[%s6984_s16 + $0xba8] sm:$0xff] }
 0x1aa   : > { %2376 = vmatprep.subr.bf16.mxu1 %v1410_v10  ;;  %v1522_v10 = vunpack.c.l.s8.bf16 %v706_v63  ;;  %v657_v63 = vld [vmem:[%s6984_s16 + $0x820] sm:$0xff]  ;;  %v898_v7 = vld [vmem:[%s6984_s16 + $0xfa8] sm:$0xff] }
 0x1ac   : > { %2336 = vmatpush2.bf16.msra.mxu0 %v1153_v13  ;;  %v818_v13 = vld [vmem:[%s6984_s16 + $0xd28] sm:$0xff] }
 0x1ad   : > { %2377 = vmatpush2.bf16.msra.mxu1 %v1409_v14  ;;  %2337 = vmatprep.subr.bf16.mxu0 %v1138_v15 }
 0x1ae   : > { %2378 = vmatprep.subr.bf16.mxu1 %v1394_v16 }
 0x1b0   : > { %2338 = vmatpush2.bf16.msra.mxu0 %v1137_v21 }
 0x1b1   : > { %2379 = vmatpush2.bf16.msra.mxu1 %v1393_v22  ;;  %2339 = vmatprep.subr.bf16.mxu0 %v1122_v23  ;;  %v1506_v23 = vunpack.c.h.s8.bf16 %v690_v12 }
 0x1b2   : > { %2380 = vmatprep.subr.bf16.mxu1 %v1378_v24  ;;  %v1762_v24 = vunpack.c.h.s8.bf16 %v818_v13 }
 0x1b4   : > { %2340 = vmatpush2.bf16.msra.mxu0 %v1121_v27 }
 0x1b5   : > { %2381 = vmatpush2.bf16.msra.mxu1 %v1377_v29  ;;  %2341 = vmatprep.subr.bf16.mxu0 %v1106_v30 }
 0x1b6   : > { %2382 = vmatprep.subr.bf16.mxu1 %v1362_v31 }
 0x1b8   : > { %2342 = vmatpush2.bf16.msra.mxu0 %v1105_v34 }
 0x1b9   : > { %2383 = vmatpush2.bf16.msra.mxu1 %v1361_v35  ;;  %2343 = vmatprep.subr.bf16.mxu0 %v1090_v36  ;;  %v1746_v36 = vunpack.c.l.s8.bf16 %v818_v13  ;;  %v897_v13 = vld [vmem:[%s6984_s16 + $0xfa0] sm:$0xff] }
 0x1ba   : > { %2384 = vmatprep.subr.bf16.mxu1 %v1346_v37 }
 0x1bc   : > { %2344 = vmatpush2.bf16.msra.mxu0 %v1089_v42  ;;  %v1489_v42 = vunpack.c.l.s8.bf16 %v689_v25 }
 0x1bd   : > { %2385 = vmatpush2.bf16.msra.mxu1 %v1345_v43  ;;  %2345 = vmatprep.subr.bf16.mxu0 %v1074_v44  ;;  %v1745_v43 = vunpack.c.l.s8.bf16 %v817_v26  ;;  %v1474_v44 = vunpack.c.h.s8.bf16 %v674_v38  ;;  %v753_v26 = vld [vmem:[%s6984_s16 + $0xb20] sm:$0xff] }
 0x1be   : > { %2386 = vmatprep.subr.bf16.mxu1 %v1330_v45  ;;  %v1730_v45 = vunpack.c.h.s8.bf16 %v802_v41 }
 0x1c0   : > { %2346 = vmatpush2.bf16.msra.mxu0 %v1073_v48  ;;  %v1473_v48 = vunpack.c.h.s8.bf16 %v673_v46 }
 0x1c1   : > { %2387 = vmatpush2.bf16.msra.mxu1 %v1329_v49  ;;  %2347 = vmatprep.subr.bf16.mxu0 %v1058_v53  ;;  %v1729_v49 = vunpack.c.h.s8.bf16 %v801_v47  ;;  %v1458_v53 = vunpack.c.l.s8.bf16 %v674_v38 }
 0x1c2   : > { %2388 = vmatprep.subr.bf16.mxu1 %v1314_v54  ;;  %v1714_v54 = vunpack.c.l.s8.bf16 %v802_v41 }
 0x1c4   : > { %2348 = vmatpush2.bf16.msra.mxu0 %v1057_v57  ;;  %v1457_v57 = vunpack.c.l.s8.bf16 %v673_v46 }
 0x1c5   : > { %2389 = vmatpush2.bf16.msra.mxu1 %v1313_v58  ;;  %2349 = vmatprep.subr.bf16.mxu0 %v1042_v51  ;;  %v1713_v58 = vunpack.c.l.s8.bf16 %v801_v47  ;;  %v1442_v51 = vunpack.c.h.s8.bf16 %v658_v55 }
 0x1c6   : > { %2390 = vmatprep.subr.bf16.mxu1 %v1298_v62  ;;  %v1698_v62 = vunpack.c.h.s8.bf16 %v786_v56 }
 0x1c8   : > { %2350 = vmatpush2.bf16.msra.mxu0 %v1041_v1  ;;  %v1441_v1 = vunpack.c.h.s8.bf16 %v657_v63 }
 0x1c9   : > { %2391 = vmatpush2.bf16.msra.mxu1 %v1297_v3  ;;  %2401 = vmatprep.subr.bf16.mxu0 %v1538_v4  ;;  %v1697_v3 = vunpack.c.h.s8.bf16 %v785_v0  ;;  %v1426_v4 = vunpack.c.l.s8.bf16 %v658_v55 }
 0x1ca   : > { %2442 = vmatprep.subr.bf16.mxu1 %v1794_v5  ;;  %v1682_v5 = vunpack.c.l.s8.bf16 %v786_v56 }
 0x1cb   : > { %v2107_v14 = vpop.f32.mrf.mxu0  ;;  %2352 = vmatmul.mubr.bf16.vlgmr.msra.gmra.mxu0 %v7072_v52 }
 0x1cc   : > { %v2148_v15 = vpop.f32.mrf.mxu1  ;;  %2393 = vmatmul.mubr.bf16.vlgmr.msra.gmra.mxu1 %v7081_v61  ;;  %v2108_v16 = vadd.f32 %v2107_v14, %v7203_v19  ;;  %2402 = vmatpush1.bf16.msra.mxu0 %v1537_v8  ;;  %v1425_v8 = vunpack.c.l.s8.bf16 %v657_v63 }
 0x1cd   : > { %2443 = vmatpush1.bf16.msra.mxu1 %v1793_v9  ;;  %v2109_v21 = vpop.f32.mrf.mxu0  ;;  %2403 = vmatprep.subr.bf16.mxu0 %v1522_v10  ;;  %v1681_v9 = vunpack.c.l.s8.bf16 %v785_v0  ;;  %v1666_v10 = vunpack.c.h.s8.bf16 %v770_v6 }
 0x1ce   : > { %v2150_v22 = vpop.f32.mrf.mxu1  ;;  %2444 = vmatprep.subr.bf16.mxu1 %v1778_v11  ;;  %v7246_v27 = vadd.f32 %v2148_v15, %v2108_v16  ;;  %v2110_v29 = vadd.f32 %v2109_v21, %v7207_v28  ;;  %2433 = vmatprep.mubr.bf16.mxu0 %v7077_v60  ;;  %v1490_v28 = vunpack.c.l.s8.bf16 %v690_v12  ;;  %v1922_v11 = vunpack.c.h.s8.bf16 %v898_v7  ;;  %v769_v12 = vld [vmem:[%s6984_s16 + $0xba0] sm:$0xff]  ;;  %v882_v21 = vld [vmem:[%s6984_s16 + $0xf28] sm:$0xff] }
 0x1cf   : > { %2474 = vmatprep.mubr.bf16.mxu1 %v7087_v50  ;;  %v2111_v19 = vpop.f32.mrf.mxu0  ;;  %v1665_v14 = vunpack.c.h.s8.bf16 %v769_v12  ;;  %v1921_v15 = vunpack.c.h.s8.bf16 %v897_v13  ;;  %v1650_v16 = vunpack.c.l.s8.bf16 %v770_v6  ;;  %v1890_v25 = vunpack.c.h.s8.bf16 %v882_v21 }
 0x1d0   : > { %v2152_v30 = vpop.f32.mrf.mxu1  ;;  %v7251_v31 = vadd.f32 %v2150_v22, %v2110_v29  ;;  %2404 = vmatpush1.bf16.msra.mxu0 %v1521_v18  ;;  %v1906_v18 = vunpack.c.l.s8.bf16 %v898_v7  ;;  %v1649_v22 = vunpack.c.l.s8.bf16 %v769_v12  ;;  %v881_v29 = vld [vmem:[%s6984_s16 + $0xf20] sm:$0xff]  ;;  %v1633_v19 = vunpack.c.h.s8.bf16 %v753_v26 }
 0x1d1   : > { %2445 = vmatpush1.bf16.msra.mxu1 %v1777_v20  ;;  %v2112_v34 = vpop.f32.mrf.mxu0  ;;  %2405 = vmatprep.subr.bf16.mxu0 %v1506_v23  ;;  %v754_v20 = vld [vmem:[%s6984_s16 + $0xb28] sm:$0xff]  ;;  %v1905_v23 = vunpack.c.l.s8.bf16 %v897_v13  ;;  %v1889_v30 = vunpack.c.h.s8.bf16 %v881_v29 }
 0x1d2   : > { %v2153_v35 = vpop.f32.mrf.mxu1  ;;  %2446 = vmatprep.subr.bf16.mxu1 %v1762_v24  ;;  %v3319_v37 = vcombine.low %v7246_v27, %v7251_v31  ;;  %v1634_v24 = vunpack.c.h.s8.bf16 %v754_v20  ;;  %v738_v34 = vld [vmem:[%s6984_s16 + $0xaa8] sm:$0xff] }
 0x1d3   : > { %v866_v35 = vld [vmem:[%s6984_s16 + $0xea8] sm:$0xff]  ;;  %v1602_v38 = vunpack.c.h.s8.bf16 %v738_v34  ;;  %v1586_v46 = vunpack.c.l.s8.bf16 %v738_v34 }
 0x1d4   : > { %2406 = vmatpush1.bf16.msra.mxu0 %v1505_v32  ;;  %v1618_v32 = vunpack.c.l.s8.bf16 %v754_v20  ;;  %v1858_v41 = vunpack.c.h.s8.bf16 %v866_v35  ;;  %v1842_v47 = vunpack.c.l.s8.bf16 %v866_v35 }
 0x1d5   : > { %2447 = vmatpush1.bf16.msra.mxu1 %v1761_v33  ;;  %2407 = vmatprep.subr.bf16.mxu0 %v1490_v28  ;;  %v1874_v33 = vunpack.c.l.s8.bf16 %v882_v21  ;;  %v1617_v28 = vunpack.c.l.s8.bf16 %v753_v26 }
 0x1d6   : > { %2448 = vmatprep.subr.bf16.mxu1 %v1746_v36  ;;  %v1873_v36 = vunpack.c.l.s8.bf16 %v881_v29  ;;  %v435_v29 = vld [vmem:[%s6984_s16 + $0x130] sm:$0xff] }
 0x1d8   : > { %2408 = vmatpush1.bf16.msra.mxu0 %v1489_v42  ;;  %v737_v42 = vld [vmem:[%s6984_s16 + $0xaa0] sm:$0xff] }
 0x1d9   : > { %2449 = vmatpush1.bf16.msra.mxu1 %v1745_v43  ;;  %2409 = vmatprep.subr.bf16.mxu0 %v1474_v44  ;;  %v865_v43 = vld [vmem:[%s6984_s16 + $0xea0] sm:$0xff]  ;;  %v1601_v44 = vunpack.c.h.s8.bf16 %v737_v42 }
 0x1da   : > { %2450 = vmatprep.subr.bf16.mxu1 %v1730_v45  ;;  %v1857_v45 = vunpack.c.h.s8.bf16 %v865_v43 }
 0x1dc   : > { %2410 = vmatpush1.bf16.msra.mxu0 %v1473_v48  ;;  %v722_v48 = vld [vmem:[%s6984_s16 + $0xa28] sm:$0xff] }
 0x1dd   : > { %2451 = vmatpush1.bf16.msra.mxu1 %v1729_v49  ;;  %2411 = vmatprep.subr.bf16.mxu0 %v1458_v53  ;;  %v850_v49 = vld [vmem:[%s6984_s16 + $0xe28] sm:$0xff]  ;;  %v1585_v53 = vunpack.c.l.s8.bf16 %v737_v42  ;;  %v1570_v55 = vunpack.c.h.s8.bf16 %v722_v48  ;;  %v1554_v63 = vunpack.c.l.s8.bf16 %v722_v48  ;;  %v548_v42 = vld [vmem:[%s6984_s16 + $0x4b8] sm:$0xff]  ;;  %v547_v48 = vld [vmem:[%s6984_s16 + $0x4b0] sm:$0xff] }
 0x1de   : > { %2452 = vmatprep.subr.bf16.mxu1 %v1714_v54  ;;  %v1841_v54 = vunpack.c.l.s8.bf16 %v865_v43  ;;  %v1826_v56 = vunpack.c.h.s8.bf16 %v850_v49  ;;  %v1810_v0 = vunpack.c.l.s8.bf16 %v850_v49  ;;  %v979_v43 = vunpack.c.l.s8.bf16 %v435_v29 }
 0x1e0   : > { %2412 = vmatpush1.bf16.msra.mxu0 %v1457_v57  ;;  %v721_v57 = vld [vmem:[%s6984_s16 + $0xa20] sm:$0xff] }
 0x1e1   : > { %2453 = vmatpush1.bf16.msra.mxu1 %v1713_v58  ;;  %2413 = vmatprep.subr.bf16.mxu0 %v1442_v51  ;;  %v849_v58 = vld [vmem:[%s6984_s16 + $0xe20] sm:$0xff]  ;;  %v1569_v51 = vunpack.c.h.s8.bf16 %v721_v57 }
 0x1e2   : > { %2454 = vmatprep.subr.bf16.mxu1 %v1698_v62  ;;  %v1825_v62 = vunpack.c.h.s8.bf16 %v849_v58 }
 0x1e4   : > { %2414 = vmatpush1.bf16.msra.mxu0 %v1441_v1  ;;  %v452_v1 = vld [vmem:[%s6984_s16 + $0x1b8] sm:$0xff] }
 0x1e5   : > { %2455 = vmatpush1.bf16.msra.mxu1 %v1697_v3  ;;  %2415 = vmatprep.subr.bf16.mxu0 %v1426_v4  ;;  %v580_v3 = vld [vmem:[%s6984_s16 + $0x5b8] sm:$0xff]  ;;  %v1553_v4 = vunpack.c.l.s8.bf16 %v721_v57  ;;  %v1028_v6 = vunpack.c.h.s8.bf16 %v452_v1  ;;  %v1012_v12 = vunpack.c.l.s8.bf16 %v452_v1  ;;  %v531_v1 = vld [vmem:[%s6984_s16 + $0x430] sm:$0xff] }
 0x1e6   : > { %2456 = vmatprep.subr.bf16.mxu1 %v1682_v5  ;;  %v1809_v5 = vunpack.c.l.s8.bf16 %v849_v58  ;;  %v1284_v7 = vunpack.c.h.s8.bf16 %v580_v3  ;;  %v1268_v13 = vunpack.c.l.s8.bf16 %v580_v3  ;;  %v532_v57 = vld [vmem:[%s6984_s16 + $0x438] sm:$0xff] }
 0x1e8   : > { %2416 = vmatpush1.bf16.msra.mxu0 %v1425_v8  ;;  %v451_v8 = vld [vmem:[%s6984_s16 + $0x1b0] sm:$0xff] }
 0x1e9   : > { %2457 = vmatpush1.bf16.msra.mxu1 %v1681_v9  ;;  %2417 = vmatprep.subr.bf16.mxu0 %v1666_v10  ;;  %v579_v9 = vld [vmem:[%s6984_s16 + $0x5b0] sm:$0xff]  ;;  %v1027_v10 = vunpack.c.h.s8.bf16 %v451_v8  ;;  %v1011_v21 = vunpack.c.l.s8.bf16 %v451_v8  ;;  %v644_v8 = vld [vmem:[%s6984_s16 + $0x7b8] sm:$0xff] }
 0x1ea   : > { %2458 = vmatprep.subr.bf16.mxu1 %v1922_v11  ;;  %v1283_v11 = vunpack.c.h.s8.bf16 %v579_v9 }
 0x1ec   : > { %2418 = vmatpush2.bf16.msra.mxu0 %v1665_v14  ;;  %v436_v14 = vld [vmem:[%s6984_s16 + $0x138] sm:$0xff] }
 0x1ed   : > { %2459 = vmatpush2.bf16.msra.mxu1 %v1921_v15  ;;  %2419 = vmatprep.subr.bf16.mxu0 %v1650_v16  ;;  %v564_v15 = vld [vmem:[%s6984_s16 + $0x538] sm:$0xff] }
 0x1ee   : > { %2460 = vmatprep.subr.bf16.mxu1 %v1906_v18  ;;  %v1252_v26 = vunpack.c.h.s8.bf16 %v564_v15 }
 0x1f0   : > { %2420 = vmatpush2.bf16.msra.mxu0 %v1649_v22  ;;  %v1267_v22 = vunpack.c.l.s8.bf16 %v579_v9 }
 0x1f1   : > { %2461 = vmatpush2.bf16.msra.mxu1 %v1905_v23  ;;  %2421 = vmatprep.subr.bf16.mxu0 %v1634_v24 }
 0x1f2   : > { %2462 = vmatprep.subr.bf16.mxu1 %v1890_v25  ;;  %v996_v25 = vunpack.c.h.s8.bf16 %v436_v14 }
 0x1f4   : > { %2422 = vmatpush2.bf16.msra.mxu0 %v1633_v19  ;;  %v563_v19 = vld [vmem:[%s6984_s16 + $0x530] sm:$0xff] }
 0x1f5   : > { %2463 = vmatpush2.bf16.msra.mxu1 %v1889_v30  ;;  %2423 = vmatprep.subr.bf16.mxu0 %v1618_v32  ;;  %v1251_v34 = vunpack.c.h.s8.bf16 %v563_v19 }
 0x1f6   : > { %2464 = vmatprep.subr.bf16.mxu1 %v1874_v33  ;;  %v995_v33 = vunpack.c.h.s8.bf16 %v435_v29 }
 0x1f8   : > { %2424 = vmatpush2.bf16.msra.mxu0 %v1617_v28 }
 0x1f9   : > { %2465 = vmatpush2.bf16.msra.mxu1 %v1873_v36  ;;  %2425 = vmatprep.subr.bf16.mxu0 %v1602_v38  ;;  %v980_v36 = vunpack.c.l.s8.bf16 %v436_v14  ;;  %v1236_v38 = vunpack.c.l.s8.bf16 %v564_v15  ;;  %v643_v14 = vld [vmem:[%s6984_s16 + $0x7b0] sm:$0xff] }
 0x1fa   : > { %2466 = vmatprep.subr.bf16.mxu1 %v1858_v41  ;;  %v420_v41 = vld [vmem:[%s6984_s16 + $0xb8] sm:$0xff]  ;;  %v1395_v29 = vunpack.c.l.s8.bf16 %v643_v14 }
 0x1fc   : > { %2426 = vmatpush2.bf16.msra.mxu0 %v1601_v44  ;;  %v1235_v44 = vunpack.c.l.s8.bf16 %v563_v19 }
 0x1fd   : > { %2467 = vmatpush2.bf16.msra.mxu1 %v1857_v45  ;;  %2427 = vmatprep.subr.bf16.mxu0 %v1586_v46  ;;  %v964_v45 = vunpack.c.h.s8.bf16 %v420_v41  ;;  %v1220_v46 = vunpack.c.h.s8.bf16 %v548_v42 }
 0x1fe   : > { %2468 = vmatprep.subr.bf16.mxu1 %v1842_v47  ;;  %v419_v47 = vld [vmem:[%s6984_s16 + $0xb0] sm:$0xff] }
 0x1ff   : > { %v963_v49 = vunpack.c.h.s8.bf16 %v419_v47  ;;  %v947_v58 = vunpack.c.l.s8.bf16 %v419_v47  ;;  %v611_v47 = vld [vmem:[%s6984_s16 + $0x6b0] sm:$0xff] }
 0x200   : > { %2428 = vmatpush2.bf16.msra.mxu0 %v1585_v53  ;;  %v1219_v53 = vunpack.c.h.s8.bf16 %v547_v48 }
 0x201   : > { %2469 = vmatpush2.bf16.msra.mxu1 %v1841_v54  ;;  %2429 = vmatprep.subr.bf16.mxu0 %v1570_v55  ;;  %v948_v54 = vunpack.c.l.s8.bf16 %v420_v41  ;;  %v1204_v55 = vunpack.c.l.s8.bf16 %v548_v42  ;;  %v612_v41 = vld [vmem:[%s6984_s16 + $0x6b8] sm:$0xff] }
 0x202   : > { %2470 = vmatprep.subr.bf16.mxu1 %v1826_v56  ;;  %v404_v56 = vld [vmem:[%s6984_s16 + $0x38] sm:$0xff] }
 0x204   : > { %2430 = vmatpush2.bf16.msra.mxu0 %v1569_v51  ;;  %v1203_v51 = vunpack.c.l.s8.bf16 %v547_v48 }
 0x205   : > { %2471 = vmatpush2.bf16.msra.mxu1 %v1825_v62  ;;  %2431 = vmatprep.subr.bf16.mxu0 %v1554_v63  ;;  %v932_v62 = vunpack.c.h.s8.bf16 %v404_v56  ;;  %v1188_v63 = vunpack.c.h.s8.bf16 %v532_v57 }
 0x206   : > { %2472 = vmatprep.subr.bf16.mxu1 %v1810_v0  ;;  %v403_v0 = vld [vmem:[%s6984_s16 + $0x30] sm:$0xff] }
 0x207   : > { %v931_v3 = vunpack.c.h.s8.bf16 %v403_v0  ;;  %v915_v9 = vunpack.c.l.s8.bf16 %v403_v0  ;;  %v595_v0 = vld [vmem:[%s6984_s16 + $0x630] sm:$0xff] }
 0x208   : > { %2432 = vmatpush2.bf16.msra.mxu0 %v1553_v4  ;;  %v1187_v4 = vunpack.c.h.s8.bf16 %v531_v1 }
 0x209   : > { %2473 = vmatpush2.bf16.msra.mxu1 %v1809_v5  ;;  %2483 = vmatprep.subr.bf16.mxu0 %v1028_v6  ;;  %v916_v5 = vunpack.c.l.s8.bf16 %v404_v56  ;;  %v1172_v6 = vunpack.c.l.s8.bf16 %v532_v57  ;;  %v596_v56 = vld [vmem:[%s6984_s16 + $0x638] sm:$0xff] }
 0x20a   : > { %2524 = vmatprep.subr.bf16.mxu1 %v1284_v7  ;;  %v516_v7 = vld [vmem:[%s6984_s16 + $0x3b8] sm:$0xff] }
 0x20b   : > { %v2189_v16 = vpop.f32.mrf.mxu0  ;;  %2434 = vmatmul.mubr.bf16.vlgmr.msra.gmra.mxu0 %v7056_v17 }
 0x20c   : > { %v2230_v18 = vpop.f32.mrf.mxu1  ;;  %2475 = vmatmul.mubr.bf16.vlgmr.msra.gmra.mxu1 %v7125_v40  ;;  %2484 = vmatpush1.bf16.msra.mxu0 %v1027_v10  ;;  %v1171_v10 = vunpack.c.l.s8.bf16 %v531_v1 }
 0x20d   : > { %v7287_v20 = vadd.f32 %v2230_v18, %v2189_v16  ;;  %2525 = vmatpush1.bf16.msra.mxu1 %v1283_v11  ;;  %v7289_v23 = vpop.f32.mrf.mxu0  ;;  %2485 = vmatprep.subr.bf16.mxu0 %v1012_v12  ;;  %v1156_v11 = vunpack.c.h.s8.bf16 %v516_v7  ;;  %v1412_v12 = vunpack.c.h.s8.bf16 %v644_v8  ;;  %v1411_v16 = vunpack.c.h.s8.bf16 %v643_v14 }
 0x20e   : > { %v7291_v24 = vpop.f32.mrf.mxu1  ;;  %2526 = vmatprep.subr.bf16.mxu1 %v1268_v13  ;;  %2515 = vmatprep.mubr.bf16.mxu0 %v7037_v59  ;;  %v515_v13 = vld [vmem:[%s6984_s16 + $0x3b0] sm:$0xff]  ;;  %v1140_v18 = vunpack.c.l.s8.bf16 %v516_v7  ;;  %v836_v7 = vld [vmem:[%s6984_s16 + $0xdb8] sm:$0xff]  ;;  %v6780_v14 = vmov 1983009808  }
 0x20f   : > { %2556 = vmatprep.mubr.bf16.mxu1 %v7043_v2  ;;  %v2193_v30 = vpop.f32.mrf.mxu0  ;;  %v1155_v15 = vunpack.c.h.s8.bf16 %v515_v13 }
 0x210   : > { %v2234_v32 = vpop.f32.mrf.mxu1  ;;  %2486 = vmatpush1.bf16.msra.mxu0 %v1011_v21  ;;  %v1396_v21 = vunpack.c.l.s8.bf16 %v644_v8 }
 0x211   : > { %2527 = vmatpush1.bf16.msra.mxu1 %v1267_v22  ;;  %v2194_v35 = vpop.f32.mrf.mxu0  ;;  %2487 = vmatprep.subr.bf16.mxu0 %v996_v25  ;;  %v500_v22 = vld [vmem:[%s6984_s16 + $0x338] sm:$0xff]  ;;  %v499_v32 = vld [vmem:[%s6984_s16 + $0x330] sm:$0xff] }
 0x212   : > { %v2235_v28 = vpop.f32.mrf.mxu1  ;;  %2528 = vmatprep.subr.bf16.mxu1 %v1252_v26  ;;  %v628_v25 = vld [vmem:[%s6984_s16 + $0x738] sm:$0xff]  ;;  %v1139_v26 = vunpack.c.l.s8.bf16 %v515_v13  ;;  %v1124_v19 = vunpack.c.h.s8.bf16 %v500_v22  ;;  %v1107_v42 = vunpack.c.l.s8.bf16 %v499_v32  ;;  %v835_v13 = vld [vmem:[%s6984_s16 + $0xdb0] sm:$0xff] }
 0x213   : > { %v1380_v30 = vunpack.c.h.s8.bf16 %v628_v25  ;;  %v1108_v28 = vunpack.c.l.s8.bf16 %v500_v22  ;;  %v1780_v22 = vunpack.c.l.s8.bf16 %v836_v7 }
 0x214   : > { %2488 = vmatpush1.bf16.msra.mxu0 %v995_v33  ;;  %v627_v33 = vld [vmem:[%s6984_s16 + $0x730] sm:$0xff] }
 0x215   : > { %2529 = vmatpush1.bf16.msra.mxu1 %v1251_v34  ;;  %2489 = vmatprep.subr.bf16.mxu0 %v980_v36  ;;  %v1123_v34 = vunpack.c.h.s8.bf16 %v499_v32  ;;  %v1379_v35 = vunpack.c.h.s8.bf16 %v627_v33  ;;  %v1364_v36 = vunpack.c.l.s8.bf16 %v628_v25  ;;  %v692_v25 = vld [vmem:[%s6984_s16 + $0x938] sm:$0xff]  ;;  %v2233_v32 = vadd.f32 %v7291_v24, %v7289_v23 }
 0x216   : > { %2530 = vmatprep.subr.bf16.mxu1 %v1236_v38  ;;  %v484_v38 = vld [vmem:[%s6984_s16 + $0x2b8] sm:$0xff] }
 0x218   : > { %2490 = vmatpush1.bf16.msra.mxu0 %v979_v43  ;;  %v1363_v43 = vunpack.c.l.s8.bf16 %v627_v33 }
 0x219   : > { %2531 = vmatpush1.bf16.msra.mxu1 %v1235_v44  ;;  %2491 = vmatprep.subr.bf16.mxu0 %v964_v45  ;;  %v1092_v44 = vunpack.c.h.s8.bf16 %v484_v38  ;;  %v1348_v45 = vunpack.c.h.s8.bf16 %v612_v41 }
 0x21a   : > { %2532 = vmatprep.subr.bf16.mxu1 %v1220_v46  ;;  %v483_v46 = vld [vmem:[%s6984_s16 + $0x2b0] sm:$0xff] }
 0x21b   : > { %v1091_v48 = vunpack.c.h.s8.bf16 %v483_v46  ;;  %v1075_v57 = vunpack.c.l.s8.bf16 %v483_v46 }
 0x21c   : > { %2492 = vmatpush1.bf16.msra.mxu0 %v963_v49  ;;  %v1347_v49 = vunpack.c.h.s8.bf16 %v611_v47 }
 0x21d   : > { %2533 = vmatpush1.bf16.msra.mxu1 %v1219_v53  ;;  %2493 = vmatprep.subr.bf16.mxu0 %v948_v54  ;;  %v1076_v53 = vunpack.c.l.s8.bf16 %v484_v38  ;;  %v1332_v54 = vunpack.c.l.s8.bf16 %v612_v41  ;;  %v1508_v38 = vunpack.c.h.s8.bf16 %v692_v25 }
 0x21e   : > { %2534 = vmatprep.subr.bf16.mxu1 %v1204_v55  ;;  %v468_v55 = vld [vmem:[%s6984_s16 + $0x238] sm:$0xff] }
 0x220   : > { %2494 = vmatpush1.bf16.msra.mxu0 %v947_v58  ;;  %v1331_v58 = vunpack.c.l.s8.bf16 %v611_v47 }
 0x221   : > { %2535 = vmatpush1.bf16.msra.mxu1 %v1203_v51  ;;  %2495 = vmatprep.subr.bf16.mxu0 %v932_v62  ;;  %v1060_v51 = vunpack.c.h.s8.bf16 %v468_v55  ;;  %v1316_v62 = vunpack.c.h.s8.bf16 %v596_v56 }
 0x222   : > { %2536 = vmatprep.subr.bf16.mxu1 %v1188_v63  ;;  %v467_v63 = vld [vmem:[%s6984_s16 + $0x230] sm:$0xff] }
 0x223   : > { %v1059_v1 = vunpack.c.h.s8.bf16 %v467_v63  ;;  %v1043_v8 = vunpack.c.l.s8.bf16 %v467_v63 }
 0x224   : > { %2496 = vmatpush1.bf16.msra.mxu0 %v931_v3  ;;  %v1315_v3 = vunpack.c.h.s8.bf16 %v595_v0 }
 0x225   : > { %2537 = vmatpush1.bf16.msra.mxu1 %v1187_v4  ;;  %2497 = vmatprep.subr.bf16.mxu0 %v916_v5  ;;  %v1044_v4 = vunpack.c.l.s8.bf16 %v468_v55  ;;  %v1300_v5 = vunpack.c.l.s8.bf16 %v596_v56 }
 0x226   : > { %2538 = vmatprep.subr.bf16.mxu1 %v1172_v6  ;;  %v708_v6 = vld [vmem:[%s6984_s16 + $0x9b8] sm:$0xff] }
 0x228   : > { %2498 = vmatpush1.bf16.msra.mxu0 %v915_v9  ;;  %v1299_v9 = vunpack.c.l.s8.bf16 %v595_v0 }
 0x229   : > { %2539 = vmatpush1.bf16.msra.mxu1 %v1171_v10  ;;  %2499 = vmatprep.subr.bf16.mxu0 %v1156_v11  ;;  %v1540_v10 = vunpack.c.h.s8.bf16 %v708_v6  ;;  %v1796_v11 = vunpack.c.h.s8.bf16 %v836_v7 }
 0x22a   : > { %2540 = vmatprep.subr.bf16.mxu1 %v1412_v12  ;;  %v707_v12 = vld [vmem:[%s6984_s16 + $0x9b0] sm:$0xff] }
 0x22c   : > { %2500 = vmatpush2.bf16.msra.mxu0 %v1155_v15  ;;  %v3322_v15 = vunpack.c.l.s4 %v6780_v14 }
 0x22d   : > { %2541 = vmatpush2.bf16.msra.mxu1 %v1411_v16  ;;  %2501 = vmatprep.subr.bf16.mxu0 %v1140_v18  ;;  %v1539_v16 = vunpack.c.h.s8.bf16 %v707_v12  ;;  %v1795_v18 = vunpack.c.h.s8.bf16 %v835_v13 }
 0x22e   : > { %2542 = vmatprep.subr.bf16.mxu1 %v1396_v21  ;;  %v1524_v21 = vunpack.c.l.s8.bf16 %v708_v6  ;;  %v803_v6 = vld [vmem:[%s6984_s16 + $0xcb0] sm:$0xff] }
 0x22f   : > { %v1731_v31 = vunpack.c.h.s8.bf16 %v803_v6 }
 0x230   : > { %2502 = vmatpush2.bf16.msra.mxu0 %v1139_v26  ;;  %v820_v26 = vld [vmem:[%s6984_s16 + $0xd38] sm:$0xff] }
 0x231   : > { %2543 = vmatpush2.bf16.msra.mxu1 %v1395_v29  ;;  %2503 = vmatprep.subr.bf16.mxu0 %v1124_v19  ;;  %v3323_v29 = vunpack.c.0.s8 %v3322_v15  ;;  %v1764_v41 = vunpack.c.h.s8.bf16 %v820_v26  ;;  %v1748_v55 = vunpack.c.l.s8.bf16 %v820_v26 }
 0x232   : > { %2544 = vmatprep.subr.bf16.mxu1 %v1380_v30 }
 0x233   : > { %v7337_v23 = vsub.s32 %v3323_v29, %v7020_v39  ;;  %v772_v29 = vld [vmem:[%s6984_s16 + $0xbb8] sm:$0xff] }
 0x234   : > { %2504 = vmatpush2.bf16.msra.mxu0 %v1123_v34  ;;  %v1523_v34 = vunpack.c.l.s8.bf16 %v707_v12 }
 0x235   : > { %2545 = vmatpush2.bf16.msra.mxu1 %v1379_v35  ;;  %2505 = vmatprep.subr.bf16.mxu0 %v1108_v28  ;;  %v1779_v35 = vunpack.c.l.s8.bf16 %v835_v13  ;;  %v1715_v13 = vunpack.c.l.s8.bf16 %v803_v6 }
 0x236   : > { %2546 = vmatprep.subr.bf16.mxu1 %v1364_v36 }
 0x238   : > { %2506 = vmatpush2.bf16.msra.mxu0 %v1107_v42  ;;  %v691_v42 = vld [vmem:[%s6984_s16 + $0x930] sm:$0xff] }
 0x239   : > { %2547 = vmatpush2.bf16.msra.mxu1 %v1363_v43  ;;  %2507 = vmatprep.subr.bf16.mxu0 %v1092_v44  ;;  %v819_v43 = vld [vmem:[%s6984_s16 + $0xd30] sm:$0xff]  ;;  %v1507_v47 = vunpack.c.h.s8.bf16 %v691_v42  ;;  %v1491_v63 = vunpack.c.l.s8.bf16 %v691_v42 }
 0x23a   : > { %2548 = vmatprep.subr.bf16.mxu1 %v1348_v45  ;;  %v1747_v0 = vunpack.c.l.s8.bf16 %v819_v43 }
 0x23c   : > { %2508 = vmatpush2.bf16.msra.mxu0 %v1091_v48  ;;  %v1763_v48 = vunpack.c.h.s8.bf16 %v819_v43  ;;  %v756_v43 = vld [vmem:[%s6984_s16 + $0xb38] sm:$0xff] }
 0x23d   : > { %2549 = vmatpush2.bf16.msra.mxu1 %v1347_v49  ;;  %2509 = vmatprep.subr.bf16.mxu0 %v1076_v53 }
 0x23e   : > { %2550 = vmatprep.subr.bf16.mxu1 %v1332_v54  ;;  %v1492_v54 = vunpack.c.l.s8.bf16 %v692_v25 }
 0x240   : > { %2510 = vmatpush2.bf16.msra.mxu0 %v1075_v57  ;;  %v676_v57 = vld [vmem:[%s6984_s16 + $0x8b8] sm:$0xff] }
 0x241   : > { %2551 = vmatpush2.bf16.msra.mxu1 %v1331_v58  ;;  %2511 = vmatprep.subr.bf16.mxu0 %v1060_v51  ;;  %v804_v58 = vld [vmem:[%s6984_s16 + $0xcb8] sm:$0xff]  ;;  %v3327_v51 = vrot.slane %v3319_v37, %v7337_v23  ;;  %v1460_v37 = vunpack.c.l.s8.bf16 %v676_v57 }
 0x242   : > { %2552 = vmatprep.subr.bf16.mxu1 %v1316_v62 }
 0x244   : > { %2512 = vmatpush2.bf16.msra.mxu0 %v1059_v1  ;;  %v393_v1 = vld [vmem:[#allocation2 + $0x10] sm:$0xff] }
 0x245   : > { %2553 = vmatpush2.bf16.msra.mxu1 %v1315_v3  ;;  %2513 = vmatprep.subr.bf16.mxu0 %v1044_v4  ;;  %v1476_v3 = vunpack.c.h.s8.bf16 %v676_v57  ;;  %v1732_v4 = vunpack.c.h.s8.bf16 %v804_v58  ;;  %v868_v57 = vld [vmem:[%s6984_s16 + $0xeb8] sm:$0xff] }
 0x246   : > { %2554 = vmatprep.subr.bf16.mxu1 %v1300_v5  ;;  %v675_v5 = vld [vmem:[%s6984_s16 + $0x8b0] sm:$0xff]  ;;  %v1844_v6 = vunpack.c.l.s8.bf16 %v868_v57 }
 0x247   : > { %v1475_v27 = vunpack.c.h.s8.bf16 %v675_v5  ;;  %v1459_v12 = vunpack.c.l.s8.bf16 %v675_v5 }
 0x248   : > { %2514 = vmatpush2.bf16.msra.mxu0 %v1043_v8 }
 0x249   : > { %2555 = vmatpush2.bf16.msra.mxu1 %v1299_v9  ;;  %2565 = vmatprep.subr.bf16.mxu0 %v1540_v10  ;;  %v1716_v9 = vunpack.c.l.s8.bf16 %v804_v58  ;;  %v660_v10 = vld [vmem:[%s6984_s16 + $0x838] sm:$0xff] }
 0x24a   : > { %2606 = vmatprep.subr.bf16.mxu1 %v1796_v11  ;;  %v788_v11 = vld [vmem:[%s6984_s16 + $0xc38] sm:$0xff]  ;;  %v1444_v14 = vunpack.c.h.s8.bf16 %v660_v10  ;;  %v1428_v25 = vunpack.c.l.s8.bf16 %v660_v10  ;;  %v723_v10 = vld [vmem:[%s6984_s16 + $0xa30] sm:$0xff] }
 0x24b   : > { %v2271_v19 = vpop.f32.mrf.mxu0  ;;  %2516 = vmatmul.mubr.bf16.vlgmr.msra.gmra.mxu0 %v7072_v52  ;;  %v1700_v15 = vunpack.c.h.s8.bf16 %v788_v11  ;;  %v1684_v26 = vunpack.c.l.s8.bf16 %v788_v11  ;;  %v851_v11 = vld [vmem:[%s6984_s16 + $0xe30] sm:$0xff] }
 0x24c   : > { %v2312_v30 = vpop.f32.mrf.mxu1  ;;  %2557 = vmatmul.mubr.bf16.vlgmr.msra.gmra.mxu1 %v7081_v61  ;;  %v2272_v33 = vadd.f32 %v2271_v19, %v7287_v20  ;;  %2566 = vmatpush1.bf16.msra.mxu0 %v1539_v16  ;;  %v659_v16 = vld [vmem:[%s6984_s16 + $0x830] sm:$0xff]  ;;  %v900_v19 = vld [vmem:[%s6984_s16 + $0xfb8] sm:$0xff] }
 0x24d   : > { %2607 = vmatpush1.bf16.msra.mxu1 %v1795_v18  ;;  %v2273_v28 = vpop.f32.mrf.mxu0  ;;  %2567 = vmatprep.subr.bf16.mxu0 %v1524_v21  ;;  %v787_v18 = vld [vmem:[%s6984_s16 + $0xc30] sm:$0xff]  ;;  %v1443_v21 = vunpack.c.h.s8.bf16 %v659_v16  ;;  %v1908_v42 = vunpack.c.l.s8.bf16 %v900_v19 }
 0x24e   : > { %v2314_v36 = vpop.f32.mrf.mxu1  ;;  %2608 = vmatprep.subr.bf16.mxu1 %v1780_v22  ;;  %v2274_v44 = vadd.f32 %v2273_v28, %v2233_v32  ;;  %2597 = vmatprep.mubr.bf16.mxu0 %v7077_v60  ;;  %v2313_v45 = vadd.f32 %v2312_v30, %v2272_v33  ;;  %v1699_v22 = vunpack.c.h.s8.bf16 %v787_v18  ;;  %v1427_v30 = vunpack.c.l.s8.bf16 %v659_v16  ;;  %v899_v28 = vld [vmem:[%s6984_s16 + $0xfb0] sm:$0xff]  ;;  %v454_v16 = vld [vmem:[%s6984_s16 + $0x1c8] sm:$0xff] }
 0x24f   : > { %2638 = vmatprep.mubr.bf16.mxu1 %v7087_v50  ;;  %v2275_v20 = vpop.f32.mrf.mxu0  ;;  %v1683_v32 = vunpack.c.l.s8.bf16 %v787_v18  ;;  %v1668_v33 = vunpack.c.h.s8.bf16 %v772_v29  ;;  %v582_v18 = vld [vmem:[%s6984_s16 + $0x5c8] sm:$0xff] }
 0x250   : > { %v2316_v24 = vpop.f32.mrf.mxu1  ;;  %v2315_v46 = vadd.f32 %v2314_v36, %v2274_v44  ;;  %2568 = vmatpush1.bf16.msra.mxu0 %v1523_v34  ;;  %v1924_v34 = vunpack.c.h.s8.bf16 %v900_v19  ;;  %v884_v44 = vld [vmem:[%s6984_s16 + $0xf38] sm:$0xff]  ;;  %v581_v19 = vld [vmem:[%s6984_s16 + $0x5c0] sm:$0xff] }
 0x251   : > { %2609 = vmatpush1.bf16.msra.mxu1 %v1779_v35  ;;  %v2276_v49 = vpop.f32.mrf.mxu0  ;;  %2569 = vmatprep.subr.bf16.mxu0 %v1508_v38  ;;  %v771_v35 = vld [vmem:[%s6984_s16 + $0xbb0] sm:$0xff]  ;;  %v1923_v38 = vunpack.c.h.s8.bf16 %v899_v28  ;;  %v1907_v24 = vunpack.c.l.s8.bf16 %v899_v28  ;;  %v566_v28 = vld [vmem:[%s6984_s16 + $0x548] sm:$0xff] }
 0x252   : > { %v2317_v53 = vpop.f32.mrf.mxu1  ;;  %2610 = vmatprep.subr.bf16.mxu1 %v1764_v41  ;;  %v3320_v56 = vcombine.low %v2313_v45, %v2315_v46  ;;  %v1667_v36 = vunpack.c.h.s8.bf16 %v771_v35  ;;  %v1652_v41 = vunpack.c.l.s8.bf16 %v772_v29  ;;  %v1651_v20 = vunpack.c.l.s8.bf16 %v771_v35  ;;  %v453_v29 = vld [vmem:[%s6984_s16 + $0x1c0] sm:$0xff]  ;;  %v438_v35 = vld [vmem:[%s6984_s16 + $0x148] sm:$0xff] }
 0x253   : > { %v1636_v45 = vunpack.c.h.s8.bf16 %v756_v43  ;;  %v1892_v46 = vunpack.c.h.s8.bf16 %v884_v44 }
 0x254   : > { %v3334_v62 = vrot.slane %v3320_v56, %v7337_v23  ;;  %2570 = vmatpush1.bf16.msra.mxu0 %v1507_v47  ;;  %v755_v47 = vld [vmem:[%s6984_s16 + $0xb30] sm:$0xff]  ;;  %v740_v56 = vld [vmem:[%s6984_s16 + $0xab8] sm:$0xff] }
 0x255   : > { %2611 = vmatpush1.bf16.msra.mxu1 %v1763_v48  ;;  %2571 = vmatprep.subr.bf16.mxu0 %v1492_v54  ;;  %v883_v48 = vld [vmem:[%s6984_s16 + $0xf30] sm:$0xff]  ;;  %v1635_v49 = vunpack.c.h.s8.bf16 %v755_v47  ;;  %v1620_v54 = vunpack.c.l.s8.bf16 %v756_v43  ;;  %v1619_v58 = vunpack.c.l.s8.bf16 %v755_v47  ;;  %v1588_v5 = vunpack.c.l.s8.bf16 %v740_v56  ;;  %v565_v47 = vld [vmem:[%s6984_s16 + $0x540] sm:$0xff] }
 0x256   : > { %2612 = vmatprep.subr.bf16.mxu1 %v1748_v55  ;;  %v3335_v7 = vcombine.low %v3327_v51, %v3334_v62  ;;  %v1891_v53 = vunpack.c.h.s8.bf16 %v883_v48  ;;  %v1876_v55 = vunpack.c.l.s8.bf16 %v884_v44  ;;  %v1875_v51 = vunpack.c.l.s8.bf16 %v883_v48 }
 0x257   : > { %v1604_v62 = vunpack.c.h.s8.bf16 %v740_v56  ;;  %v1269_v43 = vunpack.c.l.s8.bf16 %v581_v19 }
 0x258   : > { %v3391_v8 = vadd.f32 %v3335_v7, %v393_v1  ;;  %2572 = vmatpush1.bf16.msra.mxu0 %v1491_v63  ;;  %v1860_v63 = vunpack.c.h.s8.bf16 %v868_v57  ;;  %v867_v1 = vld [vmem:[%s6984_s16 + $0xeb0] sm:$0xff]  ;;  %v724_v7 = vld [vmem:[%s6984_s16 + $0xa38] sm:$0xff] }
 0x259   : > { %2613 = vmatpush1.bf16.msra.mxu1 %v1747_v0  ;;  %2573 = vmatprep.subr.bf16.mxu0 %v1476_v3  ;;  %v739_v0 = vld [vmem:[%s6984_s16 + $0xab0] sm:$0xff] }
 0x25a   : > { %2614 = vmatprep.subr.bf16.mxu1 %v1732_v4  ;;  %3395 = vst [vmem:[#allocation2 + $0x10] sm:$0xff] %v3391_v8  ;;  %v1603_v3 = vunpack.c.h.s8.bf16 %v739_v0  ;;  %v1859_v4 = vunpack.c.h.s8.bf16 %v867_v1  ;;  %v852_v8 = vld [vmem:[%s6984_s16 + $0xe38] sm:$0xff] }
 0x25c   : > { %2574 = vmatpush1.bf16.msra.mxu0 %v1475_v27  ;;  %v1587_v27 = vunpack.c.l.s8.bf16 %v739_v0 }
 0x25d   : > { %2615 = vmatpush1.bf16.msra.mxu1 %v1731_v31  ;;  %2575 = vmatprep.subr.bf16.mxu0 %v1460_v37  ;;  %v1843_v31 = vunpack.c.l.s8.bf16 %v867_v1  ;;  %v1572_v37 = vunpack.c.h.s8.bf16 %v724_v7  ;;  %v1237_v1 = vunpack.c.l.s8.bf16 %v565_v47 }
 0x25e   : > { %2616 = vmatprep.subr.bf16.mxu1 %v1716_v9  ;;  %v1828_v9 = vunpack.c.h.s8.bf16 %v852_v8 }
 0x260   : > { %2576 = vmatpush1.bf16.msra.mxu0 %v1459_v12  ;;  %v1571_v12 = vunpack.c.h.s8.bf16 %v723_v10 }
 0x261   : > { %2617 = vmatpush1.bf16.msra.mxu1 %v1715_v13  ;;  %2577 = vmatprep.subr.bf16.mxu0 %v1444_v14  ;;  %v1827_v13 = vunpack.c.h.s8.bf16 %v851_v11  ;;  %v1556_v14 = vunpack.c.l.s8.bf16 %v724_v7 }
 0x262   : > { %2618 = vmatprep.subr.bf16.mxu1 %v1700_v15  ;;  %v1812_v15 = vunpack.c.l.s8.bf16 %v852_v8 }
 0x264   : > { %2578 = vmatpush1.bf16.msra.mxu0 %v1443_v21  ;;  %v1555_v21 = vunpack.c.l.s8.bf16 %v723_v10 }
 0x265   : > { %2619 = vmatpush1.bf16.msra.mxu1 %v1699_v22  ;;  %2579 = vmatprep.subr.bf16.mxu0 %v1428_v25  ;;  %v1811_v22 = vunpack.c.l.s8.bf16 %v851_v11  ;;  %v1030_v25 = vunpack.c.h.s8.bf16 %v454_v16 }
 0x266   : > { %2620 = vmatprep.subr.bf16.mxu1 %v1684_v26  ;;  %v1286_v26 = vunpack.c.h.s8.bf16 %v582_v18 }
 0x268   : > { %2580 = vmatpush1.bf16.msra.mxu0 %v1427_v30  ;;  %v1029_v30 = vunpack.c.h.s8.bf16 %v453_v29 }
 0x269   : > { %2621 = vmatpush1.bf16.msra.mxu1 %v1683_v32  ;;  %2581 = vmatprep.subr.bf16.mxu0 %v1668_v33  ;;  %v1285_v32 = vunpack.c.h.s8.bf16 %v581_v19  ;;  %v1014_v33 = vunpack.c.l.s8.bf16 %v454_v16 }
 0x26a   : > { %2622 = vmatprep.subr.bf16.mxu1 %v1924_v34  ;;  %v1270_v34 = vunpack.c.l.s8.bf16 %v582_v18 }
 0x26c   : > { %2582 = vmatpush2.bf16.msra.mxu0 %v1667_v36 }
 0x26d   : > { %2623 = vmatpush2.bf16.msra.mxu1 %v1923_v38  ;;  %2583 = vmatprep.subr.bf16.mxu0 %v1652_v41 }
 0x26e   : > { %2624 = vmatprep.subr.bf16.mxu1 %v1908_v42  ;;  %v1013_v42 = vunpack.c.l.s8.bf16 %v453_v29 }
 0x270   : > { %2584 = vmatpush2.bf16.msra.mxu0 %v1651_v20 }
 0x271   : > { %2625 = vmatpush2.bf16.msra.mxu1 %v1907_v24  ;;  %2585 = vmatprep.subr.bf16.mxu0 %v1636_v45  ;;  %v998_v24 = vunpack.c.h.s8.bf16 %v438_v35  ;;  %v1254_v45 = vunpack.c.h.s8.bf16 %v566_v28 }
 0x272   : > { %2626 = vmatprep.subr.bf16.mxu1 %v1892_v46  ;;  %v437_v46 = vld [vmem:[%s6984_s16 + $0x140] sm:$0xff] }
 0x273   : > { %v981_v0 = vunpack.c.l.s8.bf16 %v437_v46 }
 0x274   : > { %2586 = vmatpush2.bf16.msra.mxu0 %v1635_v49 }
 0x275   : > { %2627 = vmatpush2.bf16.msra.mxu1 %v1891_v53  ;;  %2587 = vmatprep.subr.bf16.mxu0 %v1620_v54  ;;  %v997_v54 = vunpack.c.h.s8.bf16 %v437_v46  ;;  %v501_v46 = vld [vmem:[%s6984_s16 + $0x340] sm:$0xff] }
 0x276   : > { %2628 = vmatprep.subr.bf16.mxu1 %v1876_v55  ;;  %v1253_v55 = vunpack.c.h.s8.bf16 %v565_v47  ;;  %v629_v47 = vld [vmem:[%s6984_s16 + $0x740] sm:$0xff] }
 0x278   : > { %2588 = vmatpush2.bf16.msra.mxu0 %v1619_v58  ;;  %v982_v58 = vunpack.c.l.s8.bf16 %v438_v35 }
 0x279   : > { %2629 = vmatpush2.bf16.msra.mxu1 %v1875_v51  ;;  %2589 = vmatprep.subr.bf16.mxu0 %v1604_v62  ;;  %v1238_v51 = vunpack.c.l.s8.bf16 %v566_v28  ;;  %v422_v62 = vld [vmem:[%s6984_s16 + $0xc8] sm:$0xff] }
 0x27a   : > { %2630 = vmatprep.subr.bf16.mxu1 %v1860_v63  ;;  %v550_v63 = vld [vmem:[%s6984_s16 + $0x4c8] sm:$0xff] }
 0x27c   : > { %2590 = vmatpush2.bf16.msra.mxu0 %v1603_v3  ;;  %v966_v3 = vunpack.c.h.s8.bf16 %v422_v62 }
 0x27d   : > { %2631 = vmatpush2.bf16.msra.mxu1 %v1859_v4  ;;  %2591 = vmatprep.subr.bf16.mxu0 %v1588_v5  ;;  %v1222_v4 = vunpack.c.h.s8.bf16 %v550_v63  ;;  %v421_v5 = vld [vmem:[%s6984_s16 + $0xc0] sm:$0xff] }
 0x27e   : > { %2632 = vmatprep.subr.bf16.mxu1 %v1844_v6  ;;  %v549_v6 = vld [vmem:[%s6984_s16 + $0x4c0] sm:$0xff]  ;;  %v965_v7 = vunpack.c.h.s8.bf16 %v421_v5  ;;  %v949_v10 = vunpack.c.l.s8.bf16 %v421_v5 }
 0x27f   : > { %v1221_v8 = vunpack.c.h.s8.bf16 %v549_v6  ;;  %v1205_v11 = vunpack.c.l.s8.bf16 %v549_v6 }
 0x280   : > { %2592 = vmatpush2.bf16.msra.mxu0 %v1587_v27  ;;  %v950_v27 = vunpack.c.l.s8.bf16 %v422_v62 }
 0x281   : > { %2633 = vmatpush2.bf16.msra.mxu1 %v1843_v31  ;;  %2593 = vmatprep.subr.bf16.mxu0 %v1572_v37  ;;  %v1206_v31 = vunpack.c.l.s8.bf16 %v550_v63  ;;  %v406_v37 = vld [vmem:[%s6984_s16 + $0x48] sm:$0xff] }
 0x282   : > { %2634 = vmatprep.subr.bf16.mxu1 %v1828_v9  ;;  %v534_v9 = vld [vmem:[%s6984_s16 + $0x448] sm:$0xff] }
 0x284   : > { %2594 = vmatpush2.bf16.msra.mxu0 %v1571_v12  ;;  %v934_v12 = vunpack.c.h.s8.bf16 %v406_v37 }
 0x285   : > { %2635 = vmatpush2.bf16.msra.mxu1 %v1827_v13  ;;  %2595 = vmatprep.subr.bf16.mxu0 %v1556_v14  ;;  %v1190_v13 = vunpack.c.h.s8.bf16 %v534_v9  ;;  %v405_v14 = vld [vmem:[%s6984_s16 + $0x40] sm:$0xff] }
 0x286   : > { %2636 = vmatprep.subr.bf16.mxu1 %v1812_v15  ;;  %v533_v15 = vld [vmem:[%s6984_s16 + $0x440] sm:$0xff]  ;;  %v933_v16 = vunpack.c.h.s8.bf16 %v405_v14  ;;  %v917_v29 = vunpack.c.l.s8.bf16 %v405_v14 }
 0x287   : > { %v1189_v18 = vunpack.c.h.s8.bf16 %v533_v15  ;;  %v1173_v19 = vunpack.c.l.s8.bf16 %v533_v15 }
 0x288   : > { %2596 = vmatpush2.bf16.msra.mxu0 %v1555_v21  ;;  %v918_v21 = vunpack.c.l.s8.bf16 %v406_v37 }
 0x289   : > { %2637 = vmatpush2.bf16.msra.mxu1 %v1811_v22  ;;  %2647 = vmatprep.subr.bf16.mxu0 %v1030_v25  ;;  %v1174_v22 = vunpack.c.l.s8.bf16 %v534_v9  ;;  %v518_v25 = vld [vmem:[%s6984_s16 + $0x3c8] sm:$0xff] }
 0x28a   : > { %2688 = vmatprep.subr.bf16.mxu1 %v1286_v26  ;;  %v646_v26 = vld [vmem:[%s6984_s16 + $0x7c8] sm:$0xff] }
 0x28b   : > { %v2353_v36 = vpop.f32.mrf.mxu0  ;;  %2598 = vmatmul.mubr.bf16.vlgmr.msra.gmra.mxu0 %v7056_v17 }
 0x28c   : > { %v2394_v38 = vpop.f32.mrf.mxu1  ;;  %2639 = vmatmul.mubr.bf16.vlgmr.msra.gmra.mxu1 %v7125_v40  ;;  %2648 = vmatpush1.bf16.msra.mxu0 %v1029_v30  ;;  %v1158_v30 = vunpack.c.h.s8.bf16 %v518_v25 }
 0x28d   : > { %v7376_v41 = vadd.f32 %v2394_v38, %v2353_v36  ;;  %2689 = vmatpush1.bf16.msra.mxu1 %v1285_v32  ;;  %v2355_v44 = vpop.f32.mrf.mxu0  ;;  %2649 = vmatprep.subr.bf16.mxu0 %v1014_v33  ;;  %v1414_v32 = vunpack.c.h.s8.bf16 %v646_v26  ;;  %v517_v33 = vld [vmem:[%s6984_s16 + $0x3c0] sm:$0xff]  ;;  %v1142_v36 = vunpack.c.l.s8.bf16 %v518_v25  ;;  %v1398_v38 = vunpack.c.l.s8.bf16 %v646_v26 }
 0x28e   : > { %v2396_v20 = vpop.f32.mrf.mxu1  ;;  %2690 = vmatprep.subr.bf16.mxu1 %v1270_v34  ;;  %2679 = vmatprep.mubr.bf16.mxu0 %v7037_v59  ;;  %v645_v34 = vld [vmem:[%s6984_s16 + $0x7c0] sm:$0xff]  ;;  %v1157_v35 = vunpack.c.h.s8.bf16 %v517_v33 }
 0x28f   : > { %v7380_v48 = vadd.f32 %v2396_v20, %v2355_v44  ;;  %2720 = vmatprep.mubr.bf16.mxu1 %v7043_v2  ;;  %v2357_v49 = vpop.f32.mrf.mxu0  ;;  %v1413_v28 = vunpack.c.h.s8.bf16 %v645_v34  ;;  %v1141_v44 = vunpack.c.l.s8.bf16 %v517_v33  ;;  %v1397_v20 = vunpack.c.l.s8.bf16 %v645_v34 }
 0x290   : > { %v2398_v53 = vpop.f32.mrf.mxu1  ;;  %2650 = vmatpush1.bf16.msra.mxu0 %v1013_v42  ;;  %v502_v42 = vld [vmem:[%s6984_s16 + $0x348] sm:$0xff]  ;;  %v1125_v49 = vunpack.c.h.s8.bf16 %v501_v46 }
 0x291   : > { %2691 = vmatpush1.bf16.msra.mxu1 %v1269_v43  ;;  %v2358_v56 = vpop.f32.mrf.mxu0  ;;  %2651 = vmatprep.subr.bf16.mxu0 %v998_v24  ;;  %v630_v43 = vld [vmem:[%s6984_s16 + $0x748] sm:$0xff]  ;;  %v1126_v24 = vunpack.c.h.s8.bf16 %v502_v42  ;;  %v1381_v53 = vunpack.c.h.s8.bf16 %v629_v47 }
 0x292   : > { %v2399_v57 = vpop.f32.mrf.mxu1  ;;  %2692 = vmatprep.subr.bf16.mxu1 %v1254_v45  ;;  %v1382_v45 = vunpack.c.h.s8.bf16 %v630_v43  ;;  %v486_v56 = vld [vmem:[%s6984_s16 + $0x2c8] sm:$0xff] }
 0x293   : > { %v614_v57 = vld [vmem:[%s6984_s16 + $0x6c8] sm:$0xff]  ;;  %v1094_v62 = vunpack.c.h.s8.bf16 %v486_v56  ;;  %v1078_v5 = vunpack.c.l.s8.bf16 %v486_v56 }
 0x294   : > { %2652 = vmatpush1.bf16.msra.mxu0 %v997_v54  ;;  %v1110_v54 = vunpack.c.l.s8.bf16 %v502_v42  ;;  %v1350_v63 = vunpack.c.h.s8.bf16 %v614_v57  ;;  %v1334_v6 = vunpack.c.l.s8.bf16 %v614_v57 }
 0x295   : > { %2693 = vmatpush1.bf16.msra.mxu1 %v1253_v55  ;;  %2653 = vmatprep.subr.bf16.mxu0 %v982_v58  ;;  %v1366_v55 = vunpack.c.l.s8.bf16 %v630_v43  ;;  %v1109_v58 = vunpack.c.l.s8.bf16 %v501_v46 }
 0x296   : > { %2694 = vmatprep.subr.bf16.mxu1 %v1238_v51  ;;  %v1365_v51 = vunpack.c.l.s8.bf16 %v629_v47  ;;  %v693_v47 = vld [vmem:[%s6984_s16 + $0x940] sm:$0xff] }
 0x297   : > { %v1509_v57 = vunpack.c.h.s8.bf16 %v693_v47 }
 0x298   : > { %2654 = vmatpush1.bf16.msra.mxu0 %v981_v0  ;;  %v485_v0 = vld [vmem:[%s6984_s16 + $0x2c0] sm:$0xff] }
 0x299   : > { %2695 = vmatpush1.bf16.msra.mxu1 %v1237_v1  ;;  %2655 = vmatprep.subr.bf16.mxu0 %v966_v3  ;;  %v613_v1 = vld [vmem:[%s6984_s16 + $0x6c0] sm:$0xff]  ;;  %v1093_v3 = vunpack.c.h.s8.bf16 %v485_v0 }
 0x29a   : > { %2696 = vmatprep.subr.bf16.mxu1 %v1222_v4  ;;  %v1349_v4 = vunpack.c.h.s8.bf16 %v613_v1 }
 0x29c   : > { %2656 = vmatpush1.bf16.msra.mxu0 %v965_v7  ;;  %v470_v7 = vld [vmem:[%s6984_s16 + $0x248] sm:$0xff] }
 0x29d   : > { %2697 = vmatpush1.bf16.msra.mxu1 %v1221_v8  ;;  %2657 = vmatprep.subr.bf16.mxu0 %v950_v27  ;;  %v598_v8 = vld [vmem:[%s6984_s16 + $0x648] sm:$0xff]  ;;  %v1077_v27 = vunpack.c.l.s8.bf16 %v485_v0  ;;  %v1062_v37 = vunpack.c.h.s8.bf16 %v470_v7  ;;  %v1046_v14 = vunpack.c.l.s8.bf16 %v470_v7 }
 0x29e   : > { %2698 = vmatprep.subr.bf16.mxu1 %v1206_v31  ;;  %v1333_v31 = vunpack.c.l.s8.bf16 %v613_v1  ;;  %v1318_v9 = vunpack.c.h.s8.bf16 %v598_v8  ;;  %v1302_v15 = vunpack.c.l.s8.bf16 %v598_v8  ;;  %v678_v1 = vld [vmem:[%s6984_s16 + $0x8c8] sm:$0xff]  ;;  %v677_v8 = vld [vmem:[%s6984_s16 + $0x8c0] sm:$0xff] }
 0x2a0   : > { %2658 = vmatpush1.bf16.msra.mxu0 %v949_v10  ;;  %v469_v10 = vld [vmem:[%s6984_s16 + $0x240] sm:$0xff] }
 0x2a1   : > { %2699 = vmatpush1.bf16.msra.mxu1 %v1205_v11  ;;  %2659 = vmatprep.subr.bf16.mxu0 %v934_v12  ;;  %v597_v11 = vld [vmem:[%s6984_s16 + $0x640] sm:$0xff]  ;;  %v1061_v12 = vunpack.c.h.s8.bf16 %v469_v10 }
 0x2a2   : > { %2700 = vmatprep.subr.bf16.mxu1 %v1190_v13  ;;  %v1317_v13 = vunpack.c.h.s8.bf16 %v597_v11 }
 0x2a4   : > { %2660 = vmatpush1.bf16.msra.mxu0 %v933_v16  ;;  %v710_v16 = vld [vmem:[%s6984_s16 + $0x9c8] sm:$0xff] }
 0x2a5   : > { %2701 = vmatpush1.bf16.msra.mxu1 %v1189_v18  ;;  %2661 = vmatprep.subr.bf16.mxu0 %v918_v21  ;;  %v838_v18 = vld [vmem:[%s6984_s16 + $0xdc8] sm:$0xff]  ;;  %v1045_v21 = vunpack.c.l.s8.bf16 %v469_v10  ;;  %v1542_v25 = vunpack.c.h.s8.bf16 %v710_v16  ;;  %v1526_v33 = vunpack.c.l.s8.bf16 %v710_v16 }
 0x2a6   : > { %2702 = vmatprep.subr.bf16.mxu1 %v1174_v22  ;;  %v1301_v22 = vunpack.c.l.s8.bf16 %v597_v11  ;;  %v1798_v26 = vunpack.c.h.s8.bf16 %v838_v18  ;;  %v1782_v34 = vunpack.c.l.s8.bf16 %v838_v18  ;;  %v662_v11 = vld [vmem:[%s6984_s16 + $0x848] sm:$0xff]  ;;  %v661_v18 = vld [vmem:[%s6984_s16 + $0x840] sm:$0xff] }
 0x2a8   : > { %2662 = vmatpush1.bf16.msra.mxu0 %v917_v29  ;;  %v709_v29 = vld [vmem:[%s6984_s16 + $0x9c0] sm:$0xff] }
 0x2a9   : > { %2703 = vmatpush1.bf16.msra.mxu1 %v1173_v19  ;;  %2663 = vmatprep.subr.bf16.mxu0 %v1158_v30  ;;  %v837_v19 = vld [vmem:[%s6984_s16 + $0xdc0] sm:$0xff]  ;;  %v1541_v30 = vunpack.c.h.s8.bf16 %v709_v29  ;;  %v1525_v43 = vunpack.c.l.s8.bf16 %v709_v29 }
 0x2aa   : > { %2704 = vmatprep.subr.bf16.mxu1 %v1414_v32  ;;  %v1797_v32 = vunpack.c.h.s8.bf16 %v837_v19 }
 0x2ac   : > { %2664 = vmatpush2.bf16.msra.mxu0 %v1157_v35  ;;  %v694_v35 = vld [vmem:[%s6984_s16 + $0x948] sm:$0xff] }
 0x2ad   : > { %2705 = vmatpush2.bf16.msra.mxu1 %v1413_v28  ;;  %2665 = vmatprep.subr.bf16.mxu0 %v1142_v36  ;;  %v822_v28 = vld [vmem:[%s6984_s16 + $0xd48] sm:$0xff] }
 0x2ae   : > { %2706 = vmatprep.subr.bf16.mxu1 %v1398_v38  ;;  %v1766_v46 = vunpack.c.h.s8.bf16 %v822_v28 }
 0x2b0   : > { %2666 = vmatpush2.bf16.msra.mxu0 %v1141_v44  ;;  %v1781_v44 = vunpack.c.l.s8.bf16 %v837_v19  ;;  %v774_v19 = vld [vmem:[%s6984_s16 + $0xbc8] sm:$0xff] }
 0x2b1   : > { %2707 = vmatpush2.bf16.msra.mxu1 %v1397_v20  ;;  %2667 = vmatprep.subr.bf16.mxu0 %v1126_v24 }
 0x2b2   : > { %2708 = vmatprep.subr.bf16.mxu1 %v1382_v45  ;;  %v1510_v45 = vunpack.c.h.s8.bf16 %v694_v35 }
 0x2b4   : > { %2668 = vmatpush2.bf16.msra.mxu0 %v1125_v49  ;;  %v821_v49 = vld [vmem:[%s6984_s16 + $0xd40] sm:$0xff] }
 0x2b5   : > { %2709 = vmatpush2.bf16.msra.mxu1 %v1381_v53  ;;  %2669 = vmatprep.subr.bf16.mxu0 %v1110_v54 }
 0x2b6   : > { %2710 = vmatprep.subr.bf16.mxu1 %v1366_v55 }
 0x2b8   : > { %2670 = vmatpush2.bf16.msra.mxu0 %v1109_v58  ;;  %v1765_v58 = vunpack.c.h.s8.bf16 %v821_v49 }
 0x2b9   : > { %2711 = vmatpush2.bf16.msra.mxu1 %v1365_v51  ;;  %2671 = vmatprep.subr.bf16.mxu0 %v1094_v62 }
 0x2ba   : > { %2712 = vmatprep.subr.bf16.mxu1 %v1350_v63  ;;  %v1750_v63 = vunpack.c.l.s8.bf16 %v822_v28  ;;  %v773_v28 = vld [vmem:[%s6984_s16 + $0xbc0] sm:$0xff] }
 0x2bc   : > { %2672 = vmatpush2.bf16.msra.mxu0 %v1093_v3  ;;  %v806_v3 = vld [vmem:[%s6984_s16 + $0xcc8] sm:$0xff] }
 0x2bd   : > { %2713 = vmatpush2.bf16.msra.mxu1 %v1349_v4  ;;  %2673 = vmatprep.subr.bf16.mxu0 %v1078_v5  ;;  %v1493_v4 = vunpack.c.l.s8.bf16 %v693_v47  ;;  %v1749_v5 = vunpack.c.l.s8.bf16 %v821_v49  ;;  %v1734_v7 = vunpack.c.h.s8.bf16 %v806_v3  ;;  %v1718_v10 = vunpack.c.l.s8.bf16 %v806_v3 }
 0x2be   : > { %2714 = vmatprep.subr.bf16.mxu1 %v1334_v6  ;;  %v1478_v6 = vunpack.c.h.s8.bf16 %v678_v1 }
 0x2c0   : > { %2674 = vmatpush2.bf16.msra.mxu0 %v1077_v27  ;;  %v805_v27 = vld [vmem:[%s6984_s16 + $0xcc0] sm:$0xff] }
 0x2c1   : > { %2715 = vmatpush2.bf16.msra.mxu1 %v1333_v31  ;;  %2675 = vmatprep.subr.bf16.mxu0 %v1062_v37  ;;  %v1477_v31 = vunpack.c.h.s8.bf16 %v677_v8  ;;  %v1733_v37 = vunpack.c.h.s8.bf16 %v805_v27 }
 0x2c2   : > { %2716 = vmatprep.subr.bf16.mxu1 %v1318_v9  ;;  %v1462_v9 = vunpack.c.l.s8.bf16 %v678_v1 }
 0x2c4   : > { %2676 = vmatpush2.bf16.msra.mxu0 %v1061_v12  ;;  %v790_v12 = vld [vmem:[%s6984_s16 + $0xc48] sm:$0xff] }
 0x2c5   : > { %2717 = vmatpush2.bf16.msra.mxu1 %v1317_v13  ;;  %2677 = vmatprep.subr.bf16.mxu0 %v1046_v14  ;;  %v1461_v13 = vunpack.c.l.s8.bf16 %v677_v8  ;;  %v1717_v14 = vunpack.c.l.s8.bf16 %v805_v27  ;;  %v1702_v16 = vunpack.c.h.s8.bf16 %v790_v12  ;;  %v1686_v29 = vunpack.c.l.s8.bf16 %v790_v12 }
 0x2c6   : > { %2718 = vmatprep.subr.bf16.mxu1 %v1302_v15  ;;  %v1446_v15 = vunpack.c.h.s8.bf16 %v662_v11 }
 0x2c8   : > { %2678 = vmatpush2.bf16.msra.mxu0 %v1045_v21  ;;  %v789_v21 = vld [vmem:[%s6984_s16 + $0xc40] sm:$0xff] }
 0x2c9   : > { %2719 = vmatpush2.bf16.msra.mxu1 %v1301_v22  ;;  %2729 = vmatprep.subr.bf16.mxu0 %v1542_v25  ;;  %v1445_v22 = vunpack.c.h.s8.bf16 %v661_v18  ;;  %v1701_v25 = vunpack.c.h.s8.bf16 %v789_v21 }
 0x2ca   : > { %2770 = vmatprep.subr.bf16.mxu1 %v1798_v26  ;;  %v1430_v26 = vunpack.c.l.s8.bf16 %v662_v11 }
 0x2cb   : > { %v2435_v36 = vpop.f32.mrf.mxu0  ;;  %2680 = vmatmul.mubr.bf16.vlgmr.msra.gmra.mxu0 %v7072_v52 }
 0x2cc   : > { %v2476_v38 = vpop.f32.mrf.mxu1  ;;  %2721 = vmatmul.mubr.bf16.vlgmr.msra.gmra.mxu1 %v7081_v61  ;;  %v2436_v42 = vadd.f32 %v2435_v36, %v7376_v41  ;;  %2730 = vmatpush1.bf16.msra.mxu0 %v1541_v30  ;;  %v902_v30 = vld [vmem:[%s6984_s16 + $0xfc8] sm:$0xff]  ;;  %v901_v36 = vld [vmem:[%s6984_s16 + $0xfc0] sm:$0xff] }
 0x2cd   : > { %2771 = vmatpush1.bf16.msra.mxu1 %v1797_v32  ;;  %v2437_v20 = vpop.f32.mrf.mxu0  ;;  %2731 = vmatprep.subr.bf16.mxu0 %v1526_v33  ;;  %v1429_v32 = vunpack.c.l.s8.bf16 %v661_v18  ;;  %v1685_v33 = vunpack.c.l.s8.bf16 %v789_v21 }
 0x2ce   : > { %v2478_v24 = vpop.f32.mrf.mxu1  ;;  %2772 = vmatprep.subr.bf16.mxu1 %v1782_v34  ;;  %v7419_v53 = vadd.f32 %v2476_v38, %v2436_v42  ;;  %v2438_v54 = vadd.f32 %v2437_v20, %v7380_v48  ;;  %2761 = vmatprep.mubr.bf16.mxu0 %v7077_v60  ;;  %v1494_v48 = vunpack.c.l.s8.bf16 %v694_v35  ;;  %v1670_v34 = vunpack.c.h.s8.bf16 %v774_v19  ;;  %v758_v20 = vld [vmem:[%s6984_s16 + $0xb48] sm:$0xff] }
 0x2cf   : > { %2802 = vmatprep.mubr.bf16.mxu1 %v7087_v50  ;;  %v2439_v41 = vpop.f32.mrf.mxu0  ;;  %v1926_v35 = vunpack.c.h.s8.bf16 %v902_v30  ;;  %v1669_v38 = vunpack.c.h.s8.bf16 %v773_v28  ;;  %v1925_v42 = vunpack.c.h.s8.bf16 %v901_v36  ;;  %v1638_v47 = vunpack.c.h.s8.bf16 %v758_v20 }
 0x2d0   : > { %v2480_v55 = vpop.f32.mrf.mxu1  ;;  %v7424_v56 = vadd.f32 %v2478_v24, %v2438_v54  ;;  %2732 = vmatpush1.bf16.msra.mxu0 %v1525_v43  ;;  %v1654_v43 = vunpack.c.l.s8.bf16 %v774_v19  ;;  %v886_v24 = vld [vmem:[%s6984_s16 + $0xf48] sm:$0xff]  ;;  %v757_v54 = vld [vmem:[%s6984_s16 + $0xb40] sm:$0xff] }
 0x2d1   : > { %2773 = vmatpush1.bf16.msra.mxu1 %v1781_v44  ;;  %v2440_v51 = vpop.f32.mrf.mxu0  ;;  %2733 = vmatprep.subr.bf16.mxu0 %v1510_v45  ;;  %v1910_v44 = vunpack.c.l.s8.bf16 %v902_v30  ;;  %v1653_v45 = vunpack.c.l.s8.bf16 %v773_v28  ;;  %v1894_v49 = vunpack.c.h.s8.bf16 %v886_v24  ;;  %v885_v41 = vld [vmem:[%s6984_s16 + $0xf40] sm:$0xff]  ;;  %v1637_v55 = vunpack.c.h.s8.bf16 %v757_v54 }
 0x2d2   : > { %v2481_v62 = vpop.f32.mrf.mxu1  ;;  %2774 = vmatprep.subr.bf16.mxu1 %v1766_v46  ;;  %v3336_v0 = vcombine.low %v7419_v53, %v7424_v56  ;;  %v1909_v46 = vunpack.c.l.s8.bf16 %v901_v36  ;;  %v1878_v51 = vunpack.c.l.s8.bf16 %v886_v24  ;;  %v1877_v1 = vunpack.c.l.s8.bf16 %v885_v41 }
 0x2d3   : > { %v742_v62 = vld [vmem:[%s6984_s16 + $0xac8] sm:$0xff] }
 0x2d4   : > { %2734 = vmatpush1.bf16.msra.mxu0 %v1509_v57  ;;  %v1893_v57 = vunpack.c.h.s8.bf16 %v885_v41  ;;  %v1606_v3 = vunpack.c.h.s8.bf16 %v742_v62  ;;  %v1590_v27 = vunpack.c.l.s8.bf16 %v742_v62 }
 0x2d5   : > { %2775 = vmatpush1.bf16.msra.mxu1 %v1765_v58  ;;  %2735 = vmatprep.subr.bf16.mxu0 %v1494_v48  ;;  %v1622_v58 = vunpack.c.l.s8.bf16 %v758_v20  ;;  %v870_v48 = vld [vmem:[%s6984_s16 + $0xec8] sm:$0xff] }
 0x2d6   : > { %2776 = vmatprep.subr.bf16.mxu1 %v1750_v63  ;;  %v1621_v63 = vunpack.c.l.s8.bf16 %v757_v54 }
 0x2d8   : > { %2736 = vmatpush1.bf16.msra.mxu0 %v1493_v4  ;;  %v1862_v4 = vunpack.c.h.s8.bf16 %v870_v48 }
 0x2d9   : > { %2777 = vmatpush1.bf16.msra.mxu1 %v1749_v5  ;;  %2737 = vmatprep.subr.bf16.mxu0 %v1478_v6  ;;  %v741_v5 = vld [vmem:[%s6984_s16 + $0xac0] sm:$0xff] }
 0x2da   : > { %2778 = vmatprep.subr.bf16.mxu1 %v1734_v7  ;;  %v869_v6 = vld [vmem:[%s6984_s16 + $0xec0] sm:$0xff]  ;;  %v1605_v7 = vunpack.c.h.s8.bf16 %v741_v5 }
 0x2db   : > { %v1861_v8 = vunpack.c.h.s8.bf16 %v869_v6  ;;  %v1845_v11 = vunpack.c.l.s8.bf16 %v869_v6  ;;  %v552_v6 = vld [vmem:[%s6984_s16 + $0x4d8] sm:$0xff] }
 0x2dc   : > { %2738 = vmatpush1.bf16.msra.mxu0 %v1477_v31  ;;  %v1846_v31 = vunpack.c.l.s8.bf16 %v870_v48 }
 0x2dd   : > { %2779 = vmatpush1.bf16.msra.mxu1 %v1733_v37  ;;  %2739 = vmatprep.subr.bf16.mxu0 %v1462_v9  ;;  %v726_v37 = vld [vmem:[%s6984_s16 + $0xa48] sm:$0xff] }
 0x2de   : > { %2780 = vmatprep.subr.bf16.mxu1 %v1718_v10  ;;  %v854_v9 = vld [vmem:[%s6984_s16 + $0xe48] sm:$0xff]  ;;  %v1589_v10 = vunpack.c.l.s8.bf16 %v741_v5  ;;  %v1574_v12 = vunpack.c.h.s8.bf16 %v726_v37  ;;  %v1558_v21 = vunpack.c.l.s8.bf16 %v726_v37  ;;  %v424_v5 = vld [vmem:[%s6984_s16 + $0xd8] sm:$0xff]  ;;  %v423_v37 = vld [vmem:[%s6984_s16 + $0xd0] sm:$0xff] }
 0x2e0   : > { %2740 = vmatpush1.bf16.msra.mxu0 %v1461_v13  ;;  %v1830_v13 = vunpack.c.h.s8.bf16 %v854_v9 }
 0x2e1   : > { %2781 = vmatpush1.bf16.msra.mxu1 %v1717_v14  ;;  %2741 = vmatprep.subr.bf16.mxu0 %v1446_v15  ;;  %v725_v14 = vld [vmem:[%s6984_s16 + $0xa40] sm:$0xff] }
 0x2e2   : > { %2782 = vmatprep.subr.bf16.mxu1 %v1702_v16  ;;  %v853_v15 = vld [vmem:[%s6984_s16 + $0xe40] sm:$0xff]  ;;  %v1573_v16 = vunpack.c.h.s8.bf16 %v725_v14 }
 0x2e3   : > { %v1829_v18 = vunpack.c.h.s8.bf16 %v853_v15  ;;  %v1813_v19 = vunpack.c.l.s8.bf16 %v853_v15  ;;  %v536_v15 = vld [vmem:[%s6984_s16 + $0x458] sm:$0xff] }
 0x2e4   : > { %2742 = vmatpush1.bf16.msra.mxu0 %v1445_v22  ;;  %v1814_v22 = vunpack.c.l.s8.bf16 %v854_v9  ;;  %v551_v9 = vld [vmem:[%s6984_s16 + $0x4d0] sm:$0xff] }
 0x2e5   : > { %2783 = vmatpush1.bf16.msra.mxu1 %v1701_v25  ;;  %2743 = vmatprep.subr.bf16.mxu0 %v1430_v26  ;;  %v456_v25 = vld [vmem:[%s6984_s16 + $0x1d8] sm:$0xff] }
 0x2e6   : > { %2784 = vmatprep.subr.bf16.mxu1 %v1686_v29  ;;  %v584_v26 = vld [vmem:[%s6984_s16 + $0x5d8] sm:$0xff]  ;;  %v1557_v29 = vunpack.c.l.s8.bf16 %v725_v14  ;;  %v1032_v30 = vunpack.c.h.s8.bf16 %v456_v25  ;;  %v1016_v36 = vunpack.c.l.s8.bf16 %v456_v25  ;;  %v407_v25 = vld [vmem:[%s6984_s16 + $0x50] sm:$0xff] }
 0x2e7   : > { %v408_v14 = vld [vmem:[%s6984_s16 + $0x58] sm:$0xff] }
 0x2e8   : > { %2744 = vmatpush1.bf16.msra.mxu0 %v1429_v32  ;;  %v1288_v32 = vunpack.c.h.s8.bf16 %v584_v26 }
 0x2e9   : > { %2785 = vmatpush1.bf16.msra.mxu1 %v1685_v33  ;;  %2745 = vmatprep.subr.bf16.mxu0 %v1670_v34  ;;  %v455_v33 = vld [vmem:[%s6984_s16 + $0x1d0] sm:$0xff] }
 0x2ea   : > { %2786 = vmatprep.subr.bf16.mxu1 %v1926_v35  ;;  %v583_v34 = vld [vmem:[%s6984_s16 + $0x5d0] sm:$0xff]  ;;  %v1031_v35 = vunpack.c.h.s8.bf16 %v455_v33 }
 0x2eb   : > { %v1287_v28 = vunpack.c.h.s8.bf16 %v583_v34 }
 0x2ec   : > { %2746 = vmatpush2.bf16.msra.mxu0 %v1669_v38  ;;  %v1272_v38 = vunpack.c.l.s8.bf16 %v584_v26  ;;  %v535_v26 = vld [vmem:[%s6984_s16 + $0x450] sm:$0xff] }
 0x2ed   : > { %2787 = vmatpush2.bf16.msra.mxu1 %v1925_v42  ;;  %2747 = vmatprep.subr.bf16.mxu0 %v1654_v43  ;;  %v440_v42 = vld [vmem:[%s6984_s16 + $0x158] sm:$0xff] }
 0x2ee   : > { %2788 = vmatprep.subr.bf16.mxu1 %v1910_v44  ;;  %v568_v43 = vld [vmem:[%s6984_s16 + $0x558] sm:$0xff]  ;;  %v1000_v54 = vunpack.c.h.s8.bf16 %v440_v42 }
 0x2ef   : > { %v1256_v41 = vunpack.c.h.s8.bf16 %v568_v43 }
 0x2f0   : > { %2748 = vmatpush2.bf16.msra.mxu0 %v1653_v45  ;;  %v1015_v45 = vunpack.c.l.s8.bf16 %v455_v33  ;;  %v520_v33 = vld [vmem:[%s6984_s16 + $0x3d8] sm:$0xff] }
 0x2f1   : > { %2789 = vmatpush2.bf16.msra.mxu1 %v1909_v46  ;;  %2749 = vmatprep.subr.bf16.mxu0 %v1638_v47  ;;  %v1271_v46 = vunpack.c.l.s8.bf16 %v583_v34  ;;  %v648_v34 = vld [vmem:[%s6984_s16 + $0x7d8] sm:$0xff] }
 0x2f2   : > { %2790 = vmatprep.subr.bf16.mxu1 %v1894_v49 }
 0x2f4   : > { %2750 = vmatpush2.bf16.msra.mxu0 %v1637_v55  ;;  %v439_v55 = vld [vmem:[%s6984_s16 + $0x150] sm:$0xff] }
 0x2f5   : > { %2791 = vmatpush2.bf16.msra.mxu1 %v1893_v57  ;;  %2751 = vmatprep.subr.bf16.mxu0 %v1622_v58  ;;  %v567_v57 = vld [vmem:[%s6984_s16 + $0x550] sm:$0xff]  ;;  %v999_v62 = vunpack.c.h.s8.bf16 %v439_v55 }
 0x2f6   : > { %2792 = vmatprep.subr.bf16.mxu1 %v1878_v51  ;;  %v1255_v48 = vunpack.c.h.s8.bf16 %v567_v57 }
 0x2f8   : > { %2752 = vmatpush2.bf16.msra.mxu0 %v1621_v63 }
 0x2f9   : > { %2793 = vmatpush2.bf16.msra.mxu1 %v1877_v1  ;;  %2753 = vmatprep.subr.bf16.mxu0 %v1606_v3  ;;  %v984_v3 = vunpack.c.l.s8.bf16 %v440_v42  ;;  %v519_v42 = vld [vmem:[%s6984_s16 + $0x3d0] sm:$0xff] }
 0x2fa   : > { %2794 = vmatprep.subr.bf16.mxu1 %v1862_v4  ;;  %v1240_v4 = vunpack.c.l.s8.bf16 %v568_v43  ;;  %v647_v43 = vld [vmem:[%s6984_s16 + $0x7d0] sm:$0xff] }
 0x2fc   : > { %2754 = vmatpush2.bf16.msra.mxu0 %v1605_v7  ;;  %v983_v7 = vunpack.c.l.s8.bf16 %v439_v55  ;;  %v1143_v55 = vunpack.c.l.s8.bf16 %v519_v42 }
 0x2fd   : > { %2795 = vmatpush2.bf16.msra.mxu1 %v1861_v8  ;;  %2755 = vmatprep.subr.bf16.mxu0 %v1590_v27  ;;  %v1239_v8 = vunpack.c.l.s8.bf16 %v567_v57  ;;  %v968_v27 = vunpack.c.h.s8.bf16 %v424_v5  ;;  %v1399_v57 = vunpack.c.l.s8.bf16 %v647_v43 }
 0x2fe   : > { %2796 = vmatprep.subr.bf16.mxu1 %v1846_v31  ;;  %v1224_v31 = vunpack.c.h.s8.bf16 %v552_v6 }
 0x300   : > { %2756 = vmatpush2.bf16.msra.mxu0 %v1589_v10  ;;  %v967_v10 = vunpack.c.h.s8.bf16 %v423_v37 }
 0x301   : > { %2797 = vmatpush2.bf16.msra.mxu1 %v1845_v11  ;;  %2757 = vmatprep.subr.bf16.mxu0 %v1574_v12  ;;  %v1223_v11 = vunpack.c.h.s8.bf16 %v551_v9  ;;  %v952_v12 = vunpack.c.l.s8.bf16 %v424_v5  ;;  %v488_v5 = vld [vmem:[%s6984_s16 + $0x2d8] sm:$0xff] }
 0x302   : > { %2798 = vmatprep.subr.bf16.mxu1 %v1830_v13  ;;  %v1208_v13 = vunpack.c.l.s8.bf16 %v552_v6  ;;  %v616_v6 = vld [vmem:[%s6984_s16 + $0x6d8] sm:$0xff] }
 0x304   : > { %2758 = vmatpush2.bf16.msra.mxu0 %v1573_v16  ;;  %v951_v16 = vunpack.c.l.s8.bf16 %v423_v37  ;;  %v487_v37 = vld [vmem:[%s6984_s16 + $0x2d0] sm:$0xff] }
 0x305   : > { %2799 = vmatpush2.bf16.msra.mxu1 %v1829_v18  ;;  %2759 = vmatprep.subr.bf16.mxu0 %v1558_v21  ;;  %v1207_v18 = vunpack.c.l.s8.bf16 %v551_v9  ;;  %v936_v21 = vunpack.c.h.s8.bf16 %v408_v14  ;;  %v615_v9 = vld [vmem:[%s6984_s16 + $0x6d0] sm:$0xff] }
 0x306   : > { %2800 = vmatprep.subr.bf16.mxu1 %v1814_v22  ;;  %v1192_v22 = vunpack.c.h.s8.bf16 %v536_v15 }
 0x308   : > { %2760 = vmatpush2.bf16.msra.mxu0 %v1557_v29  ;;  %v935_v29 = vunpack.c.h.s8.bf16 %v407_v25 }
 0x309   : > { %2801 = vmatpush2.bf16.msra.mxu1 %v1813_v19  ;;  %2811 = vmatprep.subr.bf16.mxu0 %v1032_v30  ;;  %v1191_v19 = vunpack.c.h.s8.bf16 %v535_v26  ;;  %v920_v30 = vunpack.c.l.s8.bf16 %v408_v14  ;;  %v472_v14 = vld [vmem:[%s6984_s16 + $0x258] sm:$0xff] }
 0x30a   : > { %2852 = vmatprep.subr.bf16.mxu1 %v1288_v32  ;;  %v1176_v32 = vunpack.c.l.s8.bf16 %v536_v15  ;;  %v600_v15 = vld [vmem:[%s6984_s16 + $0x658] sm:$0xff] }
 0x30b   : > { %v2517_v44 = vpop.f32.mrf.mxu0  ;;  %2762 = vmatmul.mubr.bf16.vlgmr.msra.gmra.mxu0 %v7056_v17 }
 0x30c   : > { %v2558_v20 = vpop.f32.mrf.mxu1  ;;  %2803 = vmatmul.mubr.bf16.vlgmr.msra.gmra.mxu1 %v7125_v40  ;;  %2812 = vmatpush1.bf16.msra.mxu0 %v1031_v35  ;;  %v919_v35 = vunpack.c.l.s8.bf16 %v407_v25  ;;  %v471_v25 = vld [vmem:[%s6984_s16 + $0x250] sm:$0xff] }
 0x30d   : > { %v7460_v24 = vadd.f32 %v2558_v20, %v2517_v44  ;;  %2853 = vmatpush1.bf16.msra.mxu1 %v1287_v28  ;;  %v7462_v47 = vpop.f32.mrf.mxu0  ;;  %2813 = vmatprep.subr.bf16.mxu0 %v1016_v36  ;;  %v1175_v28 = vunpack.c.l.s8.bf16 %v535_v26  ;;  %v1160_v36 = vunpack.c.h.s8.bf16 %v520_v33  ;;  %v1159_v44 = vunpack.c.h.s8.bf16 %v519_v42  ;;  %v599_v26 = vld [vmem:[%s6984_s16 + $0x650] sm:$0xff] }
 0x30e   : > { %v7464_v49 = vpop.f32.mrf.mxu1  ;;  %2854 = vmatprep.subr.bf16.mxu1 %v1272_v38  ;;  %2843 = vmatprep.mubr.bf16.mxu0 %v7037_v59  ;;  %v1416_v38 = vunpack.c.h.s8.bf16 %v648_v34  ;;  %v1415_v20 = vunpack.c.h.s8.bf16 %v647_v43  ;;  %v711_v42 = vld [vmem:[%s6984_s16 + $0x9d0] sm:$0xff] }
 0x30f   : > { %2884 = vmatprep.mubr.bf16.mxu1 %v7043_v2  ;;  %v2521_v58 = vpop.f32.mrf.mxu0  ;;  %v839_v43 = vld [vmem:[%s6984_s16 + $0xdd0] sm:$0xff] }
 0x310   : > { %v2562_v51 = vpop.f32.mrf.mxu1  ;;  %2814 = vmatpush1.bf16.msra.mxu0 %v1015_v45  ;;  %v1144_v45 = vunpack.c.l.s8.bf16 %v520_v33  ;;  %v712_v33 = vld [vmem:[%s6984_s16 + $0x9d8] sm:$0xff] }
 0x311   : > { %2855 = vmatpush1.bf16.msra.mxu1 %v1271_v46  ;;  %v2522_v63 = vpop.f32.mrf.mxu0  ;;  %2815 = vmatprep.subr.bf16.mxu0 %v1000_v54  ;;  %v1400_v46 = vunpack.c.l.s8.bf16 %v648_v34  ;;  %v504_v54 = vld [vmem:[%s6984_s16 + $0x358] sm:$0xff] }
 0x312   : > { %v2563_v1 = vpop.f32.mrf.mxu1  ;;  %2856 = vmatprep.subr.bf16.mxu1 %v1256_v41  ;;  %v632_v41 = vld [vmem:[%s6984_s16 + $0x758] sm:$0xff]  ;;  %v1128_v58 = vunpack.c.h.s8.bf16 %v504_v54 }
 0x313   : > { %v1384_v51 = vunpack.c.h.s8.bf16 %v632_v41  ;;  %v840_v34 = vld [vmem:[%s6984_s16 + $0xdd8] sm:$0xff] }
 0x314   : > { %2816 = vmatpush1.bf16.msra.mxu0 %v999_v62  ;;  %v503_v62 = vld [vmem:[%s6984_s16 + $0x350] sm:$0xff] }
 0x315   : > { %2857 = vmatpush1.bf16.msra.mxu1 %v1255_v48  ;;  %2817 = vmatprep.subr.bf16.mxu0 %v984_v3  ;;  %v631_v48 = vld [vmem:[%s6984_s16 + $0x750] sm:$0xff]  ;;  %v1127_v63 = vunpack.c.h.s8.bf16 %v503_v62  ;;  %v1112_v3 = vunpack.c.l.s8.bf16 %v504_v54  ;;  %v696_v54 = vld [vmem:[%s6984_s16 + $0x958] sm:$0xff] }
 0x316   : > { %2858 = vmatprep.subr.bf16.mxu1 %v1240_v4  ;;  %v1383_v1 = vunpack.c.h.s8.bf16 %v631_v48  ;;  %v1368_v4 = vunpack.c.l.s8.bf16 %v632_v41  ;;  %v824_v41 = vld [vmem:[%s6984_s16 + $0xd58] sm:$0xff] }
 0x318   : > { %2818 = vmatpush1.bf16.msra.mxu0 %v983_v7  ;;  %v1111_v7 = vunpack.c.l.s8.bf16 %v503_v62  ;;  %v1527_v62 = vunpack.c.l.s8.bf16 %v711_v42 }
 0x319   : > { %2859 = vmatpush1.bf16.msra.mxu1 %v1239_v8  ;;  %2819 = vmatprep.subr.bf16.mxu0 %v968_v27  ;;  %v1367_v8 = vunpack.c.l.s8.bf16 %v631_v48  ;;  %v1096_v27 = vunpack.c.h.s8.bf16 %v488_v5  ;;  %v1783_v48 = vunpack.c.l.s8.bf16 %v839_v43 }
 0x31a   : > { %2860 = vmatprep.subr.bf16.mxu1 %v1224_v31  ;;  %v1352_v31 = vunpack.c.h.s8.bf16 %v616_v6 }
 0x31c   : > { %2820 = vmatpush1.bf16.msra.mxu0 %v967_v10  ;;  %v1095_v10 = vunpack.c.h.s8.bf16 %v487_v37 }
 0x31d   : > { %2861 = vmatpush1.bf16.msra.mxu1 %v1223_v11  ;;  %2821 = vmatprep.subr.bf16.mxu0 %v952_v12  ;;  %v1351_v11 = vunpack.c.h.s8.bf16 %v615_v9  ;;  %v1080_v12 = vunpack.c.l.s8.bf16 %v488_v5  ;;  %v695_v5 = vld [vmem:[%s6984_s16 + $0x950] sm:$0xff] }
 0x31e   : > { %2862 = vmatprep.subr.bf16.mxu1 %v1208_v13  ;;  %v1336_v13 = vunpack.c.l.s8.bf16 %v616_v6  ;;  %v823_v6 = vld [vmem:[%s6984_s16 + $0xd50] sm:$0xff] }
 0x320   : > { %2822 = vmatpush1.bf16.msra.mxu0 %v951_v16  ;;  %v1079_v16 = vunpack.c.l.s8.bf16 %v487_v37 }
 0x321   : > { %2863 = vmatpush1.bf16.msra.mxu1 %v1207_v18  ;;  %2823 = vmatprep.subr.bf16.mxu0 %v936_v21  ;;  %v1335_v18 = vunpack.c.l.s8.bf16 %v615_v9  ;;  %v1064_v21 = vunpack.c.h.s8.bf16 %v472_v14 }
 0x322   : > { %2864 = vmatprep.subr.bf16.mxu1 %v1192_v22  ;;  %v1320_v22 = vunpack.c.h.s8.bf16 %v600_v15 }
 0x324   : > { %2824 = vmatpush1.bf16.msra.mxu0 %v935_v29  ;;  %v1063_v29 = vunpack.c.h.s8.bf16 %v471_v25 }
 0x325   : > { %2865 = vmatpush1.bf16.msra.mxu1 %v1191_v19  ;;  %2825 = vmatprep.subr.bf16.mxu0 %v920_v30  ;;  %v1319_v19 = vunpack.c.h.s8.bf16 %v599_v26  ;;  %v1048_v30 = vunpack.c.l.s8.bf16 %v472_v14  ;;  %v808_v14 = vld [vmem:[%s6984_s16 + $0xcd8] sm:$0xff] }
 0x326   : > { %2866 = vmatprep.subr.bf16.mxu1 %v1176_v32  ;;  %v1304_v32 = vunpack.c.l.s8.bf16 %v600_v15  ;;  %v3344_v15 = vrot.slane %v3336_v0, %v7337_v23 }
 0x328   : > { %2826 = vmatpush1.bf16.msra.mxu0 %v919_v35  ;;  %v1047_v35 = vunpack.c.l.s8.bf16 %v471_v25 }
 0x329   : > { %2867 = vmatpush1.bf16.msra.mxu1 %v1175_v28  ;;  %2827 = vmatprep.subr.bf16.mxu0 %v1160_v36  ;;  %v1303_v28 = vunpack.c.l.s8.bf16 %v599_v26  ;;  %v1544_v36 = vunpack.c.h.s8.bf16 %v712_v33  ;;  %v1736_v26 = vunpack.c.h.s8.bf16 %v808_v14 }
 0x32a   : > { %2868 = vmatprep.subr.bf16.mxu1 %v1416_v38  ;;  %v1800_v38 = vunpack.c.h.s8.bf16 %v840_v34 }
 0x32c   : > { %2828 = vmatpush2.bf16.msra.mxu0 %v1159_v44  ;;  %v1543_v44 = vunpack.c.h.s8.bf16 %v711_v42 }
 0x32d   : > { %2869 = vmatpush2.bf16.msra.mxu1 %v1415_v20  ;;  %2829 = vmatprep.subr.bf16.mxu0 %v1144_v45  ;;  %v1799_v20 = vunpack.c.h.s8.bf16 %v839_v43  ;;  %v1528_v45 = vunpack.c.l.s8.bf16 %v712_v33  ;;  %v1720_v33 = vunpack.c.l.s8.bf16 %v808_v14  ;;  %v663_v43 = vld [vmem:[%s6984_s16 + $0x850] sm:$0xff] }
 0x32e   : > { %2870 = vmatprep.subr.bf16.mxu1 %v1400_v46  ;;  %v1784_v46 = vunpack.c.l.s8.bf16 %v840_v34  ;;  %v664_v34 = vld [vmem:[%s6984_s16 + $0x858] sm:$0xff] }
 0x330   : > { %2830 = vmatpush2.bf16.msra.mxu0 %v1143_v55 }
 0x331   : > { %2871 = vmatpush2.bf16.msra.mxu1 %v1399_v57  ;;  %2831 = vmatprep.subr.bf16.mxu0 %v1128_v58  ;;  %v2561_v58 = vadd.f32 %v7464_v49, %v7462_v47 }
 0x332   : > { %2872 = vmatprep.subr.bf16.mxu1 %v1384_v51 }
 0x334   : > { %2832 = vmatpush2.bf16.msra.mxu0 %v1127_v63 }
 0x335   : > { %2873 = vmatpush2.bf16.msra.mxu1 %v1383_v1  ;;  %2833 = vmatprep.subr.bf16.mxu0 %v1112_v3  ;;  %v1512_v3 = vunpack.c.h.s8.bf16 %v696_v54 }
 0x336   : > { %2874 = vmatprep.subr.bf16.mxu1 %v1368_v4  ;;  %v1768_v4 = vunpack.c.h.s8.bf16 %v824_v41 }
 0x338   : > { %2834 = vmatpush2.bf16.msra.mxu0 %v1111_v7 }
 0x339   : > { %2875 = vmatpush2.bf16.msra.mxu1 %v1367_v8  ;;  %2835 = vmatprep.subr.bf16.mxu0 %v1096_v27  ;;  %v1511_v27 = vunpack.c.h.s8.bf16 %v695_v5 }
 0x33a   : > { %2876 = vmatprep.subr.bf16.mxu1 %v1352_v31  ;;  %v1767_v31 = vunpack.c.h.s8.bf16 %v823_v6 }
 0x33c   : > { %2836 = vmatpush2.bf16.msra.mxu0 %v1095_v10  ;;  %v1496_v10 = vunpack.c.l.s8.bf16 %v696_v54 }
 0x33d   : > { %2877 = vmatpush2.bf16.msra.mxu1 %v1351_v11  ;;  %2837 = vmatprep.subr.bf16.mxu0 %v1080_v12  ;;  %v1752_v11 = vunpack.c.l.s8.bf16 %v824_v41  ;;  %v776_v41 = vld [vmem:[%s6984_s16 + $0xbd8] sm:$0xff] }
 0x33e   : > { %2878 = vmatprep.subr.bf16.mxu1 %v1336_v13  ;;  %v680_v13 = vld [vmem:[%s6984_s16 + $0x8d8] sm:$0xff] }
 0x33f   : > { %v1480_v25 = vunpack.c.h.s8.bf16 %v680_v13  ;;  %v1464_v0 = vunpack.c.l.s8.bf16 %v680_v13  ;;  %v872_v13 = vld [vmem:[%s6984_s16 + $0xed8] sm:$0xff] }
 0x340   : > { %2838 = vmatpush2.bf16.msra.mxu0 %v1079_v16 }
 0x341   : > { %2879 = vmatpush2.bf16.msra.mxu1 %v1335_v18  ;;  %2839 = vmatprep.subr.bf16.mxu0 %v1064_v21  ;;  %v1495_v18 = vunpack.c.l.s8.bf16 %v695_v5  ;;  %v1751_v21 = vunpack.c.l.s8.bf16 %v823_v6  ;;  %v760_v6 = vld [vmem:[%s6984_s16 + $0xb58] sm:$0xff] }
 0x342   : > { %2880 = vmatprep.subr.bf16.mxu1 %v1320_v22  ;;  %v394_v22 = vld [vmem:[#allocation2] sm:$0xff] }
 0x344   : > { %2840 = vmatpush2.bf16.msra.mxu0 %v1063_v29  ;;  %v679_v29 = vld [vmem:[%s6984_s16 + $0x8d0] sm:$0xff] }
 0x345   : > { %2881 = vmatpush2.bf16.msra.mxu1 %v1319_v19  ;;  %2841 = vmatprep.subr.bf16.mxu0 %v1048_v30  ;;  %v807_v19 = vld [vmem:[%s6984_s16 + $0xcd0] sm:$0xff]  ;;  %v1479_v53 = vunpack.c.h.s8.bf16 %v679_v29 }
 0x346   : > { %2882 = vmatprep.subr.bf16.mxu1 %v1304_v32  ;;  %v1735_v56 = vunpack.c.h.s8.bf16 %v807_v19 }
 0x348   : > { %2842 = vmatpush2.bf16.msra.mxu0 %v1047_v35  ;;  %v792_v35 = vld [vmem:[%s6984_s16 + $0xc58] sm:$0xff] }
 0x349   : > { %2883 = vmatpush2.bf16.msra.mxu1 %v1303_v28  ;;  %2893 = vmatprep.subr.bf16.mxu0 %v1544_v36  ;;  %v1463_v28 = vunpack.c.l.s8.bf16 %v679_v29  ;;  %v1719_v36 = vunpack.c.l.s8.bf16 %v807_v19  ;;  %v1704_v42 = vunpack.c.h.s8.bf16 %v792_v35  ;;  %v1688_v54 = vunpack.c.l.s8.bf16 %v792_v35  ;;  %v855_v35 = vld [vmem:[%s6984_s16 + $0xe50] sm:$0xff] }
 0x34a   : > { %2934 = vmatprep.subr.bf16.mxu1 %v1800_v38  ;;  %v1448_v38 = vunpack.c.h.s8.bf16 %v664_v34  ;;  %v1848_v19 = vunpack.c.l.s8.bf16 %v872_v13 }
 0x34b   : > { %v2599_v55 = vpop.f32.mrf.mxu0  ;;  %2844 = vmatmul.mubr.bf16.vlgmr.msra.gmra.mxu0 %v7072_v52 }
 0x34c   : > { %v2640_v57 = vpop.f32.mrf.mxu1  ;;  %2885 = vmatmul.mubr.bf16.vlgmr.msra.gmra.mxu1 %v7081_v61  ;;  %v2600_v51 = vadd.f32 %v2599_v55, %v7460_v24  ;;  %2894 = vmatpush1.bf16.msra.mxu0 %v1543_v44  ;;  %v791_v44 = vld [vmem:[%s6984_s16 + $0xc50] sm:$0xff]  ;;  %v904_v55 = vld [vmem:[%s6984_s16 + $0xfd8] sm:$0xff] }
 0x34d   : > { %2935 = vmatpush1.bf16.msra.mxu1 %v1799_v20  ;;  %v2601_v63 = vpop.f32.mrf.mxu0  ;;  %2895 = vmatprep.subr.bf16.mxu0 %v1528_v45  ;;  %v1447_v20 = vunpack.c.h.s8.bf16 %v663_v43  ;;  %v1703_v45 = vunpack.c.h.s8.bf16 %v791_v44  ;;  %v1912_v5 = vunpack.c.l.s8.bf16 %v904_v55 }
 0x34e   : > { %v2642_v1 = vpop.f32.mrf.mxu1  ;;  %2936 = vmatprep.subr.bf16.mxu1 %v1784_v46  ;;  %v2602_v7 = vadd.f32 %v2601_v63, %v2561_v58  ;;  %2925 = vmatprep.mubr.bf16.mxu0 %v7077_v60  ;;  %v2641_v49 = vadd.f32 %v2640_v57, %v2600_v51  ;;  %v1432_v46 = vunpack.c.l.s8.bf16 %v664_v34  ;;  %v1431_v57 = vunpack.c.l.s8.bf16 %v663_v43  ;;  %v903_v63 = vld [vmem:[%s6984_s16 + $0xfd0] sm:$0xff]  ;;  %v458_v43 = vld [vmem:[%s6984_s16 + $0x1e8] sm:$0xff] }
 0x34f   : > { %2966 = vmatprep.mubr.bf16.mxu1 %v7087_v50  ;;  %v2603_v47 = vpop.f32.mrf.mxu0  ;;  %v1687_v58 = vunpack.c.l.s8.bf16 %v791_v44  ;;  %v1672_v51 = vunpack.c.h.s8.bf16 %v776_v41  ;;  %v727_v34 = vld [vmem:[%s6984_s16 + $0xa50] sm:$0xff]  ;;  %v586_v44 = vld [vmem:[%s6984_s16 + $0x5e8] sm:$0xff] }
 0x350   : > { %v2644_v24 = vpop.f32.mrf.mxu1  ;;  %v2643_v8 = vadd.f32 %v2642_v1, %v2602_v7  ;;  %2896 = vmatpush1.bf16.msra.mxu0 %v1527_v62  ;;  %v1928_v62 = vunpack.c.h.s8.bf16 %v904_v55  ;;  %v888_v7 = vld [vmem:[%s6984_s16 + $0xf58] sm:$0xff]  ;;  %v585_v55 = vld [vmem:[%s6984_s16 + $0x5e0] sm:$0xff] }
 0x351   : > { %2937 = vmatpush1.bf16.msra.mxu1 %v1783_v48  ;;  %v2604_v37 = vpop.f32.mrf.mxu0  ;;  %2897 = vmatprep.subr.bf16.mxu0 %v1512_v3  ;;  %v775_v48 = vld [vmem:[%s6984_s16 + $0xbd0] sm:$0xff]  ;;  %v1927_v3 = vunpack.c.h.s8.bf16 %v903_v63  ;;  %v1911_v24 = vunpack.c.l.s8.bf16 %v903_v63  ;;  %v570_v63 = vld [vmem:[%s6984_s16 + $0x568] sm:$0xff] }
 0x352   : > { %v2645_v9 = vpop.f32.mrf.mxu1  ;;  %2938 = vmatprep.subr.bf16.mxu1 %v1768_v4  ;;  %v3337_v12 = vcombine.low %v2641_v49, %v2643_v8  ;;  %v1671_v1 = vunpack.c.h.s8.bf16 %v775_v48  ;;  %v1656_v4 = vunpack.c.l.s8.bf16 %v776_v41  ;;  %v1655_v47 = vunpack.c.l.s8.bf16 %v775_v48  ;;  %v457_v41 = vld [vmem:[%s6984_s16 + $0x1e0] sm:$0xff]  ;;  %v442_v48 = vld [vmem:[%s6984_s16 + $0x168] sm:$0xff] }
 0x353   : > { %v1640_v49 = vunpack.c.h.s8.bf16 %v760_v6  ;;  %v1896_v8 = vunpack.c.h.s8.bf16 %v888_v7 }
 0x354   : > { %v3351_v16 = vrot.slane %v3337_v12, %v7337_v23  ;;  %2898 = vmatpush1.bf16.msra.mxu0 %v1511_v27  ;;  %v759_v27 = vld [vmem:[%s6984_s16 + $0xb50] sm:$0xff]  ;;  %v744_v12 = vld [vmem:[%s6984_s16 + $0xad8] sm:$0xff] }
 0x355   : > { %2939 = vmatpush1.bf16.msra.mxu1 %v1767_v31  ;;  %2899 = vmatprep.subr.bf16.mxu0 %v1496_v10  ;;  %v887_v31 = vld [vmem:[%s6984_s16 + $0xf50] sm:$0xff]  ;;  %v1639_v37 = vunpack.c.h.s8.bf16 %v759_v27  ;;  %v1624_v10 = vunpack.c.l.s8.bf16 %v760_v6  ;;  %v1623_v14 = vunpack.c.l.s8.bf16 %v759_v27  ;;  %v1592_v29 = vunpack.c.l.s8.bf16 %v744_v12  ;;  %v569_v27 = vld [vmem:[%s6984_s16 + $0x560] sm:$0xff] }
 0x356   : > { %2940 = vmatprep.subr.bf16.mxu1 %v1752_v11  ;;  %v3352_v30 = vcombine.low %v3344_v15, %v3351_v16  ;;  %v1895_v9 = vunpack.c.h.s8.bf16 %v887_v31  ;;  %v1880_v11 = vunpack.c.l.s8.bf16 %v888_v7  ;;  %v1879_v15 = vunpack.c.l.s8.bf16 %v887_v31 }
 0x357   : > { %v1608_v16 = vunpack.c.h.s8.bf16 %v744_v12  ;;  %v1273_v6 = vunpack.c.l.s8.bf16 %v585_v55 }
 0x358   : > { %v3392_v32 = vadd.f32 %v3352_v30, %v394_v22  ;;  %2900 = vmatpush1.bf16.msra.mxu0 %v1495_v18  ;;  %v1864_v18 = vunpack.c.h.s8.bf16 %v872_v13  ;;  %v871_v22 = vld [vmem:[%s6984_s16 + $0xed0] sm:$0xff]  ;;  %v728_v30 = vld [vmem:[%s6984_s16 + $0xa58] sm:$0xff] }
 0x359   : > { %2941 = vmatpush1.bf16.msra.mxu1 %v1751_v21  ;;  %2901 = vmatprep.subr.bf16.mxu0 %v1480_v25  ;;  %v743_v21 = vld [vmem:[%s6984_s16 + $0xad0] sm:$0xff] }
 0x35a   : > { %2942 = vmatprep.subr.bf16.mxu1 %v1736_v26  ;;  %3396 = vst [vmem:[#allocation2] sm:$0xff] %v3392_v32  ;;  %v1607_v25 = vunpack.c.h.s8.bf16 %v743_v21  ;;  %v1863_v26 = vunpack.c.h.s8.bf16 %v871_v22  ;;  %v856_v32 = vld [vmem:[%s6984_s16 + $0xe58] sm:$0xff] }
 0x35c   : > { %2902 = vmatpush1.bf16.msra.mxu0 %v1479_v53  ;;  %v1591_v53 = vunpack.c.l.s8.bf16 %v743_v21 }
 0x35d   : > { %2943 = vmatpush1.bf16.msra.mxu1 %v1735_v56  ;;  %2903 = vmatprep.subr.bf16.mxu0 %v1464_v0  ;;  %v1847_v56 = vunpack.c.l.s8.bf16 %v871_v22  ;;  %v1576_v0 = vunpack.c.h.s8.bf16 %v728_v30  ;;  %v1241_v22 = vunpack.c.l.s8.bf16 %v569_v27 }
 0x35e   : > { %2944 = vmatprep.subr.bf16.mxu1 %v1720_v33  ;;  %v1832_v33 = vunpack.c.h.s8.bf16 %v856_v32 }
 0x360   : > { %2904 = vmatpush1.bf16.msra.mxu0 %v1463_v28  ;;  %v1575_v28 = vunpack.c.h.s8.bf16 %v727_v34 }
 0x361   : > { %2945 = vmatpush1.bf16.msra.mxu1 %v1719_v36  ;;  %2905 = vmatprep.subr.bf16.mxu0 %v1448_v38  ;;  %v1831_v36 = vunpack.c.h.s8.bf16 %v855_v35  ;;  %v1560_v38 = vunpack.c.l.s8.bf16 %v728_v30 }
 0x362   : > { %2946 = vmatprep.subr.bf16.mxu1 %v1704_v42  ;;  %v1816_v42 = vunpack.c.l.s8.bf16 %v856_v32 }
 0x364   : > { %2906 = vmatpush1.bf16.msra.mxu0 %v1447_v20  ;;  %v1559_v20 = vunpack.c.l.s8.bf16 %v727_v34 }
 0x365   : > { %2947 = vmatpush1.bf16.msra.mxu1 %v1703_v45  ;;  %2907 = vmatprep.subr.bf16.mxu0 %v1432_v46  ;;  %v1815_v45 = vunpack.c.l.s8.bf16 %v855_v35  ;;  %v1034_v46 = vunpack.c.h.s8.bf16 %v458_v43 }
 0x366   : > { %2948 = vmatprep.subr.bf16.mxu1 %v1688_v54  ;;  %v1290_v54 = vunpack.c.h.s8.bf16 %v586_v44 }
 0x368   : > { %2908 = vmatpush1.bf16.msra.mxu0 %v1431_v57  ;;  %v1033_v57 = vunpack.c.h.s8.bf16 %v457_v41 }
 0x369   : > { %2949 = vmatpush1.bf16.msra.mxu1 %v1687_v58  ;;  %2909 = vmatprep.subr.bf16.mxu0 %v1672_v51  ;;  %v1289_v58 = vunpack.c.h.s8.bf16 %v585_v55  ;;  %v1018_v51 = vunpack.c.l.s8.bf16 %v458_v43 }
 0x36a   : > { %2950 = vmatprep.subr.bf16.mxu1 %v1928_v62  ;;  %v1274_v62 = vunpack.c.l.s8.bf16 %v586_v44 }
 0x36c   : > { %2910 = vmatpush2.bf16.msra.mxu0 %v1671_v1 }
 0x36d   : > { %2951 = vmatpush2.bf16.msra.mxu1 %v1927_v3  ;;  %2911 = vmatprep.subr.bf16.mxu0 %v1656_v4 }
 0x36e   : > { %2952 = vmatprep.subr.bf16.mxu1 %v1912_v5  ;;  %v1017_v5 = vunpack.c.l.s8.bf16 %v457_v41 }
 0x370   : > { %2912 = vmatpush2.bf16.msra.mxu0 %v1655_v47 }
 0x371   : > { %2953 = vmatpush2.bf16.msra.mxu1 %v1911_v24  ;;  %2913 = vmatprep.subr.bf16.mxu0 %v1640_v49  ;;  %v1002_v24 = vunpack.c.h.s8.bf16 %v442_v48  ;;  %v1258_v49 = vunpack.c.h.s8.bf16 %v570_v63 }
 0x372   : > { %2954 = vmatprep.subr.bf16.mxu1 %v1896_v8  ;;  %v441_v8 = vld [vmem:[%s6984_s16 + $0x160] sm:$0xff] }
 0x373   : > { %v985_v21 = vunpack.c.l.s8.bf16 %v441_v8 }
 0x374   : > { %2914 = vmatpush2.bf16.msra.mxu0 %v1639_v37 }
 0x375   : > { %2955 = vmatpush2.bf16.msra.mxu1 %v1895_v9  ;;  %2915 = vmatprep.subr.bf16.mxu0 %v1624_v10  ;;  %v1001_v10 = vunpack.c.h.s8.bf16 %v441_v8  ;;  %v505_v8 = vld [vmem:[%s6984_s16 + $0x360] sm:$0xff] }
 0x376   : > { %2956 = vmatprep.subr.bf16.mxu1 %v1880_v11  ;;  %v1257_v11 = vunpack.c.h.s8.bf16 %v569_v27  ;;  %v633_v27 = vld [vmem:[%s6984_s16 + $0x760] sm:$0xff] }
 0x378   : > { %2916 = vmatpush2.bf16.msra.mxu0 %v1623_v14  ;;  %v986_v14 = vunpack.c.l.s8.bf16 %v442_v48 }
 0x379   : > { %2957 = vmatpush2.bf16.msra.mxu1 %v1879_v15  ;;  %2917 = vmatprep.subr.bf16.mxu0 %v1608_v16  ;;  %v1242_v15 = vunpack.c.l.s8.bf16 %v570_v63  ;;  %v426_v16 = vld [vmem:[%s6984_s16 + $0xe8] sm:$0xff] }
 0x37a   : > { %2958 = vmatprep.subr.bf16.mxu1 %v1864_v18  ;;  %v554_v18 = vld [vmem:[%s6984_s16 + $0x4e8] sm:$0xff] }
 0x37c   : > { %2918 = vmatpush2.bf16.msra.mxu0 %v1607_v25  ;;  %v970_v25 = vunpack.c.h.s8.bf16 %v426_v16 }
 0x37d   : > { %2959 = vmatpush2.bf16.msra.mxu1 %v1863_v26  ;;  %2919 = vmatprep.subr.bf16.mxu0 %v1592_v29  ;;  %v1226_v26 = vunpack.c.h.s8.bf16 %v554_v18  ;;  %v425_v29 = vld [vmem:[%s6984_s16 + $0xe0] sm:$0xff] }
 0x37e   : > { %2960 = vmatprep.subr.bf16.mxu1 %v1848_v19  ;;  %v553_v19 = vld [vmem:[%s6984_s16 + $0x4e0] sm:$0xff]  ;;  %v969_v30 = vunpack.c.h.s8.bf16 %v425_v29  ;;  %v953_v34 = vunpack.c.l.s8.bf16 %v425_v29 }
 0x37f   : > { %v1225_v32 = vunpack.c.h.s8.bf16 %v553_v19  ;;  %v1209_v35 = vunpack.c.l.s8.bf16 %v553_v19 }
 0x380   : > { %2920 = vmatpush2.bf16.msra.mxu0 %v1591_v53  ;;  %v954_v53 = vunpack.c.l.s8.bf16 %v426_v16 }
 0x381   : > { %2961 = vmatpush2.bf16.msra.mxu1 %v1847_v56  ;;  %2921 = vmatprep.subr.bf16.mxu0 %v1576_v0  ;;  %v1210_v56 = vunpack.c.l.s8.bf16 %v554_v18  ;;  %v410_v0 = vld [vmem:[%s6984_s16 + $0x68] sm:$0xff] }
 0x382   : > { %2962 = vmatprep.subr.bf16.mxu1 %v1832_v33  ;;  %v538_v33 = vld [vmem:[%s6984_s16 + $0x468] sm:$0xff] }
 0x384   : > { %2922 = vmatpush2.bf16.msra.mxu0 %v1575_v28  ;;  %v938_v28 = vunpack.c.h.s8.bf16 %v410_v0 }
 0x385   : > { %2963 = vmatpush2.bf16.msra.mxu1 %v1831_v36  ;;  %2923 = vmatprep.subr.bf16.mxu0 %v1560_v38  ;;  %v1194_v36 = vunpack.c.h.s8.bf16 %v538_v33  ;;  %v409_v38 = vld [vmem:[%s6984_s16 + $0x60] sm:$0xff] }
 0x386   : > { %2964 = vmatprep.subr.bf16.mxu1 %v1816_v42  ;;  %v537_v42 = vld [vmem:[%s6984_s16 + $0x460] sm:$0xff]  ;;  %v937_v43 = vunpack.c.h.s8.bf16 %v409_v38  ;;  %v921_v41 = vunpack.c.l.s8.bf16 %v409_v38 }
 0x387   : > { %v1193_v44 = vunpack.c.h.s8.bf16 %v537_v42  ;;  %v1177_v55 = vunpack.c.l.s8.bf16 %v537_v42 }
 0x388   : > { %2924 = vmatpush2.bf16.msra.mxu0 %v1559_v20  ;;  %v922_v20 = vunpack.c.l.s8.bf16 %v410_v0 }
 0x389   : > { %2965 = vmatpush2.bf16.msra.mxu1 %v1815_v45  ;;  %2975 = vmatprep.subr.bf16.mxu0 %v1034_v46  ;;  %v1178_v45 = vunpack.c.l.s8.bf16 %v538_v33  ;;  %v522_v46 = vld [vmem:[%s6984_s16 + $0x3e8] sm:$0xff] }
 0x38a   : > { %3016 = vmatprep.subr.bf16.mxu1 %v1290_v54  ;;  %v650_v54 = vld [vmem:[%s6984_s16 + $0x7e8] sm:$0xff] }
 0x38b   : > { %v2681_v1 = vpop.f32.mrf.mxu0  ;;  %2926 = vmatmul.mubr.bf16.vlgmr.msra.gmra.mxu0 %v7056_v17 }
 0x38c   : > { %v2722_v3 = vpop.f32.mrf.mxu1  ;;  %2967 = vmatmul.mubr.bf16.vlgmr.msra.gmra.mxu1 %v7125_v40  ;;  %2976 = vmatpush1.bf16.msra.mxu0 %v1033_v57  ;;  %v1162_v57 = vunpack.c.h.s8.bf16 %v522_v46 }
 0x38d   : > { %v7546_v4 = vadd.f32 %v2722_v3, %v2681_v1  ;;  %3017 = vmatpush1.bf16.msra.mxu1 %v1289_v58  ;;  %v2683_v7 = vpop.f32.mrf.mxu0  ;;  %2977 = vmatprep.subr.bf16.mxu0 %v1018_v51  ;;  %v1418_v58 = vunpack.c.h.s8.bf16 %v650_v54  ;;  %v521_v51 = vld [vmem:[%s6984_s16 + $0x3e0] sm:$0xff]  ;;  %v1146_v1 = vunpack.c.l.s8.bf16 %v522_v46  ;;  %v1402_v3 = vunpack.c.l.s8.bf16 %v650_v54 }
 0x38e   : > { %v2724_v47 = vpop.f32.mrf.mxu1  ;;  %3018 = vmatprep.subr.bf16.mxu1 %v1274_v62  ;;  %3007 = vmatprep.mubr.bf16.mxu0 %v7037_v59  ;;  %v649_v62 = vld [vmem:[%s6984_s16 + $0x7e0] sm:$0xff]  ;;  %v1161_v48 = vunpack.c.h.s8.bf16 %v521_v51 }
 0x38f   : > { %v7550_v31 = vadd.f32 %v2724_v47, %v2683_v7  ;;  %3048 = vmatprep.mubr.bf16.mxu1 %v7043_v2  ;;  %v2685_v37 = vpop.f32.mrf.mxu0  ;;  %v1417_v63 = vunpack.c.h.s8.bf16 %v649_v62  ;;  %v1145_v7 = vunpack.c.l.s8.bf16 %v521_v51  ;;  %v1401_v47 = vunpack.c.l.s8.bf16 %v649_v62 }
 0x390   : > { %v2726_v9 = vpop.f32.mrf.mxu1  ;;  %2978 = vmatpush1.bf16.msra.mxu0 %v1017_v5  ;;  %v506_v5 = vld [vmem:[%s6984_s16 + $0x368] sm:$0xff]  ;;  %v1129_v37 = vunpack.c.h.s8.bf16 %v505_v8 }
 0x391   : > { %3019 = vmatpush1.bf16.msra.mxu1 %v1273_v6  ;;  %v2686_v12 = vpop.f32.mrf.mxu0  ;;  %2979 = vmatprep.subr.bf16.mxu0 %v1002_v24  ;;  %v634_v6 = vld [vmem:[%s6984_s16 + $0x768] sm:$0xff]  ;;  %v1130_v24 = vunpack.c.h.s8.bf16 %v506_v5  ;;  %v1385_v9 = vunpack.c.h.s8.bf16 %v633_v27 }
 0x392   : > { %v2727_v13 = vpop.f32.mrf.mxu1  ;;  %3020 = vmatprep.subr.bf16.mxu1 %v1258_v49  ;;  %v1386_v49 = vunpack.c.h.s8.bf16 %v634_v6  ;;  %v490_v12 = vld [vmem:[%s6984_s16 + $0x2e8] sm:$0xff] }
 0x393   : > { %v618_v13 = vld [vmem:[%s6984_s16 + $0x6e8] sm:$0xff]  ;;  %v1098_v16 = vunpack.c.h.s8.bf16 %v490_v12  ;;  %v1082_v29 = vunpack.c.l.s8.bf16 %v490_v12 }
 0x394   : > { %2980 = vmatpush1.bf16.msra.mxu0 %v1001_v10  ;;  %v1114_v10 = vunpack.c.l.s8.bf16 %v506_v5  ;;  %v1354_v18 = vunpack.c.h.s8.bf16 %v618_v13  ;;  %v1338_v19 = vunpack.c.l.s8.bf16 %v618_v13 }
 0x395   : > { %3021 = vmatpush1.bf16.msra.mxu1 %v1257_v11  ;;  %2981 = vmatprep.subr.bf16.mxu0 %v986_v14  ;;  %v1370_v11 = vunpack.c.l.s8.bf16 %v634_v6  ;;  %v1113_v14 = vunpack.c.l.s8.bf16 %v505_v8 }
 0x396   : > { %3022 = vmatprep.subr.bf16.mxu1 %v1242_v15  ;;  %v1369_v15 = vunpack.c.l.s8.bf16 %v633_v27  ;;  %v697_v27 = vld [vmem:[%s6984_s16 + $0x960] sm:$0xff] }
 0x397   : > { %v1513_v13 = vunpack.c.h.s8.bf16 %v697_v27 }
 0x398   : > { %2982 = vmatpush1.bf16.msra.mxu0 %v985_v21  ;;  %v489_v21 = vld [vmem:[%s6984_s16 + $0x2e0] sm:$0xff] }
 0x399   : > { %3023 = vmatpush1.bf16.msra.mxu1 %v1241_v22  ;;  %2983 = vmatprep.subr.bf16.mxu0 %v970_v25  ;;  %v617_v22 = vld [vmem:[%s6984_s16 + $0x6e0] sm:$0xff]  ;;  %v1097_v25 = vunpack.c.h.s8.bf16 %v489_v21 }
 0x39a   : > { %3024 = vmatprep.subr.bf16.mxu1 %v1226_v26  ;;  %v1353_v26 = vunpack.c.h.s8.bf16 %v617_v22 }
 0x39c   : > { %2984 = vmatpush1.bf16.msra.mxu0 %v969_v30  ;;  %v474_v30 = vld [vmem:[%s6984_s16 + $0x268] sm:$0xff] }
 0x39d   : > { %3025 = vmatpush1.bf16.msra.mxu1 %v1225_v32  ;;  %2985 = vmatprep.subr.bf16.mxu0 %v954_v53  ;;  %v602_v32 = vld [vmem:[%s6984_s16 + $0x668] sm:$0xff]  ;;  %v1081_v53 = vunpack.c.l.s8.bf16 %v489_v21  ;;  %v1066_v0 = vunpack.c.h.s8.bf16 %v474_v30  ;;  %v1050_v38 = vunpack.c.l.s8.bf16 %v474_v30 }
 0x39e   : > { %3026 = vmatprep.subr.bf16.mxu1 %v1210_v56  ;;  %v1337_v56 = vunpack.c.l.s8.bf16 %v617_v22  ;;  %v1322_v33 = vunpack.c.h.s8.bf16 %v602_v32  ;;  %v1306_v42 = vunpack.c.l.s8.bf16 %v602_v32  ;;  %v682_v22 = vld [vmem:[%s6984_s16 + $0x8e8] sm:$0xff]  ;;  %v681_v32 = vld [vmem:[%s6984_s16 + $0x8e0] sm:$0xff] }
 0x3a0   : > { %2986 = vmatpush1.bf16.msra.mxu0 %v953_v34  ;;  %v473_v34 = vld [vmem:[%s6984_s16 + $0x260] sm:$0xff] }
 0x3a1   : > { %3027 = vmatpush1.bf16.msra.mxu1 %v1209_v35  ;;  %2987 = vmatprep.subr.bf16.mxu0 %v938_v28  ;;  %v601_v35 = vld [vmem:[%s6984_s16 + $0x660] sm:$0xff]  ;;  %v1065_v28 = vunpack.c.h.s8.bf16 %v473_v34 }
 0x3a2   : > { %3028 = vmatprep.subr.bf16.mxu1 %v1194_v36  ;;  %v1321_v36 = vunpack.c.h.s8.bf16 %v601_v35 }
 0x3a4   : > { %2988 = vmatpush1.bf16.msra.mxu0 %v937_v43  ;;  %v714_v43 = vld [vmem:[%s6984_s16 + $0x9e8] sm:$0xff] }
 0x3a5   : > { %3029 = vmatpush1.bf16.msra.mxu1 %v1193_v44  ;;  %2989 = vmatprep.subr.bf16.mxu0 %v922_v20  ;;  %v842_v44 = vld [vmem:[%s6984_s16 + $0xde8] sm:$0xff]  ;;  %v1049_v20 = vunpack.c.l.s8.bf16 %v473_v34  ;;  %v1546_v46 = vunpack.c.h.s8.bf16 %v714_v43  ;;  %v1530_v51 = vunpack.c.l.s8.bf16 %v714_v43 }
 0x3a6   : > { %3030 = vmatprep.subr.bf16.mxu1 %v1178_v45  ;;  %v1305_v45 = vunpack.c.l.s8.bf16 %v601_v35  ;;  %v1802_v54 = vunpack.c.h.s8.bf16 %v842_v44  ;;  %v1786_v62 = vunpack.c.l.s8.bf16 %v842_v44  ;;  %v666_v35 = vld [vmem:[%s6984_s16 + $0x868] sm:$0xff]  ;;  %v665_v44 = vld [vmem:[%s6984_s16 + $0x860] sm:$0xff] }
 0x3a8   : > { %2990 = vmatpush1.bf16.msra.mxu0 %v921_v41  ;;  %v713_v41 = vld [vmem:[%s6984_s16 + $0x9e0] sm:$0xff] }
 0x3a9   : > { %3031 = vmatpush1.bf16.msra.mxu1 %v1177_v55  ;;  %2991 = vmatprep.subr.bf16.mxu0 %v1162_v57  ;;  %v841_v55 = vld [vmem:[%s6984_s16 + $0xde0] sm:$0xff]  ;;  %v1545_v57 = vunpack.c.h.s8.bf16 %v713_v41  ;;  %v1529_v6 = vunpack.c.l.s8.bf16 %v713_v41 }
 0x3aa   : > { %3032 = vmatprep.subr.bf16.mxu1 %v1418_v58  ;;  %v1801_v58 = vunpack.c.h.s8.bf16 %v841_v55 }
 0x3ac   : > { %2992 = vmatpush2.bf16.msra.mxu0 %v1161_v48  ;;  %v698_v48 = vld [vmem:[%s6984_s16 + $0x968] sm:$0xff] }
 0x3ad   : > { %3033 = vmatpush2.bf16.msra.mxu1 %v1417_v63  ;;  %2993 = vmatprep.subr.bf16.mxu0 %v1146_v1  ;;  %v826_v63 = vld [vmem:[%s6984_s16 + $0xd68] sm:$0xff] }
 0x3ae   : > { %3034 = vmatprep.subr.bf16.mxu1 %v1402_v3  ;;  %v1770_v8 = vunpack.c.h.s8.bf16 %v826_v63 }
 0x3b0   : > { %2994 = vmatpush2.bf16.msra.mxu0 %v1145_v7  ;;  %v1785_v7 = vunpack.c.l.s8.bf16 %v841_v55  ;;  %v778_v55 = vld [vmem:[%s6984_s16 + $0xbe8] sm:$0xff] }
 0x3b1   : > { %3035 = vmatpush2.bf16.msra.mxu1 %v1401_v47  ;;  %2995 = vmatprep.subr.bf16.mxu0 %v1130_v24 }
 0x3b2   : > { %3036 = vmatprep.subr.bf16.mxu1 %v1386_v49  ;;  %v1514_v49 = vunpack.c.h.s8.bf16 %v698_v48 }
 0x3b4   : > { %2996 = vmatpush2.bf16.msra.mxu0 %v1129_v37  ;;  %v825_v37 = vld [vmem:[%s6984_s16 + $0xd60] sm:$0xff] }
 0x3b5   : > { %3037 = vmatpush2.bf16.msra.mxu1 %v1385_v9  ;;  %2997 = vmatprep.subr.bf16.mxu0 %v1114_v10 }
 0x3b6   : > { %3038 = vmatprep.subr.bf16.mxu1 %v1370_v11 }
 0x3b8   : > { %2998 = vmatpush2.bf16.msra.mxu0 %v1113_v14  ;;  %v1769_v14 = vunpack.c.h.s8.bf16 %v825_v37 }
 0x3b9   : > { %3039 = vmatpush2.bf16.msra.mxu1 %v1369_v15  ;;  %2999 = vmatprep.subr.bf16.mxu0 %v1098_v16 }
 0x3ba   : > { %3040 = vmatprep.subr.bf16.mxu1 %v1354_v18  ;;  %v1754_v18 = vunpack.c.l.s8.bf16 %v826_v63  ;;  %v777_v63 = vld [vmem:[%s6984_s16 + $0xbe0] sm:$0xff] }
 0x3bc   : > { %3000 = vmatpush2.bf16.msra.mxu0 %v1097_v25  ;;  %v810_v25 = vld [vmem:[%s6984_s16 + $0xce8] sm:$0xff] }
 0x3bd   : > { %3041 = vmatpush2.bf16.msra.mxu1 %v1353_v26  ;;  %3001 = vmatprep.subr.bf16.mxu0 %v1082_v29  ;;  %v1497_v26 = vunpack.c.l.s8.bf16 %v697_v27  ;;  %v1753_v29 = vunpack.c.l.s8.bf16 %v825_v37  ;;  %v1738_v30 = vunpack.c.h.s8.bf16 %v810_v25  ;;  %v1722_v34 = vunpack.c.l.s8.bf16 %v810_v25 }
 0x3be   : > { %3042 = vmatprep.subr.bf16.mxu1 %v1338_v19  ;;  %v1482_v19 = vunpack.c.h.s8.bf16 %v682_v22 }
 0x3c0   : > { %3002 = vmatpush2.bf16.msra.mxu0 %v1081_v53  ;;  %v809_v53 = vld [vmem:[%s6984_s16 + $0xce0] sm:$0xff] }
 0x3c1   : > { %3043 = vmatpush2.bf16.msra.mxu1 %v1337_v56  ;;  %3003 = vmatprep.subr.bf16.mxu0 %v1066_v0  ;;  %v1481_v56 = vunpack.c.h.s8.bf16 %v681_v32  ;;  %v1737_v0 = vunpack.c.h.s8.bf16 %v809_v53 }
 0x3c2   : > { %3044 = vmatprep.subr.bf16.mxu1 %v1322_v33  ;;  %v1466_v33 = vunpack.c.l.s8.bf16 %v682_v22 }
 0x3c4   : > { %3004 = vmatpush2.bf16.msra.mxu0 %v1065_v28  ;;  %v794_v28 = vld [vmem:[%s6984_s16 + $0xc68] sm:$0xff] }
 0x3c5   : > { %3045 = vmatpush2.bf16.msra.mxu1 %v1321_v36  ;;  %3005 = vmatprep.subr.bf16.mxu0 %v1050_v38  ;;  %v1465_v36 = vunpack.c.l.s8.bf16 %v681_v32  ;;  %v1721_v38 = vunpack.c.l.s8.bf16 %v809_v53  ;;  %v1706_v43 = vunpack.c.h.s8.bf16 %v794_v28  ;;  %v1690_v41 = vunpack.c.l.s8.bf16 %v794_v28 }
 0x3c6   : > { %3046 = vmatprep.subr.bf16.mxu1 %v1306_v42  ;;  %v1450_v42 = vunpack.c.h.s8.bf16 %v666_v35 }
 0x3c8   : > { %3006 = vmatpush2.bf16.msra.mxu0 %v1049_v20  ;;  %v793_v20 = vld [vmem:[%s6984_s16 + $0xc60] sm:$0xff] }
 0x3c9   : > { %3047 = vmatpush2.bf16.msra.mxu1 %v1305_v45  ;;  %3057 = vmatprep.subr.bf16.mxu0 %v1546_v46  ;;  %v1449_v45 = vunpack.c.h.s8.bf16 %v665_v44  ;;  %v1705_v46 = vunpack.c.h.s8.bf16 %v793_v20 }
 0x3ca   : > { %3098 = vmatprep.subr.bf16.mxu1 %v1802_v54  ;;  %v1434_v54 = vunpack.c.l.s8.bf16 %v666_v35 }
 0x3cb   : > { %v2763_v1 = vpop.f32.mrf.mxu0  ;;  %3008 = vmatmul.mubr.bf16.vlgmr.msra.gmra.mxu0 %v7072_v52 }
 0x3cc   : > { %v2804_v3 = vpop.f32.mrf.mxu1  ;;  %3049 = vmatmul.mubr.bf16.vlgmr.msra.gmra.mxu1 %v7081_v61  ;;  %v2764_v5 = vadd.f32 %v2763_v1, %v7546_v4  ;;  %3058 = vmatpush1.bf16.msra.mxu0 %v1545_v57  ;;  %v906_v57 = vld [vmem:[%s6984_s16 + $0xfe8] sm:$0xff]  ;;  %v905_v1 = vld [vmem:[%s6984_s16 + $0xfe0] sm:$0xff] }
 0x3cd   : > { %3099 = vmatpush1.bf16.msra.mxu1 %v1801_v58  ;;  %v2765_v47 = vpop.f32.mrf.mxu0  ;;  %3059 = vmatprep.subr.bf16.mxu0 %v1530_v51  ;;  %v1433_v58 = vunpack.c.l.s8.bf16 %v665_v44  ;;  %v1689_v51 = vunpack.c.l.s8.bf16 %v793_v20 }
 0x3ce   : > { %v2806_v24 = vpop.f32.mrf.mxu1  ;;  %3100 = vmatprep.subr.bf16.mxu1 %v1786_v62  ;;  %v7589_v9 = vadd.f32 %v2804_v3, %v2764_v5  ;;  %v2766_v10 = vadd.f32 %v2765_v47, %v7550_v31  ;;  %3089 = vmatprep.mubr.bf16.mxu0 %v7077_v60  ;;  %v1498_v31 = vunpack.c.l.s8.bf16 %v698_v48  ;;  %v1674_v62 = vunpack.c.h.s8.bf16 %v778_v55  ;;  %v762_v47 = vld [vmem:[%s6984_s16 + $0xb68] sm:$0xff] }
 0x3cf   : > { %3130 = vmatprep.mubr.bf16.mxu1 %v7087_v50  ;;  %v2767_v4 = vpop.f32.mrf.mxu0  ;;  %v1930_v48 = vunpack.c.h.s8.bf16 %v906_v57  ;;  %v1673_v3 = vunpack.c.h.s8.bf16 %v777_v63  ;;  %v1929_v5 = vunpack.c.h.s8.bf16 %v905_v1  ;;  %v1642_v27 = vunpack.c.h.s8.bf16 %v762_v47 }
 0x3d0   : > { %v2808_v11 = vpop.f32.mrf.mxu1  ;;  %v7594_v12 = vadd.f32 %v2806_v24, %v2766_v10  ;;  %3060 = vmatpush1.bf16.msra.mxu0 %v1529_v6  ;;  %v1658_v6 = vunpack.c.l.s8.bf16 %v778_v55  ;;  %v890_v24 = vld [vmem:[%s6984_s16 + $0xf68] sm:$0xff]  ;;  %v761_v10 = vld [vmem:[%s6984_s16 + $0xb60] sm:$0xff] }
 0x3d1   : > { %3101 = vmatpush1.bf16.msra.mxu1 %v1785_v7  ;;  %v2768_v15 = vpop.f32.mrf.mxu0  ;;  %3061 = vmatprep.subr.bf16.mxu0 %v1514_v49  ;;  %v1914_v7 = vunpack.c.l.s8.bf16 %v906_v57  ;;  %v1657_v49 = vunpack.c.l.s8.bf16 %v777_v63  ;;  %v1898_v37 = vunpack.c.h.s8.bf16 %v890_v24  ;;  %v889_v4 = vld [vmem:[%s6984_s16 + $0xf60] sm:$0xff]  ;;  %v1641_v11 = vunpack.c.h.s8.bf16 %v761_v10 }
 0x3d2   : > { %v2809_v16 = vpop.f32.mrf.mxu1  ;;  %3102 = vmatprep.subr.bf16.mxu1 %v1770_v8  ;;  %v3353_v21 = vcombine.low %v7589_v9, %v7594_v12  ;;  %v1913_v8 = vunpack.c.l.s8.bf16 %v905_v1  ;;  %v1882_v15 = vunpack.c.l.s8.bf16 %v890_v24  ;;  %v1881_v22 = vunpack.c.l.s8.bf16 %v889_v4 }
 0x3d3   : > { %v746_v16 = vld [vmem:[%s6984_s16 + $0xae8] sm:$0xff] }
 0x3d4   : > { %3062 = vmatpush1.bf16.msra.mxu0 %v1513_v13  ;;  %v1897_v13 = vunpack.c.h.s8.bf16 %v889_v4  ;;  %v1610_v25 = vunpack.c.h.s8.bf16 %v746_v16  ;;  %v1594_v53 = vunpack.c.l.s8.bf16 %v746_v16 }
 0x3d5   : > { %3103 = vmatpush1.bf16.msra.mxu1 %v1769_v14  ;;  %3063 = vmatprep.subr.bf16.mxu0 %v1498_v31  ;;  %v1626_v14 = vunpack.c.l.s8.bf16 %v762_v47  ;;  %v874_v31 = vld [vmem:[%s6984_s16 + $0xee8] sm:$0xff] }
 0x3d6   : > { %3104 = vmatprep.subr.bf16.mxu1 %v1754_v18  ;;  %v1625_v18 = vunpack.c.l.s8.bf16 %v761_v10 }
 0x3d8   : > { %3064 = vmatpush1.bf16.msra.mxu0 %v1497_v26  ;;  %v1866_v26 = vunpack.c.h.s8.bf16 %v874_v31 }
 0x3d9   : > { %3105 = vmatpush1.bf16.msra.mxu1 %v1753_v29  ;;  %3065 = vmatprep.subr.bf16.mxu0 %v1482_v19  ;;  %v745_v29 = vld [vmem:[%s6984_s16 + $0xae0] sm:$0xff] }
 0x3da   : > { %3106 = vmatprep.subr.bf16.mxu1 %v1738_v30  ;;  %v873_v19 = vld [vmem:[%s6984_s16 + $0xee0] sm:$0xff]  ;;  %v1609_v30 = vunpack.c.h.s8.bf16 %v745_v29 }
 0x3db   : > { %v1865_v32 = vunpack.c.h.s8.bf16 %v873_v19  ;;  %v1849_v35 = vunpack.c.l.s8.bf16 %v873_v19  ;;  %v556_v19 = vld [vmem:[%s6984_s16 + $0x4f8] sm:$0xff] }
 0x3dc   : > { %3066 = vmatpush1.bf16.msra.mxu0 %v1481_v56  ;;  %v1850_v56 = vunpack.c.l.s8.bf16 %v874_v31 }
 0x3dd   : > { %3107 = vmatpush1.bf16.msra.mxu1 %v1737_v0  ;;  %3067 = vmatprep.subr.bf16.mxu0 %v1466_v33  ;;  %v730_v0 = vld [vmem:[%s6984_s16 + $0xa68] sm:$0xff] }
 0x3de   : > { %3108 = vmatprep.subr.bf16.mxu1 %v1722_v34  ;;  %v858_v33 = vld [vmem:[%s6984_s16 + $0xe68] sm:$0xff]  ;;  %v1593_v34 = vunpack.c.l.s8.bf16 %v745_v29  ;;  %v1578_v28 = vunpack.c.h.s8.bf16 %v730_v0  ;;  %v1562_v20 = vunpack.c.l.s8.bf16 %v730_v0  ;;  %v428_v29 = vld [vmem:[%s6984_s16 + $0xf8] sm:$0xff] }
 0x3e0   : > { %3068 = vmatpush1.bf16.msra.mxu0 %v1465_v36  ;;  %v1834_v36 = vunpack.c.h.s8.bf16 %v858_v33 }
 0x3e1   : > { %3109 = vmatpush1.bf16.msra.mxu1 %v1721_v38  ;;  %3069 = vmatprep.subr.bf16.mxu0 %v1450_v42  ;;  %v729_v38 = vld [vmem:[%s6984_s16 + $0xa60] sm:$0xff] }
 0x3e2   : > { %3110 = vmatprep.subr.bf16.mxu1 %v1706_v43  ;;  %v857_v42 = vld [vmem:[%s6984_s16 + $0xe60] sm:$0xff]  ;;  %v1577_v43 = vunpack.c.h.s8.bf16 %v729_v38 }
 0x3e3   : > { %v1833_v44 = vunpack.c.h.s8.bf16 %v857_v42  ;;  %v1817_v55 = vunpack.c.l.s8.bf16 %v857_v42 }
 0x3e4   : > { %3070 = vmatpush1.bf16.msra.mxu0 %v1449_v45  ;;  %v1818_v45 = vunpack.c.l.s8.bf16 %v858_v33 }
 0x3e5   : > { %3111 = vmatpush1.bf16.msra.mxu1 %v1705_v46  ;;  %3071 = vmatprep.subr.bf16.mxu0 %v1434_v54  ;;  %v460_v46 = vld [vmem:[%s6984_s16 + $0x1f8] sm:$0xff] }
 0x3e6   : > { %3112 = vmatprep.subr.bf16.mxu1 %v1690_v41  ;;  %v588_v54 = vld [vmem:[%s6984_s16 + $0x5f8] sm:$0xff]  ;;  %v1561_v41 = vunpack.c.l.s8.bf16 %v729_v38  ;;  %v1036_v57 = vunpack.c.h.s8.bf16 %v460_v46  ;;  %v1020_v1 = vunpack.c.l.s8.bf16 %v460_v46 }
 0x3e8   : > { %3072 = vmatpush1.bf16.msra.mxu0 %v1433_v58  ;;  %v1292_v58 = vunpack.c.h.s8.bf16 %v588_v54 }
 0x3e9   : > { %3113 = vmatpush1.bf16.msra.mxu1 %v1689_v51  ;;  %3073 = vmatprep.subr.bf16.mxu0 %v1674_v62  ;;  %v459_v51 = vld [vmem:[%s6984_s16 + $0x1f0] sm:$0xff] }
 0x3ea   : > { %3114 = vmatprep.subr.bf16.mxu1 %v1930_v48  ;;  %v587_v62 = vld [vmem:[%s6984_s16 + $0x5f0] sm:$0xff]  ;;  %v1035_v48 = vunpack.c.h.s8.bf16 %v459_v51 }
 0x3eb   : > { %v1291_v63 = vunpack.c.h.s8.bf16 %v587_v62 }
 0x3ec   : > { %3074 = vmatpush2.bf16.msra.mxu0 %v1673_v3  ;;  %v1276_v3 = vunpack.c.l.s8.bf16 %v588_v54 }
 0x3ed   : > { %3115 = vmatpush2.bf16.msra.mxu1 %v1929_v5  ;;  %3075 = vmatprep.subr.bf16.mxu0 %v1658_v6  ;;  %v444_v5 = vld [vmem:[%s6984_s16 + $0x178] sm:$0xff] }
 0x3ee   : > { %3116 = vmatprep.subr.bf16.mxu1 %v1914_v7  ;;  %v572_v6 = vld [vmem:[%s6984_s16 + $0x578] sm:$0xff]  ;;  %v1004_v10 = vunpack.c.h.s8.bf16 %v444_v5 }
 0x3ef   : > { %v1260_v4 = vunpack.c.h.s8.bf16 %v572_v6 }
 0x3f0   : > { %3076 = vmatpush2.bf16.msra.mxu0 %v1657_v49  ;;  %v1019_v49 = vunpack.c.l.s8.bf16 %v459_v51 }
 0x3f1   : > { %3117 = vmatpush2.bf16.msra.mxu1 %v1913_v8  ;;  %3077 = vmatprep.subr.bf16.mxu0 %v1642_v27  ;;  %v1275_v8 = vunpack.c.l.s8.bf16 %v587_v62 }
 0x3f2   : > { %3118 = vmatprep.subr.bf16.mxu1 %v1898_v37 }
 0x3f4   : > { %3078 = vmatpush2.bf16.msra.mxu0 %v1641_v11  ;;  %v443_v11 = vld [vmem:[%s6984_s16 + $0x170] sm:$0xff] }
 0x3f5   : > { %3119 = vmatpush2.bf16.msra.mxu1 %v1897_v13  ;;  %3079 = vmatprep.subr.bf16.mxu0 %v1626_v14  ;;  %v571_v13 = vld [vmem:[%s6984_s16 + $0x570] sm:$0xff]  ;;  %v1003_v16 = vunpack.c.h.s8.bf16 %v443_v11 }
 0x3f6   : > { %3120 = vmatprep.subr.bf16.mxu1 %v1882_v15  ;;  %v1259_v31 = vunpack.c.h.s8.bf16 %v571_v13 }
 0x3f8   : > { %3080 = vmatpush2.bf16.msra.mxu0 %v1625_v18 }
 0x3f9   : > { %3121 = vmatpush2.bf16.msra.mxu1 %v1881_v22  ;;  %3081 = vmatprep.subr.bf16.mxu0 %v1610_v25  ;;  %v988_v25 = vunpack.c.l.s8.bf16 %v444_v5 }
 0x3fa   : > { %3122 = vmatprep.subr.bf16.mxu1 %v1866_v26  ;;  %v1244_v26 = vunpack.c.l.s8.bf16 %v572_v6 }
 0x3fc   : > { %3082 = vmatpush2.bf16.msra.mxu0 %v1609_v30  ;;  %v972_v30 = vunpack.c.h.s8.bf16 %v428_v29 }
 0x3fd   : > { %3123 = vmatpush2.bf16.msra.mxu1 %v1865_v32  ;;  %3083 = vmatprep.subr.bf16.mxu0 %v1594_v53  ;;  %v1228_v32 = vunpack.c.h.s8.bf16 %v556_v19  ;;  %v427_v53 = vld [vmem:[%s6984_s16 + $0xf0] sm:$0xff] }
 0x3fe   : > { %3124 = vmatprep.subr.bf16.mxu1 %v1850_v56  ;;  %v555_v56 = vld [vmem:[%s6984_s16 + $0x4f0] sm:$0xff]  ;;  %v971_v0 = vunpack.c.h.s8.bf16 %v427_v53  ;;  %v955_v38 = vunpack.c.l.s8.bf16 %v427_v53 }
 0x3ff   : > { %v1227_v33 = vunpack.c.h.s8.bf16 %v555_v56  ;;  %v1211_v42 = vunpack.c.l.s8.bf16 %v555_v56 }
 0x400   : > { %3084 = vmatpush2.bf16.msra.mxu0 %v1593_v34  ;;  %v956_v34 = vunpack.c.l.s8.bf16 %v428_v29 }
 0x401   : > { %3125 = vmatpush2.bf16.msra.mxu1 %v1849_v35  ;;  %3085 = vmatprep.subr.bf16.mxu0 %v1578_v28  ;;  %v1212_v35 = vunpack.c.l.s8.bf16 %v556_v19  ;;  %v412_v28 = vld [vmem:[%s6984_s16 + $0x78] sm:$0xff] }
 0x402   : > { %3126 = vmatprep.subr.bf16.mxu1 %v1834_v36  ;;  %v540_v36 = vld [vmem:[%s6984_s16 + $0x478] sm:$0xff] }
 0x404   : > { %3086 = vmatpush2.bf16.msra.mxu0 %v1577_v43  ;;  %v940_v43 = vunpack.c.h.s8.bf16 %v412_v28 }
 0x405   : > { %3127 = vmatpush2.bf16.msra.mxu1 %v1833_v44  ;;  %3087 = vmatprep.subr.bf16.mxu0 %v1562_v20  ;;  %v1196_v44 = vunpack.c.h.s8.bf16 %v540_v36  ;;  %v411_v20 = vld [vmem:[%s6984_s16 + $0x70] sm:$0xff] }
 0x406   : > { %3128 = vmatprep.subr.bf16.mxu1 %v1818_v45  ;;  %v539_v45 = vld [vmem:[%s6984_s16 + $0x470] sm:$0xff]  ;;  %v939_v46 = vunpack.c.h.s8.bf16 %v411_v20  ;;  %v923_v51 = vunpack.c.l.s8.bf16 %v411_v20 }
 0x407   : > { %v1195_v54 = vunpack.c.h.s8.bf16 %v539_v45  ;;  %v1179_v62 = vunpack.c.l.s8.bf16 %v539_v45 }
 0x408   : > { %3088 = vmatpush2.bf16.msra.mxu0 %v1561_v41  ;;  %v924_v41 = vunpack.c.l.s8.bf16 %v412_v28 }
 0x409   : > { %3129 = vmatpush2.bf16.msra.mxu1 %v1817_v55  ;;  %3139 = vmatprep.subr.bf16.mxu0 %v1036_v57  ;;  %v1180_v55 = vunpack.c.l.s8.bf16 %v540_v36  ;;  %v524_v57 = vld [vmem:[%s6984_s16 + $0x3f8] sm:$0xff] }
 0x40a   : > { %3180 = vmatprep.subr.bf16.mxu1 %v1292_v58  ;;  %v652_v58 = vld [vmem:[%s6984_s16 + $0x7f8] sm:$0xff] }
 0x40b   : > { %v2845_v7 = vpop.f32.mrf.mxu0  ;;  %3090 = vmatmul.mubr.bf16.vlgmr.msra.gmra.mxu0 %v7056_v17 }
 0x40c   : > { %v2886_v47 = vpop.f32.mrf.mxu1  ;;  %3131 = vmatmul.mubr.bf16.vlgmr.msra.gmra.mxu1 %v7125_v40  ;;  %3140 = vmatpush1.bf16.msra.mxu0 %v1035_v48  ;;  %v1164_v48 = vunpack.c.h.s8.bf16 %v524_v57 }
 0x40d   : > { %v7630_v24 = vadd.f32 %v2886_v47, %v2845_v7  ;;  %3181 = vmatpush1.bf16.msra.mxu1 %v1291_v63  ;;  %v7632_v27 = vpop.f32.mrf.mxu0  ;;  %3141 = vmatprep.subr.bf16.mxu0 %v1020_v1  ;;  %v1420_v63 = vunpack.c.h.s8.bf16 %v652_v58  ;;  %v523_v1 = vld [vmem:[%s6984_s16 + $0x3f0] sm:$0xff]  ;;  %v1148_v7 = vunpack.c.l.s8.bf16 %v524_v57  ;;  %v1404_v47 = vunpack.c.l.s8.bf16 %v652_v58 }
 0x40e   : > { %v7634_v37 = vpop.f32.mrf.mxu1  ;;  %3182 = vmatprep.subr.bf16.mxu1 %v1276_v3  ;;  %3171 = vmatprep.mubr.bf16.mxu0 %v7037_v59  ;;  %v987_v59 = vunpack.c.l.s8.bf16 %v443_v11  ;;  %v651_v3 = vld [vmem:[%s6984_s16 + $0x7f0] sm:$0xff]  ;;  %v1163_v5 = vunpack.c.h.s8.bf16 %v523_v1 }
 0x40f   : > { %3212 = vmatprep.mubr.bf16.mxu1 %v7043_v2  ;;  %v2849_v14 = vpop.f32.mrf.mxu0  ;;  %v1243_v2 = vunpack.c.l.s8.bf16 %v571_v13  ;;  %v1419_v6 = vunpack.c.h.s8.bf16 %v651_v3 }
 0x410   : > { %v2890_v15 = vpop.f32.mrf.mxu1  ;;  %3142 = vmatpush1.bf16.msra.mxu0 %v1019_v49  ;;  %v508_v49 = vld [vmem:[%s6984_s16 + $0x378] sm:$0xff]  ;;  %v507_v14 = vld [vmem:[%s6984_s16 + $0x370] sm:$0xff] }
 0x411   : > { %3183 = vmatpush1.bf16.msra.mxu1 %v1275_v8  ;;  %v2850_v18 = vpop.f32.mrf.mxu0  ;;  %3143 = vmatprep.subr.bf16.mxu0 %v1004_v10  ;;  %v636_v8 = vld [vmem:[%s6984_s16 + $0x778] sm:$0xff]  ;;  %v1147_v10 = vunpack.c.l.s8.bf16 %v523_v1  ;;  %v1132_v11 = vunpack.c.h.s8.bf16 %v508_v49  ;;  %v635_v15 = vld [vmem:[%s6984_s16 + $0x770] sm:$0xff]  ;;  %v1115_v29 = vunpack.c.l.s8.bf16 %v507_v14 }
 0x412   : > { %v2891_v22 = vpop.f32.mrf.mxu1  ;;  %3184 = vmatprep.subr.bf16.mxu1 %v1260_v4  ;;  %v1403_v4 = vunpack.c.l.s8.bf16 %v651_v3  ;;  %v1388_v13 = vunpack.c.h.s8.bf16 %v636_v8  ;;  %v1116_v18 = vunpack.c.l.s8.bf16 %v508_v49  ;;  %v1371_v19 = vunpack.c.l.s8.bf16 %v635_v15 }
 0x413   : > { %v1372_v22 = vunpack.c.l.s8.bf16 %v636_v8 }
 0x414   : > { %3144 = vmatpush1.bf16.msra.mxu0 %v1003_v16  ;;  %v1131_v16 = vunpack.c.h.s8.bf16 %v507_v14 }
 0x415   : > { %3185 = vmatpush1.bf16.msra.mxu1 %v1259_v31  ;;  %3145 = vmatprep.subr.bf16.mxu0 %v988_v25  ;;  %v1387_v31 = vunpack.c.h.s8.bf16 %v635_v15  ;;  %v492_v25 = vld [vmem:[%s6984_s16 + $0x2f8] sm:$0xff] }
 0x416   : > { %3186 = vmatprep.subr.bf16.mxu1 %v1244_v26  ;;  %v620_v26 = vld [vmem:[%s6984_s16 + $0x6f8] sm:$0xff] }
 0x418   : > { %3146 = vmatpush1.bf16.msra.mxu0 %v987_v59  ;;  %v1100_v59 = vunpack.c.h.s8.bf16 %v492_v25 }
 0x419   : > { %3187 = vmatpush1.bf16.msra.mxu1 %v1243_v2  ;;  %3147 = vmatprep.subr.bf16.mxu0 %v972_v30  ;;  %v1356_v2 = vunpack.c.h.s8.bf16 %v620_v26  ;;  %v491_v30 = vld [vmem:[%s6984_s16 + $0x2f0] sm:$0xff] }
 0x41a   : > { %3188 = vmatprep.subr.bf16.mxu1 %v1228_v32  ;;  %v619_v32 = vld [vmem:[%s6984_s16 + $0x6f0] sm:$0xff]  ;;  %v1099_v53 = vunpack.c.h.s8.bf16 %v491_v30  ;;  %v1083_v28 = vunpack.c.l.s8.bf16 %v491_v30  ;;  %v812_v30 = vld [vmem:[%s6984_s16 + $0xcf8] sm:$0xff] }
 0x41b   : > { %v1355_v56 = vunpack.c.h.s8.bf16 %v619_v32  ;;  %v1339_v36 = vunpack.c.l.s8.bf16 %v619_v32  ;;  %v3361_v32 = vrot.slane %v3353_v21, %v7337_v23 }
 0x41c   : > { %3148 = vmatpush1.bf16.msra.mxu0 %v971_v0  ;;  %v1084_v0 = vunpack.c.l.s8.bf16 %v492_v25 }
 0x41d   : > { %3189 = vmatpush1.bf16.msra.mxu1 %v1227_v33  ;;  %3149 = vmatprep.subr.bf16.mxu0 %v956_v34  ;;  %v1340_v33 = vunpack.c.l.s8.bf16 %v620_v26  ;;  %v476_v34 = vld [vmem:[%s6984_s16 + $0x278] sm:$0xff] }
 0x41e   : > { %3190 = vmatprep.subr.bf16.mxu1 %v1212_v35  ;;  %v604_v35 = vld [vmem:[%s6984_s16 + $0x678] sm:$0xff] }
 0x420   : > { %3150 = vmatpush1.bf16.msra.mxu0 %v955_v38  ;;  %v1068_v38 = vunpack.c.h.s8.bf16 %v476_v34 }
 0x421   : > { %3191 = vmatpush1.bf16.msra.mxu1 %v1211_v42  ;;  %3151 = vmatprep.subr.bf16.mxu0 %v940_v43  ;;  %v1324_v42 = vunpack.c.h.s8.bf16 %v604_v35  ;;  %v475_v43 = vld [vmem:[%s6984_s16 + $0x270] sm:$0xff] }
 0x422   : > { %3192 = vmatprep.subr.bf16.mxu1 %v1196_v44  ;;  %v603_v44 = vld [vmem:[%s6984_s16 + $0x670] sm:$0xff]  ;;  %v1067_v20 = vunpack.c.h.s8.bf16 %v475_v43  ;;  %v1051_v57 = vunpack.c.l.s8.bf16 %v475_v43  ;;  %v1724_v43 = vunpack.c.l.s8.bf16 %v812_v30 }
 0x423   : > { %v1323_v45 = vunpack.c.h.s8.bf16 %v603_v44  ;;  %v1307_v58 = vunpack.c.l.s8.bf16 %v603_v44  ;;  %v668_v44 = vld [vmem:[%s6984_s16 + $0x878] sm:$0xff] }
 0x424   : > { %3152 = vmatpush1.bf16.msra.mxu0 %v939_v46  ;;  %v1052_v46 = vunpack.c.l.s8.bf16 %v476_v34 }
 0x425   : > { %3193 = vmatpush1.bf16.msra.mxu1 %v1195_v54  ;;  %3153 = vmatprep.subr.bf16.mxu0 %v924_v41  ;;  %v1308_v54 = vunpack.c.l.s8.bf16 %v604_v35  ;;  %v716_v41 = vld [vmem:[%s6984_s16 + $0x9f8] sm:$0xff]  ;;  %v1740_v35 = vunpack.c.h.s8.bf16 %v812_v30 }
 0x426   : > { %3194 = vmatprep.subr.bf16.mxu1 %v1180_v55  ;;  %v844_v55 = vld [vmem:[%s6984_s16 + $0xdf8] sm:$0xff] }
 0x428   : > { %3154 = vmatpush1.bf16.msra.mxu0 %v923_v51  ;;  %v1548_v51 = vunpack.c.h.s8.bf16 %v716_v41 }
 0x429   : > { %3195 = vmatpush1.bf16.msra.mxu1 %v1179_v62  ;;  %3155 = vmatprep.subr.bf16.mxu0 %v1164_v48  ;;  %v1804_v62 = vunpack.c.h.s8.bf16 %v844_v55  ;;  %v715_v48 = vld [vmem:[%s6984_s16 + $0x9f0] sm:$0xff] }
 0x42a   : > { %3196 = vmatprep.subr.bf16.mxu1 %v1420_v63  ;;  %v843_v63 = vld [vmem:[%s6984_s16 + $0xdf0] sm:$0xff]  ;;  %v1547_v1 = vunpack.c.h.s8.bf16 %v715_v48 }
 0x42b   : > { %v1803_v3 = vunpack.c.h.s8.bf16 %v843_v63 }
 0x42c   : > { %3156 = vmatpush2.bf16.msra.mxu0 %v1163_v5  ;;  %v1532_v5 = vunpack.c.l.s8.bf16 %v716_v41 }
 0x42d   : > { %3197 = vmatpush2.bf16.msra.mxu1 %v1419_v6  ;;  %3157 = vmatprep.subr.bf16.mxu0 %v1148_v7  ;;  %v1788_v6 = vunpack.c.l.s8.bf16 %v844_v55  ;;  %v700_v7 = vld [vmem:[%s6984_s16 + $0x978] sm:$0xff]  ;;  %v667_v55 = vld [vmem:[%s6984_s16 + $0x870] sm:$0xff] }
 0x42e   : > { %3198 = vmatprep.subr.bf16.mxu1 %v1404_v47  ;;  %v828_v47 = vld [vmem:[%s6984_s16 + $0xd78] sm:$0xff] }
 0x430   : > { %3158 = vmatpush2.bf16.msra.mxu0 %v1147_v10  ;;  %v2889_v10 = vadd.f32 %v7634_v37, %v7632_v27 }
 0x431   : > { %3199 = vmatpush2.bf16.msra.mxu1 %v1403_v4  ;;  %3159 = vmatprep.subr.bf16.mxu0 %v1132_v11  ;;  %v1531_v11 = vunpack.c.l.s8.bf16 %v715_v48 }
 0x432   : > { %3200 = vmatprep.subr.bf16.mxu1 %v1388_v13  ;;  %v1787_v13 = vunpack.c.l.s8.bf16 %v843_v63  ;;  %v780_v63 = vld [vmem:[%s6984_s16 + $0xbf8] sm:$0xff] }
 0x434   : > { %3160 = vmatpush2.bf16.msra.mxu0 %v1131_v16  ;;  %v1516_v16 = vunpack.c.h.s8.bf16 %v700_v7 }
 0x435   : > { %3201 = vmatpush2.bf16.msra.mxu1 %v1387_v31  ;;  %3161 = vmatprep.subr.bf16.mxu0 %v1116_v18  ;;  %v1772_v31 = vunpack.c.h.s8.bf16 %v828_v47  ;;  %v699_v18 = vld [vmem:[%s6984_s16 + $0x970] sm:$0xff] }
 0x436   : > { %3202 = vmatprep.subr.bf16.mxu1 %v1372_v22  ;;  %v827_v22 = vld [vmem:[%s6984_s16 + $0xd70] sm:$0xff]  ;;  %v1515_v25 = vunpack.c.h.s8.bf16 %v699_v18 }
 0x437   : > { %v1771_v26 = vunpack.c.h.s8.bf16 %v827_v22 }
 0x438   : > { %3162 = vmatpush2.bf16.msra.mxu0 %v1115_v29 }
 0x439   : > { %3203 = vmatpush2.bf16.msra.mxu1 %v1371_v19  ;;  %3163 = vmatprep.subr.bf16.mxu0 %v1100_v59  ;;  %v1500_v59 = vunpack.c.l.s8.bf16 %v700_v7 }
 0x43a   : > { %3204 = vmatprep.subr.bf16.mxu1 %v1356_v2  ;;  %v1756_v2 = vunpack.c.l.s8.bf16 %v828_v47  ;;  %v779_v47 = vld [vmem:[%s6984_s16 + $0xbf0] sm:$0xff] }
 0x43c   : > { %3164 = vmatpush2.bf16.msra.mxu0 %v1099_v53 }
 0x43d   : > { %3205 = vmatpush2.bf16.msra.mxu1 %v1355_v56  ;;  %3165 = vmatprep.subr.bf16.mxu0 %v1084_v0  ;;  %v1499_v56 = vunpack.c.l.s8.bf16 %v699_v18  ;;  %v1755_v0 = vunpack.c.l.s8.bf16 %v827_v22  ;;  %v763_v22 = vld [vmem:[%s6984_s16 + $0xb70] sm:$0xff] }
 0x43e   : > { %3206 = vmatprep.subr.bf16.mxu1 %v1340_v33  ;;  %v395_v33 = vld [vmem:[#allocation2 + $0x18] sm:$0xff] }
 0x440   : > { %3166 = vmatpush2.bf16.msra.mxu0 %v1083_v28  ;;  %v683_v28 = vld [vmem:[%s6984_s16 + $0x8f0] sm:$0xff] }
 0x441   : > { %3207 = vmatpush2.bf16.msra.mxu1 %v1339_v36  ;;  %3167 = vmatprep.subr.bf16.mxu0 %v1068_v38  ;;  %v811_v36 = vld [vmem:[%s6984_s16 + $0xcf0] sm:$0xff]  ;;  %v1483_v9 = vunpack.c.h.s8.bf16 %v683_v28 }
 0x442   : > { %3208 = vmatprep.subr.bf16.mxu1 %v1324_v42  ;;  %v1739_v12 = vunpack.c.h.s8.bf16 %v811_v36 }
 0x444   : > { %3168 = vmatpush2.bf16.msra.mxu0 %v1067_v20  ;;  %v796_v20 = vld [vmem:[%s6984_s16 + $0xc78] sm:$0xff] }
 0x445   : > { %3209 = vmatpush2.bf16.msra.mxu1 %v1323_v45  ;;  %3169 = vmatprep.subr.bf16.mxu0 %v1052_v46  ;;  %v1467_v45 = vunpack.c.l.s8.bf16 %v683_v28  ;;  %v1723_v46 = vunpack.c.l.s8.bf16 %v811_v36  ;;  %v1708_v41 = vunpack.c.h.s8.bf16 %v796_v20  ;;  %v1692_v48 = vunpack.c.l.s8.bf16 %v796_v20 }
 0x446   : > { %3210 = vmatprep.subr.bf16.mxu1 %v1308_v54  ;;  %v1452_v54 = vunpack.c.h.s8.bf16 %v668_v44 }
 0x448   : > { %3170 = vmatpush2.bf16.msra.mxu0 %v1051_v57  ;;  %v795_v57 = vld [vmem:[%s6984_s16 + $0xc70] sm:$0xff] }
 0x449   : > { %3211 = vmatpush2.bf16.msra.mxu1 %v1307_v58  ;;  %3221 = vmatprep.subr.bf16.mxu0 %v1548_v51  ;;  %v1451_v58 = vunpack.c.h.s8.bf16 %v667_v55  ;;  %v1707_v51 = vunpack.c.h.s8.bf16 %v795_v57 }
 0x44a   : > { %3262 = vmatprep.subr.bf16.mxu1 %v1804_v62  ;;  %v1436_v62 = vunpack.c.l.s8.bf16 %v668_v44 }
 0x44b   : > { %v2927_v49 = vpop.f32.mrf.mxu0  ;;  %3172 = vmatmul.mubr.bf16.vlgmr.msra.gmra.mxu0 %v7072_v52 }
 0x44c   : > { %v2968_v8 = vpop.f32.mrf.mxu1  ;;  %3213 = vmatmul.mubr.bf16.vlgmr.msra.gmra.mxu1 %v7081_v61  ;;  %v2928_v4 = vadd.f32 %v2927_v49, %v7630_v24  ;;  %3222 = vmatpush1.bf16.msra.mxu0 %v1547_v1  ;;  %v908_v1 = vld [vmem:[%s6984_s16 + $0xff8] sm:$0xff]  ;;  %v907_v49 = vld [vmem:[%s6984_s16 + $0xff0] sm:$0xff] }
 0x44d   : > { %3263 = vmatpush1.bf16.msra.mxu1 %v1803_v3  ;;  %v2929_v14 = vpop.f32.mrf.mxu0  ;;  %3223 = vmatprep.subr.bf16.mxu0 %v1532_v5  ;;  %v1435_v3 = vunpack.c.l.s8.bf16 %v667_v55  ;;  %v1691_v5 = vunpack.c.l.s8.bf16 %v795_v57  ;;  %v1932_v7 = vunpack.c.h.s8.bf16 %v908_v1 }
 0x44e   : > { %v2970_v15 = vpop.f32.mrf.mxu1  ;;  %3264 = vmatprep.subr.bf16.mxu1 %v1788_v6  ;;  %v2930_v52 = vadd.f32 %v2929_v14, %v2889_v10  ;;  %3253 = vmatprep.mubr.bf16.mxu0 %v7077_v60  ;;  %v2969_v27 = vadd.f32 %v2968_v8, %v2928_v4  ;;  %v1676_v6 = vunpack.c.h.s8.bf16 %v780_v63  ;;  %v1675_v8 = vunpack.c.h.s8.bf16 %v779_v47  ;;  %v892_v14 = vld [vmem:[%s6984_s16 + $0xf78] sm:$0xff] }
 0x44f   : > { %3294 = vmatprep.mubr.bf16.mxu1 %v7087_v50  ;;  %v2931_v61 = vpop.f32.mrf.mxu0  ;;  %v684_v50 = vld [vmem:[%s6984_s16 + $0x8f8] sm:$0xff]  ;;  %v1931_v10 = vunpack.c.h.s8.bf16 %v907_v49  ;;  %v1660_v4 = vunpack.c.l.s8.bf16 %v780_v63  ;;  %v1900_v18 = vunpack.c.h.s8.bf16 %v892_v14 }
 0x450   : > { %v2972_v24 = vpop.f32.mrf.mxu1  ;;  %v2971_v37 = vadd.f32 %v2970_v15, %v2930_v52  ;;  %3224 = vmatpush1.bf16.msra.mxu0 %v1531_v11  ;;  %v1484_v34 = vunpack.c.h.s8.bf16 %v684_v50  ;;  %v1468_v21 = vunpack.c.l.s8.bf16 %v684_v50  ;;  %v1916_v11 = vunpack.c.l.s8.bf16 %v908_v1  ;;  %v891_v52 = vld [vmem:[%s6984_s16 + $0xf70] sm:$0xff] }
 0x451   : > { %3265 = vmatpush1.bf16.msra.mxu1 %v1787_v13  ;;  %v2932_v29 = vpop.f32.mrf.mxu0  ;;  %3225 = vmatprep.subr.bf16.mxu0 %v1516_v16  ;;  %v764_v13 = vld [vmem:[%s6984_s16 + $0xb78] sm:$0xff]  ;;  %v1659_v15 = vunpack.c.l.s8.bf16 %v779_v47  ;;  %v1915_v16 = vunpack.c.l.s8.bf16 %v907_v49  ;;  %v1643_v61 = vunpack.c.h.s8.bf16 %v763_v22  ;;  %v1899_v24 = vunpack.c.h.s8.bf16 %v891_v52  ;;  %v875_v50 = vld [vmem:[%s6984_s16 + $0xef0] sm:$0xff] }
 0x452   : > { %v2973_v19 = vpop.f32.mrf.mxu1  ;;  %3266 = vmatprep.subr.bf16.mxu1 %v1772_v31  ;;  %v3354_v60 = vcombine.low %v2969_v27, %v2971_v37  ;;  %v1644_v31 = vunpack.c.h.s8.bf16 %v764_v13  ;;  %v1628_v27 = vunpack.c.l.s8.bf16 %v764_v13  ;;  %v1884_v37 = vunpack.c.l.s8.bf16 %v892_v14 }
 0x453   : > { %v1627_v29 = vunpack.c.l.s8.bf16 %v763_v22  ;;  %v1883_v19 = vunpack.c.l.s8.bf16 %v891_v52 }
 0x454   : > { %v3368_v53 = vrot.slane %v3354_v60, %v7337_v23  ;;  %3226 = vmatpush1.bf16.msra.mxu0 %v1515_v25  ;;  %v748_v25 = vld [vmem:[%s6984_s16 + $0xaf8] sm:$0xff]  ;;  %v747_v60 = vld [vmem:[%s6984_s16 + $0xaf0] sm:$0xff] }
 0x455   : > { %3267 = vmatpush1.bf16.msra.mxu1 %v1771_v26  ;;  %3227 = vmatprep.subr.bf16.mxu0 %v1500_v59  ;;  %v876_v26 = vld [vmem:[%s6984_s16 + $0xef8] sm:$0xff]  ;;  %v1612_v59 = vunpack.c.h.s8.bf16 %v748_v25  ;;  %v1611_v30 = vunpack.c.h.s8.bf16 %v747_v60 }
 0x456   : > { %3268 = vmatprep.subr.bf16.mxu1 %v1756_v2  ;;  %v3369_v38 = vcombine.low %v3361_v32, %v3368_v53  ;;  %v1868_v2 = vunpack.c.h.s8.bf16 %v876_v26  ;;  %v1867_v32 = vunpack.c.h.s8.bf16 %v875_v50  ;;  %v1596_v53 = vunpack.c.l.s8.bf16 %v748_v25 }
 0x458   : > { %v3393_v42 = vadd.f32 %v3369_v38, %v395_v33  ;;  %3228 = vmatpush1.bf16.msra.mxu0 %v1499_v56  ;;  %v1852_v56 = vunpack.c.l.s8.bf16 %v876_v26  ;;  %v860_v33 = vld [vmem:[%s6984_s16 + $0xe78] sm:$0xff]  ;;  %v731_v38 = vld [vmem:[%s6984_s16 + $0xa70] sm:$0xff] }
 0x459   : > { %3269 = vmatpush1.bf16.msra.mxu1 %v1755_v0  ;;  %3229 = vmatprep.subr.bf16.mxu0 %v1484_v34  ;;  %v732_v0 = vld [vmem:[%s6984_s16 + $0xa78] sm:$0xff]  ;;  %v1595_v34 = vunpack.c.l.s8.bf16 %v747_v60  ;;  %v1836_v36 = vunpack.c.h.s8.bf16 %v860_v33  ;;  %v1563_v44 = vunpack.c.l.s8.bf16 %v731_v38 }
 0x45a   : > { %3270 = vmatprep.subr.bf16.mxu1 %v1740_v35  ;;  %3397 = vst [vmem:[#allocation2 + $0x18] sm:$0xff] %v3393_v42  ;;  %v1851_v35 = vunpack.c.l.s8.bf16 %v875_v50  ;;  %v1580_v28 = vunpack.c.h.s8.bf16 %v732_v0  ;;  %v859_v42 = vld [vmem:[%s6984_s16 + $0xe70] sm:$0xff] }
 0x45b   : > { %v1819_v20 = vunpack.c.l.s8.bf16 %v859_v42 }
 0x45c   : > { %3230 = vmatpush1.bf16.msra.mxu0 %v1483_v9  ;;  %v1579_v9 = vunpack.c.h.s8.bf16 %v731_v38 }
 0x45d   : > { %3271 = vmatpush1.bf16.msra.mxu1 %v1739_v12  ;;  %3231 = vmatprep.subr.bf16.mxu0 %v1468_v21  ;;  %v1835_v12 = vunpack.c.h.s8.bf16 %v859_v42  ;;  %v1564_v21 = vunpack.c.l.s8.bf16 %v732_v0  ;;  %v396_v0 = vld [vmem:[#allocation2 + $0x8] sm:$0xff] }
 0x45e   : > { %3272 = vmatprep.subr.bf16.mxu1 %v1724_v43  ;;  %v1820_v43 = vunpack.c.l.s8.bf16 %v860_v33 }
 0x460   : > { %3232 = vmatpush1.bf16.msra.mxu0 %v1467_v45 }
 0x461   : > { %3273 = vmatpush1.bf16.msra.mxu1 %v1723_v46  ;;  %3233 = vmatprep.subr.bf16.mxu0 %v1452_v54 }
 0x462   : > { %3274 = vmatprep.subr.bf16.mxu1 %v1708_v41 }
 0x464   : > { %3234 = vmatpush1.bf16.msra.mxu0 %v1451_v58 }
 0x465   : > { %3275 = vmatpush1.bf16.msra.mxu1 %v1707_v51  ;;  %3235 = vmatprep.subr.bf16.mxu0 %v1436_v62 }
 0x466   : > { %3276 = vmatprep.subr.bf16.mxu1 %v1692_v48 }
 0x468   : > { %3236 = vmatpush1.bf16.msra.mxu0 %v1435_v3 }
 0x469   : > { %3277 = vmatpush1.bf16.msra.mxu1 %v1691_v5  ;;  %3237 = vmatprep.subr.bf16.mxu0 %v1676_v6 }
 0x46a   : > { %3278 = vmatprep.subr.bf16.mxu1 %v1932_v7 }
 0x46c   : > { %3238 = vmatpush2.bf16.msra.mxu0 %v1675_v8 }
 0x46d   : > { %3279 = vmatpush2.bf16.msra.mxu1 %v1931_v10  ;;  %3239 = vmatprep.subr.bf16.mxu0 %v1660_v4 }
 0x46e   : > { %3280 = vmatprep.subr.bf16.mxu1 %v1916_v11 }
 0x470   : > { %3240 = vmatpush2.bf16.msra.mxu0 %v1659_v15 }
 0x471   : > { %3281 = vmatpush2.bf16.msra.mxu1 %v1915_v16  ;;  %3241 = vmatprep.subr.bf16.mxu0 %v1644_v31 }
 0x472   : > { %3282 = vmatprep.subr.bf16.mxu1 %v1900_v18 }
 0x474   : > { %3242 = vmatpush2.bf16.msra.mxu0 %v1643_v61 }
 0x475   : > { %3283 = vmatpush2.bf16.msra.mxu1 %v1899_v24  ;;  %3243 = vmatprep.subr.bf16.mxu0 %v1628_v27 }
 0x476   : > { %3284 = vmatprep.subr.bf16.mxu1 %v1884_v37 }
 0x478   : > { %3244 = vmatpush2.bf16.msra.mxu0 %v1627_v29 }
 0x479   : > { %3285 = vmatpush2.bf16.msra.mxu1 %v1883_v19  ;;  %3245 = vmatprep.subr.bf16.mxu0 %v1612_v59 }
 0x47a   : > { %3286 = vmatprep.subr.bf16.mxu1 %v1868_v2 }
 0x47c   : > { %3246 = vmatpush2.bf16.msra.mxu0 %v1611_v30 }
 0x47d   : > { %3287 = vmatpush2.bf16.msra.mxu1 %v1867_v32  ;;  %3247 = vmatprep.subr.bf16.mxu0 %v1596_v53 }
 0x47e   : > { %3288 = vmatprep.subr.bf16.mxu1 %v1852_v56 }
 0x480   : > { %3248 = vmatpush2.bf16.msra.mxu0 %v1595_v34 }
 0x481   : > { %3289 = vmatpush2.bf16.msra.mxu1 %v1851_v35  ;;  %3249 = vmatprep.subr.bf16.mxu0 %v1580_v28 }
 0x482   : > { %3290 = vmatprep.subr.bf16.mxu1 %v1836_v36 }
 0x484   : > { %3250 = vmatpush2.bf16.msra.mxu0 %v1579_v9 }
 0x485   : > { %3291 = vmatpush2.bf16.msra.mxu1 %v1835_v12  ;;  %3251 = vmatprep.subr.bf16.mxu0 %v1564_v21 }
 0x486   : > { %3292 = vmatprep.subr.bf16.mxu1 %v1820_v43 }
 0x488   : > { %3252 = vmatpush2.bf16.msra.mxu0 %v1563_v44 }
 0x489   : > { %3293 = vmatpush2.bf16.msra.mxu1 %v1819_v20 }
 0x48b   : > { %v3009_v45 = vpop.f32.mrf.mxu0  ;;  %3254 = vmatmul.mubr.bf16.vlgmr.msra.gmra.mxu0 %v7056_v17 }
 0x48c   : > { %v3050_v46 = vpop.f32.mrf.mxu1  ;;  %3295 = vmatmul.mubr.bf16.vlgmr.msra.gmra.mxu1 %v7125_v40 }
 0x48d   : > { %v3051_v54 = vadd.f32 %v3050_v46, %v3009_v45  ;;  %v3011_v41 = vpop.f32.mrf.mxu0 }
 0x48e   : > { %v3052_v55 = vpop.f32.mrf.mxu1 }
 0x48f   : > { %v3053_v57 = vadd.f32 %v3052_v55, %v3011_v41  ;;  %v3013_v58 = vpop.f32.mrf.mxu0 }
 0x490   : > { %v3054_v51 = vpop.f32.mrf.mxu1 }
 0x491   : > { %v3014_v62 = vpop.f32.mrf.mxu0 }
 0x492   : > { %v3055_v48 = vpop.f32.mrf.mxu1 }
 0x4cb   : > { %v3091_v63 = vpop.f32.mrf.mxu0 }
 0x4cc   : > { %v3132_v1 = vpop.f32.mrf.mxu1  ;;  %v3092_v3 = vadd.f32 %v3091_v63, %v3051_v54 }
 0x4cd   : > { %v3093_v5 = vpop.f32.mrf.mxu0 }
 0x4ce   : > { %v3134_v6 = vpop.f32.mrf.mxu1  ;;  %v3133_v7 = vadd.f32 %v3132_v1, %v3092_v3  ;;  %v3094_v47 = vadd.f32 %v3093_v5, %v3053_v57 }
 0x4cf   : > { %v3095_v49 = vpop.f32.mrf.mxu0 }
 0x4d0   : > { %v3136_v8 = vpop.f32.mrf.mxu1  ;;  %v3135_v17 = vadd.f32 %v3134_v6, %v3094_v47 }
 0x4d1   : > { %v3096_v10 = vpop.f32.mrf.mxu0 }
 0x4d2   : > { %v3137_v40 = vpop.f32.mrf.mxu1  ;;  %v3370_v4 = vcombine.low %v3133_v7, %v3135_v17 }
 0x4d4   : > { %v3378_v53 = vrot.slane %v3370_v4, %v7337_v23 }
 0x50b   : > { %v3173_v11 = vpop.f32.mrf.mxu0 }
 0x50c   : > { %v3214_v13 = vpop.f32.mrf.mxu1 }
 0x50d   : > { %v3215_v14 = vadd.f32 %v3214_v13, %v3173_v11  ;;  %v3175_v15 = vpop.f32.mrf.mxu0 }
 0x50e   : > { %v3216_v16 = vpop.f32.mrf.mxu1 }
 0x50f   : > { %v3177_v31 = vpop.f32.mrf.mxu0  ;;  %v3217_v27 = vadd.f32 %v3216_v16, %v3175_v15 }
 0x510   : > { %v3218_v18 = vpop.f32.mrf.mxu1 }
 0x511   : > { %v3178_v22 = vpop.f32.mrf.mxu0 }
 0x512   : > { %v3219_v52 = vpop.f32.mrf.mxu1 }
 0x54b   : > { %v3255_v61 = vpop.f32.mrf.mxu0 }
 0x54c   : > { %v3296_v24 = vpop.f32.mrf.mxu1  ;;  %v3256_v37 = vadd.f32 %v3255_v61, %v3215_v14 }
 0x54d   : > { %v3257_v25 = vpop.f32.mrf.mxu0 }
 0x54e   : > { %v3298_v26 = vpop.f32.mrf.mxu1  ;;  %v3258_v29 = vadd.f32 %v3257_v25, %v3217_v27  ;;  %v3297_v2 = vadd.f32 %v3296_v24, %v3256_v37 }
 0x54f   : > { %v3259_v19 = vpop.f32.mrf.mxu0 }
 0x550   : > { %v3300_v59 = vpop.f32.mrf.mxu1  ;;  %v3299_v60 = vadd.f32 %v3298_v26, %v3258_v29 }
 0x551   : > { %v3260_v50 = vpop.f32.mrf.mxu0 }
 0x552   : > { %v3301_v30 = vpop.f32.mrf.mxu1  ;;  %v3371_v32 = vcombine.low %v3297_v2, %v3299_v60 }
 0x554   : > { %v3385_v56 = vrot.slane %v3371_v32, %v7337_v23 }
 0x556   : > { %v3386_v33 = vcombine.low %v3378_v53, %v3385_v56  ;;  %3402 = sbr.rel (%p5820_p13) target bundleno = 1975 (0x7b7), region = 84 }
 0x558   : > { %v3394_v34 = vadd.f32 %v3386_v33, %v396_v0 }
 0x55a   : > { %3398 = vst [vmem:[#allocation2 + $0x8] sm:$0xff] %v3394_v34 }
 0x55b   : > { %v6179_v35 = vld [vmem:[#allocation9 + $0x74] ss:$8 sps:$4 sm:$0xff]   ;;  %v6183_v36 = vld [vmem:[#allocation9 + $0x70] ss:$8 sps:$4 sm:$0xff]   ;;  %v6185_v42 = vld [vmem:[#allocation9 + $0x64] ss:$8 sps:$4 sm:$0xff]  }
 0x55c   : > { %v6181_v28 = vld [vmem:[#allocation9 + $0x174] ss:$8 sps:$4 sm:$0xff]   ;;  %5351 = vmatprep.subr.bf16.mxu0 %v6179_v35  ;;  %v6184_v38 = vld [vmem:[#allocation9 + $0x170] ss:$8 sps:$4 sm:$0xff]   ;;  %v6187_v9 = vld [vmem:[#allocation9 + $0x164] ss:$8 sps:$4 sm:$0xff]  }
 0x55d   : > { %5392 = vmatprep.subr.bf16.mxu1 %v6181_v28  ;;  %5352 = vmatpush1.bf16.msra.mxu0 %v6183_v36  ;;  %v6189_v12 = vld [vmem:[#allocation9 + $0x60] ss:$8 sps:$4 sm:$0xff]   ;;  %v6191_v43 = vld [vmem:[#allocation9 + $0x54] ss:$8 sps:$4 sm:$0xff]   ;;  %v6195_v20 = vld [vmem:[#allocation9 + $0x50] ss:$8 sps:$4 sm:$0xff]  }
 0x55e   : > { %5393 = vmatpush1.bf16.msra.mxu1 %v6184_v38  ;;  %5353 = vmatprep.subr.bf16.mxu0 %v6185_v42  ;;  %v6190_v21 = vld [vmem:[#allocation9 + $0x160] ss:$8 sps:$4 sm:$0xff]   ;;  %v6193_v44 = vld [vmem:[#allocation9 + $0x154] ss:$8 sps:$4 sm:$0xff]   ;;  %v6196_v45 = vld [vmem:[#allocation9 + $0x150] ss:$8 sps:$4 sm:$0xff]  }
 0x55f   : > { %5394 = vmatprep.subr.bf16.mxu1 %v6187_v9  ;;  %v6197_v46 = vld [vmem:[#allocation9 + $0x44] ss:$8 sps:$4 sm:$0xff]   ;;  %v6201_v41 = vld [vmem:[#allocation9 + $0x40] ss:$8 sps:$4 sm:$0xff]   ;;  %v6203_v57 = vld [vmem:[#allocation9 + $0x34] ss:$8 sps:$4 sm:$0xff]  }
 0x560   : > { %v6199_v54 = vld [vmem:[#allocation9 + $0x144] ss:$8 sps:$4 sm:$0xff]   ;;  %v6202_v55 = vld [vmem:[#allocation9 + $0x140] ss:$8 sps:$4 sm:$0xff]   ;;  %v6205_v58 = vld [vmem:[#allocation9 + $0x134] ss:$8 sps:$4 sm:$0xff]  }
 0x561   : > { %5354 = vmatpush1.bf16.msra.mxu0 %v6189_v12  ;;  %v6207_v51 = vld [vmem:[#allocation9 + $0x30] ss:$8 sps:$4 sm:$0xff]   ;;  %v6209_v48 = vld [vmem:[#allocation9 + $0x24] ss:$8 sps:$4 sm:$0xff]   ;;  %v6213_v1 = vld [vmem:[#allocation9 + $0x20] ss:$8 sps:$4 sm:$0xff]  }
 0x562   : > { %5395 = vmatpush1.bf16.msra.mxu1 %v6190_v21  ;;  %5355 = vmatprep.subr.bf16.mxu0 %v6191_v43  ;;  %v6208_v62 = vld [vmem:[#allocation9 + $0x130] ss:$8 sps:$4 sm:$0xff]   ;;  %v6211_v63 = vld [vmem:[#allocation9 + $0x124] ss:$8 sps:$4 sm:$0xff]   ;;  %v6214_v3 = vld [vmem:[#allocation9 + $0x120] ss:$8 sps:$4 sm:$0xff]  }
 0x563   : > { %5396 = vmatprep.subr.bf16.mxu1 %v6193_v44  ;;  %v6215_v5 = vld [vmem:[#allocation9 + $0x14] ss:$8 sps:$4 sm:$0xff]   ;;  %v6219_v7 = vld [vmem:[#allocation9 + $0x10] ss:$8 sps:$4 sm:$0xff]   ;;  %v6221_v49 = vld [vmem:[#allocation9 + $0x4] ss:$8 sps:$4 sm:$0xff]  }
 0x564   : > { %v6217_v6 = vld [vmem:[#allocation9 + $0x114] ss:$8 sps:$4 sm:$0xff]   ;;  %v6220_v47 = vld [vmem:[#allocation9 + $0x110] ss:$8 sps:$4 sm:$0xff]   ;;  %v6223_v8 = vld [vmem:[#allocation9 + $0x104] ss:$8 sps:$4 sm:$0xff]  }
 0x565   : > { %5356 = vmatpush1.bf16.msra.mxu0 %v6195_v20  ;;  %v6225_v17 = vld [vmem:[#allocation9] ss:$8 sps:$4 sm:$0xff]   ;;  %v6227_v40 = vld [vmem:[#allocation9 + $0xf4] ss:$8 sps:$4 sm:$0xff]   ;;  %v6231_v11 = vld [vmem:[#allocation9 + $0xf0] ss:$8 sps:$4 sm:$0xff]  }
 0x566   : > { %5397 = vmatpush1.bf16.msra.mxu1 %v6196_v45  ;;  %5357 = vmatprep.subr.bf16.mxu0 %v6197_v46  ;;  %v6226_v10 = vld [vmem:[#allocation9 + $0x100] ss:$8 sps:$4 sm:$0xff]   ;;  %v6229_v4 = vld [vmem:[#allocation9 + $0x1f4] ss:$8 sps:$4 sm:$0xff]   ;;  %v6232_v13 = vld [vmem:[#allocation9 + $0x1f0] ss:$8 sps:$4 sm:$0xff]  }
 0x567   : > { %5398 = vmatprep.subr.bf16.mxu1 %v6199_v54  ;;  %v6233_v14 = vld [vmem:[#allocation9 + $0xe4] ss:$8 sps:$4 sm:$0xff]   ;;  %v6237_v16 = vld [vmem:[#allocation9 + $0xe0] ss:$8 sps:$4 sm:$0xff]   ;;  %v6239_v18 = vld [vmem:[#allocation9 + $0xd4] ss:$8 sps:$4 sm:$0xff]  }
 0x568   : > { %v6235_v15 = vld [vmem:[#allocation9 + $0x1e4] ss:$8 sps:$4 sm:$0xff]   ;;  %v6238_v31 = vld [vmem:[#allocation9 + $0x1e0] ss:$8 sps:$4 sm:$0xff]   ;;  %v6241_v22 = vld [vmem:[#allocation9 + $0x1d4] ss:$8 sps:$4 sm:$0xff]  }
 0x569   : > { %5358 = vmatpush1.bf16.msra.mxu0 %v6201_v41  ;;  %v6243_v52 = vld [vmem:[#allocation9 + $0xd0] ss:$8 sps:$4 sm:$0xff]   ;;  %v7714_v24 = vsub.s32 0, %v7020_v39  ;;  %v6245_v27 = vld [vmem:[#allocation9 + $0xc4] ss:$8 sps:$4 sm:$0xff]   ;;  %v7717_v37 = vsub.s32 1, %v7020_v39 }
 0x56a   : > { %5399 = vmatpush1.bf16.msra.mxu1 %v6202_v55  ;;  %5359 = vmatprep.subr.bf16.mxu0 %v6203_v57  ;;  %v6244_v61 = vld [vmem:[#allocation9 + $0x1d0] ss:$8 sps:$4 sm:$0xff]   ;;  %v7720_v25 = vsub.s32 2, %v7020_v39  ;;  %v6247_v26 = vld [vmem:[#allocation9 + $0x1c4] ss:$8 sps:$4 sm:$0xff]   ;;  %v7723_v29 = vsub.s32 3, %v7020_v39 }
 0x56b   : > { %5400 = vmatprep.subr.bf16.mxu1 %v6205_v58  ;;  %v6249_v19 = vld [vmem:[#allocation9 + $0xc0] ss:$8 sps:$4 sm:$0xff]   ;;  %v7727_v2 = vld [vmem:[#allocation8] sm:$0xff]  ;;  %v6257_v21 = vld [vmem:[#allocation9 + $0xa4] ss:$8 sps:$4 sm:$0xff]   ;;  %vm5695_vm0 = vcmask 1041408  }
 0x56c   : > { %v7725_v59 = vld [vmem:[#allocation6] sm:$0xff]  ;;  %v6251_v50 = vld [vmem:[#allocation9 + $0xb4] ss:$8 sps:$4 sm:$0xff]   ;;  %v3558_v33 = vrot.slane %v7727_v2, %v7714_v24  ;;  %v3562_v34 = vrot.slane %v7727_v2, %v7717_v37  ;;  %v3566_v28 = vrot.slane %v7727_v2, %v7720_v25  ;;  %v3570_v36 = vrot.slane %v7727_v2, %v7723_v29  ;;  %v6255_v38 = vld [vmem:[#allocation9 + $0xb0] ss:$8 sps:$4 sm:$0xff]  }
 0x56d   : > { %5360 = vmatpush1.bf16.msra.mxu0 %v6207_v51  ;;  %v6250_v60 = vld [vmem:[#allocation9 + $0x1c0] ss:$8 sps:$4 sm:$0xff]   ;;  %v3414_v30 = vrot.slane %v7725_v59, %v7714_v24  ;;  %v3418_v32 = vrot.slane %v7725_v59, %v7717_v37  ;;  %v3422_v53 = vrot.slane %v7725_v59, %v7720_v25  ;;  %v6253_v56 = vld [vmem:[#allocation9 + $0x1b4] ss:$8 sps:$4 sm:$0xff]   ;;  %v3426_v0 = vrot.slane %v7725_v59, %v7723_v29  ;;  %v6256_v12 = vld [vmem:[#allocation9 + $0x1b0] ss:$8 sps:$4 sm:$0xff]  }
 0x56e   : > { %5401 = vmatpush1.bf16.msra.mxu1 %v6208_v62  ;;  %5361 = vmatprep.subr.bf16.mxu0 %v6209_v48  ;;  %v3619_v9 = vcombine.low %v3558_v33, %v3562_v34  ;;  %v3620_v44 = vcombine.low %v3566_v28, %v3570_v36  ;;  %v6259_v20 = vld [vmem:[#allocation9 + $0x1a4] ss:$8 sps:$4 sm:$0xff]   ;;  %v6261_v55 = vld [vmem:[#allocation9 + $0xa0] ss:$8 sps:$4 sm:$0xff]   ;;  %v6263_v51 = vld [vmem:[#allocation9 + $0x94] ss:$8 sps:$4 sm:$0xff]  }
 0x56f   : > { %5402 = vmatprep.subr.bf16.mxu1 %v6211_v63  ;;  %v3475_v35 = vcombine.low %v3414_v30, %v3418_v32  ;;  %v3476_v42 = vcombine.low %v3422_v53, %v3426_v0  ;;  %v3403_v54 = vld [vmem:[#allocation2 + $0x10] sm:$0xff]  ;;  %v6262_v58 = vld [vmem:[#allocation9 + $0x1a0] ss:$8 sps:$4 sm:$0xff]   ;;  %vm5709_vm1 = vcmask 1024  }
 0x570   : > { %v3627_v46 = vrot.slane %v3619_v9, %v7337_v23  ;;  %v3634_v41 = vrot.slane %v3620_v44, %v7337_v23  ;;  %v6265_v48 = vld [vmem:[#allocation9 + $0x194] ss:$8 sps:$4 sm:$0xff]   ;;  %v6281_v30 = vld [vmem:[#allocation9 + $0x260] ss:$8 sps:$4 sm:$0xff]   ;;  %v6290_v28 = vld [vmem:[#allocation9 + $0x350] ss:$8 sps:$4 sm:$0xff]  }
 0x571   : > { %5362 = vmatpush1.bf16.msra.mxu0 %v6213_v1  ;;  %v3483_v43 = vrot.slane %v3475_v35, %v7337_v23  ;;  %v3490_v45 = vrot.slane %v3476_v42, %v7337_v23  ;;  %v6267_v1 = vld [vmem:[#allocation9 + $0x90] ss:$8 sps:$4 sm:$0xff]   ;;  %v6284_v32 = vld [vmem:[#allocation9 + $0x360] ss:$8 sps:$4 sm:$0xff]   ;;  %v6289_v53 = vld [vmem:[#allocation9 + $0x254] ss:$8 sps:$4 sm:$0xff]  }
 0x572   : > { %5403 = vmatpush1.bf16.msra.mxu1 %v6214_v3  ;;  %5363 = vmatprep.subr.bf16.mxu0 %v6215_v5  ;;  %v3635_v62 = vcombine.low %v3627_v46, %v3634_v41  ;;  %v6268_v5 = vld [vmem:[#allocation9 + $0x190] ss:$8 sps:$4 sm:$0xff]   ;;  %v6293_v44 = vld [vmem:[#allocation9 + $0x240] ss:$8 sps:$4 sm:$0xff]   ;;  %v6304_v41 = vld [vmem:[#allocation9 + $0x334] ss:$8 sps:$4 sm:$0xff]  }
 0x573   : > { %5404 = vmatprep.subr.bf16.mxu1 %v6217_v6  ;;  %v3491_v57 = vcombine.low %v3483_v43, %v3490_v45  ;;  %v6269_v6 = vld [vmem:[#allocation9 + $0x84] ss:$8 sps:$4 sm:$0xff]   ;;  %v6287_v35 = vld [vmem:[#allocation9 + $0x250] ss:$8 sps:$4 sm:$0xff]   ;;  %v6301_v45 = vld [vmem:[#allocation9 + $0x234] ss:$8 sps:$4 sm:$0xff]  }
 0x575   : > { %5364 = vmatpush1.bf16.msra.mxu0 %v6219_v7  ;;  %v3547_v63 = vmul.f32 %v3491_v57, %v3403_v54  ;;  %v6271_v7 = vld [vmem:[#allocation9 + $0x184] ss:$8 sps:$4 sm:$0xff]  }
 0x576   : > { %5405 = vmatpush1.bf16.msra.mxu1 %v6220_v47  ;;  %5365 = vmatprep.subr.bf16.mxu0 %v6221_v49 }
 0x577   : > { %5406 = vmatprep.subr.bf16.mxu1 %v6223_v8  ;;  %v3691_v3 = vadd.f32 %v3635_v62, %v3547_v63  ;;  %v6310_v63 = vld [vmem:[#allocation9 + $0x324] ss:$8 sps:$4 sm:$0xff]  }
 0x579   : > { %5366 = vmatpush1.bf16.msra.mxu0 %v6225_v17  ;;  %v3695_v47 = vmax.f32 %v3691_v3, 0.0  ;;  %v6273_v17 = vld [vmem:[#allocation9 + $0x80] ss:$8 sps:$4 sm:$0xff]  }
 0x57a   : > { %5407 = vmatpush1.bf16.msra.mxu1 %v6226_v10  ;;  %5367 = vmatprep.subr.bf16.mxu0 %v6227_v40  ;;  %v6274_v10 = vld [vmem:[#allocation9 + $0x180] ss:$8 sps:$4 sm:$0xff]  }
 0x57b   : > { %5408 = vmatprep.subr.bf16.mxu1 %v6229_v4  ;;  %v3710_v49 = vrot.slane %v3695_v47, %v7337_v23  ;;  %v3703_v8 = vcombine.high %v3695_v47, %v3695_v47  ;;  %v6305_v3 = vld [vmem:[#allocation9 + $0x220] ss:$8 sps:$4 sm:$0xff]   ;;  %v6316_v47 = vld [vmem:[#allocation9 + $0x314] ss:$8 sps:$4 sm:$0xff]  }
 0x57d   : > { %5368 = vmatpush2.bf16.msra.mxu0 %v6231_v11  ;;  %v3718_v40 = vcombine.high %v3710_v49, %v3710_v49  ;;  %v3717_v4 = vrot.slane %v3703_v8, %v7337_v23  ;;  %v6277_v11 = vld [vmem:[#allocation9 + $0x274] ss:$8 sps:$4 sm:$0xff]   ;;  %v6311_v8 = vld [vmem:[#allocation9 + $0x210] ss:$8 sps:$4 sm:$0xff]  }
 0x57e   : > { %5409 = vmatpush2.bf16.msra.mxu1 %v6232_v13  ;;  %5369 = vmatprep.subr.bf16.mxu0 %v6233_v14  ;;  %v6280_v13 = vld [vmem:[#allocation9 + $0x374] ss:$8 sps:$4 sm:$0xff]  }
 0x57f   : > { %5410 = vmatprep.subr.bf16.mxu1 %v6235_v15  ;;  %v3788_v14 = vpack.c.bf16 %v3718_v40, %v3718_v40  ;;  %v3719_v15 = vcombine.high %v3717_v4, %v3717_v4  ;;  %v6319_v40 = vld [vmem:[#allocation9 + $0x204] ss:$8 sps:$4 sm:$0xff]  }
 0x581   : > { %5370 = vmatpush2.bf16.msra.mxu0 %v6237_v16  ;;  %v3787_v16 = vpack.c.bf16 %v3710_v49, %v3710_v49  ;;  %5383 = vmatprep.mubr.bf16.mxu0 %v3788_v14  ;;  %v3404_v49 = vld [vmem:[#allocation2] sm:$0xff] }
 0x582   : > { %5411 = vmatpush2.bf16.msra.mxu1 %v6238_v31  ;;  %5371 = vmatprep.subr.bf16.mxu0 %v6239_v18  ;;  %v3789_v31 = vpack.c.bf16 %v3717_v4, %v3717_v4  ;;  %v6275_v18 = vld [vmem:[#allocation9 + $0x270] ss:$8 sps:$4 sm:$0xff]  }
 0x583   : > { %5412 = vmatprep.subr.bf16.mxu1 %v6241_v22  ;;  %v6278_v22 = vld [vmem:[#allocation9 + $0x370] ss:$8 sps:$4 sm:$0xff]  }
 0x585   : > { %5372 = vmatpush2.bf16.msra.mxu0 %v6243_v52  ;;  %v3790_v52 = vpack.c.bf16 %v3719_v15, %v3719_v15  ;;  %v6320_v15 = vld [vmem:[#allocation9 + $0x300] ss:$8 sps:$4 sm:$0xff]  }
 0x586   : > { %5413 = vmatpush2.bf16.msra.mxu1 %v6244_v61  ;;  %5373 = vmatprep.subr.bf16.mxu0 %v6245_v27  ;;  %v6283_v61 = vld [vmem:[#allocation9 + $0x264] ss:$8 sps:$4 sm:$0xff]  }
 0x587   : > { %5414 = vmatprep.subr.bf16.mxu1 %v6247_v26  ;;  %v6286_v27 = vld [vmem:[#allocation9 + $0x364] ss:$8 sps:$4 sm:$0xff]   ;;  %5424 = vmatprep.mubr.bf16.mxu1 %v3790_v52  ;;  %v7752_v26 = vsub.s32 4, %v7020_v39  ;;  %v6323_v52 = vld [vmem:[#allocation9 + $0x2f0] ss:$8 sps:$4 sm:$0xff]  }
 0x589   : > { %5374 = vmatpush2.bf16.msra.mxu0 %v6249_v19  ;;  %v7755_v19 = vsub.s32 5, %v7020_v39  ;;  %v3430_v0 = vrot.slane %v7725_v59, %v7752_v26  ;;  %v3574_v36 = vrot.slane %v7727_v2, %v7752_v26 }
 0x58a   : > { %5415 = vmatpush2.bf16.msra.mxu1 %v6250_v60  ;;  %5375 = vmatprep.subr.bf16.mxu0 %v6251_v50  ;;  %v7758_v60 = vsub.s32 6, %v7020_v39  ;;  %v7761_v50 = vsub.s32 7, %v7020_v39 }
 0x58b   : > { %5416 = vmatprep.subr.bf16.mxu1 %v6253_v56  ;;  %v6292_v56 = vld [vmem:[#allocation9 + $0x354] ss:$8 sps:$4 sm:$0xff]   ;;  %v3434_v33 = vrot.slane %v7725_v59, %v7755_v19  ;;  %v3578_v42 = vrot.slane %v7727_v2, %v7755_v19 }
 0x58c   : > { %v3438_v34 = vrot.slane %v7725_v59, %v7758_v60  ;;  %v3442_v39 = vrot.slane %v7725_v59, %v7761_v50  ;;  %v3582_v9 = vrot.slane %v7727_v2, %v7758_v60  ;;  %v6298_v59 = vld [vmem:[#allocation9 + $0x344] ss:$8 sps:$4 sm:$0xff]  }
 0x58d   : > { %5376 = vmatpush2.bf16.msra.mxu0 %v6255_v38  ;;  %v6295_v38 = vld [vmem:[#allocation9 + $0x244] ss:$8 sps:$4 sm:$0xff]   ;;  %v3636_v46 = vcombine.low %v3574_v36, %v3578_v42  ;;  %v6335_v36 = vld [vmem:[#allocation9 + $0x2d0] ss:$8 sps:$4 sm:$0xff]  }
 0x58e   : > { %5417 = vmatpush2.bf16.msra.mxu1 %v6256_v12  ;;  %5377 = vmatprep.subr.bf16.mxu0 %v6257_v21  ;;  %v3586_v12 = vrot.slane %v7727_v2, %v7761_v50  ;;  %v3492_v21 = vcombine.low %v3430_v0, %v3434_v33  ;;  %v3493_v43 = vcombine.low %v3438_v34, %v3442_v39  ;;  %v6299_v2 = vld [vmem:[#allocation9 + $0x230] ss:$8 sps:$4 sm:$0xff]   ;;  %v6334_v0 = vld [vmem:[#allocation9 + $0x3e4] ss:$8 sps:$4 sm:$0xff]   ;;  %v6329_v33 = vld [vmem:[#allocation9 + $0x2e0] ss:$8 sps:$4 sm:$0xff]  }
 0x58f   : > { %5418 = vmatprep.subr.bf16.mxu1 %v6259_v20  ;;  %v6296_v20 = vld [vmem:[#allocation9 + $0x340] ss:$8 sps:$4 sm:$0xff]   ;;  %v3644_v62 = vrot.slane %v3636_v46, %v7337_v23  ;;  %v6343_v42 = vld [vmem:[#allocation9 + $0x2c4] ss:$8 sps:$4 sm:$0xff]  }
 0x590   : > { %v3637_v54 = vcombine.low %v3582_v9, %v3586_v12  ;;  %v3507_v57 = vrot.slane %v3493_v43, %v7337_v23  ;;  %v6332_v39 = vld [vmem:[#allocation9 + $0x3e0] ss:$8 sps:$4 sm:$0xff]   ;;  %v6346_v9 = vld [vmem:[#allocation9 + $0x3c4] ss:$8 sps:$4 sm:$0xff]   ;;  %v6352_v43 = vld [vmem:[#allocation9 + $0x3b4] ss:$8 sps:$4 sm:$0xff]  }
 0x591   : > { %5378 = vmatpush2.bf16.msra.mxu0 %v6261_v55  ;;  %v3500_v55 = vrot.slane %v3492_v21, %v7337_v23  ;;  %v6341_v12 = vld [vmem:[#allocation9 + $0x2c0] ss:$8 sps:$4 sm:$0xff]   ;;  %v6349_v21 = vld [vmem:[#allocation9 + $0x2b4] ss:$8 sps:$4 sm:$0xff]   ;;  %v6358_v46 = vld [vmem:[#allocation9 + $0x3a4] ss:$8 sps:$4 sm:$0xff]  }
 0x592   : > { %5419 = vmatpush2.bf16.msra.mxu1 %v6262_v58  ;;  %5379 = vmatprep.subr.bf16.mxu0 %v6263_v51  ;;  %v6302_v58 = vld [vmem:[#allocation9 + $0x330] ss:$8 sps:$4 sm:$0xff]   ;;  %v6307_v51 = vld [vmem:[#allocation9 + $0x224] ss:$8 sps:$4 sm:$0xff]  }
 0x593   : > { %5420 = vmatprep.subr.bf16.mxu1 %v6265_v48  ;;  %v3651_v48 = vrot.slane %v3637_v54, %v7337_v23  ;;  %v6353_v54 = vld [vmem:[#allocation9 + $0x2a0] ss:$8 sps:$4 sm:$0xff]  }
 0x595   : > { %5380 = vmatpush2.bf16.msra.mxu0 %v6267_v1  ;;  %v3508_v1 = vcombine.low %v3500_v55, %v3507_v57  ;;  %v6361_v55 = vld [vmem:[#allocation9 + $0x294] ss:$8 sps:$4 sm:$0xff]  }
 0x596   : > { %5421 = vmatpush2.bf16.msra.mxu1 %v6268_v5  ;;  %5381 = vmatprep.subr.bf16.mxu0 %v6269_v6  ;;  %v6308_v5 = vld [vmem:[#allocation9 + $0x320] ss:$8 sps:$4 sm:$0xff]   ;;  %v6313_v6 = vld [vmem:[#allocation9 + $0x214] ss:$8 sps:$4 sm:$0xff]  }
 0x597   : > { %5422 = vmatprep.subr.bf16.mxu1 %v6271_v7  ;;  %v3652_v7 = vcombine.low %v3644_v62, %v3651_v48  ;;  %v6364_v57 = vld [vmem:[#allocation9 + $0x394] ss:$8 sps:$4 sm:$0xff]   ;;  %v6370_v62 = vld [vmem:[#allocation9 + $0x384] ss:$8 sps:$4 sm:$0xff]   ;;  %v6365_v48 = vld [vmem:[#allocation9 + $0x280] ss:$8 sps:$4 sm:$0xff]  }
 0x599   : > { %5382 = vmatpush2.bf16.msra.mxu0 %v6273_v17  ;;  %v3548_v17 = vmul.f32 %v3508_v1, %v3404_v49  ;;  %v6373_v1 = vld [vmem:[#allocation9 + $0x474] ss:$8 sps:$4 sm:$0xff]   ;;  %v6379_v49 = vld [vmem:[#allocation9 + $0x464] ss:$8 sps:$4 sm:$0xff]  }
 0x59a   : > { %5423 = vmatpush2.bf16.msra.mxu1 %v6274_v10  ;;  %5433 = vmatprep.subr.bf16.mxu0 %v6277_v11  ;;  %v6314_v10 = vld [vmem:[#allocation9 + $0x310] ss:$8 sps:$4 sm:$0xff]   ;;  %v6322_v11 = vld [vmem:[#allocation9 + $0x304] ss:$8 sps:$4 sm:$0xff]  }
 0x59b   : > { %5474 = vmatprep.subr.bf16.mxu1 %v6280_v13  ;;  %v3692_v4 = vadd.f32 %v3652_v7, %v3548_v17  ;;  %v6317_v13 = vld [vmem:[#allocation9 + $0x200] ss:$8 sps:$4 sm:$0xff]  }
 0x59c   : > { %5384 = vmatmul.mubr.bf16.vlgmr.msra.gmra.mxu0 %v3787_v16  ;;  %v6325_v16 = vld [vmem:[#allocation9 + $0x2f4] ss:$8 sps:$4 sm:$0xff]   ;;  %v7797_v17 = vld [vmem:[#allocation6 + $0x8] sm:$0xff] }
 0x59d   : > { %5425 = vmatmul.mubr.bf16.vlgmr.msra.gmra.mxu1 %v3789_v31  ;;  %5434 = vmatpush1.bf16.msra.mxu0 %v6275_v18  ;;  %v3696_v14 = vmax.f32 %v3692_v4, 0.0  ;;  %v3454_v4 = vrot.slane %v7797_v17, %v7720_v25 }
 0x59e   : > { %5475 = vmatpush1.bf16.msra.mxu1 %v6278_v22  ;;  %5435 = vmatprep.subr.bf16.mxu0 %v6283_v61  ;;  %v6328_v22 = vld [vmem:[#allocation9 + $0x3f4] ss:$8 sps:$4 sm:$0xff]  }
 0x59f   : > { %5476 = vmatprep.subr.bf16.mxu1 %v6286_v27  ;;  %v7784_v31 = vrot.slane %v3696_v14, %v7337_v23  ;;  %v3720_v18 = vcombine.high %v3696_v14, %v3696_v14 }
 0x5a1   : > { %5436 = vmatpush1.bf16.msra.mxu0 %v6281_v30  ;;  %v3735_v61 = vcombine.high %v7784_v31, %v7784_v31  ;;  %v7789_v27 = vrot.slane %v3720_v18, %v7337_v23  ;;  %v6326_v30 = vld [vmem:[#allocation9 + $0x3f0] ss:$8 sps:$4 sm:$0xff]   ;;  %v6377_v18 = vld [vmem:[#allocation9 + $0x460] ss:$8 sps:$4 sm:$0xff]  }
 0x5a2   : > { %5477 = vmatpush1.bf16.msra.mxu1 %v6284_v32  ;;  %5437 = vmatprep.subr.bf16.mxu0 %v6289_v53  ;;  %v6331_v32 = vld [vmem:[#allocation9 + $0x2e4] ss:$8 sps:$4 sm:$0xff]  }
 0x5a3   : > { %5478 = vmatprep.subr.bf16.mxu1 %v6292_v56  ;;  %v3792_v53 = vpack.c.bf16 %v3735_v61, %v3735_v61  ;;  %v3736_v56 = vcombine.high %v7789_v27, %v7789_v27  ;;  %v3793_v7 = vpack.c.bf16 %v7789_v27, %v7789_v27  ;;  %v6385_v27 = vld [vmem:[#allocation9 + $0x454] ss:$8 sps:$4 sm:$0xff]  }
 0x5a5   : > { %5438 = vmatpush1.bf16.msra.mxu0 %v6287_v35  ;;  %5465 = vmatprep.mubr.bf16.mxu0 %v3792_v53  ;;  %v3794_v34 = vpack.c.bf16 %v3736_v56, %v3736_v56  ;;  %v6337_v35 = vld [vmem:[#allocation9 + $0x2d4] ss:$8 sps:$4 sm:$0xff]  }
 0x5a6   : > { %5479 = vmatpush1.bf16.msra.mxu1 %v6290_v28  ;;  %5439 = vmatprep.subr.bf16.mxu0 %v6295_v38  ;;  %v6340_v28 = vld [vmem:[#allocation9 + $0x3d4] ss:$8 sps:$4 sm:$0xff]   ;;  %v6338_v38 = vld [vmem:[#allocation9 + $0x3d0] ss:$8 sps:$4 sm:$0xff]  }
 0x5a7   : > { %5480 = vmatprep.subr.bf16.mxu1 %v6298_v59  ;;  %5506 = vmatprep.mubr.bf16.mxu1 %v3794_v34  ;;  %v6344_v59 = vld [vmem:[#allocation9 + $0x3c0] ss:$8 sps:$4 sm:$0xff]   ;;  %v6388_v53 = vld [vmem:[#allocation9 + $0x554] ss:$8 sps:$4 sm:$0xff]   ;;  %v6383_v34 = vld [vmem:[#allocation9 + $0x450] ss:$8 sps:$4 sm:$0xff]  }
 0x5a9   : > { %5440 = vmatpush1.bf16.msra.mxu0 %v6293_v44  ;;  %v6347_v44 = vld [vmem:[#allocation9 + $0x2b0] ss:$8 sps:$4 sm:$0xff]  }
 0x5aa   : > { %5481 = vmatpush1.bf16.msra.mxu1 %v6296_v20  ;;  %5441 = vmatprep.subr.bf16.mxu0 %v6301_v45  ;;  %v6350_v20 = vld [vmem:[#allocation9 + $0x3b0] ss:$8 sps:$4 sm:$0xff]   ;;  %v6355_v45 = vld [vmem:[#allocation9 + $0x2a4] ss:$8 sps:$4 sm:$0xff]  }
 0x5ab   : > { %5482 = vmatprep.subr.bf16.mxu1 %v6304_v41  ;;  %v6356_v41 = vld [vmem:[#allocation9 + $0x3a0] ss:$8 sps:$4 sm:$0xff]  }
 0x5ad   : > { %5442 = vmatpush1.bf16.msra.mxu0 %v6299_v2  ;;  %v6359_v2 = vld [vmem:[#allocation9 + $0x290] ss:$8 sps:$4 sm:$0xff]  }
 0x5ae   : > { %5483 = vmatpush1.bf16.msra.mxu1 %v6302_v58  ;;  %5443 = vmatprep.subr.bf16.mxu0 %v6307_v51  ;;  %v6362_v58 = vld [vmem:[#allocation9 + $0x390] ss:$8 sps:$4 sm:$0xff]   ;;  %v6367_v51 = vld [vmem:[#allocation9 + $0x284] ss:$8 sps:$4 sm:$0xff]  }
 0x5af   : > { %5484 = vmatprep.subr.bf16.mxu1 %v6310_v63  ;;  %v6368_v63 = vld [vmem:[#allocation9 + $0x380] ss:$8 sps:$4 sm:$0xff]  }
 0x5b1   : > { %5444 = vmatpush1.bf16.msra.mxu0 %v6305_v3  ;;  %v6376_v3 = vld [vmem:[#allocation9 + $0x574] ss:$8 sps:$4 sm:$0xff]  }
 0x5b2   : > { %5485 = vmatpush1.bf16.msra.mxu1 %v6308_v5  ;;  %5445 = vmatprep.subr.bf16.mxu0 %v6313_v6  ;;  %v3791_v5 = vpack.c.bf16 %v7784_v31, %v7784_v31  ;;  %v6371_v6 = vld [vmem:[#allocation9 + $0x470] ss:$8 sps:$4 sm:$0xff]  }
 0x5b3   : > { %5486 = vmatprep.subr.bf16.mxu1 %v6316_v47  ;;  %v6374_v47 = vld [vmem:[#allocation9 + $0x570] ss:$8 sps:$4 sm:$0xff]  }
 0x5b5   : > { %5446 = vmatpush1.bf16.msra.mxu0 %v6311_v8  ;;  %v6382_v8 = vld [vmem:[#allocation9 + $0x564] ss:$8 sps:$4 sm:$0xff]  }
 0x5b6   : > { %5487 = vmatpush1.bf16.msra.mxu1 %v6314_v10  ;;  %5447 = vmatprep.subr.bf16.mxu0 %v6319_v40  ;;  %v3446_v10 = vrot.slane %v7797_v17, %v7714_v24  ;;  %v3450_v40 = vrot.slane %v7797_v17, %v7717_v37 }
 0x5b7   : > { %5488 = vmatprep.subr.bf16.mxu1 %v6322_v11  ;;  %v3458_v11 = vrot.slane %v7797_v17, %v7723_v29 }
 0x5b9   : > { %5448 = vmatpush1.bf16.msra.mxu0 %v6317_v13  ;;  %v7807_v13 = vld [vmem:[#allocation8 + $0x8] sm:$0xff]  ;;  %v3510_v61 = vcombine.low %v3454_v4, %v3458_v11  ;;  %v3462_v4 = vrot.slane %v7797_v17, %v7752_v26  ;;  %v3466_v11 = vrot.slane %v7797_v17, %v7755_v19 }
 0x5ba   : > { %5489 = vmatpush1.bf16.msra.mxu1 %v6320_v15  ;;  %5449 = vmatprep.subr.bf16.mxu0 %v6325_v16  ;;  %v3590_v14 = vrot.slane %v7807_v13, %v7714_v24  ;;  %v3594_v15 = vrot.slane %v7807_v13, %v7717_v37  ;;  %v3598_v16 = vrot.slane %v7807_v13, %v7720_v25 }
 0x5bb   : > { %5490 = vmatprep.subr.bf16.mxu1 %v6328_v22  ;;  %v3602_v31 = vrot.slane %v7807_v13, %v7723_v29  ;;  %v6380_v22 = vld [vmem:[#allocation9 + $0x560] ss:$8 sps:$4 sm:$0xff]   ;;  %v3524_v25 = vrot.slane %v3510_v61, %v7337_v23  ;;  %v3618_v61 = vrot.slane %v7807_v13, %v7761_v50 }
 0x5bd   : > { %5450 = vmatpush2.bf16.msra.mxu0 %v6323_v52  ;;  %v3509_v52 = vcombine.low %v3446_v10, %v3450_v40  ;;  %v6421_v10 = vld [vmem:[#allocation9 + $0x4f4] ss:$8 sps:$4 sm:$0xff]  }
 0x5be   : > { %5491 = vmatpush2.bf16.msra.mxu1 %v6326_v30  ;;  %5451 = vmatprep.subr.bf16.mxu0 %v6331_v32  ;;  %v3653_v30 = vcombine.low %v3590_v14, %v3594_v15  ;;  %v3654_v32 = vcombine.low %v3598_v16, %v3602_v31  ;;  %v6424_v40 = vld [vmem:[#allocation9 + $0x5f4] ss:$8 sps:$4 sm:$0xff]   ;;  %v3470_v14 = vrot.slane %v7797_v17, %v7758_v60  ;;  %v6419_v16 = vld [vmem:[#allocation9 + $0x4f0] ss:$8 sps:$4 sm:$0xff]  }
 0x5bf   : > { %5492 = vmatprep.subr.bf16.mxu1 %v6334_v0  ;;  %v3517_v56 = vrot.slane %v3509_v52, %v7337_v23  ;;  %v3405_v0 = vld [vmem:[#allocation2 + $0x18] sm:$0xff]  ;;  %v3474_v15 = vrot.slane %v7797_v17, %v7761_v50  ;;  %v3614_v52 = vrot.slane %v7807_v13, %v7758_v60  ;;  %v6430_v17 = vld [vmem:[#allocation9 + $0x5e4] ss:$8 sps:$4 sm:$0xff]  }
 0x5c0   : > { %v3661_v29 = vrot.slane %v3653_v30, %v7337_v23  ;;  %v6422_v31 = vld [vmem:[#allocation9 + $0x5f0] ss:$8 sps:$4 sm:$0xff]   ;;  %v3526_v30 = vcombine.low %v3462_v4, %v3466_v11  ;;  %v6436_v60 = vld [vmem:[#allocation9 + $0x5d4] ss:$8 sps:$4 sm:$0xff]  }
 0x5c1   : > { %5452 = vmatpush2.bf16.msra.mxu0 %v6329_v33  ;;  %v3668_v33 = vrot.slane %v3654_v32, %v7337_v23  ;;  %v3527_v32 = vcombine.low %v3470_v14, %v3474_v15  ;;  %v6467_v11 = vld [vmem:[#allocation9 + $0x670] ss:$8 sps:$4 sm:$0xff]   ;;  %v6475_v15 = vld [vmem:[#allocation9 + $0x664] ss:$8 sps:$4 sm:$0xff]  }
 0x5c2   : > { %5493 = vmatpush2.bf16.msra.mxu1 %v6332_v39  ;;  %5453 = vmatprep.subr.bf16.mxu0 %v6337_v35  ;;  %v6386_v39 = vld [vmem:[#allocation9 + $0x550] ss:$8 sps:$4 sm:$0xff]   ;;  %v3525_v35 = vcombine.low %v3517_v56, %v3524_v25  ;;  %v6428_v56 = vld [vmem:[#allocation9 + $0x5e0] ss:$8 sps:$4 sm:$0xff]   ;;  %v3671_v25 = vcombine.low %v3614_v52, %v3618_v61  ;;  %v6481_v52 = vld [vmem:[#allocation9 + $0x654] ss:$8 sps:$4 sm:$0xff]  }
 0x5c3   : > { %5494 = vmatprep.subr.bf16.mxu1 %v6340_v28  ;;  %v6391_v28 = vld [vmem:[#allocation9 + $0x444] ss:$8 sps:$4 sm:$0xff]   ;;  %v3541_v50 = vrot.slane %v3527_v32, %v7337_v23  ;;  %v6470_v14 = vld [vmem:[#allocation9 + $0x770] ss:$8 sps:$4 sm:$0xff]   ;;  %v6484_v61 = vld [vmem:[#allocation9 + $0x754] ss:$8 sps:$4 sm:$0xff]  }
 0x5c4   : > { %v6485_v32 = vld [vmem:[#allocation9 + $0x640] ss:$8 sps:$4 sm:$0xff]  }
 0x5c5   : > { %5454 = vmatpush2.bf16.msra.mxu0 %v6335_v36  ;;  %v3669_v36 = vcombine.low %v3661_v29, %v3668_v33  ;;  %v6434_v29 = vld [vmem:[#allocation9 + $0x5d0] ss:$8 sps:$4 sm:$0xff]  }
 0x5c6   : > { %5495 = vmatpush2.bf16.msra.mxu1 %v6338_v38  ;;  %5455 = vmatprep.subr.bf16.mxu0 %v6343_v42  ;;  %v6394_v38 = vld [vmem:[#allocation9 + $0x544] ss:$8 sps:$4 sm:$0xff]   ;;  %v3549_v42 = vmul.f32 %v3525_v35, %v3405_v0  ;;  %v3534_v0 = vrot.slane %v3526_v30, %v7337_v23 }
 0x5c7   : > { %5496 = vmatprep.subr.bf16.mxu1 %v6346_v9  ;;  %v6389_v9 = vld [vmem:[#allocation9 + $0x440] ss:$8 sps:$4 sm:$0xff]   ;;  %v6442_v35 = vld [vmem:[#allocation9 + $0x5c4] ss:$8 sps:$4 sm:$0xff]  }
 0x5c8   : > { %v6490_v30 = vld [vmem:[#allocation9 + $0x744] ss:$8 sps:$4 sm:$0xff]  }
 0x5c9   : > { %5456 = vmatpush2.bf16.msra.mxu0 %v6341_v12  ;;  %v6392_v12 = vld [vmem:[#allocation9 + $0x540] ss:$8 sps:$4 sm:$0xff]  }
 0x5ca   : > { %5497 = vmatpush2.bf16.msra.mxu1 %v6344_v59  ;;  %5457 = vmatprep.subr.bf16.mxu0 %v6349_v21  ;;  %v3693_v59 = vadd.f32 %v3669_v36, %v3549_v42  ;;  %v6397_v21 = vld [vmem:[#allocation9 + $0x434] ss:$8 sps:$4 sm:$0xff]   ;;  %v6437_v36 = vld [vmem:[#allocation9 + $0x4c0] ss:$8 sps:$4 sm:$0xff]  }
 0x5cb   : > { %5498 = vmatprep.subr.bf16.mxu1 %v6352_v43  ;;  %v6400_v43 = vld [vmem:[#allocation9 + $0x534] ss:$8 sps:$4 sm:$0xff]   ;;  %v6440_v42 = vld [vmem:[#allocation9 + $0x5c0] ss:$8 sps:$4 sm:$0xff]  }
 0x5cd   : > { %5458 = vmatpush2.bf16.msra.mxu0 %v6347_v44  ;;  %v3697_v44 = vmax.f32 %v3693_v59, 0.0  ;;  %v6448_v59 = vld [vmem:[#allocation9 + $0x5b4] ss:$8 sps:$4 sm:$0xff]  }
 0x5ce   : > { %5499 = vmatpush2.bf16.msra.mxu1 %v6350_v20  ;;  %5459 = vmatprep.subr.bf16.mxu0 %v6355_v45  ;;  %v6395_v20 = vld [vmem:[#allocation9 + $0x430] ss:$8 sps:$4 sm:$0xff]  }
 0x5cf   : > { %5500 = vmatprep.subr.bf16.mxu1 %v6358_v46  ;;  %v6398_v45 = vld [vmem:[#allocation9 + $0x530] ss:$8 sps:$4 sm:$0xff]   ;;  %v7822_v46 = vrot.slane %v3697_v44, %v7337_v23 }
 0x5d1   : > { %5460 = vmatpush2.bf16.msra.mxu0 %v6353_v54  ;;  %v3737_v54 = vcombine.high %v3697_v44, %v3697_v44 }
 0x5d2   : > { %5501 = vmatpush2.bf16.msra.mxu1 %v6356_v41  ;;  %5461 = vmatprep.subr.bf16.mxu0 %v6361_v55  ;;  %v6403_v41 = vld [vmem:[#allocation9 + $0x424] ss:$8 sps:$4 sm:$0xff]  }
 0x5d3   : > { %5502 = vmatprep.subr.bf16.mxu1 %v6364_v57  ;;  %v6406_v55 = vld [vmem:[#allocation9 + $0x524] ss:$8 sps:$4 sm:$0xff]   ;;  %v3752_v57 = vcombine.high %v7822_v46, %v7822_v46 }
 0x5d5   : > { %5462 = vmatpush2.bf16.msra.mxu0 %v6359_v2  ;;  %v7827_v2 = vrot.slane %v3737_v54, %v7337_v23  ;;  %v6454_v54 = vld [vmem:[#allocation9 + $0x5a4] ss:$8 sps:$4 sm:$0xff]  }
 0x5d6   : > { %5503 = vmatpush2.bf16.msra.mxu1 %v6362_v58  ;;  %5463 = vmatprep.subr.bf16.mxu0 %v6367_v51  ;;  %v6401_v58 = vld [vmem:[#allocation9 + $0x420] ss:$8 sps:$4 sm:$0xff]  }
 0x5d7   : > { %5504 = vmatprep.subr.bf16.mxu1 %v6370_v62  ;;  %v6404_v51 = vld [vmem:[#allocation9 + $0x520] ss:$8 sps:$4 sm:$0xff]   ;;  %v3796_v62 = vpack.c.bf16 %v3752_v57, %v3752_v57 }
 0x5d8   : > { %v6452_v57 = vld [vmem:[#allocation9 + $0x5a0] ss:$8 sps:$4 sm:$0xff]  }
 0x5d9   : > { %5464 = vmatpush2.bf16.msra.mxu0 %v6365_v48  ;;  %v3753_v48 = vcombine.high %v7827_v2, %v7827_v2 }
 0x5da   : > { %5505 = vmatpush2.bf16.msra.mxu1 %v6368_v63  ;;  %5515 = vmatprep.subr.bf16.mxu0 %v6373_v1  ;;  %v6409_v63 = vld [vmem:[#allocation9 + $0x414] ss:$8 sps:$4 sm:$0xff]  }
 0x5db   : > { %5556 = vmatprep.subr.bf16.mxu1 %v6376_v3  ;;  %v6412_v1 = vld [vmem:[#allocation9 + $0x514] ss:$8 sps:$4 sm:$0xff]   ;;  %v3798_v3 = vpack.c.bf16 %v3753_v48, %v3753_v48  ;;  %v6455_v48 = vld [vmem:[#allocation9 + $0x490] ss:$8 sps:$4 sm:$0xff]  }
 0x5dc   : > { %5466 = vmatmul.mubr.bf16.vlgmr.msra.gmra.mxu0 %v3791_v5  ;;  %v6407_v5 = vld [vmem:[#allocation9 + $0x410] ss:$8 sps:$4 sm:$0xff]  }
 0x5dd   : > { %5507 = vmatmul.mubr.bf16.vlgmr.msra.gmra.mxu1 %v3793_v7  ;;  %5516 = vmatpush1.bf16.msra.mxu0 %v6371_v6  ;;  %v6410_v6 = vld [vmem:[#allocation9 + $0x510] ss:$8 sps:$4 sm:$0xff]   ;;  %v6415_v7 = vld [vmem:[#allocation9 + $0x404] ss:$8 sps:$4 sm:$0xff]  }
 0x5de   : > { %5557 = vmatpush1.bf16.msra.mxu1 %v6374_v47  ;;  %5517 = vmatprep.subr.bf16.mxu0 %v6379_v49  ;;  %v6418_v47 = vld [vmem:[#allocation9 + $0x504] ss:$8 sps:$4 sm:$0xff]   ;;  %v6413_v49 = vld [vmem:[#allocation9 + $0x400] ss:$8 sps:$4 sm:$0xff]  }
 0x5df   : > { %5558 = vmatprep.subr.bf16.mxu1 %v6382_v8  ;;  %5547 = vmatprep.mubr.bf16.mxu0 %v3796_v62  ;;  %v6416_v8 = vld [vmem:[#allocation9 + $0x500] ss:$8 sps:$4 sm:$0xff]  }
 0x5e0   : > { %5588 = vmatprep.mubr.bf16.mxu1 %v3798_v3  ;;  %v6466_v3 = vld [vmem:[#allocation9 + $0x584] ss:$8 sps:$4 sm:$0xff]  }
 0x5e1   : > { %5518 = vmatpush1.bf16.msra.mxu0 %v6377_v18  ;;  %v3606_v18 = vrot.slane %v7807_v13, %v7752_v26 }
 0x5e2   : > { %5559 = vmatpush1.bf16.msra.mxu1 %v6380_v22  ;;  %5519 = vmatprep.subr.bf16.mxu0 %v6385_v27  ;;  %v3610_v22 = vrot.slane %v7807_v13, %v7755_v19  ;;  %v6427_v27 = vld [vmem:[#allocation9 + $0x4e4] ss:$8 sps:$4 sm:$0xff]   ;;  %v6433_v19 = vld [vmem:[#allocation9 + $0x4d4] ss:$8 sps:$4 sm:$0xff]   ;;  %v6431_v13 = vld [vmem:[#allocation9 + $0x4d0] ss:$8 sps:$4 sm:$0xff]  }
 0x5e3   : > { %5560 = vmatprep.subr.bf16.mxu1 %v6388_v53  ;;  %v6425_v53 = vld [vmem:[#allocation9 + $0x4e0] ss:$8 sps:$4 sm:$0xff]  }
 0x5e4   : > { %v3670_v26 = vcombine.low %v3606_v18, %v3610_v22  ;;  %v6476_v22 = vld [vmem:[#allocation9 + $0x760] ss:$8 sps:$4 sm:$0xff]  }
 0x5e5   : > { %5520 = vmatpush1.bf16.msra.mxu0 %v6383_v34  ;;  %v3685_v34 = vrot.slane %v3671_v25, %v7337_v23  ;;  %v6491_v25 = vld [vmem:[#allocation9 + $0x630] ss:$8 sps:$4 sm:$0xff]  }
 0x5e6   : > { %5561 = vmatpush1.bf16.msra.mxu1 %v6386_v39  ;;  %5521 = vmatprep.subr.bf16.mxu0 %v6391_v28  ;;  %v3678_v33 = vrot.slane %v3670_v26, %v7337_v23  ;;  %v6439_v39 = vld [vmem:[#allocation9 + $0x4c4] ss:$8 sps:$4 sm:$0xff]   ;;  %v3542_v28 = vcombine.low %v3534_v0, %v3541_v50  ;;  %v6496_v26 = vld [vmem:[#allocation9 + $0x734] ss:$8 sps:$4 sm:$0xff]   ;;  %v6497_v50 = vld [vmem:[#allocation9 + $0x620] ss:$8 sps:$4 sm:$0xff]  }
 0x5e7   : > { %5562 = vmatprep.subr.bf16.mxu1 %v6394_v38  ;;  %v6502_v0 = vld [vmem:[#allocation9 + $0x724] ss:$8 sps:$4 sm:$0xff]  }
 0x5e8   : > { %v3686_v38 = vcombine.low %v3678_v33, %v3685_v34  ;;  %v6508_v33 = vld [vmem:[#allocation9 + $0x714] ss:$8 sps:$4 sm:$0xff]   ;;  %v6503_v34 = vld [vmem:[#allocation9 + $0x610] ss:$8 sps:$4 sm:$0xff]  }
 0x5e9   : > { %5522 = vmatpush1.bf16.msra.mxu0 %v6389_v9  ;;  %v6445_v9 = vld [vmem:[#allocation9 + $0x4b4] ss:$8 sps:$4 sm:$0xff]  }
 0x5ea   : > { %5563 = vmatpush1.bf16.msra.mxu1 %v6392_v12  ;;  %5523 = vmatprep.subr.bf16.mxu0 %v6397_v21  ;;  %v3406_v12 = vld [vmem:[#allocation2 + $0x8] sm:$0xff] }
 0x5eb   : > { %5564 = vmatprep.subr.bf16.mxu1 %v6400_v43  ;;  %v3550_v21 = vmul.f32 %v3542_v28, %v3406_v12  ;;  %v6443_v43 = vld [vmem:[#allocation9 + $0x4b0] ss:$8 sps:$4 sm:$0xff]   ;;  %v6514_v28 = vld [vmem:[#allocation9 + $0x704] ss:$8 sps:$4 sm:$0xff]  }
 0x5ec   : > { %v6515_v12 = vld [vmem:[#allocation9 + $0x6f0] ss:$8 sps:$4 sm:$0xff]  }
 0x5ed   : > { %5524 = vmatpush1.bf16.msra.mxu0 %v6395_v20  ;;  %v3694_v44 = vadd.f32 %v3686_v38, %v3550_v21  ;;  %v6446_v20 = vld [vmem:[#allocation9 + $0x5b0] ss:$8 sps:$4 sm:$0xff]   ;;  %v6512_v38 = vld [vmem:[#allocation9 + $0x700] ss:$8 sps:$4 sm:$0xff]   ;;  %v6523_v21 = vld [vmem:[#allocation9 + $0x6e4] ss:$8 sps:$4 sm:$0xff]  }
 0x5ee   : > { %5565 = vmatpush1.bf16.msra.mxu1 %v6398_v45  ;;  %5525 = vmatprep.subr.bf16.mxu0 %v6403_v41  ;;  %v6451_v45 = vld [vmem:[#allocation9 + $0x4a4] ss:$8 sps:$4 sm:$0xff]  }
 0x5ef   : > { %5566 = vmatprep.subr.bf16.mxu1 %v6406_v55  ;;  %v3698_v41 = vmax.f32 %v3694_v44, 0.0  ;;  %v6449_v55 = vld [vmem:[#allocation9 + $0x4a0] ss:$8 sps:$4 sm:$0xff]  }
 0x5f0   : > { %v6521_v44 = vld [vmem:[#allocation9 + $0x6e0] ss:$8 sps:$4 sm:$0xff]  }
 0x5f1   : > { %5526 = vmatpush1.bf16.msra.mxu0 %v6401_v58  ;;  %v6457_v58 = vld [vmem:[#allocation9 + $0x494] ss:$8 sps:$4 sm:$0xff]   ;;  %v3754_v62 = vcombine.high %v3698_v41, %v3698_v41 }
 0x5f2   : > { %5567 = vmatpush1.bf16.msra.mxu1 %v6404_v51  ;;  %5527 = vmatprep.subr.bf16.mxu0 %v6409_v63  ;;  %v6460_v51 = vld [vmem:[#allocation9 + $0x594] ss:$8 sps:$4 sm:$0xff]   ;;  %v6458_v63 = vld [vmem:[#allocation9 + $0x590] ss:$8 sps:$4 sm:$0xff]  }
 0x5f3   : > { %5568 = vmatprep.subr.bf16.mxu1 %v6412_v1  ;;  %v6463_v1 = vld [vmem:[#allocation9 + $0x484] ss:$8 sps:$4 sm:$0xff]  }
 0x5f5   : > { %5528 = vmatpush1.bf16.msra.mxu0 %v6407_v5  ;;  %v7852_v5 = vrot.slane %v3698_v41, %v7337_v23  ;;  %v6527_v41 = vld [vmem:[#allocation9 + $0x6d0] ss:$8 sps:$4 sm:$0xff]  }
 0x5f6   : > { %5569 = vmatpush1.bf16.msra.mxu1 %v6410_v6  ;;  %5529 = vmatprep.subr.bf16.mxu0 %v6415_v7  ;;  %v7855_v6 = vrot.slane %v3754_v62, %v7337_v23  ;;  %v6461_v7 = vld [vmem:[#allocation9 + $0x480] ss:$8 sps:$4 sm:$0xff]   ;;  %v3797_v23 = vpack.c.bf16 %v7827_v2, %v7827_v2  ;;  %v6479_v2 = vld [vmem:[#allocation9 + $0x650] ss:$8 sps:$4 sm:$0xff]  }
 0x5f7   : > { %5570 = vmatprep.subr.bf16.mxu1 %v6418_v47  ;;  %v6464_v47 = vld [vmem:[#allocation9 + $0x580] ss:$8 sps:$4 sm:$0xff]  }
 0x5f8   : > { %v3770_v4 = vcombine.high %v7855_v6, %v7855_v6  ;;  %v6536_v62 = vld [vmem:[#allocation9 + $0x7c0] ss:$8 sps:$4 sm:$0xff]  }
 0x5f9   : > { %5530 = vmatpush1.bf16.msra.mxu0 %v6413_v49  ;;  %v6469_v49 = vld [vmem:[#allocation9 + $0x674] ss:$8 sps:$4 sm:$0xff]  }
 0x5fa   : > { %5571 = vmatpush1.bf16.msra.mxu1 %v6416_v8  ;;  %5531 = vmatprep.subr.bf16.mxu0 %v6421_v10  ;;  %v6472_v8 = vld [vmem:[#allocation9 + $0x774] ss:$8 sps:$4 sm:$0xff]   ;;  %v3769_v10 = vcombine.high %v7852_v5, %v7852_v5  ;;  %v3802_v18 = vpack.c.bf16 %v3770_v4, %v3770_v4  ;;  %v6551_v4 = vld [vmem:[#allocation9 + $0x690] ss:$8 sps:$4 sm:$0xff]  }
 0x5fb   : > { %5572 = vmatprep.subr.bf16.mxu1 %v6424_v40  ;;  %v3795_v40 = vpack.c.bf16 %v7822_v46, %v7822_v46  ;;  %v6473_v46 = vld [vmem:[#allocation9 + $0x660] ss:$8 sps:$4 sm:$0xff]  }
 0x5fd   : > { %5532 = vmatpush2.bf16.msra.mxu0 %v6419_v16  ;;  %v6478_v16 = vld [vmem:[#allocation9 + $0x764] ss:$8 sps:$4 sm:$0xff]  }
 0x5fe   : > { %5573 = vmatpush2.bf16.msra.mxu1 %v6422_v31  ;;  %5533 = vmatprep.subr.bf16.mxu0 %v6427_v27  ;;  %v3800_v31 = vpack.c.bf16 %v3769_v10, %v3769_v10  ;;  %v6482_v27 = vld [vmem:[#allocation9 + $0x750] ss:$8 sps:$4 sm:$0xff]   ;;  %v6553_v10 = vld [vmem:[#allocation9 + $0x694] ss:$8 sps:$4 sm:$0xff]  }
 0x5ff   : > { %5574 = vmatprep.subr.bf16.mxu1 %v6430_v17  ;;  %v6487_v17 = vld [vmem:[#allocation9 + $0x644] ss:$8 sps:$4 sm:$0xff]  }
 0x601   : > { %5534 = vmatpush2.bf16.msra.mxu0 %v6425_v53  ;;  %v6488_v53 = vld [vmem:[#allocation9 + $0x740] ss:$8 sps:$4 sm:$0xff]  }
 0x602   : > { %5575 = vmatpush2.bf16.msra.mxu1 %v6428_v56  ;;  %5535 = vmatprep.subr.bf16.mxu0 %v6433_v19  ;;  %v6493_v56 = vld [vmem:[#allocation9 + $0x634] ss:$8 sps:$4 sm:$0xff]   ;;  %v6494_v19 = vld [vmem:[#allocation9 + $0x730] ss:$8 sps:$4 sm:$0xff]  }
 0x603   : > { %5576 = vmatprep.subr.bf16.mxu1 %v6436_v60  ;;  %v6499_v60 = vld [vmem:[#allocation9 + $0x624] ss:$8 sps:$4 sm:$0xff]  }
 0x605   : > { %5536 = vmatpush2.bf16.msra.mxu0 %v6431_v13  ;;  %v6500_v13 = vld [vmem:[#allocation9 + $0x720] ss:$8 sps:$4 sm:$0xff]  }
 0x606   : > { %5577 = vmatpush2.bf16.msra.mxu1 %v6434_v29  ;;  %5537 = vmatprep.subr.bf16.mxu0 %v6439_v39  ;;  %v6505_v29 = vld [vmem:[#allocation9 + $0x614] ss:$8 sps:$4 sm:$0xff]   ;;  %v6506_v39 = vld [vmem:[#allocation9 + $0x710] ss:$8 sps:$4 sm:$0xff]  }
 0x607   : > { %5578 = vmatprep.subr.bf16.mxu1 %v6442_v35  ;;  %v6511_v35 = vld [vmem:[#allocation9 + $0x604] ss:$8 sps:$4 sm:$0xff]  }
 0x609   : > { %5538 = vmatpush2.bf16.msra.mxu0 %v6437_v36  ;;  %v6509_v36 = vld [vmem:[#allocation9 + $0x600] ss:$8 sps:$4 sm:$0xff]  }
 0x60a   : > { %5579 = vmatpush2.bf16.msra.mxu1 %v6440_v42  ;;  %5539 = vmatprep.subr.bf16.mxu0 %v6445_v9  ;;  %v6517_v42 = vld [vmem:[#allocation9 + $0x6f4] ss:$8 sps:$4 sm:$0xff]  }
 0x60b   : > { %5580 = vmatprep.subr.bf16.mxu1 %v6448_v59  ;;  %v6520_v9 = vld [vmem:[#allocation9 + $0x7f4] ss:$8 sps:$4 sm:$0xff]   ;;  %v6518_v59 = vld [vmem:[#allocation9 + $0x7f0] ss:$8 sps:$4 sm:$0xff]  }
 0x60d   : > { %5540 = vmatpush2.bf16.msra.mxu0 %v6443_v43  ;;  %v6526_v43 = vld [vmem:[#allocation9 + $0x7e4] ss:$8 sps:$4 sm:$0xff]  }
 0x60e   : > { %5581 = vmatpush2.bf16.msra.mxu1 %v6446_v20  ;;  %5541 = vmatprep.subr.bf16.mxu0 %v6451_v45  ;;  %v6524_v20 = vld [vmem:[#allocation9 + $0x7e0] ss:$8 sps:$4 sm:$0xff]   ;;  %v6529_v45 = vld [vmem:[#allocation9 + $0x6d4] ss:$8 sps:$4 sm:$0xff]  }
 0x60f   : > { %5582 = vmatprep.subr.bf16.mxu1 %v6454_v54  ;;  %v6532_v54 = vld [vmem:[#allocation9 + $0x7d4] ss:$8 sps:$4 sm:$0xff]  }
 0x611   : > { %5542 = vmatpush2.bf16.msra.mxu0 %v6449_v55  ;;  %v6530_v55 = vld [vmem:[#allocation9 + $0x7d0] ss:$8 sps:$4 sm:$0xff]  }
 0x612   : > { %5583 = vmatpush2.bf16.msra.mxu1 %v6452_v57  ;;  %5543 = vmatprep.subr.bf16.mxu0 %v6457_v58  ;;  %v6535_v57 = vld [vmem:[#allocation9 + $0x6c4] ss:$8 sps:$4 sm:$0xff]  }
 0x613   : > { %5584 = vmatprep.subr.bf16.mxu1 %v6460_v51  ;;  %v6538_v58 = vld [vmem:[#allocation9 + $0x7c4] ss:$8 sps:$4 sm:$0xff]   ;;  %v6533_v51 = vld [vmem:[#allocation9 + $0x6c0] ss:$8 sps:$4 sm:$0xff]  }
 0x615   : > { %5544 = vmatpush2.bf16.msra.mxu0 %v6455_v48  ;;  %v6541_v48 = vld [vmem:[#allocation9 + $0x6b4] ss:$8 sps:$4 sm:$0xff]  }
 0x616   : > { %5585 = vmatpush2.bf16.msra.mxu1 %v6458_v63  ;;  %5545 = vmatprep.subr.bf16.mxu0 %v6463_v1  ;;  %v6544_v63 = vld [vmem:[#allocation9 + $0x7b4] ss:$8 sps:$4 sm:$0xff]   ;;  %v6539_v1 = vld [vmem:[#allocation9 + $0x6b0] ss:$8 sps:$4 sm:$0xff]  }
 0x617   : > { %5586 = vmatprep.subr.bf16.mxu1 %v6466_v3  ;;  %v6542_v3 = vld [vmem:[#allocation9 + $0x7b0] ss:$8 sps:$4 sm:$0xff]  }
 0x619   : > { %5546 = vmatpush2.bf16.msra.mxu0 %v6461_v7  ;;  %v6547_v7 = vld [vmem:[#allocation9 + $0x6a4] ss:$8 sps:$4 sm:$0xff]  }
 0x61a   : > { %5587 = vmatpush2.bf16.msra.mxu1 %v6464_v47  ;;  %5597 = vmatprep.subr.bf16.mxu0 %v6469_v49  ;;  %v6550_v47 = vld [vmem:[#allocation9 + $0x7a4] ss:$8 sps:$4 sm:$0xff]   ;;  %v6545_v49 = vld [vmem:[#allocation9 + $0x6a0] ss:$8 sps:$4 sm:$0xff]  }
 0x61b   : > { %5638 = vmatprep.subr.bf16.mxu1 %v6472_v8  ;;  %v6548_v8 = vld [vmem:[#allocation9 + $0x7a0] ss:$8 sps:$4 sm:$0xff]  }
 0x61c   : > { %5548 = vmatmul.mubr.bf16.vlgmr.msra.gmra.mxu0 %v3795_v40  ;;  %v6556_v40 = vld [vmem:[#allocation9 + $0x794] ss:$8 sps:$4 sm:$0xff]  }
 0x61d   : > { %5589 = vmatmul.mubr.bf16.vlgmr.msra.gmra.mxu1 %v3797_v23  ;;  %5598 = vmatpush1.bf16.msra.mxu0 %v6467_v11  ;;  %v6554_v23 = vld [vmem:[#allocation9 + $0x790] ss:$8 sps:$4 sm:$0xff]   ;;  %v6559_v11 = vld [vmem:[#allocation9 + $0x684] ss:$8 sps:$4 sm:$0xff]  }
 0x61e   : > { %5639 = vmatpush1.bf16.msra.mxu1 %v6470_v14  ;;  %5599 = vmatprep.subr.bf16.mxu0 %v6475_v15  ;;  %v6562_v14 = vld [vmem:[#allocation9 + $0x784] ss:$8 sps:$4 sm:$0xff]   ;;  %v6557_v15 = vld [vmem:[#allocation9 + $0x680] ss:$8 sps:$4 sm:$0xff]  }
 0x61f   : > { %5640 = vmatprep.subr.bf16.mxu1 %v6478_v16  ;;  %5629 = vmatprep.mubr.bf16.mxu0 %v3800_v31  ;;  %v6560_v16 = vld [vmem:[#allocation9 + $0x780] ss:$8 sps:$4 sm:$0xff]  }
 0x620   : > { %5670 = vmatprep.mubr.bf16.mxu1 %v3802_v18  ;;  %v4059_v31 = vld [vmem:[#allocation11] sm:$0x3]  ;;  %v3799_v18 = vpack.c.bf16 %v7852_v5, %v7852_v5 }
 0x621   : > { %5600 = vmatpush1.bf16.msra.mxu0 %v6473_v46  ;;  %v4064_v46 = vrot.slane %v4059_v31, %v7714_v24 }
 0x622   : > { %5641 = vmatpush1.bf16.msra.mxu1 %v6476_v22  ;;  %5601 = vmatprep.subr.bf16.mxu0 %v6481_v52  ;;  %v3801_v22 = vpack.c.bf16 %v7855_v6, %v7855_v6  ;;  %v4068_v52 = vrot.slane %v4059_v31, %v7717_v37 }
 0x623   : > { %5642 = vmatprep.subr.bf16.mxu1 %v6484_v61 }
 0x625   : > { %5602 = vmatpush1.bf16.msra.mxu0 %v6479_v2 }
 0x626   : > { %5643 = vmatpush1.bf16.msra.mxu1 %v6482_v27  ;;  %5603 = vmatprep.subr.bf16.mxu0 %v6487_v17 }
 0x627   : > { %5644 = vmatprep.subr.bf16.mxu1 %v6490_v30 }
 0x629   : > { %5604 = vmatpush1.bf16.msra.mxu0 %v6485_v32 }
 0x62a   : > { %5645 = vmatpush1.bf16.msra.mxu1 %v6488_v53  ;;  %5605 = vmatprep.subr.bf16.mxu0 %v6493_v56 }
 0x62b   : > { %5646 = vmatprep.subr.bf16.mxu1 %v6496_v26 }
 0x62d   : > { %5606 = vmatpush1.bf16.msra.mxu0 %v6491_v25 }
 0x62e   : > { %5647 = vmatpush1.bf16.msra.mxu1 %v6494_v19  ;;  %5607 = vmatprep.subr.bf16.mxu0 %v6499_v60 }
 0x62f   : > { %5648 = vmatprep.subr.bf16.mxu1 %v6502_v0 }
 0x631   : > { %5608 = vmatpush1.bf16.msra.mxu0 %v6497_v50 }
 0x632   : > { %5649 = vmatpush1.bf16.msra.mxu1 %v6500_v13  ;;  %5609 = vmatprep.subr.bf16.mxu0 %v6505_v29 }
 0x633   : > { %5650 = vmatprep.subr.bf16.mxu1 %v6508_v33 }
 0x635   : > { %5610 = vmatpush1.bf16.msra.mxu0 %v6503_v34 }
 0x636   : > { %5651 = vmatpush1.bf16.msra.mxu1 %v6506_v39  ;;  %5611 = vmatprep.subr.bf16.mxu0 %v6511_v35 }
 0x637   : > { %5652 = vmatprep.subr.bf16.mxu1 %v6514_v28 }
 0x639   : > { %5612 = vmatpush1.bf16.msra.mxu0 %v6509_v36 }
 0x63a   : > { %5653 = vmatpush1.bf16.msra.mxu1 %v6512_v38  ;;  %5613 = vmatprep.subr.bf16.mxu0 %v6517_v42 }
 0x63b   : > { %5654 = vmatprep.subr.bf16.mxu1 %v6520_v9 }
 0x63d   : > { %5614 = vmatpush2.bf16.msra.mxu0 %v6515_v12 }
 0x63e   : > { %5655 = vmatpush2.bf16.msra.mxu1 %v6518_v59  ;;  %5615 = vmatprep.subr.bf16.mxu0 %v6523_v21 }
 0x63f   : > { %5656 = vmatprep.subr.bf16.mxu1 %v6526_v43 }
 0x641   : > { %5616 = vmatpush2.bf16.msra.mxu0 %v6521_v44 }
 0x642   : > { %5657 = vmatpush2.bf16.msra.mxu1 %v6524_v20  ;;  %5617 = vmatprep.subr.bf16.mxu0 %v6529_v45 }
 0x643   : > { %5658 = vmatprep.subr.bf16.mxu1 %v6532_v54 }
 0x645   : > { %5618 = vmatpush2.bf16.msra.mxu0 %v6527_v41 }
 0x646   : > { %5659 = vmatpush2.bf16.msra.mxu1 %v6530_v55  ;;  %5619 = vmatprep.subr.bf16.mxu0 %v6535_v57  ;;  %v5681_v55 = vld [vmem:[#allocation12] sm:$0x3] }
 0x647   : > { %5660 = vmatprep.subr.bf16.mxu1 %v6538_v58 }
 0x649   : > { %5620 = vmatpush2.bf16.msra.mxu0 %v6533_v51 }
 0x64a   : > { %5661 = vmatpush2.bf16.msra.mxu1 %v6536_v62  ;;  %5621 = vmatprep.subr.bf16.mxu0 %v6541_v48 }
 0x64b   : > { %5662 = vmatprep.subr.bf16.mxu1 %v6544_v63 }
 0x64d   : > { %5622 = vmatpush2.bf16.msra.mxu0 %v6539_v1 }
 0x64e   : > { %5663 = vmatpush2.bf16.msra.mxu1 %v6542_v3  ;;  %5623 = vmatprep.subr.bf16.mxu0 %v6547_v7  ;;  %v5686_v3 = vrot.slane %v5681_v55, %v7714_v24 }
 0x64f   : > { %5664 = vmatprep.subr.bf16.mxu1 %v6550_v47 }
 0x651   : > { %5624 = vmatpush2.bf16.msra.mxu0 %v6545_v49 }
 0x652   : > { %5665 = vmatpush2.bf16.msra.mxu1 %v6548_v8  ;;  %5625 = vmatprep.subr.bf16.mxu0 %v6553_v10  ;;  %v5690_v10 = vrot.slane %v5681_v55, %v7717_v37 }
 0x653   : > { %5666 = vmatprep.subr.bf16.mxu1 %v6556_v40 }
 0x655   : > { %5626 = vmatpush2.bf16.msra.mxu0 %v6551_v4 }
 0x656   : > { %5667 = vmatpush2.bf16.msra.mxu1 %v6554_v23  ;;  %5627 = vmatprep.subr.bf16.mxu0 %v6559_v11 }
 0x657   : > { %5668 = vmatprep.subr.bf16.mxu1 %v6562_v14 }
 0x659   : > { %5628 = vmatpush2.bf16.msra.mxu0 %v6557_v15 }
 0x65a   : > { %5669 = vmatpush2.bf16.msra.mxu1 %v6560_v16 }
 0x65c   : > { %v5385_v61 = vpop.f32.mrf.mxu0  ;;  %5630 = vmatmul.mubr.bf16.vlgmr.msra.gmra.mxu0 %v3799_v18  ;;  %v6077_v18 = vld [vmem:[#allocation3] ss:$0 sm:$0xff] }
 0x65d   : > { %v5386_v2 = vadd.f32 %v5385_v61, %v4064_v46  ;;  %v5426_v27 = vpop.f32.mrf.mxu1  ;;  %5671 = vmatmul.mubr.bf16.vlgmr.msra.gmra.mxu1 %v3801_v22 }
 0x65e   : > { %v5387_v17 = vpop.f32.mrf.mxu0 }
 0x65f   : > { %v5427_v30 = vadd.f32 %v5426_v27, %v5386_v2  ;;  %v5388_v32 = vadd.f32 %v5387_v17, %v4068_v52  ;;  %v5428_v53 = vpop.f32.mrf.mxu1 }
 0x660   : > { %v5389_v56 = vpop.f32.mrf.mxu0 }
 0x661   : > { %v5429_v5 = vadd.f32 %v5428_v53, %v5388_v32  ;;  %v5430_v26 = vpop.f32.mrf.mxu1 }
 0x662   : > { %v5390_v25 = vpop.f32.mrf.mxu0 }
 0x663   : > { %v5431_v19 = vpop.f32.mrf.mxu1 }
 0x69c   : > { %v5467_v60 = vpop.f32.mrf.mxu0 }
 0x69d   : > { %v5468_v0 = vadd.f32 %v5467_v60, %v5427_v30  ;;  %v5508_v6 = vpop.f32.mrf.mxu1 }
 0x69e   : > { %v5469_v50 = vpop.f32.mrf.mxu0 }
 0x69f   : > { %v5509_v13 = vadd.f32 %v5508_v6, %v5468_v0  ;;  %v5470_v29 = vadd.f32 %v5469_v50, %v5429_v5  ;;  %v5510_v33 = vpop.f32.mrf.mxu1 }
 0x6a0   : > { %v5471_v34 = vpop.f32.mrf.mxu0 }
 0x6a1   : > { %v5511_v39 = vadd.f32 %v5510_v33, %v5470_v29  ;;  %v5512_v35 = vpop.f32.mrf.mxu1 }
 0x6a2   : > { %v5472_v28 = vpop.f32.mrf.mxu0 }
 0x6a3   : > { %v5513_v36 = vpop.f32.mrf.mxu1 }
 0x6dc   : > { %v5549_v38 = vpop.f32.mrf.mxu0 }
 0x6dd   : > { %v5590_v42 = vpop.f32.mrf.mxu1  ;;  %v5550_v20 = vadd.f32 %v5549_v38, %v5509_v13 }
 0x6de   : > { %v5551_v9 = vpop.f32.mrf.mxu0 }
 0x6df   : > { %v5592_v12 = vpop.f32.mrf.mxu1  ;;  %v5552_v45 = vadd.f32 %v5551_v9, %v5511_v39  ;;  %v5591_v54 = vadd.f32 %v5590_v42, %v5550_v20 }
 0x6e0   : > { %v5553_v59 = vpop.f32.mrf.mxu0 }
 0x6e1   : > { %v5594_v21 = vpop.f32.mrf.mxu1  ;;  %v5593_v57 = vadd.f32 %v5592_v12, %v5552_v45 }
 0x6e2   : > { %v5554_v43 = vpop.f32.mrf.mxu0 }
 0x6e3   : > { %v5595_v44 = vpop.f32.mrf.mxu1 }
 0x71c   : > { %v5631_v41 = vpop.f32.mrf.mxu0 }
 0x71d   : > { %v5632_v58 = vadd.f32 %v5631_v41, %v5591_v54  ;;  %v5672_v51 = vpop.f32.mrf.mxu1 }
 0x71e   : > { %v5633_v62 = vpop.f32.mrf.mxu0 }
 0x71f   : > { %v5673_v48 = vadd.f32 %v5672_v51, %v5632_v58  ;;  %v5634_v63 = vadd.f32 %v5633_v62, %v5593_v57  ;;  %v5674_v1 = vpop.f32.mrf.mxu1 }
 0x720   : > { %v5635_v7 = vpop.f32.mrf.mxu0 }
 0x721   : > { %v5679_v47 = vmax.f32 %v5673_v48, 0.0  ;;  %v5675_v49 = vadd.f32 %v5674_v1, %v5634_v63  ;;  %v5676_v8 = vpop.f32.mrf.mxu1 }
 0x722   : > { %v5636_v40 = vpop.f32.mrf.mxu0 }
 0x723   : > { %v5680_v4 = vmax.f32 %v5675_v49, 0.0  ;;  %v5677_v23 = vpop.f32.mrf.mxu1  ;;  %v5693_v11 = vmul.f32 %v5686_v3, %v5679_v47 }
 0x725   : > { %v5694_v14 = vmul.f32 %v5690_v10, %v5680_v4  ;;  %v5696_v15 = vsel %vm5695_vm0, %v5693_v11, 0.0 }
 0x727   : > { %v5697_v16 = vsel %vm5695_vm0, %v5694_v14, 0.0 }
 0x728   : > { %v5698_v31 = vadd.f32 %v5697_v16, %v5696_v15 }
 0x72a   : > { %5699 = vadd.xlane.f32.xlu0 %v5698_v31 }
 0x7b3   : > { %v5700_v46 = vpop.xlane.xlu0 %5699 }
 0x7b4   : > { %v5708_v24 = vadd.f32 %v6077_v18, %v5700_v46 }
 0x7b6   : > { %5710 = vst.msk [vmem:[%s7897_s8] sm:$0x3] %vm5709_vm1, %v5708_v24 }
 0x7b7 PF: > { %p23_p0 = scmp.ge.s32.totalorder %s6926_s19, 6   ;;  %s7916_s29 = smov %s6759_s30 }
 0x7b8   : > { %s7917_s30 = smov %s6763_s9  ;;  %s7918_s9 = smov %s6937_s28 }
 0x7b9   : > { %s7919_s10 = smov %s6926_s19  ;;  %25 = sbr.rel (!%p23_p0) target bundleno = 9 (0x9), region = 117 }
 0x7be   :  { %5722 = vsyncpa [#allocation5], 1 }
 0x7bf   :  { %5724 = vsyncpa [#allocation5 + $0x1], 1 }
 0x7c0   :  { %5725 = vsyncpa [#allocation7], 1 }
 0x7c1   :  { %5726 = vsyncpa [#allocation10], 1 }
 0x7c2   :  { %5727 = vsyncpa [#allocation13], 1 }

</bundles_post_ra>
